<compile_context>
chip_gen: v7x
topology: tpu7x:2x2x1
jax: 0.10.0
libtpu: 0.0.40
codegen_flags: <defaults>
</compile_context>

<pallas_src>
import jax
import jax.numpy as jnp
from jax.experimental import pallas as pl
from jax.experimental.pallas import tpu as pltpu

EPS = 1e-5
LANES = 128
W_OFF = 8          # sublane-aligned column offset of the conv interior in pad_ref


def residual_block_kernel(x_ref, w1_ref, g1_ref, b1_ref,
                          w2_ref, g2_ref, b2_ref,
                          out_ref, pad_ref):
    N, H, W, Cp = x_ref.shape
    _, Hp, WPAD, _ = pad_ref.shape
    W0 = W_OFF - 1                      # leftmost column read by the dw=0 tap
    rows = N * H * W
    inv_rows = 1.0 / rows

    # One full-buffer memset zeroes every halo cell once (unmasked full-tile
    # stores). The interior is fully overwritten before each conv reads it and
    # the halo is shared by both convs, so this runs exactly once.
    pad_ref[...] = jnp.zeros((N, Hp, WPAD, Cp), jnp.float32)

    def conv3x3(w_ref):
        # 9 accumulating MXU matmuls, one per 3x3 tap. Each tap slices its own
        # shifted window straight out of the padded scratch ref (no full-buffer
        # load, no im2col slab).
        acc = None
        for dh in range(3):
            for dw in range(3):
                win = pad_ref[:, dh:dh + H, W0 + dw:W0 + dw + W, :]
                win = win.reshape(rows, Cp)
                part = jnp.dot(win, w_ref[dh * 3 + dw],
                               preferred_element_type=jnp.float32)
                acc = part if acc is None else acc + part
        return acc                                            # (rows, Cp) f32

    def batchnorm(acc, g_ref, b_ref):
        # Training-mode BN, fused: one reduce pass (sum + sum-of-squares), then
        # a single per-channel scale/shift FMA pass over acc. rsqrt -> EUP slot.
        s1 = jnp.sum(acc, axis=0, keepdims=True)
        s2 = jnp.sum(acc * acc, axis=0, keepdims=True)
        mean = s1 * inv_rows
        var = s2 * inv_rows - mean * mean                     # biased variance
        scale = g_ref[...] * jax.lax.rsqrt(var + EPS)
        shift = b_ref[...] - mean * scale
        return acc * scale + shift

    # ---- conv1 -> BN1 -> ReLU (aligned, unmasked interior store) ----
    pad_ref[:, 1:H + 1, W_OFF:W_OFF + W, :] = x_ref[...]
    y1 = jnp.maximum(batchnorm(conv3x3(w1_ref), g1_ref, b1_ref), 0.0)

    # ---- conv2 -> BN2 (padded scratch reused; halo still zero) ----
    pad_ref[:, 1:H + 1, W_OFF:W_OFF + W, :] = y1.reshape(N, H, W, Cp)
    y2 = batchnorm(conv3x3(w2_ref), g2_ref, b2_ref)

    # ---- identity shortcut + final ReLU (lane-dense store, last dim = Cp) ----
    out = jnp.maximum(y2 + x_ref[...].reshape(rows, Cp), 0.0)
    out_ref[...] = out.reshape(N, H, W, Cp)


def residual_block(x_nchw, w1, gamma1, beta1, w2, gamma2, beta2):
    """x_nchw: (N, Cin, H, W); w1/w2: (Cout, Cin, 3, 3) / (Cout, Cout, 3, 3)."""
    N, Cin, H, W = x_nchw.shape
    Cout = w1.shape[0]
    assert Cin == Cout, "identity shortcut requires in_channel == out_channel"

    # Lane-dense layout: NCHW -> NHWC, channels padded up to a multiple of 128.
    Cp = ((Cout + LANES - 1) // LANES) * LANES
    x = jnp.transpose(x_nchw, (0, 2, 3, 1)).astype(jnp.float32)
    x = jnp.pad(x, ((0, 0), (0, 0), (0, 0), (0, Cp - Cin)))

    # Padded-activation scratch geometry: interior at sublane-aligned column
    # offset W_OFF=8, left halo at col 7, right halo at col 8+W; W dim padded
    # up to a multiple of 8 so rows are whole sublane tiles.
    WPAD = ((W_OFF + W + 1 + 7) // 8) * 8

    def prep_w(w):
        wk = jnp.transpose(w, (2, 3, 1, 0)).astype(jnp.float32)      # (3,3,Cin,Cout)
        wk = jnp.pad(wk, ((0, 0), (0, 0), (0, Cp - Cin), (0, Cp - Cout)))
        return wk.reshape(9, Cp, Cp)                                  # per-tap weights

    def prep_gb(g, b):
        gp = jnp.concatenate([g.astype(jnp.float32).reshape(-1),
                              jnp.ones((Cp - Cout,), jnp.float32)])
        bp = jnp.concatenate([b.astype(jnp.float32).reshape(-1),
                              jnp.zeros((Cp - Cout,), jnp.float32)])
        return gp.reshape(1, Cp), bp.reshape(1, Cp)

    w1_k, w2_k = prep_w(w1), prep_w(w2)
    g1, b1 = prep_gb(gamma1, beta1)
    g2, b2 = prep_gb(gamma2, beta2)

    vmem = pl.BlockSpec(memory_space=pltpu.MemorySpace.VMEM)
    out_nhwc = pl.pallas_call(
        residual_block_kernel,
        out_shape=jax.ShapeDtypeStruct((N, H, W, Cp), jnp.float32),
        in_specs=[vmem] * 7,
        out_specs=vmem,
        scratch_shapes=[
            pltpu.VMEM((N, H + 2, WPAD, Cp), jnp.float32),   # reused padded activation
        ],
        compiler_params=pltpu.CompilerParams(
            # Actual footprint is ~3 MiB; 16 MiB leaves room for compiler scratch
            # while staying well inside v7x's 64 MiB physical VMEM.
            vmem_limit_bytes=16 * 1024 * 1024),
    )(x, w1_k, g1, b1, w2_k, g2, b2)

    out = out_nhwc[..., :Cout]                                # drop padded channels
    return jnp.transpose(out, (0, 3, 1, 2))                   # back to NCHW


def ref_forward(x, w1, g1, b1, w2, g2, b2):
    """Pure-JAX reference mirroring the PyTorch module (training-mode BN)."""
    def conv(x, w):
        return jax.lax.conv_general_dilated(
            x, w, window_strides=(1, 1), padding=((1, 1), (1, 1)),
            dimension_numbers=("NCHW", "OIHW", "NCHW"))

    def bn(x, g, b):
        mean = jnp.mean(x, axis=(0, 2, 3), keepdims=True)
        var = jnp.mean((x - mean) ** 2, axis=(0, 2, 3), keepdims=True)
        return ((x - mean) * jax.lax.rsqrt(var + EPS) * g.reshape(1, -1, 1, 1)
                + b.reshape(1, -1, 1, 1))

    y = jax.nn.relu(bn(conv(x, w1), g1, b1))
    y = bn(conv(y, w2), g2, b2)
    return jax.nn.relu(y + x)


if __name__ == "__main__":
    N, C, H, W = 2, 4, 16, 16   # in_channel == out_channel == 4, stride=1, shortcut=None

    key = jax.random.PRNGKey(0)
    kx, kw1, kw2, kg1, kb1, kg2, kb2 = jax.random.split(key, 7)

    x = jax.random.normal(kx, (N, C, H, W), dtype=jnp.float32)
    w1 = jax.random.normal(kw1, (C, C, 3, 3), dtype=jnp.float32) * 0.1
    w2 = jax.random.normal(kw2, (C, C, 3, 3), dtype=jnp.float32) * 0.1
    gamma1 = 1.0 + 0.1 * jax.random.normal(kg1, (C,), dtype=jnp.float32)
    beta1 = 0.1 * jax.random.normal(kb1, (C,), dtype=jnp.float32)
    gamma2 = 1.0 + 0.1 * jax.random.normal(kg2, (C,), dtype=jnp.float32)
    beta2 = 0.1 * jax.random.normal(kb2, (C,), dtype=jnp.float32)

    out = residual_block(x, w1, gamma1, beta1, w2, gamma2, beta2)
    out = jax.block_until_ready(out)

    ref = jax.block_until_ready(ref_forward(x, w1, gamma1, beta1, w2, gamma2, beta2))
    assert out.shape == (N, C, H, W)
    assert jnp.allclose(out, ref, atol=1e-3, rtol=1e-3), "kernel mismatch vs reference"

    print("KERNEL_OK")
</pallas_src>

<mosaic_0001>
module attributes {stable_mosaic.version = 11 : i64} {
  func.func @residual_block_kernel(%arg0: memref<2x16x16x128xf32, #tpu.memory_space<vmem>>, %arg1: memref<9x128x128xf32, #tpu.memory_space<vmem>>, %arg2: memref<1x128xf32, #tpu.memory_space<vmem>>, %arg3: memref<1x128xf32, #tpu.memory_space<vmem>>, %arg4: memref<9x128x128xf32, #tpu.memory_space<vmem>>, %arg5: memref<1x128xf32, #tpu.memory_space<vmem>>, %arg6: memref<1x128xf32, #tpu.memory_space<vmem>>, %arg7: memref<2x16x16x128xf32, #tpu.memory_space<vmem>>, %arg8: memref<2x18x32x128xf32, #tpu.memory_space<vmem>>) attributes {dimension_semantics = [], scalar_prefetch = 0 : i64, scratch_operands = 1 : i64, tpu.core_type = #tpu.core_type<tc>} {
    %cst = arith.constant 0.000000e+00 : f32
    %0 = vector.broadcast %cst : f32 to vector<2x18x32x128xf32>
    %c0 = arith.constant 0 : index
    %c0_0 = arith.constant 0 : index
    %c0_1 = arith.constant 0 : index
    %c0_2 = arith.constant 0 : index
    %1 = vector.load %arg8[%c0, %c0_0, %c0_1, %c0_2] : memref<2x18x32x128xf32, #tpu.memory_space<vmem>>, vector<2x18x32x128xf32>
    tpu.vector_store %arg8[%c0, %c0_0, %c0_1, %c0_2], %0 {strides = array<i32>} : memref<2x18x32x128xf32, #tpu.memory_space<vmem>>, vector<2x18x32x128xf32>,
    %c0_3 = arith.constant 0 : index
    %c0_4 = arith.constant 0 : index
    %c0_5 = arith.constant 0 : index
    %c0_6 = arith.constant 0 : index
    %2 = vector.load %arg0[%c0_3, %c0_4, %c0_5, %c0_6] : memref<2x16x16x128xf32, #tpu.memory_space<vmem>>, vector<2x16x16x128xf32>
    %c0_7 = arith.constant 0 : index
    %c1 = arith.constant 1 : index
    %c8 = arith.constant 8 : index
    %c0_8 = arith.constant 0 : index
    %3 = vector.load %arg8[%c0_7, %c1, %c8, %c0_8] : memref<2x18x32x128xf32, #tpu.memory_space<vmem>>, vector<2x16x16x128xf32>
    tpu.vector_store %arg8[%c0_7, %c1, %c8, %c0_8], %2 {strides = array<i32>} : memref<2x18x32x128xf32, #tpu.memory_space<vmem>>, vector<2x16x16x128xf32>,
    %c0_9 = arith.constant 0 : index
    %c0_10 = arith.constant 0 : index
    %c7 = arith.constant 7 : index
    %c0_11 = arith.constant 0 : index
    %4 = vector.load %arg8[%c0_9, %c0_10, %c7, %c0_11] : memref<2x18x32x128xf32, #tpu.memory_space<vmem>>, vector<2x16x16x128xf32>
    %5 = vector.shape_cast %4 : vector<2x16x16x128xf32> to vector<512x128xf32>
    %c0_12 = arith.constant 0 : index
    %c0_13 = arith.constant 0 : index
    %c0_14 = arith.constant 0 : index
    %6 = vector.load %arg1[%c0_12, %c0_13, %c0_14] : memref<9x128x128xf32, #tpu.memory_space<vmem>>, vector<1x128x128xf32>
    %7 = vector.shape_cast %6 : vector<1x128x128xf32> to vector<128x128xf32>
    %cst_15 = arith.constant dense<0.000000e+00> : vector<512x128xf32>
    %8 = tpu.matmul %5, %7, %cst_15 {dimension_numbers = #tpu.dot_dimension_numbers<[1], [0], [0], [1], [0, 0, 1, 1], [], []>} : vector<512x128xf32>, vector<128x128xf32>, vector<512x128xf32> -> vector<512x128xf32>
    %c0_16 = arith.constant 0 : index
    %c0_17 = arith.constant 0 : index
    %c8_18 = arith.constant 8 : index
    %c0_19 = arith.constant 0 : index
    %9 = vector.load %arg8[%c0_16, %c0_17, %c8_18, %c0_19] : memref<2x18x32x128xf32, #tpu.memory_space<vmem>>, vector<2x16x16x128xf32>
    %10 = vector.shape_cast %9 : vector<2x16x16x128xf32> to vector<512x128xf32>
    %c1_20 = arith.constant 1 : index
    %c0_21 = arith.constant 0 : index
    %c0_22 = arith.constant 0 : index
    %11 = vector.load %arg1[%c1_20, %c0_21, %c0_22] : memref<9x128x128xf32, #tpu.memory_space<vmem>>, vector<1x128x128xf32>
    %12 = vector.shape_cast %11 : vector<1x128x128xf32> to vector<128x128xf32>
    %cst_23 = arith.constant dense<0.000000e+00> : vector<512x128xf32>
    %13 = tpu.matmul %10, %12, %cst_23 {dimension_numbers = #tpu.dot_dimension_numbers<[1], [0], [0], [1], [0, 0, 1, 1], [], []>} : vector<512x128xf32>, vector<128x128xf32>, vector<512x128xf32> -> vector<512x128xf32>
    %14 = arith.addf %8, %13 : vector<512x128xf32>
    %c0_24 = arith.constant 0 : index
    %c0_25 = arith.constant 0 : index
    %c9 = arith.constant 9 : index
    %c0_26 = arith.constant 0 : index
    %15 = vector.load %arg8[%c0_24, %c0_25, %c9, %c0_26] : memref<2x18x32x128xf32, #tpu.memory_space<vmem>>, vector<2x16x16x128xf32>
    %16 = vector.shape_cast %15 : vector<2x16x16x128xf32> to vector<512x128xf32>
    %c2 = arith.constant 2 : index
    %c0_27 = arith.constant 0 : index
    %c0_28 = arith.constant 0 : index
    %17 = vector.load %arg1[%c2, %c0_27, %c0_28] : memref<9x128x128xf32, #tpu.memory_space<vmem>>, vector<1x128x128xf32>
    %18 = vector.shape_cast %17 : vector<1x128x128xf32> to vector<128x128xf32>
    %cst_29 = arith.constant dense<0.000000e+00> : vector<512x128xf32>
    %19 = tpu.matmul %16, %18, %cst_29 {dimension_numbers = #tpu.dot_dimension_numbers<[1], [0], [0], [1], [0, 0, 1, 1], [], []>} : vector<512x128xf32>, vector<128x128xf32>, vector<512x128xf32> -> vector<512x128xf32>
    %20 = arith.addf %14, %19 : vector<512x128xf32>
    %c0_30 = arith.constant 0 : index
    %c1_31 = arith.constant 1 : index
    %c7_32 = arith.constant 7 : index
    %c0_33 = arith.constant 0 : index
    %21 = vector.load %arg8[%c0_30, %c1_31, %c7_32, %c0_33] : memref<2x18x32x128xf32, #tpu.memory_space<vmem>>, vector<2x16x16x128xf32>
    %22 = vector.shape_cast %21 : vector<2x16x16x128xf32> to vector<512x128xf32>
    %c3 = arith.constant 3 : index
    %c0_34 = arith.constant 0 : index
    %c0_35 = arith.constant 0 : index
    %23 = vector.load %arg1[%c3, %c0_34, %c0_35] : memref<9x128x128xf32, #tpu.memory_space<vmem>>, vector<1x128x128xf32>
    %24 = vector.shape_cast %23 : vector<1x128x128xf32> to vector<128x128xf32>
    %cst_36 = arith.constant dense<0.000000e+00> : vector<512x128xf32>
    %25 = tpu.matmul %22, %24, %cst_36 {dimension_numbers = #tpu.dot_dimension_numbers<[1], [0], [0], [1], [0, 0, 1, 1], [], []>} : vector<512x128xf32>, vector<128x128xf32>, vector<512x128xf32> -> vector<512x128xf32>
    %26 = arith.addf %20, %25 : vector<512x128xf32>
    %c0_37 = arith.constant 0 : index
    %c1_38 = arith.constant 1 : index
    %c8_39 = arith.constant 8 : index
    %c0_40 = arith.constant 0 : index
    %27 = vector.load %arg8[%c0_37, %c1_38, %c8_39, %c0_40] : memref<2x18x32x128xf32, #tpu.memory_space<vmem>>, vector<2x16x16x128xf32>
    %28 = vector.shape_cast %27 : vector<2x16x16x128xf32> to vector<512x128xf32>
    %c4 = arith.constant 4 : index
    %c0_41 = arith.constant 0 : index
    %c0_42 = arith.constant 0 : index
    %29 = vector.load %arg1[%c4, %c0_41, %c0_42] : memref<9x128x128xf32, #tpu.memory_space<vmem>>, vector<1x128x128xf32>
    %30 = vector.shape_cast %29 : vector<1x128x128xf32> to vector<128x128xf32>
    %cst_43 = arith.constant dense<0.000000e+00> : vector<512x128xf32>
    %31 = tpu.matmul %28, %30, %cst_43 {dimension_numbers = #tpu.dot_dimension_numbers<[1], [0], [0], [1], [0, 0, 1, 1], [], []>} : vector<512x128xf32>, vector<128x128xf32>, vector<512x128xf32> -> vector<512x128xf32>
    %32 = arith.addf %26, %31 : vector<512x128xf32>
    %c0_44 = arith.constant 0 : index
    %c1_45 = arith.constant 1 : index
    %c9_46 = arith.constant 9 : index
    %c0_47 = arith.constant 0 : index
    %33 = vector.load %arg8[%c0_44, %c1_45, %c9_46, %c0_47] : memref<2x18x32x128xf32, #tpu.memory_space<vmem>>, vector<2x16x16x128xf32>
    %34 = vector.shape_cast %33 : vector<2x16x16x128xf32> to vector<512x128xf32>
    %c5 = arith.constant 5 : index
    %c0_48 = arith.constant 0 : index
    %c0_49 = arith.constant 0 : index
    %35 = vector.load %arg1[%c5, %c0_48, %c0_49] : memref<9x128x128xf32, #tpu.memory_space<vmem>>, vector<1x128x128xf32>
    %36 = vector.shape_cast %35 : vector<1x128x128xf32> to vector<128x128xf32>
    %cst_50 = arith.constant dense<0.000000e+00> : vector<512x128xf32>
    %37 = tpu.matmul %34, %36, %cst_50 {dimension_numbers = #tpu.dot_dimension_numbers<[1], [0], [0], [1], [0, 0, 1, 1], [], []>} : vector<512x128xf32>, vector<128x128xf32>, vector<512x128xf32> -> vector<512x128xf32>
    %38 = arith.addf %32, %37 : vector<512x128xf32>
    %c0_51 = arith.constant 0 : index
    %c2_52 = arith.constant 2 : index
    %c7_53 = arith.constant 7 : index
    %c0_54 = arith.constant 0 : index
    %39 = vector.load %arg8[%c0_51, %c2_52, %c7_53, %c0_54] : memref<2x18x32x128xf32, #tpu.memory_space<vmem>>, vector<2x16x16x128xf32>
    %40 = vector.shape_cast %39 : vector<2x16x16x128xf32> to vector<512x128xf32>
    %c6 = arith.constant 6 : index
    %c0_55 = arith.constant 0 : index
    %c0_56 = arith.constant 0 : index
    %41 = vector.load %arg1[%c6, %c0_55, %c0_56] : memref<9x128x128xf32, #tpu.memory_space<vmem>>, vector<1x128x128xf32>
    %42 = vector.shape_cast %41 : vector<1x128x128xf32> to vector<128x128xf32>
    %cst_57 = arith.constant dense<0.000000e+00> : vector<512x128xf32>
    %43 = tpu.matmul %40, %42, %cst_57 {dimension_numbers = #tpu.dot_dimension_numbers<[1], [0], [0], [1], [0, 0, 1, 1], [], []>} : vector<512x128xf32>, vector<128x128xf32>, vector<512x128xf32> -> vector<512x128xf32>
    %44 = arith.addf %38, %43 : vector<512x128xf32>
    %c0_58 = arith.constant 0 : index
    %c2_59 = arith.constant 2 : index
    %c8_60 = arith.constant 8 : index
    %c0_61 = arith.constant 0 : index
    %45 = vector.load %arg8[%c0_58, %c2_59, %c8_60, %c0_61] : memref<2x18x32x128xf32, #tpu.memory_space<vmem>>, vector<2x16x16x128xf32>
    %46 = vector.shape_cast %45 : vector<2x16x16x128xf32> to vector<512x128xf32>
    %c7_62 = arith.constant 7 : index
    %c0_63 = arith.constant 0 : index
    %c0_64 = arith.constant 0 : index
    %47 = vector.load %arg1[%c7_62, %c0_63, %c0_64] : memref<9x128x128xf32, #tpu.memory_space<vmem>>, vector<1x128x128xf32>
    %48 = vector.shape_cast %47 : vector<1x128x128xf32> to vector<128x128xf32>
    %cst_65 = arith.constant dense<0.000000e+00> : vector<512x128xf32>
    %49 = tpu.matmul %46, %48, %cst_65 {dimension_numbers = #tpu.dot_dimension_numbers<[1], [0], [0], [1], [0, 0, 1, 1], [], []>} : vector<512x128xf32>, vector<128x128xf32>, vector<512x128xf32> -> vector<512x128xf32>
    %50 = arith.addf %44, %49 : vector<512x128xf32>
    %c0_66 = arith.constant 0 : index
    %c2_67 = arith.constant 2 : index
    %c9_68 = arith.constant 9 : index
    %c0_69 = arith.constant 0 : index
    %51 = vector.load %arg8[%c0_66, %c2_67, %c9_68, %c0_69] : memref<2x18x32x128xf32, #tpu.memory_space<vmem>>, vector<2x16x16x128xf32>
    %52 = vector.shape_cast %51 : vector<2x16x16x128xf32> to vector<512x128xf32>
    %c8_70 = arith.constant 8 : index
    %c0_71 = arith.constant 0 : index
    %c0_72 = arith.constant 0 : index
    %53 = vector.load %arg1[%c8_70, %c0_71, %c0_72] : memref<9x128x128xf32, #tpu.memory_space<vmem>>, vector<1x128x128xf32>
    %54 = vector.shape_cast %53 : vector<1x128x128xf32> to vector<128x128xf32>
    %cst_73 = arith.constant dense<0.000000e+00> : vector<512x128xf32>
    %55 = tpu.matmul %52, %54, %cst_73 {dimension_numbers = #tpu.dot_dimension_numbers<[1], [0], [0], [1], [0, 0, 1, 1], [], []>} : vector<512x128xf32>, vector<128x128xf32>, vector<512x128xf32> -> vector<512x128xf32>
    %56 = arith.addf %50, %55 : vector<512x128xf32>
    %cst_74 = arith.constant dense<0.000000e+00> : vector<128xf32>
    %57 = vector.multi_reduction <add>, %56, %cst_74 [0] : vector<512x128xf32> to vector<128xf32>
    %58 = vector.shape_cast %57 : vector<128xf32> to vector<1x128xf32>
    %59 = arith.mulf %56, %56 : vector<512x128xf32>
    %cst_75 = arith.constant dense<0.000000e+00> : vector<128xf32>
    %60 = vector.multi_reduction <add>, %59, %cst_75 [0] : vector<512x128xf32> to vector<128xf32>
    %61 = vector.shape_cast %60 : vector<128xf32> to vector<1x128xf32>
    %cst_76 = arith.constant 0.001953125 : f32
    %62 = vector.broadcast %cst_76 : f32 to vector<1x128xf32>
    %63 = arith.mulf %58, %62 : vector<1x128xf32>
    %cst_77 = arith.constant 0.001953125 : f32
    %64 = vector.broadcast %cst_77 : f32 to vector<1x128xf32>
    %65 = arith.mulf %61, %64 : vector<1x128xf32>
    %66 = arith.mulf %63, %63 : vector<1x128xf32>
    %67 = arith.subf %65, %66 : vector<1x128xf32>
    %c0_78 = arith.constant 0 : index
    %c0_79 = arith.constant 0 : index
    %68 = vector.load %arg2[%c0_78, %c0_79] : memref<1x128xf32, #tpu.memory_space<vmem>>, vector<1x128xf32>
    %cst_80 = arith.constant 9.99999974E-6 : f32
    %69 = vector.broadcast %cst_80 : f32 to vector<1x128xf32>
    %70 = arith.addf %67, %69 : vector<1x128xf32>
    %71 = math.rsqrt %70 : vector<1x128xf32>
    %72 = arith.mulf %68, %71 : vector<1x128xf32>
    %c0_81 = arith.constant 0 : index
    %c0_82 = arith.constant 0 : index
    %73 = vector.load %arg3[%c0_81, %c0_82] : memref<1x128xf32, #tpu.memory_space<vmem>>, vector<1x128xf32>
    %74 = arith.mulf %63, %72 : vector<1x128xf32>
    %75 = arith.subf %73, %74 : vector<1x128xf32>
    %76 = vector.broadcast %72 : vector<1x128xf32> to vector<512x128xf32>
    %77 = arith.mulf %56, %76 : vector<512x128xf32>
    %78 = vector.broadcast %75 : vector<1x128xf32> to vector<512x128xf32>
    %79 = arith.addf %77, %78 : vector<512x128xf32>
    %cst_83 = arith.constant 0.000000e+00 : f32
    %80 = vector.broadcast %cst_83 : f32 to vector<512x128xf32>
    %81 = arith.maximumf %79, %80 : vector<512x128xf32>
    %82 = vector.shape_cast %81 : vector<512x128xf32> to vector<2x16x16x128xf32>
    %c0_84 = arith.constant 0 : index
    %c1_85 = arith.constant 1 : index
    %c8_86 = arith.constant 8 : index
    %c0_87 = arith.constant 0 : index
    %83 = vector.load %arg8[%c0_84, %c1_85, %c8_86, %c0_87] : memref<2x18x32x128xf32, #tpu.memory_space<vmem>>, vector<2x16x16x128xf32>
    tpu.vector_store %arg8[%c0_84, %c1_85, %c8_86, %c0_87], %82 {strides = array<i32>} : memref<2x18x32x128xf32, #tpu.memory_space<vmem>>, vector<2x16x16x128xf32>,
    %c0_88 = arith.constant 0 : index
    %c0_89 = arith.constant 0 : index
    %c7_90 = arith.constant 7 : index
    %c0_91 = arith.constant 0 : index
    %84 = vector.load %arg8[%c0_88, %c0_89, %c7_90, %c0_91] : memref<2x18x32x128xf32, #tpu.memory_space<vmem>>, vector<2x16x16x128xf32>
    %85 = vector.shape_cast %84 : vector<2x16x16x128xf32> to vector<512x128xf32>
    %c0_92 = arith.constant 0 : index
    %c0_93 = arith.constant 0 : index
    %c0_94 = arith.constant 0 : index
    %86 = vector.load %arg4[%c0_92, %c0_93, %c0_94] : memref<9x128x128xf32, #tpu.memory_space<vmem>>, vector<1x128x128xf32>
    %87 = vector.shape_cast %86 : vector<1x128x128xf32> to vector<128x128xf32>
    %cst_95 = arith.constant dense<0.000000e+00> : vector<512x128xf32>
    %88 = tpu.matmul %85, %87, %cst_95 {dimension_numbers = #tpu.dot_dimension_numbers<[1], [0], [0], [1], [0, 0, 1, 1], [], []>} : vector<512x128xf32>, vector<128x128xf32>, vector<512x128xf32> -> vector<512x128xf32>
    %c0_96 = arith.constant 0 : index
    %c0_97 = arith.constant 0 : index
    %c8_98 = arith.constant 8 : index
    %c0_99 = arith.constant 0 : index
    %89 = vector.load %arg8[%c0_96, %c0_97, %c8_98, %c0_99] : memref<2x18x32x128xf32, #tpu.memory_space<vmem>>, vector<2x16x16x128xf32>
    %90 = vector.shape_cast %89 : vector<2x16x16x128xf32> to vector<512x128xf32>
    %c1_100 = arith.constant 1 : index
    %c0_101 = arith.constant 0 : index
    %c0_102 = arith.constant 0 : index
    %91 = vector.load %arg4[%c1_100, %c0_101, %c0_102] : memref<9x128x128xf32, #tpu.memory_space<vmem>>, vector<1x128x128xf32>
    %92 = vector.shape_cast %91 : vector<1x128x128xf32> to vector<128x128xf32>
    %cst_103 = arith.constant dense<0.000000e+00> : vector<512x128xf32>
    %93 = tpu.matmul %90, %92, %cst_103 {dimension_numbers = #tpu.dot_dimension_numbers<[1], [0], [0], [1], [0, 0, 1, 1], [], []>} : vector<512x128xf32>, vector<128x128xf32>, vector<512x128xf32> -> vector<512x128xf32>
    %94 = arith.addf %88, %93 : vector<512x128xf32>
    %c0_104 = arith.constant 0 : index
    %c0_105 = arith.constant 0 : index
    %c9_106 = arith.constant 9 : index
    %c0_107 = arith.constant 0 : index
    %95 = vector.load %arg8[%c0_104, %c0_105, %c9_106, %c0_107] : memref<2x18x32x128xf32, #tpu.memory_space<vmem>>, vector<2x16x16x128xf32>
    %96 = vector.shape_cast %95 : vector<2x16x16x128xf32> to vector<512x128xf32>
    %c2_108 = arith.constant 2 : index
    %c0_109 = arith.constant 0 : index
    %c0_110 = arith.constant 0 : index
    %97 = vector.load %arg4[%c2_108, %c0_109, %c0_110] : memref<9x128x128xf32, #tpu.memory_space<vmem>>, vector<1x128x128xf32>
    %98 = vector.shape_cast %97 : vector<1x128x128xf32> to vector<128x128xf32>
    %cst_111 = arith.constant dense<0.000000e+00> : vector<512x128xf32>
    %99 = tpu.matmul %96, %98, %cst_111 {dimension_numbers = #tpu.dot_dimension_numbers<[1], [0], [0], [1], [0, 0, 1, 1], [], []>} : vector<512x128xf32>, vector<128x128xf32>, vector<512x128xf32> -> vector<512x128xf32>
    %100 = arith.addf %94, %99 : vector<512x128xf32>
    %c0_112 = arith.constant 0 : index
    %c1_113 = arith.constant 1 : index
    %c7_114 = arith.constant 7 : index
    %c0_115 = arith.constant 0 : index
    %101 = vector.load %arg8[%c0_112, %c1_113, %c7_114, %c0_115] : memref<2x18x32x128xf32, #tpu.memory_space<vmem>>, vector<2x16x16x128xf32>
    %102 = vector.shape_cast %101 : vector<2x16x16x128xf32> to vector<512x128xf32>
    %c3_116 = arith.constant 3 : index
    %c0_117 = arith.constant 0 : index
    %c0_118 = arith.constant 0 : index
    %103 = vector.load %arg4[%c3_116, %c0_117, %c0_118] : memref<9x128x128xf32, #tpu.memory_space<vmem>>, vector<1x128x128xf32>
    %104 = vector.shape_cast %103 : vector<1x128x128xf32> to vector<128x128xf32>
    %cst_119 = arith.constant dense<0.000000e+00> : vector<512x128xf32>
    %105 = tpu.matmul %102, %104, %cst_119 {dimension_numbers = #tpu.dot_dimension_numbers<[1], [0], [0], [1], [0, 0, 1, 1], [], []>} : vector<512x128xf32>, vector<128x128xf32>, vector<512x128xf32> -> vector<512x128xf32>
    %106 = arith.addf %100, %105 : vector<512x128xf32>
    %c0_120 = arith.constant 0 : index
    %c1_121 = arith.constant 1 : index
    %c8_122 = arith.constant 8 : index
    %c0_123 = arith.constant 0 : index
    %107 = vector.load %arg8[%c0_120, %c1_121, %c8_122, %c0_123] : memref<2x18x32x128xf32, #tpu.memory_space<vmem>>, vector<2x16x16x128xf32>
    %108 = vector.shape_cast %107 : vector<2x16x16x128xf32> to vector<512x128xf32>
    %c4_124 = arith.constant 4 : index
    %c0_125 = arith.constant 0 : index
    %c0_126 = arith.constant 0 : index
    %109 = vector.load %arg4[%c4_124, %c0_125, %c0_126] : memref<9x128x128xf32, #tpu.memory_space<vmem>>, vector<1x128x128xf32>
    %110 = vector.shape_cast %109 : vector<1x128x128xf32> to vector<128x128xf32>
    %cst_127 = arith.constant dense<0.000000e+00> : vector<512x128xf32>
    %111 = tpu.matmul %108, %110, %cst_127 {dimension_numbers = #tpu.dot_dimension_numbers<[1], [0], [0], [1], [0, 0, 1, 1], [], []>} : vector<512x128xf32>, vector<128x128xf32>, vector<512x128xf32> -> vector<512x128xf32>
    %112 = arith.addf %106, %111 : vector<512x128xf32>
    %c0_128 = arith.constant 0 : index
    %c1_129 = arith.constant 1 : index
    %c9_130 = arith.constant 9 : index
    %c0_131 = arith.constant 0 : index
    %113 = vector.load %arg8[%c0_128, %c1_129, %c9_130, %c0_131] : memref<2x18x32x128xf32, #tpu.memory_space<vmem>>, vector<2x16x16x128xf32>
    %114 = vector.shape_cast %113 : vector<2x16x16x128xf32> to vector<512x128xf32>
    %c5_132 = arith.constant 5 : index
    %c0_133 = arith.constant 0 : index
    %c0_134 = arith.constant 0 : index
    %115 = vector.load %arg4[%c5_132, %c0_133, %c0_134] : memref<9x128x128xf32, #tpu.memory_space<vmem>>, vector<1x128x128xf32>
    %116 = vector.shape_cast %115 : vector<1x128x128xf32> to vector<128x128xf32>
    %cst_135 = arith.constant dense<0.000000e+00> : vector<512x128xf32>
    %117 = tpu.matmul %114, %116, %cst_135 {dimension_numbers = #tpu.dot_dimension_numbers<[1], [0], [0], [1], [0, 0, 1, 1], [], []>} : vector<512x128xf32>, vector<128x128xf32>, vector<512x128xf32> -> vector<512x128xf32>
    %118 = arith.addf %112, %117 : vector<512x128xf32>
    %c0_136 = arith.constant 0 : index
    %c2_137 = arith.constant 2 : index
    %c7_138 = arith.constant 7 : index
    %c0_139 = arith.constant 0 : index
    %119 = vector.load %arg8[%c0_136, %c2_137, %c7_138, %c0_139] : memref<2x18x32x128xf32, #tpu.memory_space<vmem>>, vector<2x16x16x128xf32>
    %120 = vector.shape_cast %119 : vector<2x16x16x128xf32> to vector<512x128xf32>
    %c6_140 = arith.constant 6 : index
    %c0_141 = arith.constant 0 : index
    %c0_142 = arith.constant 0 : index
    %121 = vector.load %arg4[%c6_140, %c0_141, %c0_142] : memref<9x128x128xf32, #tpu.memory_space<vmem>>, vector<1x128x128xf32>
    %122 = vector.shape_cast %121 : vector<1x128x128xf32> to vector<128x128xf32>
    %cst_143 = arith.constant dense<0.000000e+00> : vector<512x128xf32>
    %123 = tpu.matmul %120, %122, %cst_143 {dimension_numbers = #tpu.dot_dimension_numbers<[1], [0], [0], [1], [0, 0, 1, 1], [], []>} : vector<512x128xf32>, vector<128x128xf32>, vector<512x128xf32> -> vector<512x128xf32>
    %124 = arith.addf %118, %123 : vector<512x128xf32>
    %c0_144 = arith.constant 0 : index
    %c2_145 = arith.constant 2 : index
    %c8_146 = arith.constant 8 : index
    %c0_147 = arith.constant 0 : index
    %125 = vector.load %arg8[%c0_144, %c2_145, %c8_146, %c0_147] : memref<2x18x32x128xf32, #tpu.memory_space<vmem>>, vector<2x16x16x128xf32>
    %126 = vector.shape_cast %125 : vector<2x16x16x128xf32> to vector<512x128xf32>
    %c7_148 = arith.constant 7 : index
    %c0_149 = arith.constant 0 : index
    %c0_150 = arith.constant 0 : index
    %127 = vector.load %arg4[%c7_148, %c0_149, %c0_150] : memref<9x128x128xf32, #tpu.memory_space<vmem>>, vector<1x128x128xf32>
    %128 = vector.shape_cast %127 : vector<1x128x128xf32> to vector<128x128xf32>
    %cst_151 = arith.constant dense<0.000000e+00> : vector<512x128xf32>
    %129 = tpu.matmul %126, %128, %cst_151 {dimension_numbers = #tpu.dot_dimension_numbers<[1], [0], [0], [1], [0, 0, 1, 1], [], []>} : vector<512x128xf32>, vector<128x128xf32>, vector<512x128xf32> -> vector<512x128xf32>
    %130 = arith.addf %124, %129 : vector<512x128xf32>
    %c0_152 = arith.constant 0 : index
    %c2_153 = arith.constant 2 : index
    %c9_154 = arith.constant 9 : index
    %c0_155 = arith.constant 0 : index
    %131 = vector.load %arg8[%c0_152, %c2_153, %c9_154, %c0_155] : memref<2x18x32x128xf32, #tpu.memory_space<vmem>>, vector<2x16x16x128xf32>
    %132 = vector.shape_cast %131 : vector<2x16x16x128xf32> to vector<512x128xf32>
    %c8_156 = arith.constant 8 : index
    %c0_157 = arith.constant 0 : index
    %c0_158 = arith.constant 0 : index
    %133 = vector.load %arg4[%c8_156, %c0_157, %c0_158] : memref<9x128x128xf32, #tpu.memory_space<vmem>>, vector<1x128x128xf32>
    %134 = vector.shape_cast %133 : vector<1x128x128xf32> to vector<128x128xf32>
    %cst_159 = arith.constant dense<0.000000e+00> : vector<512x128xf32>
    %135 = tpu.matmul %132, %134, %cst_159 {dimension_numbers = #tpu.dot_dimension_numbers<[1], [0], [0], [1], [0, 0, 1, 1], [], []>} : vector<512x128xf32>, vector<128x128xf32>, vector<512x128xf32> -> vector<512x128xf32>
    %136 = arith.addf %130, %135 : vector<512x128xf32>
    %cst_160 = arith.constant dense<0.000000e+00> : vector<128xf32>
    %137 = vector.multi_reduction <add>, %136, %cst_160 [0] : vector<512x128xf32> to vector<128xf32>
    %138 = vector.shape_cast %137 : vector<128xf32> to vector<1x128xf32>
    %139 = arith.mulf %136, %136 : vector<512x128xf32>
    %cst_161 = arith.constant dense<0.000000e+00> : vector<128xf32>
    %140 = vector.multi_reduction <add>, %139, %cst_161 [0] : vector<512x128xf32> to vector<128xf32>
    %141 = vector.shape_cast %140 : vector<128xf32> to vector<1x128xf32>
    %cst_162 = arith.constant 0.001953125 : f32
    %142 = vector.broadcast %cst_162 : f32 to vector<1x128xf32>
    %143 = arith.mulf %138, %142 : vector<1x128xf32>
    %cst_163 = arith.constant 0.001953125 : f32
    %144 = vector.broadcast %cst_163 : f32 to vector<1x128xf32>
    %145 = arith.mulf %141, %144 : vector<1x128xf32>
    %146 = arith.mulf %143, %143 : vector<1x128xf32>
    %147 = arith.subf %145, %146 : vector<1x128xf32>
    %c0_164 = arith.constant 0 : index
    %c0_165 = arith.constant 0 : index
    %148 = vector.load %arg5[%c0_164, %c0_165] : memref<1x128xf32, #tpu.memory_space<vmem>>, vector<1x128xf32>
    %cst_166 = arith.constant 9.99999974E-6 : f32
    %149 = vector.broadcast %cst_166 : f32 to vector<1x128xf32>
    %150 = arith.addf %147, %149 : vector<1x128xf32>
    %151 = math.rsqrt %150 : vector<1x128xf32>
    %152 = arith.mulf %148, %151 : vector<1x128xf32>
    %c0_167 = arith.constant 0 : index
    %c0_168 = arith.constant 0 : index
    %153 = vector.load %arg6[%c0_167, %c0_168] : memref<1x128xf32, #tpu.memory_space<vmem>>, vector<1x128xf32>
    %154 = arith.mulf %143, %152 : vector<1x128xf32>
    %155 = arith.subf %153, %154 : vector<1x128xf32>
    %156 = vector.broadcast %152 : vector<1x128xf32> to vector<512x128xf32>
    %157 = arith.mulf %136, %156 : vector<512x128xf32>
    %158 = vector.broadcast %155 : vector<1x128xf32> to vector<512x128xf32>
    %159 = arith.addf %157, %158 : vector<512x128xf32>
    %c0_169 = arith.constant 0 : index
    %c0_170 = arith.constant 0 : index
    %c0_171 = arith.constant 0 : index
    %c0_172 = arith.constant 0 : index
    %160 = vector.load %arg0[%c0_169, %c0_170, %c0_171, %c0_172] : memref<2x16x16x128xf32, #tpu.memory_space<vmem>>, vector<2x16x16x128xf32>
    %161 = vector.shape_cast %160 : vector<2x16x16x128xf32> to vector<512x128xf32>
    %162 = arith.addf %159, %161 : vector<512x128xf32>
    %cst_173 = arith.constant 0.000000e+00 : f32
    %163 = vector.broadcast %cst_173 : f32 to vector<512x128xf32>
    %164 = arith.maximumf %162, %163 : vector<512x128xf32>
    %165 = vector.shape_cast %164 : vector<512x128xf32> to vector<2x16x16x128xf32>
    %c0_174 = arith.constant 0 : index
    %c0_175 = arith.constant 0 : index
    %c0_176 = arith.constant 0 : index
    %c0_177 = arith.constant 0 : index
    %166 = vector.load %arg7[%c0_174, %c0_175, %c0_176, %c0_177] : memref<2x16x16x128xf32, #tpu.memory_space<vmem>>, vector<2x16x16x128xf32>
    tpu.vector_store %arg7[%c0_174, %c0_175, %c0_176, %c0_177], %165 {strides = array<i32>} : memref<2x16x16x128xf32, #tpu.memory_space<vmem>>, vector<2x16x16x128xf32>,
    return
  }
}

</mosaic_0001>

<bundles_post_ra>
// kernel: tpu_custom_call.1
= control target key start
LH: loop header
LB: loop body
LE: loop exit
PB: predicated region body
PF: predicated region fallthrough
CT: control target
= control target key end

     0   :  { %12 = vsyncpa [#allocation4], 0  ;;  %s20389_s0 = inlined_call_operand.hbm [shape: f32[2,16,16,128], index: 0, kind: input, shape index: {}]   ;;  %s20390_s1 = inlined_call_operand.hbm [shape: f32[9,128,128], index: 1, kind: input, shape index: {}]   ;;  %s20391_s2 = inlined_call_operand.vmem [shape: f32[1,128], index: 2, kind: input, shape index: {}]   ;;  %s20392_s3 = inlined_call_operand.vmem [shape: f32[1,128], index: 3, kind: input, shape index: {}]   ;;  %s20393_s4 = inlined_call_operand.hbm [shape: f32[9,128,128], index: 4, kind: input, shape index: {}]   ;;  %s20394_s5 = inlined_call_operand.vmem [shape: f32[1,128], index: 5, kind: input, shape index: {}]   ;;  %s20395_s6 = inlined_call_operand.vmem [shape: f32[1,128], index: 6, kind: input, shape index: {}]   ;;  %s20396_s7 = inlined_call_operand.hbm [shape: f32[2,16,16,128], index: 7, kind: output, shape index: {}]  }
   0x1   :  { %13 = vsyncpa [#allocation7], 0 }
   0x2   :  { %14 = vsyncpa [#allocation5], 0  ;;  %s16184_s24 = smov [#allocation6]   ;;  %s16185_s26 = smov [#allocation3]  }
   0x3   :  { %s32_s25 = sshll.u32 %s16184_s24, 4  ;;  %s20_s27 = sshll.u32 %s16185_s26, 4  ;;  %s33_s25 = int_to_ptr.vmem [resolvable:$true] %s32_s25  ;;  %s16231_s27 = int_to_ptr.vmem [resolvable:$true] %s20_s27 }
   0x4   :  { %s16090_s30 = scalar_lea.hbm %s20390_s1, 18432 }
   0x5   :  { %p16091_p0 = scmp.ne.s32.totalorder %s20390_s1, %s16090_s30  ;;  %p16094_p1 = scmp.lt.u32.totalorder %s16090_s30, %s20390_s1 }
   0x7   :  { %p16096_p2 = pnand %p16094_p1, %p16091_p0 }
   0x9   :  { %16099 = shalt.err (!%p16096_p2)
}
   0xa   :  { %s16100_s12 = scalar_lea.vmem %s33_s25, 18432  ;;  %p16105_p4 = scmp.lt.s32.totalorder %s33_s25, %s33_s25 }
   0xb   :  { %p16101_p3 = scmp.ne.s32.totalorder %s33_s25, %s16100_s12  ;;  %p16106_p5 = scmp.lt.s32.totalorder %s16100_s12, %s16100_s12 }
   0xd   :  { %p16107_p6 = por %p16106_p5, %p16105_p4 }
   0xf   :  { %p16108_p7 = pnand %p16107_p6, %p16101_p3 }
  0x11   :  { %16111 = shalt.err (!%p16108_p7)
}
  0x12   :  { %s16186_s13 = smov 128   ;;  %s16187_s14 = smov 8  }
  0x13   :  { %38 = dma.hbm_to_vmem [thread:$0]  %s20390_s1, 18432, %s33_s25, [#allocation7], %s16186_s13, %s16186_s13, %s16187_s14  }
  0x14   :  { %s16112_s19 = scalar_lea.hbm %s20389_s0, 8192 }
  0x15   :  { %p16113_p8 = scmp.ne.s32.totalorder %s20389_s0, %s16112_s19  ;;  %p16116_p9 = scmp.lt.u32.totalorder %s16112_s19, %s20389_s0 }
  0x17   :  { %p16118_p10 = pnand %p16116_p9, %p16113_p8 }
  0x19   :  { %16121 = shalt.err (!%p16118_p10)
}
  0x1a   :  { %s16122_s24 = scalar_lea.vmem %s16231_s27, 8192  ;;  %p16127_p12 = scmp.lt.s32.totalorder %s16231_s27, %s16231_s27 }
  0x1b   :  { %p16123_p11 = scmp.ne.s32.totalorder %s16231_s27, %s16122_s24  ;;  %p16128_p13 = scmp.lt.s32.totalorder %s16122_s24, %s16122_s24 }
  0x1d   :  { %p16129_p0 = por %p16128_p13, %p16127_p12 }
  0x1f   :  { %p16130_p1 = pnand %p16129_p0, %p16123_p11 }
  0x21   :  { %16133 = shalt.err (!%p16130_p1)
}
  0x22   :  { %26 = dma.hbm_to_vmem [thread:$0]  %s20389_s0, 8192, %s16231_s27, [#allocation4], %s16186_s13, %s16186_s13, %s16187_s14  }
  0x23   :  { %s16188_s26 = smov [#allocation8]   ;;  %s16134_s8 = scalar_lea.hbm %s20393_s4, 18432 }
  0x24   :  { %s48_s28 = sshll.u32 %s16188_s26, 4  ;;  %p16135_p2 = scmp.ne.s32.totalorder %s20393_s4, %s16134_s8  ;;  %s49_s28 = int_to_ptr.vmem [resolvable:$true] %s48_s28 }
  0x25   :  { %p16138_p3 = scmp.lt.u32.totalorder %s16134_s8, %s20393_s4 }
  0x27   :  { %p16140_p4 = pnand %p16138_p3, %p16135_p2 }
  0x29   :  { %16143 = shalt.err (!%p16140_p4)
}
  0x2a   :  { %s16144_s15 = scalar_lea.vmem %s49_s28, 18432  ;;  %p16149_p6 = scmp.lt.s32.totalorder %s49_s28, %s49_s28 }
  0x2b   :  { %p16145_p5 = scmp.ne.s32.totalorder %s49_s28, %s16144_s15  ;;  %p16150_p7 = scmp.lt.s32.totalorder %s16144_s15, %s16144_s15 }
  0x2d   :  { %p16151_p8 = por %p16150_p7, %p16149_p6 }
  0x2f   :  { %p16152_p9 = pnand %p16151_p8, %p16145_p5 }
  0x31   :  { %16155 = shalt.err (!%p16152_p9)
}
  0x32   :  { %54 = dma.hbm_to_vmem [thread:$0]  %s20393_s4, 18432, %s49_s28, [#allocation7], %s16186_s13, %s16186_s13, %s16187_s14  }
  0x33   :  { %16178 = dma.done.wait [#allocation4], 8192  }
  0x34   :  { %16179 = vsyncadd [#allocation4], 4294959104 }
  0x35   :  { %16180 = dma.done.wait [#allocation7], 36864  }
  0x36   :  { %16181 = vsyncadd [#allocation7], 4294930432  ;;  %v20397_v0 = vmov 0.0   ;;  %v486_v1 = vld [vmem:[#allocation6 + $0x80] sm:$0xff]  ;;  %v487_v2 = vld [vmem:[#allocation6 + $0x88] sm:$0xff] }
  0x37   :  { %69 = vst [vmem:[#allocation2 + $0x8] sm:$0xff] %v20397_v0  ;;  %12204 = vmatprep.mubr.f32.mxu0 %v20397_v0  ;;  %68 = vst [vmem:[#allocation2] sm:$0xff] %v20397_v0  ;;  %13356 = vmatprep.mubr.f32.mxu1 %v20397_v0  ;;  %v488_v3 = vld [vmem:[#allocation6 + $0x90] sm:$0xff]  ;;  %v14476_v4 = vpack.c.bf16 %v487_v2, %v486_v1  ;;  %v489_v5 = vld [vmem:[#allocation6 + $0x98] sm:$0xff] }
  0x38   :  { %70 = vst [vmem:[#allocation2 + $0x10] sm:$0xff] %v20397_v0  ;;  %71 = vst [vmem:[#allocation2 + $0x18] sm:$0xff] %v20397_v0  ;;  %v14480_v6 = vpack.c.bf16 %v489_v5, %v488_v3  ;;  %v490_v7 = vld [vmem:[#allocation6 + $0xa0] sm:$0xff]  ;;  %v491_v8 = vld [vmem:[#allocation6 + $0xa8] sm:$0xff] }
  0x39   :  { %72 = vst [vmem:[#allocation2 + $0x20] sm:$0xff] %v20397_v0  ;;  %75 = vst [vmem:[#allocation2 + $0x38] sm:$0xff] %v20397_v0  ;;  %14477 = vmatprep.subr.bf16.mxu0 %v14476_v4  ;;  %v14484_v9 = vpack.c.bf16 %v491_v8, %v490_v7  ;;  %v492_v10 = vld [vmem:[#allocation6 + $0xb0] sm:$0xff]  ;;  %v493_v11 = vld [vmem:[#allocation6 + $0xb8] sm:$0xff] }
  0x3a   :  { %76 = vst [vmem:[#allocation2 + $0x40] sm:$0xff] %v20397_v0  ;;  %79 = vst [vmem:[#allocation2 + $0x58] sm:$0xff] %v20397_v0  ;;  %14479 = vmatpush3.bf16.msra.mxu0 %v14476_v4  ;;  %v16365_v12 = vld [vmem:[#allocation3] sm:$0xff]  ;;  %v16367_v13 = vld [vmem:[#allocation3 + $0x8] sm:$0xff]  ;;  %v14488_v21 = vpack.c.bf16 %v493_v11, %v492_v10 }
  0x3b   :  { %80 = vst [vmem:[#allocation2 + $0x60] sm:$0xff] %v20397_v0  ;;  %83 = vst [vmem:[#allocation2 + $0x78] sm:$0xff] %v20397_v0  ;;  %14481 = vmatprep.subr.bf16.mxu0 %v14480_v6  ;;  %v16369_v14 = vld [vmem:[#allocation3 + $0x10] sm:$0xff]  ;;  %v16374_v15 = vld [vmem:[#allocation3 + $0x18] sm:$0xff] }
  0x3c   :  { %84 = vst [vmem:[#allocation2 + $0x80] sm:$0xff] %v20397_v0  ;;  %87 = vst [vmem:[#allocation2 + $0x98] sm:$0xff] %v20397_v0  ;;  %v16376_v16 = vld [vmem:[#allocation3 + $0x20] sm:$0xff]  ;;  %v16378_v17 = vld [vmem:[#allocation3 + $0x28] sm:$0xff] }
  0x3d   :  { %88 = vst [vmem:[#allocation2 + $0xa0] sm:$0xff] %v20397_v0  ;;  %91 = vst [vmem:[#allocation2 + $0xb8] sm:$0xff] %v20397_v0  ;;  %v494_v18 = vld [vmem:[#allocation6 + $0xc0] sm:$0xff]  ;;  %v16383_v19 = vld [vmem:[#allocation3 + $0x30] sm:$0xff] }
  0x3e   :  { %92 = vst [vmem:[#allocation2 + $0xc0] sm:$0xff] %v20397_v0  ;;  %95 = vst [vmem:[#allocation2 + $0xd8] sm:$0xff] %v20397_v0  ;;  %14483 = vmatpush3.bf16.msra.mxu0 %v14480_v6  ;;  %v16385_v20 = vld [vmem:[#allocation3 + $0x38] sm:$0xff]  ;;  %v495_v22 = vld [vmem:[#allocation6 + $0xc8] sm:$0xff] }
  0x3f   :  { %96 = vst [vmem:[#allocation2 + $0xe0] sm:$0xff] %v20397_v0  ;;  %99 = vst [vmem:[#allocation2 + $0xf8] sm:$0xff] %v20397_v0  ;;  %14485 = vmatprep.subr.bf16.mxu0 %v14484_v9  ;;  %v16389_v23 = vld [vmem:[#allocation3 + $0x40] sm:$0xff]  ;;  %v16391_v24 = vld [vmem:[#allocation3 + $0x48] sm:$0xff]  ;;  %v14492_v34 = vpack.c.bf16 %v495_v22, %v494_v18 }
  0x40   :  { %100 = vst [vmem:[#allocation2 + $0x100] sm:$0xff] %v20397_v0  ;;  %103 = vst [vmem:[#allocation2 + $0x118] sm:$0xff] %v20397_v0  ;;  %v16395_v25 = vld [vmem:[#allocation3 + $0x50] sm:$0xff]  ;;  %v16397_v26 = vld [vmem:[#allocation3 + $0x58] sm:$0xff] }
  0x41   :  { %104 = vst [vmem:[#allocation2 + $0x120] sm:$0xff] %v20397_v0  ;;  %107 = vst [vmem:[#allocation2 + $0x138] sm:$0xff] %v20397_v0  ;;  %v16399_v27 = vld [vmem:[#allocation3 + $0x60] sm:$0xff]  ;;  %v16404_v28 = vld [vmem:[#allocation3 + $0x68] sm:$0xff] }
  0x42   :  { %108 = vst [vmem:[#allocation2 + $0x140] sm:$0xff] %v20397_v0  ;;  %111 = vst [vmem:[#allocation2 + $0x158] sm:$0xff] %v20397_v0  ;;  %v16406_v29 = vld [vmem:[#allocation3 + $0x70] sm:$0xff]  ;;  %v16408_v30 = vld [vmem:[#allocation3 + $0x78] sm:$0xff]  ;;  %14487 = vmatpush3.bf16.msra.mxu0 %v14484_v9 }
  0x43   :  { %112 = vst [vmem:[#allocation2 + $0x160] sm:$0xff] %v20397_v0  ;;  %115 = vst [vmem:[#allocation2 + $0x178] sm:$0xff] %v20397_v0  ;;  %v496_v31 = vld [vmem:[#allocation6 + $0xd0] sm:$0xff]  ;;  %v497_v32 = vld [vmem:[#allocation6 + $0xd8] sm:$0xff]  ;;  %14489 = vmatprep.subr.bf16.mxu0 %v14488_v21 }
  0x44   :  { %116 = vst [vmem:[#allocation2 + $0x180] sm:$0xff] %v20397_v0  ;;  %119 = vst [vmem:[#allocation2 + $0x198] sm:$0xff] %v20397_v0  ;;  %v16413_v33 = vld [vmem:[#allocation3 + $0x80] sm:$0xff]  ;;  %v16416_v35 = vld [vmem:[#allocation3 + $0x88] sm:$0xff]  ;;  %v14496_v45 = vpack.c.bf16 %v497_v32, %v496_v31 }
  0x45   :  { %120 = vst [vmem:[#allocation2 + $0x1a0] sm:$0xff] %v20397_v0  ;;  %123 = vst [vmem:[#allocation2 + $0x1b8] sm:$0xff] %v20397_v0  ;;  %v16418_v36 = vld [vmem:[#allocation3 + $0x90] sm:$0xff]  ;;  %v16420_v37 = vld [vmem:[#allocation3 + $0x98] sm:$0xff] }
  0x46   :  { %124 = vst [vmem:[#allocation2 + $0x1c0] sm:$0xff] %v20397_v0  ;;  %127 = vst [vmem:[#allocation2 + $0x1d8] sm:$0xff] %v20397_v0  ;;  %v16425_v38 = vld [vmem:[#allocation3 + $0xa0] sm:$0xff]  ;;  %v16427_v39 = vld [vmem:[#allocation3 + $0xa8] sm:$0xff]  ;;  %14491 = vmatpush3.bf16.msra.mxu0 %v14488_v21 }
  0x47   :  { %128 = vst [vmem:[#allocation2 + $0x1e0] sm:$0xff] %v20397_v0  ;;  %131 = vst [vmem:[#allocation2 + $0x1f8] sm:$0xff] %v20397_v0  ;;  %v16429_v40 = vld [vmem:[#allocation3 + $0xb0] sm:$0xff]  ;;  %v16434_v41 = vld [vmem:[#allocation3 + $0xb8] sm:$0xff]  ;;  %14493 = vmatprep.subr.bf16.mxu0 %v14492_v34 }
  0x48   :  { %132 = vst [vmem:[#allocation2 + $0x200] sm:$0xff] %v20397_v0  ;;  %135 = vst [vmem:[#allocation2 + $0x218] sm:$0xff] %v20397_v0  ;;  %v16437_v42 = vld [vmem:[#allocation3 + $0xc0] sm:$0xff]  ;;  %v16439_v43 = vld [vmem:[#allocation3 + $0xc8] sm:$0xff] }
  0x49   :  { %136 = vst [vmem:[#allocation2 + $0x220] sm:$0xff] %v20397_v0  ;;  %137 = vst [vmem:[#allocation2 + $0x228] sm:$0xff] %v20397_v0  ;;  %v16441_v44 = vld [vmem:[#allocation3 + $0xd0] sm:$0xff]  ;;  %v16446_v46 = vld [vmem:[#allocation3 + $0xd8] sm:$0xff] }
  0x4a   :  { %138 = vst [vmem:[#allocation2 + $0x230] sm:$0xff] %v20397_v0  ;;  %139 = vst [vmem:[#allocation2 + $0x238] sm:$0xff] %v20397_v0  ;;  %v16448_v47 = vld [vmem:[#allocation3 + $0xe0] sm:$0xff]  ;;  %v16450_v48 = vld [vmem:[#allocation3 + $0xe8] sm:$0xff]  ;;  %14495 = vmatpush3.bf16.msra.mxu0 %v14492_v34 }
  0x4b   :  { %140 = vst [vmem:[#allocation2 + $0x240] sm:$0xff] %v20397_v0  ;;  %141 = vst [vmem:[#allocation2 + $0x248] sm:$0xff] %v20397_v0  ;;  %v498_v49 = vld [vmem:[#allocation6 + $0xe0] sm:$0xff]  ;;  %v499_v50 = vld [vmem:[#allocation6 + $0xe8] sm:$0xff]  ;;  %14497 = vmatprep.subr.bf16.mxu0 %v14496_v45 }
  0x4c   :  { %142 = vst [vmem:[#allocation2 + $0x250] sm:$0xff] %v20397_v0  ;;  %143 = vst [vmem:[#allocation2 + $0x258] sm:$0xff] %v20397_v0  ;;  %v16455_v51 = vld [vmem:[#allocation3 + $0x100] sm:$0xff]  ;;  %v16458_v52 = vld [vmem:[#allocation3 + $0x108] sm:$0xff]  ;;  %v14500_v58 = vpack.c.bf16 %v499_v50, %v498_v49 }
  0x4d   :  { %144 = vst [vmem:[#allocation2 + $0x260] sm:$0xff] %v20397_v0  ;;  %147 = vst [vmem:[#allocation2 + $0x278] sm:$0xff] %v20397_v0  ;;  %v16460_v53 = vld [vmem:[#allocation3 + $0x110] sm:$0xff]  ;;  %v16462_v54 = vld [vmem:[#allocation3 + $0x118] sm:$0xff] }
  0x4e   :  { %148 = vst [vmem:[#allocation2 + $0x280] sm:$0xff] %v20397_v0  ;;  %151 = vst [vmem:[#allocation2 + $0x298] sm:$0xff] %v20397_v0  ;;  %v16467_v55 = vld [vmem:[#allocation3 + $0x120] sm:$0xff]  ;;  %v16469_v56 = vld [vmem:[#allocation3 + $0x128] sm:$0xff]  ;;  %14499 = vmatpush3.bf16.msra.mxu0 %v14496_v45 }
  0x4f   :  { %152 = vst [vmem:[#allocation2 + $0x2a0] sm:$0xff] %v20397_v0  ;;  %155 = vst [vmem:[#allocation2 + $0x2b8] sm:$0xff] %v20397_v0  ;;  %v16471_v57 = vld [vmem:[#allocation3 + $0x130] sm:$0xff]  ;;  %v501_v60 = vld [vmem:[#allocation6 + $0xf8] sm:$0xff]  ;;  %14501 = vmatprep.subr.bf16.mxu0 %v14500_v58 }
  0x50   :  { %156 = vst [vmem:[#allocation2 + $0x2c0] sm:$0xff] %v20397_v0  ;;  %159 = vst [vmem:[#allocation2 + $0x2d8] sm:$0xff] %v20397_v0  ;;  %v500_v59 = vld [vmem:[#allocation6 + $0xf0] sm:$0xff]  ;;  %v16476_v61 = vld [vmem:[#allocation3 + $0x138] sm:$0xff] }
  0x51   :  { %160 = vst [vmem:[#allocation2 + $0x2e0] sm:$0xff] %v20397_v0  ;;  %163 = vst [vmem:[#allocation2 + $0x2f8] sm:$0xff] %v20397_v0  ;;  %v16479_v62 = vld [vmem:[#allocation3 + $0x140] sm:$0xff]  ;;  %v16481_v63 = vld [vmem:[#allocation3 + $0x148] sm:$0xff]  ;;  %v14504_v8 = vpack.c.bf16 %v501_v60, %v500_v59 }
  0x52   :  { %164 = vst [vmem:[#allocation2 + $0x300] sm:$0xff] %v20397_v0  ;;  %167 = vst [vmem:[#allocation2 + $0x318] sm:$0xff] %v20397_v0  ;;  %v16483_v1 = vld [vmem:[#allocation3 + $0x150] sm:$0xff]  ;;  %v16488_v2 = vld [vmem:[#allocation3 + $0x158] sm:$0xff]  ;;  %14503 = vmatpush3.bf16.msra.mxu0 %v14500_v58 }
  0x53   :  { %168 = vst [vmem:[#allocation2 + $0x320] sm:$0xff] %v20397_v0  ;;  %171 = vst [vmem:[#allocation2 + $0x338] sm:$0xff] %v20397_v0  ;;  %v16490_v3 = vld [vmem:[#allocation3 + $0x160] sm:$0xff]  ;;  %v16492_v4 = vld [vmem:[#allocation3 + $0x168] sm:$0xff]  ;;  %14505 = vmatprep.subr.bf16.mxu0 %v14504_v8 }
  0x54   :  { %172 = vst [vmem:[#allocation2 + $0x340] sm:$0xff] %v20397_v0  ;;  %175 = vst [vmem:[#allocation2 + $0x358] sm:$0xff] %v20397_v0  ;;  %v405_v5 = vld [vmem:[#allocation6] sm:$0xff]  ;;  %v16497_v6 = vld [vmem:[#allocation3 + $0x170] sm:$0xff] }
  0x55   :  { %176 = vst [vmem:[#allocation2 + $0x360] sm:$0xff] %v20397_v0  ;;  %179 = vst [vmem:[#allocation2 + $0x378] sm:$0xff] %v20397_v0  ;;  %v16499_v7 = vld [vmem:[#allocation3 + $0x178] sm:$0xff]  ;;  %v406_v9 = vld [vmem:[#allocation6 + $0x8] sm:$0xff] }
  0x56   :  { %180 = vst [vmem:[#allocation2 + $0x380] sm:$0xff] %v20397_v0  ;;  %183 = vst [vmem:[#allocation2 + $0x398] sm:$0xff] %v20397_v0  ;;  %v16503_v10 = vld [vmem:[#allocation3 + $0x180] sm:$0xff]  ;;  %v16505_v11 = vld [vmem:[#allocation3 + $0x188] sm:$0xff]  ;;  %v14508_v50 = vpack.c.bf16 %v406_v9, %v405_v5  ;;  %14507 = vmatpush3.bf16.msra.mxu0 %v14504_v8 }
  0x57   :  { %184 = vst [vmem:[#allocation2 + $0x3a0] sm:$0xff] %v20397_v0  ;;  %187 = vst [vmem:[#allocation2 + $0x3b8] sm:$0xff] %v20397_v0  ;;  %v16509_v18 = vld [vmem:[#allocation3 + $0x190] sm:$0xff]  ;;  %v16511_v21 = vld [vmem:[#allocation3 + $0x198] sm:$0xff] }
  0x58   :  { %188 = vst [vmem:[#allocation2 + $0x3c0] sm:$0xff] %v20397_v0  ;;  %191 = vst [vmem:[#allocation2 + $0x3d8] sm:$0xff] %v20397_v0  ;;  %v16513_v22 = vld [vmem:[#allocation3 + $0x1a0] sm:$0xff]  ;;  %v16518_v31 = vld [vmem:[#allocation3 + $0x1a8] sm:$0xff]  ;;  %14509 = vmatprep.subr.bf16.mxu0 %v14508_v50 }
  0x59   :  { %192 = vst [vmem:[#allocation2 + $0x3e0] sm:$0xff] %v20397_v0  ;;  %195 = vst [vmem:[#allocation2 + $0x3f8] sm:$0xff] %v20397_v0  ;;  %v16520_v32 = vld [vmem:[#allocation3 + $0x1b0] sm:$0xff]  ;;  %v16522_v34 = vld [vmem:[#allocation3 + $0x1b8] sm:$0xff] }
  0x5a   :  { %196 = vst [vmem:[#allocation2 + $0x400] sm:$0xff] %v20397_v0  ;;  %199 = vst [vmem:[#allocation2 + $0x418] sm:$0xff] %v20397_v0  ;;  %v407_v45 = vld [vmem:[#allocation6 + $0x10] sm:$0xff]  ;;  %v16527_v49 = vld [vmem:[#allocation3 + $0x1c0] sm:$0xff] }
  0x5b   :  { %200 = vst [vmem:[#allocation2 + $0x420] sm:$0xff] %v20397_v0  ;;  %203 = vst [vmem:[#allocation2 + $0x438] sm:$0xff] %v20397_v0  ;;  %v16530_v59 = vld [vmem:[#allocation3 + $0x1c8] sm:$0xff]  ;;  %v16532_v60 = vld [vmem:[#allocation3 + $0x1d0] sm:$0xff] }
  0x5c   :  { %204 = vst [vmem:[#allocation2 + $0x440] sm:$0xff] %v20397_v0  ;;  %207 = vst [vmem:[#allocation2 + $0x458] sm:$0xff] %v20397_v0  ;;  %v408_v58 = vld [vmem:[#allocation6 + $0x18] sm:$0xff]  ;;  %v409_v9 = vld [vmem:[#allocation6 + $0x20] sm:$0xff] }
  0x5d   :  { %208 = vst [vmem:[#allocation2 + $0x460] sm:$0xff] %v20397_v0  ;;  %209 = vst [vmem:[#allocation2 + $0x468] sm:$0xff] %v20397_v0  ;;  %v14512_v5 = vpack.c.bf16 %v408_v58, %v407_v45  ;;  %v414_v45 = vld [vmem:[#allocation6 + $0x48] sm:$0xff] }
  0x5e   :  { %210 = vst [vmem:[#allocation2 + $0x470] sm:$0xff] %v20397_v0  ;;  %211 = vst [vmem:[#allocation2 + $0x478] sm:$0xff] %v20397_v0  ;;  %v16534_v0 = vld [vmem:[#allocation3 + $0x1d8] sm:$0xff] }
  0x5f   :  { %277 = vst [vmem:[#allocation2 + $0x28] sm:$0xff] %v16365_v12  ;;  %278 = vst [vmem:[#allocation2 + $0x30] sm:$0xff] %v16367_v13 }
  0x60   :  { %279 = vst [vmem:[#allocation2 + $0x48] sm:$0xff] %v16369_v14  ;;  %280 = vst [vmem:[#allocation2 + $0x50] sm:$0xff] %v16374_v15 }
  0x61   :  { %281 = vst [vmem:[#allocation2 + $0x68] sm:$0xff] %v16376_v16  ;;  %282 = vst [vmem:[#allocation2 + $0x70] sm:$0xff] %v16378_v17 }
  0x62   :  { %283 = vst [vmem:[#allocation2 + $0x88] sm:$0xff] %v16383_v19  ;;  %284 = vst [vmem:[#allocation2 + $0x90] sm:$0xff] %v16385_v20 }
  0x63   :  { %285 = vst [vmem:[#allocation2 + $0xa8] sm:$0xff] %v16389_v23  ;;  %286 = vst [vmem:[#allocation2 + $0xb0] sm:$0xff] %v16391_v24 }
  0x64   :  { %287 = vst [vmem:[#allocation2 + $0xc8] sm:$0xff] %v16395_v25  ;;  %288 = vst [vmem:[#allocation2 + $0xd0] sm:$0xff] %v16397_v26 }
  0x65   :  { %289 = vst [vmem:[#allocation2 + $0xe8] sm:$0xff] %v16399_v27  ;;  %290 = vst [vmem:[#allocation2 + $0xf0] sm:$0xff] %v16404_v28 }
  0x66   :  { %291 = vst [vmem:[#allocation2 + $0x108] sm:$0xff] %v16406_v29  ;;  %292 = vst [vmem:[#allocation2 + $0x110] sm:$0xff] %v16408_v30 }
  0x67   :  { %293 = vst [vmem:[#allocation2 + $0x128] sm:$0xff] %v16413_v33  ;;  %294 = vst [vmem:[#allocation2 + $0x130] sm:$0xff] %v16416_v35 }
  0x68   :  { %295 = vst [vmem:[#allocation2 + $0x148] sm:$0xff] %v16418_v36  ;;  %296 = vst [vmem:[#allocation2 + $0x150] sm:$0xff] %v16420_v37 }
  0x69   :  { %297 = vst [vmem:[#allocation2 + $0x168] sm:$0xff] %v16425_v38  ;;  %298 = vst [vmem:[#allocation2 + $0x170] sm:$0xff] %v16427_v39 }
  0x6a   :  { %299 = vst [vmem:[#allocation2 + $0x188] sm:$0xff] %v16429_v40  ;;  %300 = vst [vmem:[#allocation2 + $0x190] sm:$0xff] %v16434_v41 }
  0x6b   :  { %301 = vst [vmem:[#allocation2 + $0x1a8] sm:$0xff] %v16437_v42  ;;  %302 = vst [vmem:[#allocation2 + $0x1b0] sm:$0xff] %v16439_v43 }
  0x6c   :  { %303 = vst [vmem:[#allocation2 + $0x1c8] sm:$0xff] %v16441_v44  ;;  %304 = vst [vmem:[#allocation2 + $0x1d0] sm:$0xff] %v16446_v46  ;;  %v16647_v58 = vld [vmem:[#allocation2 + $0xef] sm:$0xff] }
  0x6d   :  { %305 = vst [vmem:[#allocation2 + $0x1e8] sm:$0xff] %v16448_v47  ;;  %306 = vst [vmem:[#allocation2 + $0x1f0] sm:$0xff] %v16450_v48 }
  0x6e   :  { %309 = vst [vmem:[#allocation2 + $0x268] sm:$0xff] %v16455_v51  ;;  %310 = vst [vmem:[#allocation2 + $0x270] sm:$0xff] %v16458_v52 }
  0x6f   :  { %311 = vst [vmem:[#allocation2 + $0x288] sm:$0xff] %v16460_v53  ;;  %312 = vst [vmem:[#allocation2 + $0x290] sm:$0xff] %v16462_v54 }
  0x70   :  { %313 = vst [vmem:[#allocation2 + $0x2a8] sm:$0xff] %v16467_v55  ;;  %314 = vst [vmem:[#allocation2 + $0x2b0] sm:$0xff] %v16469_v56 }
  0x71   :  { %315 = vst [vmem:[#allocation2 + $0x2c8] sm:$0xff] %v16471_v57  ;;  %316 = vst [vmem:[#allocation2 + $0x2d0] sm:$0xff] %v16476_v61 }
  0x72   :  { %317 = vst [vmem:[#allocation2 + $0x2e8] sm:$0xff] %v16479_v62  ;;  %318 = vst [vmem:[#allocation2 + $0x2f0] sm:$0xff] %v16481_v63 }
  0x73   :  { %319 = vst [vmem:[#allocation2 + $0x308] sm:$0xff] %v16483_v1  ;;  %320 = vst [vmem:[#allocation2 + $0x310] sm:$0xff] %v16488_v2 }
  0x74   :  { %321 = vst [vmem:[#allocation2 + $0x328] sm:$0xff] %v16490_v3  ;;  %322 = vst [vmem:[#allocation2 + $0x330] sm:$0xff] %v16492_v4 }
  0x75   :  { %323 = vst [vmem:[#allocation2 + $0x348] sm:$0xff] %v16497_v6  ;;  %324 = vst [vmem:[#allocation2 + $0x350] sm:$0xff] %v16499_v7 }
  0x76   :  { %325 = vst [vmem:[#allocation2 + $0x368] sm:$0xff] %v16503_v10  ;;  %326 = vst [vmem:[#allocation2 + $0x370] sm:$0xff] %v16505_v11 }
  0x77   :  { %327 = vst [vmem:[#allocation2 + $0x388] sm:$0xff] %v16509_v18  ;;  %328 = vst [vmem:[#allocation2 + $0x390] sm:$0xff] %v16511_v21 }
  0x78   :  { %329 = vst [vmem:[#allocation2 + $0x3a8] sm:$0xff] %v16513_v22  ;;  %20674 = vst [vmem:[#allocation13_spill] sm:$0xff] %v16518_v31 }
  0x79   :  { %20675 = vst [vmem:[#allocation14_spill] sm:$0xff] %v16520_v32  ;;  %20676 = vst [vmem:[#allocation15_spill] sm:$0xff] %v16522_v34 }
  0x7a   :  { %330 = vst [vmem:[#allocation2 + $0x3b0] sm:$0xff] %v16518_v31  ;;  %331 = vst [vmem:[#allocation2 + $0x3c8] sm:$0xff] %v16520_v32  ;;  %v16541_v32 = vld [vmem:[#allocation3 + $0x1e8] sm:$0xff]  ;;  %v20682_v31 = vmov 0.0  }
  0x7b   :  { %332 = vst [vmem:[#allocation2 + $0x3d0] sm:$0xff] %v16522_v34  ;;  %20677 = vst [vmem:[#allocation16_spill] sm:$0xff] %v16527_v49  ;;  %v16539_v34 = vld [vmem:[#allocation3 + $0x1e0] sm:$0xff]  ;;  %12205 = vmatmul.mubr.f32.vlgmr.msra.gmra.mrb[0].mxu0 %v20682_v31 }
  0x7c   :  { %333 = vst [vmem:[#allocation2 + $0x3e8] sm:$0xff] %v16527_v49  ;;  %20678 = vst [vmem:[#allocation17_spill] sm:$0xff] %v16530_v59  ;;  %v410_v49 = vld [vmem:[#allocation6 + $0x28] sm:$0xff]  ;;  %14511 = vmatpush3.bf16.msra.mxu0 %v14508_v50  ;;  %12207 = vmatprep.mubr.f32.mxu0 %v16365_v12  ;;  %v415_v50 = vld [vmem:[#allocation6 + $0x50] sm:$0xff] }
  0x7d   :  { %20679 = vst [vmem:[#allocation18_spill] sm:$0xff] %v16532_v60  ;;  %20680 = vst [vmem:[#allocation19_spill] sm:$0xff] %v16534_v0  ;;  %14513 = vmatprep.subr.bf16.mxu0 %v14512_v5 }
  0x7e   :  { %334 = vst [vmem:[#allocation2 + $0x3f0] sm:$0xff] %v16530_v59  ;;  %335 = vst [vmem:[#allocation2 + $0x408] sm:$0xff] %v16532_v60  ;;  %v411_v60 = vld [vmem:[#allocation6 + $0x30] sm:$0xff]  ;;  %v412_v59 = vld [vmem:[#allocation6 + $0x38] sm:$0xff] }
  0x7f   :  { %336 = vst [vmem:[#allocation2 + $0x410] sm:$0xff] %v16534_v0  ;;  %20681 = vst [vmem:[#allocation20_spill] sm:$0xff] %v16541_v32  ;;  %v14516_v0 = vpack.c.bf16 %v410_v49, %v409_v9  ;;  %12208 = vmatmul.mubr.f32.gmra.mrb[2].mxu0 %v16367_v13  ;;  %v14520_v8 = vpack.c.bf16 %v412_v59, %v411_v60  ;;  %v416_v49 = vld [vmem:[#allocation6 + $0x58] sm:$0xff]  ;;  %v418_v59 = vld [vmem:[#allocation6 + $0x68] sm:$0xff] }
  0x80   :  { %337 = vst [vmem:[#allocation2 + $0x428] sm:$0xff] %v16539_v34  ;;  %338 = vst [vmem:[#allocation2 + $0x430] sm:$0xff] %v16541_v32  ;;  %12210 = vmatprep.mubr.f32.mxu0 %v16369_v14  ;;  %14515 = vmatpush3.bf16.msra.mxu0 %v14512_v5  ;;  %v413_v32 = vld [vmem:[#allocation6 + $0x40] sm:$0xff]  ;;  %v14528_v13 = vpack.c.bf16 %v416_v49, %v415_v50  ;;  %v1868_v60 = vld [vmem:[#allocation6 + $0x188] sm:$0xff] }
  0x81   :  { %14517 = vmatprep.subr.bf16.mxu0 %v14516_v0  ;;  %v14524_v12 = vpack.c.bf16 %v414_v45, %v413_v32  ;;  %v417_v14 = vld [vmem:[#allocation6 + $0x60] sm:$0xff]  ;;  %v1338_v32 = vld [vmem:[#allocation6 + $0x108] sm:$0xff] }
  0x82   :  { %v16649_v5 = vld [vmem:[#allocation2 + $0x107] sm:$0xff]  ;;  %v16668_v49 = vld [vmem:[#allocation2 + $0x14f] sm:$0xff] }
  0x83   :  { %12211 = vmatmul.mubr.f32.gmra.mrb[4].mxu0 %v16374_v15  ;;  %v419_v15 = vld [vmem:[#allocation6 + $0x70] sm:$0xff]  ;;  %v16657_v45 = vld [vmem:[#allocation2 + $0x127] sm:$0xff] }
  0x84   :  { %12213 = vmatprep.mubr.f32.mxu0 %v16376_v16  ;;  %14519 = vmatpush3.bf16.msra.mxu0 %v14516_v0  ;;  %v14532_v0 = vpack.c.bf16 %v418_v59, %v417_v14  ;;  %v420_v16 = vld [vmem:[#allocation6 + $0x78] sm:$0xff]  ;;  %v16664_v50 = vld [vmem:[#allocation2 + $0x147] sm:$0xff]  ;;  %v16674_v14 = vld [vmem:[#allocation2 + $0x16f] sm:$0xff] }
  0x85   :  { %14521 = vmatprep.subr.bf16.mxu0 %v14520_v8  ;;  %v16676_v59 = vld [vmem:[#allocation2 + $0x187] sm:$0xff] }
  0x87   :  { %12214 = vmatmul.mubr.f32.gmra.mrb[6].mxu0 %v16378_v17  ;;  %v14536_v17 = vpack.c.bf16 %v420_v16, %v419_v15  ;;  %v16682_v15 = vld [vmem:[#allocation2 + $0x1a7] sm:$0xff]  ;;  %v16686_v16 = vld [vmem:[#allocation2 + $0x1af] sm:$0xff] }
  0x88   :  { %12216 = vmatprep.mubr.f32.mxu0 %v16383_v19  ;;  %14523 = vmatpush3.bf16.msra.mxu0 %v14520_v8  ;;  %v1337_v19 = vld [vmem:[#allocation6 + $0x100] sm:$0xff]  ;;  %v16655_v8 = vld [vmem:[#allocation2 + $0x10f] sm:$0xff] }
  0x89   :  { %14525 = vmatprep.subr.bf16.mxu0 %v14524_v12 }
  0x8b   :  { %12217 = vmatmul.mubr.f32.gmra.mrb[8].mxu0 %v16385_v20  ;;  %v14540_v20 = vpack.c.bf16 %v1338_v32, %v1337_v19  ;;  %v16692_v19 = vld [vmem:[#allocation2 + $0x1cf] sm:$0xff]  ;;  %v16694_v32 = vld [vmem:[#allocation2 + $0x1e7] sm:$0xff] }
  0x8c   :  { %12219 = vmatprep.mubr.f32.mxu0 %v16389_v23  ;;  %14527 = vmatpush3.bf16.msra.mxu0 %v14524_v12  ;;  %v20683_v23 = vld [vmem:[#allocation13_spill] sm:$0xff]  ;;  %v16662_v12 = vld [vmem:[#allocation2 + $0x12f] sm:$0xff] }
  0x8d   :  { %14529 = vmatprep.subr.bf16.mxu0 %v14528_v13 }
  0x8f   :  { %12220 = vmatmul.mubr.f32.gmra.mrb[10].mxu0 %v16391_v24  ;;  %v20684_v24 = vld [vmem:[#allocation14_spill] sm:$0xff] }
  0x90   :  { %12222 = vmatprep.mubr.f32.mxu0 %v16395_v25  ;;  %14531 = vmatpush3.bf16.msra.mxu0 %v14528_v13  ;;  %v20685_v25 = vld [vmem:[#allocation15_spill] sm:$0xff]  ;;  %v16670_v13 = vld [vmem:[#allocation2 + $0x167] sm:$0xff] }
  0x91   :  { %14533 = vmatprep.subr.bf16.mxu0 %v14532_v0 }
  0x93   :  { %12223 = vmatmul.mubr.f32.gmra.mrb[12].mxu0 %v16397_v26  ;;  %v20686_v26 = vld [vmem:[#allocation16_spill] sm:$0xff] }
  0x94   :  { %12225 = vmatprep.mubr.f32.mxu0 %v16399_v27  ;;  %14535 = vmatpush3.bf16.msra.mxu0 %v14532_v0  ;;  %v20687_v27 = vld [vmem:[#allocation17_spill] sm:$0xff]  ;;  %v16680_v0 = vld [vmem:[#allocation2 + $0x18f] sm:$0xff] }
  0x95   :  { %14537 = vmatprep.subr.bf16.mxu0 %v14536_v17 }
  0x97   :  { %12226 = vmatmul.mubr.f32.gmra.mrb[14].mxu0 %v16404_v28  ;;  %v20688_v28 = vld [vmem:[#allocation18_spill] sm:$0xff] }
  0x98   :  { %12228 = vmatprep.mubr.f32.mxu0 %v16406_v29  ;;  %14539 = vmatpush3.bf16.msra.mxu0 %v14536_v17  ;;  %v20689_v29 = vld [vmem:[#allocation19_spill] sm:$0xff]  ;;  %v16688_v17 = vld [vmem:[#allocation2 + $0x1c7] sm:$0xff] }
  0x99   :  { %14541 = vmatprep.subr.bf16.mxu0 %v14540_v20 }
  0x9b   :  { %12229 = vmatmul.mubr.f32.gmra.mrb[16].mxu0 %v16408_v30  ;;  %v341_v30 = vld [vmem:[#allocation2 + $0x7] sm:$0xff] }
  0x9c   :  { %12231 = vmatprep.mubr.f32.mxu0 %v16413_v33  ;;  %v1339_v33 = vld [vmem:[#allocation6 + $0x110] sm:$0xff] }
  0x9f   :  { %12232 = vmatmul.mubr.f32.gmra.mrb[18].mxu0 %v16416_v35  ;;  %v1340_v35 = vld [vmem:[#allocation6 + $0x118] sm:$0xff] }
  0xa0   :  { %12234 = vmatprep.mubr.f32.mxu0 %v16418_v36  ;;  %v20690_v36 = vld [vmem:[#allocation20_spill] sm:$0xff] }
  0xa3   :  { %12235 = vmatmul.mubr.f32.gmra.mrb[20].mxu0 %v16420_v37  ;;  %v342_v37 = vld [vmem:[#allocation2 + $0xf] sm:$0xff] }
  0xa4   :  { %12237 = vmatprep.mubr.f32.mxu0 %v16425_v38  ;;  %v16608_v38 = vld [vmem:[#allocation2 + $0x27] sm:$0xff] }
  0xa7   :  { %12238 = vmatmul.mubr.f32.gmra.mrb[22].mxu0 %v16427_v39  ;;  %v14544_v39 = vpack.c.bf16 %v1340_v35, %v1339_v33  ;;  %v16718_v33 = vld [vmem:[#allocation2 + $0x2c7] sm:$0xff]  ;;  %v16722_v35 = vld [vmem:[#allocation2 + $0x2cf] sm:$0xff] }
  0xa8   :  { %12240 = vmatprep.mubr.f32.mxu0 %v16429_v40  ;;  %v1341_v40 = vld [vmem:[#allocation6 + $0x120] sm:$0xff] }
  0xab   :  { %12241 = vmatmul.mubr.f32.gmra.mrb[24].mxu0 %v16434_v41  ;;  %v1342_v41 = vld [vmem:[#allocation6 + $0x128] sm:$0xff] }
  0xac   :  { %12243 = vmatprep.mubr.f32.mxu0 %v16437_v42  ;;  %v16611_v42 = vld [vmem:[#allocation2 + $0x2f] sm:$0xff] }
  0xaf   :  { %12244 = vmatmul.mubr.f32.gmra.mrb[26].mxu0 %v16439_v43  ;;  %v16613_v43 = vld [vmem:[#allocation2 + $0x47] sm:$0xff] }
  0xb0   :  { %12246 = vmatprep.mubr.f32.mxu0 %v16441_v44  ;;  %v14548_v44 = vpack.c.bf16 %v1342_v41, %v1341_v40  ;;  %v16734_v40 = vld [vmem:[#allocation2 + $0x30f] sm:$0xff]  ;;  %v16736_v41 = vld [vmem:[#allocation2 + $0x327] sm:$0xff] }
  0xb3   :  { %12247 = vmatmul.mubr.f32.gmra.mrb[28].mxu0 %v16446_v46  ;;  %v1343_v46 = vld [vmem:[#allocation6 + $0x130] sm:$0xff] }
  0xb4   :  { %12249 = vmatprep.mubr.f32.mxu0 %v16448_v47  ;;  %v1344_v47 = vld [vmem:[#allocation6 + $0x138] sm:$0xff] }
  0xb7   :  { %12250 = vmatmul.mubr.f32.gmra.mrb[30].mxu0 %v16450_v48  ;;  %v16617_v48 = vld [vmem:[#allocation2 + $0x4f] sm:$0xff] }
  0xb8   :  { %12252 = vmatprep.mubr.f32.mxu0 %v20682_v31 }
  0xbb   :  { %12253 = vmatmul.mubr.f32.gmra.mrb[32].mxu0 %v20682_v31 }
  0xbc   :  { %12255 = vmatprep.mubr.f32.mxu0 %v16455_v51  ;;  %v16619_v51 = vld [vmem:[#allocation2 + $0x67] sm:$0xff] }
  0xbf   :  { %12256 = vmatmul.mubr.f32.gmra.mrb[34].mxu0 %v16458_v52  ;;  %v14552_v52 = vpack.c.bf16 %v1344_v47, %v1343_v46  ;;  %v16742_v46 = vld [vmem:[#allocation2 + $0x347] sm:$0xff]  ;;  %v16746_v47 = vld [vmem:[#allocation2 + $0x34f] sm:$0xff] }
  0xc0   :  { %12258 = vmatprep.mubr.f32.mxu0 %v16460_v53  ;;  %v1345_v53 = vld [vmem:[#allocation6 + $0x140] sm:$0xff] }
  0xc3   :  { %12259 = vmatmul.mubr.f32.gmra.mrb[36].mxu0 %v16462_v54  ;;  %v1346_v54 = vld [vmem:[#allocation6 + $0x148] sm:$0xff] }
  0xc4   :  { %12261 = vmatprep.mubr.f32.mxu0 %v16467_v55  ;;  %v16623_v55 = vld [vmem:[#allocation2 + $0x6f] sm:$0xff] }
  0xc7   :  { %12262 = vmatmul.mubr.f32.gmra.mrb[38].mxu0 %v16469_v56  ;;  %v16625_v56 = vld [vmem:[#allocation2 + $0x87] sm:$0xff] }
  0xc8   :  { %12264 = vmatprep.mubr.f32.mxu0 %v16471_v57  ;;  %v14556_v57 = vpack.c.bf16 %v1346_v54, %v1345_v53  ;;  %v16752_v53 = vld [vmem:[#allocation2 + $0x36f] sm:$0xff]  ;;  %v16754_v54 = vld [vmem:[#allocation2 + $0x387] sm:$0xff] }
  0xcb   :  { %12265 = vmatmul.mubr.f32.gmra.mrb[40].mxu0 %v16476_v61  ;;  %v1347_v61 = vld [vmem:[#allocation6 + $0x150] sm:$0xff] }
  0xcc   :  { %12267 = vmatprep.mubr.f32.mxu0 %v16479_v62  ;;  %v1348_v62 = vld [vmem:[#allocation6 + $0x158] sm:$0xff] }
  0xcf   :  { %12268 = vmatmul.mubr.f32.gmra.mrb[42].mxu0 %v16481_v63  ;;  %v16629_v63 = vld [vmem:[#allocation2 + $0x8f] sm:$0xff] }
  0xd0   :  { %12270 = vmatprep.mubr.f32.mxu0 %v16483_v1  ;;  %v16631_v1 = vld [vmem:[#allocation2 + $0xa7] sm:$0xff] }
  0xd3   :  { %12271 = vmatmul.mubr.f32.gmra.mrb[44].mxu0 %v16488_v2  ;;  %v14560_v2 = vpack.c.bf16 %v1348_v62, %v1347_v61  ;;  %v16760_v61 = vld [vmem:[#allocation2 + $0x3a7] sm:$0xff]  ;;  %v16764_v62 = vld [vmem:[#allocation2 + $0x3af] sm:$0xff] }
  0xd4   :  { %12273 = vmatprep.mubr.f32.mxu0 %v16490_v3  ;;  %v1349_v3 = vld [vmem:[#allocation6 + $0x160] sm:$0xff]  ;;  %20691 = vst [vmem:[#allocation13_spill] sm:$0xff] %v16760_v61  ;;  %20692 = vst [vmem:[#allocation14_spill] sm:$0xff] %v16764_v62 }
  0xd7   :  { %12274 = vmatmul.mubr.f32.gmra.mrb[46].mxu0 %v16492_v4  ;;  %v1350_v4 = vld [vmem:[#allocation6 + $0x168] sm:$0xff] }
  0xd8   :  { %12276 = vmatprep.mubr.f32.mxu0 %v16497_v6  ;;  %v16635_v6 = vld [vmem:[#allocation2 + $0xaf] sm:$0xff] }
  0xdb   :  { %12277 = vmatmul.mubr.f32.gmra.mrb[48].mxu0 %v16499_v7  ;;  %v16637_v7 = vld [vmem:[#allocation2 + $0xc7] sm:$0xff] }
  0xdc   :  { %12279 = vmatprep.mubr.f32.mxu0 %v16503_v10  ;;  %v14564_v10 = vpack.c.bf16 %v1350_v4, %v1349_v3  ;;  %v16770_v3 = vld [vmem:[#allocation2 + $0x3cf] sm:$0xff]  ;;  %v16772_v4 = vld [vmem:[#allocation2 + $0x3e7] sm:$0xff] }
  0xdd   :  { %20694 = vst [vmem:[#allocation16_spill] sm:$0xff] %v16770_v3  ;;  %20695 = vst [vmem:[#allocation17_spill] sm:$0xff] %v16772_v4 }
  0xdf   :  { %12280 = vmatmul.mubr.f32.gmra.mrb[50].mxu0 %v16505_v11  ;;  %v1351_v11 = vld [vmem:[#allocation6 + $0x170] sm:$0xff] }
  0xe0   :  { %12282 = vmatprep.mubr.f32.mxu0 %v16509_v18  ;;  %v1352_v18 = vld [vmem:[#allocation6 + $0x178] sm:$0xff] }
  0xe1   :  { %v14568_v31 = vpack.c.bf16 %v1352_v18, %v1351_v11  ;;  %v16778_v11 = vld [vmem:[#allocation2 + $0x407] sm:$0xff]  ;;  %v16782_v18 = vld [vmem:[#allocation2 + $0x40f] sm:$0xff] }
  0xe2   :  { %20697 = vst [vmem:[#allocation19_spill] sm:$0xff] %v16778_v11  ;;  %20698 = vst [vmem:[#allocation20_spill] sm:$0xff] %v16782_v18 }
  0xe3   :  { %12283 = vmatmul.mubr.f32.gmra.mrb[52].mxu0 %v16511_v21  ;;  %v16641_v21 = vld [vmem:[#allocation2 + $0xcf] sm:$0xff] }
  0xe4   :  { %12285 = vmatprep.mubr.f32.mxu0 %v16513_v22  ;;  %v16643_v22 = vld [vmem:[#allocation2 + $0xe7] sm:$0xff] }
  0xe7   :  { %12286 = vmatmul.mubr.f32.gmra.mrb[54].mxu0 %v20683_v23  ;;  %v373_v23 = vld [vmem:[#allocation2 + $0x247] sm:$0xff] }
  0xe8   :  { %12288 = vmatprep.mubr.f32.mxu0 %v20684_v24  ;;  %v374_v24 = vld [vmem:[#allocation2 + $0x24f] sm:$0xff] }
  0xeb   :  { %12289 = vmatmul.mubr.f32.gmra.mrb[56].mxu0 %v20685_v25  ;;  %v16701_v25 = vld [vmem:[#allocation2 + $0x267] sm:$0xff] }
  0xec   :  { %12291 = vmatprep.mubr.f32.mxu0 %v20686_v26  ;;  %v16704_v26 = vld [vmem:[#allocation2 + $0x26f] sm:$0xff] }
  0xef   :  { %12292 = vmatmul.mubr.f32.gmra.mrb[58].mxu0 %v20687_v27  ;;  %v16706_v27 = vld [vmem:[#allocation2 + $0x287] sm:$0xff] }
  0xf0   :  { %12294 = vmatprep.mubr.f32.mxu0 %v20688_v28  ;;  %v16710_v28 = vld [vmem:[#allocation2 + $0x28f] sm:$0xff] }
  0xf3   :  { %12295 = vmatmul.mubr.f32.gmra.mrb[60].mxu0 %v20689_v29  ;;  %v16712_v29 = vld [vmem:[#allocation2 + $0x2a7] sm:$0xff] }
  0xf4   :  { %12297 = vmatprep.mubr.f32.mxu0 %v16539_v34  ;;  %v1867_v34 = vld [vmem:[#allocation6 + $0x180] sm:$0xff] }
  0xf5   :  { %v16651_v9 = vpack.c.bf16 %v1868_v60, %v1867_v34  ;;  %v16788_v34 = vld [vmem:[#allocation2 + $0x42f] sm:$0xff] }
  0xf6   :  { %20700 = vst [vmem:[#allocation22_spill] sm:$0xff] %v16788_v34  ;;  %v1272_v60 = vld [vmem:[#allocation2 + $0x9] sm:$0xff] }
  0xf7   :  { %12298 = vmatmul.mubr.f32.gmra.mrb[62].mxu0 %v20690_v36  ;;  %v16724_v36 = vld [vmem:[#allocation2 + $0x2e7] sm:$0xff] }
  0xf8   :  { %12332 = vmatprep.mubr.f32.mxu0 %v341_v30  ;;  %v16716_v30 = vld [vmem:[#allocation2 + $0x2af] sm:$0xff] }
  0xfb   :  { %12333 = vmatmul.mubr.f32.vlgmr.msra.gmra.mrb[0].mxu0 %v342_v37  ;;  %v16728_v37 = vld [vmem:[#allocation2 + $0x2ef] sm:$0xff] }
  0xfc   :  { %14543 = vmatpush3.bf16.msra.mxu0 %v14540_v20  ;;  %12335 = vmatprep.mubr.f32.mxu0 %v16608_v38  ;;  %v16698_v20 = vld [vmem:[#allocation2 + $0x1ef] sm:$0xff] }
  0xfd   :  { %14545 = vmatprep.subr.bf16.mxu0 %v14544_v39 }
  0xff   :  { %12336 = vmatmul.mubr.f32.gmra.mrb[2].mxu0 %v16611_v42 }
 0x100   :  { %12338 = vmatprep.mubr.f32.mxu0 %v16613_v43  ;;  %14547 = vmatpush3.bf16.msra.mxu0 %v14544_v39  ;;  %v16730_v39 = vld [vmem:[#allocation2 + $0x307] sm:$0xff] }
 0x101   :  { %14549 = vmatprep.subr.bf16.mxu0 %v14548_v44 }
 0x103   :  { %12339 = vmatmul.mubr.f32.gmra.mrb[4].mxu0 %v16617_v48 }
 0x104   :  { %12341 = vmatprep.mubr.f32.mxu0 %v16619_v51  ;;  %14551 = vmatpush3.bf16.msra.mxu0 %v14548_v44  ;;  %v16740_v44 = vld [vmem:[#allocation2 + $0x32f] sm:$0xff] }
 0x105   :  { %14553 = vmatprep.subr.bf16.mxu0 %v14552_v52 }
 0x107   :  { %12342 = vmatmul.mubr.f32.gmra.mrb[6].mxu0 %v16623_v55 }
 0x108   :  { %12344 = vmatprep.mubr.f32.mxu0 %v16625_v56  ;;  %14555 = vmatpush3.bf16.msra.mxu0 %v14552_v52  ;;  %v16748_v52 = vld [vmem:[#allocation2 + $0x367] sm:$0xff] }
 0x109   :  { %14557 = vmatprep.subr.bf16.mxu0 %v14556_v57 }
 0x10b   :  { %12345 = vmatmul.mubr.f32.gmra.mrb[8].mxu0 %v16629_v63 }
 0x10c   :  { %12347 = vmatprep.mubr.f32.mxu0 %v16631_v1  ;;  %14559 = vmatpush3.bf16.msra.mxu0 %v14556_v57  ;;  %v16758_v57 = vld [vmem:[#allocation2 + $0x38f] sm:$0xff] }
 0x10d   :  { %14561 = vmatprep.subr.bf16.mxu0 %v14560_v2 }
 0x10f   :  { %12348 = vmatmul.mubr.f32.gmra.mrb[10].mxu0 %v16635_v6 }
 0x110   :  { %12350 = vmatprep.mubr.f32.mxu0 %v16637_v7  ;;  %14563 = vmatpush3.bf16.msra.mxu0 %v14560_v2  ;;  %v16766_v2 = vld [vmem:[#allocation2 + $0x3c7] sm:$0xff] }
 0x111   :  { %14565 = vmatprep.subr.bf16.mxu0 %v14564_v10  ;;  %20693 = vst [vmem:[#allocation15_spill] sm:$0xff] %v16766_v2 }
 0x113   :  { %12351 = vmatmul.mubr.f32.gmra.mrb[12].mxu0 %v16641_v21 }
 0x114   :  { %12353 = vmatprep.mubr.f32.mxu0 %v16643_v22  ;;  %14567 = vmatpush3.bf16.msra.mxu0 %v14564_v10  ;;  %v16776_v10 = vld [vmem:[#allocation2 + $0x3ef] sm:$0xff] }
 0x115   :  { %14569 = vmatprep.subr.bf16.mxu0 %v14568_v31  ;;  %20696 = vst [vmem:[#allocation18_spill] sm:$0xff] %v16776_v10 }
 0x117   :  { %12354 = vmatmul.mubr.f32.gmra.mrb[14].mxu0 %v16647_v58 }
 0x118   :  { %12356 = vmatprep.mubr.f32.mxu0 %v16649_v5  ;;  %14571 = vmatpush3.bf16.msra.mxu0 %v14568_v31  ;;  %v16784_v31 = vld [vmem:[#allocation2 + $0x427] sm:$0xff] }
 0x119   :  { %14573 = vmatprep.subr.bf16.mxu0 %v16651_v9  ;;  %20699 = vst [vmem:[#allocation21_spill] sm:$0xff] %v16784_v31 }
 0x11b   :  { %12357 = vmatmul.mubr.f32.gmra.mrb[16].mxu0 %v16655_v8 }
 0x11c   :  { %12359 = vmatprep.mubr.f32.mxu0 %v16657_v45 }
 0x11f   :  { %12360 = vmatmul.mubr.f32.gmra.mrb[18].mxu0 %v16662_v12 }
 0x120   :  { %12362 = vmatprep.mubr.f32.mxu0 %v16664_v50 }
 0x123   :  { %12363 = vmatmul.mubr.f32.gmra.mrb[20].mxu0 %v16668_v49 }
 0x124   :  { %12365 = vmatprep.mubr.f32.mxu0 %v16670_v13 }
 0x127   :  { %12366 = vmatmul.mubr.f32.gmra.mrb[22].mxu0 %v16674_v14 }
 0x128   :  { %12368 = vmatprep.mubr.f32.mxu0 %v16676_v59 }
 0x12b   :  { %12369 = vmatmul.mubr.f32.gmra.mrb[24].mxu0 %v16680_v0 }
 0x12c   :  { %12371 = vmatprep.mubr.f32.mxu0 %v16682_v15 }
 0x12f   :  { %12372 = vmatmul.mubr.f32.gmra.mrb[26].mxu0 %v16686_v16 }
 0x130   :  { %12374 = vmatprep.mubr.f32.mxu0 %v16688_v17 }
 0x133   :  { %12375 = vmatmul.mubr.f32.gmra.mrb[28].mxu0 %v16692_v19 }
 0x134   :  { %12377 = vmatprep.mubr.f32.mxu0 %v16694_v32 }
 0x137   :  { %12378 = vmatmul.mubr.f32.gmra.mrb[30].mxu0 %v16698_v20 }
 0x138   :  { %12380 = vmatprep.mubr.f32.mxu0 %v373_v23  ;;  %v1869_v23 = vld [vmem:[#allocation6 + $0x190] sm:$0xff] }
 0x13b   :  { %12381 = vmatmul.mubr.f32.gmra.mrb[32].mxu0 %v374_v24  ;;  %v1870_v24 = vld [vmem:[#allocation6 + $0x198] sm:$0xff] }
 0x13c   :  { %12383 = vmatprep.mubr.f32.mxu0 %v16701_v25 }
 0x13f   :  { %12384 = vmatmul.mubr.f32.gmra.mrb[34].mxu0 %v16704_v26 }
 0x140   :  { %12386 = vmatprep.mubr.f32.mxu0 %v16706_v27 }
 0x143   :  { %12387 = vmatmul.mubr.f32.gmra.mrb[36].mxu0 %v16710_v28 }
 0x144   :  { %12389 = vmatprep.mubr.f32.mxu0 %v16712_v29 }
 0x147   :  { %12390 = vmatmul.mubr.f32.gmra.mrb[38].mxu0 %v16716_v30 }
 0x148   :  { %12392 = vmatprep.mubr.f32.mxu0 %v16718_v33 }
 0x14b   :  { %12393 = vmatmul.mubr.f32.gmra.mrb[40].mxu0 %v16722_v35 }
 0x14c   :  { %12395 = vmatprep.mubr.f32.mxu0 %v16724_v36 }
 0x14f   :  { %12396 = vmatmul.mubr.f32.gmra.mrb[42].mxu0 %v16728_v37 }
 0x150   :  { %12398 = vmatprep.mubr.f32.mxu0 %v16730_v39 }
 0x153   :  { %12399 = vmatmul.mubr.f32.gmra.mrb[44].mxu0 %v16734_v40 }
 0x154   :  { %12401 = vmatprep.mubr.f32.mxu0 %v16736_v41 }
 0x157   :  { %12402 = vmatmul.mubr.f32.gmra.mrb[46].mxu0 %v16740_v44 }
 0x158   :  { %12404 = vmatprep.mubr.f32.mxu0 %v16742_v46 }
 0x15b   :  { %12405 = vmatmul.mubr.f32.gmra.mrb[48].mxu0 %v16746_v47 }
 0x15c   :  { %12407 = vmatprep.mubr.f32.mxu0 %v16748_v52 }
 0x15f   :  { %12408 = vmatmul.mubr.f32.gmra.mrb[50].mxu0 %v16752_v53 }
 0x160   :  { %12410 = vmatprep.mubr.f32.mxu0 %v16754_v54 }
 0x163   :  { %12411 = vmatmul.mubr.f32.gmra.mrb[52].mxu0 %v16758_v57 }
 0x164   :  { %12413 = vmatprep.mubr.f32.mxu0 %v16760_v61  ;;  %v1873_v61 = vld [vmem:[#allocation6 + $0x1b0] sm:$0xff] }
 0x167   :  { %12414 = vmatmul.mubr.f32.gmra.mrb[54].mxu0 %v16764_v62 }
 0x168   :  { %12416 = vmatprep.mubr.f32.mxu0 %v16766_v2  ;;  %v1872_v2 = vld [vmem:[#allocation6 + $0x1a8] sm:$0xff] }
 0x16b   :  { %12417 = vmatmul.mubr.f32.gmra.mrb[56].mxu0 %v16770_v3  ;;  %v1871_v3 = vld [vmem:[#allocation6 + $0x1a0] sm:$0xff] }
 0x16c   :  { %12419 = vmatprep.mubr.f32.mxu0 %v16772_v4  ;;  %v1273_v4 = vld [vmem:[#allocation2 + $0x11] sm:$0xff]  ;;  %v14580_v62 = vpack.c.bf16 %v1872_v2, %v1871_v3  ;;  %v16809_v3 = vld [vmem:[#allocation2 + $0x89] sm:$0xff] }
 0x16d   :  { %v16807_v2 = vld [vmem:[#allocation2 + $0x71] sm:$0xff]  ;;  %20707 = vst [vmem:[#allocation29_spill] sm:$0xff] %v16809_v3 }
 0x16e   :  { %20706 = vst [vmem:[#allocation28_spill] sm:$0xff] %v16807_v2 }
 0x16f   :  { %12420 = vmatmul.mubr.f32.gmra.mrb[58].mxu0 %v16776_v10  ;;  %v16791_v10 = vld [vmem:[#allocation2 + $0x29] sm:$0xff] }
 0x170   :  { %12422 = vmatprep.mubr.f32.mxu0 %v16778_v11  ;;  %20701 = vst [vmem:[#allocation23_spill] sm:$0xff] %v16791_v10  ;;  %v14576_v11 = vpack.c.bf16 %v1870_v24, %v1869_v23  ;;  %v1875_v23 = vld [vmem:[#allocation6 + $0x1c0] sm:$0xff]  ;;  %v1876_v24 = vld [vmem:[#allocation6 + $0x1c8] sm:$0xff] }
 0x173   :  { %12423 = vmatmul.mubr.f32.gmra.mrb[60].mxu0 %v16782_v18  ;;  %v16797_v18 = vld [vmem:[#allocation2 + $0x49] sm:$0xff] }
 0x174   :  { %12425 = vmatprep.mubr.f32.mxu0 %v16784_v31  ;;  %v16795_v31 = vld [vmem:[#allocation2 + $0x31] sm:$0xff]  ;;  %20703 = vst [vmem:[#allocation25_spill] sm:$0xff] %v16797_v18 }
 0x175   :  { %20702 = vst [vmem:[#allocation24_spill] sm:$0xff] %v16795_v31 }
 0x177   :  { %12426 = vmatmul.mubr.f32.gmra.mrb[62].mxu0 %v16788_v34  ;;  %v1874_v34 = vld [vmem:[#allocation6 + $0x1b8] sm:$0xff] }
 0x178   :  { %12460 = vmatprep.mubr.f32.mxu0 %v1272_v60  ;;  %v16801_v60 = vld [vmem:[#allocation2 + $0x51] sm:$0xff] }
 0x179   :  { %20704 = vst [vmem:[#allocation26_spill] sm:$0xff] %v16801_v60 }
 0x17b   :  { %12461 = vmatmul.mubr.f32.vlgmr.msra.gmra.mrb[0].mxu0 %v1273_v4  ;;  %v16803_v4 = vld [vmem:[#allocation2 + $0x69] sm:$0xff] }
 0x17c   :  { %14575 = vmatpush3.bf16.msra.mxu0 %v16651_v9  ;;  %12463 = vmatprep.mubr.f32.mxu0 %v16791_v10  ;;  %20705 = vst [vmem:[#allocation27_spill] sm:$0xff] %v16803_v4  ;;  %v14584_v9 = vpack.c.bf16 %v1874_v34, %v1873_v61  ;;  %v1878_v10 = vld [vmem:[#allocation6 + $0x1d8] sm:$0xff] }
 0x17d   :  { %14577 = vmatprep.subr.bf16.mxu0 %v14576_v11  ;;  %v16813_v61 = vld [vmem:[#allocation2 + $0x91] sm:$0xff] }
 0x17e   :  { %20708 = vst [vmem:[#allocation30_spill] sm:$0xff] %v16813_v61 }
 0x17f   :  { %12464 = vmatmul.mubr.f32.gmra.mrb[2].mxu0 %v16795_v31  ;;  %v1877_v31 = vld [vmem:[#allocation6 + $0x1d0] sm:$0xff] }
 0x180   :  { %12466 = vmatprep.mubr.f32.mxu0 %v16797_v18  ;;  %14579 = vmatpush3.bf16.msra.mxu0 %v14576_v11  ;;  %v14588_v18 = vpack.c.bf16 %v1876_v24, %v1875_v23  ;;  %v16815_v11 = vld [vmem:[#allocation2 + $0xa9] sm:$0xff]  ;;  %v14592_v34 = vpack.c.bf16 %v1878_v10, %v1877_v31  ;;  %v16825_v10 = vld [vmem:[#allocation2 + $0xd1] sm:$0xff] }
 0x181   :  { %14581 = vmatprep.subr.bf16.mxu0 %v14580_v62  ;;  %20709 = vst [vmem:[#allocation31_spill] sm:$0xff] %v16815_v11  ;;  %v16821_v23 = vld [vmem:[#allocation2 + $0xc9] sm:$0xff]  ;;  %20712 = vst [vmem:[#allocation34_spill] sm:$0xff] %v16825_v10 }
 0x182   :  { %20711 = vst [vmem:[#allocation33_spill] sm:$0xff] %v16821_v23  ;;  %v16827_v31 = vld [vmem:[#allocation2 + $0xe9] sm:$0xff] }
 0x183   :  { %12467 = vmatmul.mubr.f32.gmra.mrb[4].mxu0 %v16801_v60  ;;  %v1880_v60 = vld [vmem:[#allocation6 + $0x1e8] sm:$0xff]  ;;  %20713 = vst [vmem:[#allocation35_spill] sm:$0xff] %v16827_v31 }
 0x184   :  { %12469 = vmatprep.mubr.f32.mxu0 %v16803_v4  ;;  %14583 = vmatpush3.bf16.msra.mxu0 %v14580_v62  ;;  %v1879_v4 = vld [vmem:[#allocation6 + $0x1e0] sm:$0xff]  ;;  %v16819_v62 = vld [vmem:[#allocation2 + $0xb1] sm:$0xff] }
 0x185   :  { %14585 = vmatprep.subr.bf16.mxu0 %v14584_v9  ;;  %20710 = vst [vmem:[#allocation32_spill] sm:$0xff] %v16819_v62  ;;  %v14596_v24 = vpack.c.bf16 %v1880_v60, %v1879_v4  ;;  %v16833_v60 = vld [vmem:[#allocation2 + $0x109] sm:$0xff] }
 0x186   :  { %20715 = vst [vmem:[#allocation37_spill] sm:$0xff] %v16833_v60 }
 0x187   :  { %12470 = vmatmul.mubr.f32.gmra.mrb[6].mxu0 %v16807_v2  ;;  %v1882_v2 = vld [vmem:[#allocation6 + $0x1f8] sm:$0xff] }
 0x188   :  { %12472 = vmatprep.mubr.f32.mxu0 %v16809_v3  ;;  %14587 = vmatpush3.bf16.msra.mxu0 %v14584_v9  ;;  %v1881_v3 = vld [vmem:[#allocation6 + $0x1f0] sm:$0xff] }
 0x189   :  { %14589 = vmatprep.subr.bf16.mxu0 %v14588_v18  ;;  %v14600_v9 = vpack.c.bf16 %v1882_v2, %v1881_v3  ;;  %v16841_v2 = vld [vmem:[#allocation2 + $0x129] sm:$0xff]  ;;  %v16846_v3 = vld [vmem:[#allocation2 + $0x131] sm:$0xff] }
 0x18a   :  { %20717 = vst [vmem:[#allocation39_spill] sm:$0xff] %v16841_v2  ;;  %20718 = vst [vmem:[#allocation40_spill] sm:$0xff] %v16846_v3 }
 0x18b   :  { %12473 = vmatmul.mubr.f32.gmra.mrb[8].mxu0 %v16813_v61  ;;  %v2398_v61 = vld [vmem:[#allocation6 + $0x208] sm:$0xff] }
 0x18c   :  { %12475 = vmatprep.mubr.f32.mxu0 %v16815_v11  ;;  %14591 = vmatpush3.bf16.msra.mxu0 %v14588_v18  ;;  %v2397_v11 = vld [vmem:[#allocation6 + $0x200] sm:$0xff]  ;;  %v16831_v18 = vld [vmem:[#allocation2 + $0xf1] sm:$0xff] }
 0x18d   :  { %14593 = vmatprep.subr.bf16.mxu0 %v14592_v34  ;;  %20714 = vst [vmem:[#allocation36_spill] sm:$0xff] %v16831_v18  ;;  %v16835_v4 = vpack.c.bf16 %v2398_v61, %v2397_v11  ;;  %v16852_v61 = vld [vmem:[#allocation2 + $0x151] sm:$0xff]  ;;  %v16854_v11 = vld [vmem:[#allocation2 + $0x169] sm:$0xff] }
 0x18e   :  { %20720 = vst [vmem:[#allocation42_spill] sm:$0xff] %v16852_v61  ;;  %20721 = vst [vmem:[#allocation43_spill] sm:$0xff] %v16854_v11 }
 0x18f   :  { %12476 = vmatmul.mubr.f32.gmra.mrb[10].mxu0 %v16819_v62  ;;  %v2402_v62 = vld [vmem:[#allocation6 + $0x228] sm:$0xff] }
 0x190   :  { %12478 = vmatprep.mubr.f32.mxu0 %v16821_v23  ;;  %14595 = vmatpush3.bf16.msra.mxu0 %v14592_v34  ;;  %v16839_v34 = vld [vmem:[#allocation2 + $0x111] sm:$0xff]  ;;  %v2401_v23 = vld [vmem:[#allocation6 + $0x220] sm:$0xff] }
 0x191   :  { %14597 = vmatprep.subr.bf16.mxu0 %v14596_v24  ;;  %20716 = vst [vmem:[#allocation38_spill] sm:$0xff] %v16839_v34 }
 0x193   :  { %12479 = vmatmul.mubr.f32.gmra.mrb[12].mxu0 %v16825_v10  ;;  %v2400_v10 = vld [vmem:[#allocation6 + $0x218] sm:$0xff] }
 0x194   :  { %12481 = vmatprep.mubr.f32.mxu0 %v16827_v31  ;;  %14599 = vmatpush3.bf16.msra.mxu0 %v14596_v24  ;;  %v16848_v24 = vld [vmem:[#allocation2 + $0x149] sm:$0xff] }
 0x195   :  { %14601 = vmatprep.subr.bf16.mxu0 %v14600_v9  ;;  %20719 = vst [vmem:[#allocation41_spill] sm:$0xff] %v16848_v24  ;;  %v16896_v31 = vld [vmem:[#allocation2 + $0x289] sm:$0xff] }
 0x196   :  { %20733 = vst [vmem:[#allocation55_spill] sm:$0xff] %v16896_v31 }
 0x197   :  { %12482 = vmatmul.mubr.f32.gmra.mrb[14].mxu0 %v16831_v18  ;;  %v1305_v18 = vld [vmem:[#allocation2 + $0x251] sm:$0xff] }
 0x198   :  { %12484 = vmatprep.mubr.f32.mxu0 %v16833_v60  ;;  %14603 = vmatpush3.bf16.msra.mxu0 %v14600_v9  ;;  %v16858_v9 = vld [vmem:[#allocation2 + $0x171] sm:$0xff] }
 0x199   :  { %14605 = vmatprep.subr.bf16.mxu0 %v16835_v4  ;;  %20722 = vst [vmem:[#allocation44_spill] sm:$0xff] %v16858_v9  ;;  %v16877_v60 = vld [vmem:[#allocation3 + $0xf8] sm:$0xff] }
 0x19a   :  { %308 = vst [vmem:[#allocation2 + $0x210] sm:$0xff] %v16877_v60 }
 0x19b   :  { %12485 = vmatmul.mubr.f32.gmra.mrb[16].mxu0 %v16839_v34  ;;  %v16860_v34 = vld [vmem:[#allocation2 + $0x189] sm:$0xff] }
 0x19c   :  { %12487 = vmatprep.mubr.f32.mxu0 %v16841_v2  ;;  %20723 = vst [vmem:[#allocation45_spill] sm:$0xff] %v16860_v34  ;;  %v16864_v2 = vld [vmem:[#allocation2 + $0x191] sm:$0xff] }
 0x19d   :  { %20724 = vst [vmem:[#allocation46_spill] sm:$0xff] %v16864_v2 }
 0x19f   :  { %12488 = vmatmul.mubr.f32.gmra.mrb[18].mxu0 %v16846_v3  ;;  %v16866_v3 = vld [vmem:[#allocation2 + $0x1a9] sm:$0xff] }
 0x1a0   :  { %12490 = vmatprep.mubr.f32.mxu0 %v16848_v24  ;;  %20725 = vst [vmem:[#allocation47_spill] sm:$0xff] %v16866_v3  ;;  %v16870_v24 = vld [vmem:[#allocation2 + $0x1b1] sm:$0xff] }
 0x1a1   :  { %20726 = vst [vmem:[#allocation48_spill] sm:$0xff] %v16870_v24 }
 0x1a3   :  { %12491 = vmatmul.mubr.f32.gmra.mrb[20].mxu0 %v16852_v61  ;;  %v16872_v61 = vld [vmem:[#allocation2 + $0x1c9] sm:$0xff] }
 0x1a4   :  { %12493 = vmatprep.mubr.f32.mxu0 %v16854_v11  ;;  %20727 = vst [vmem:[#allocation49_spill] sm:$0xff] %v16872_v61  ;;  %v16874_v11 = vld [vmem:[#allocation3 + $0xf0] sm:$0xff] }
 0x1a5   :  { %307 = vst [vmem:[#allocation2 + $0x208] sm:$0xff] %v16874_v11 }
 0x1a7   :  { %12494 = vmatmul.mubr.f32.gmra.mrb[22].mxu0 %v16858_v9  ;;  %v1304_v9 = vld [vmem:[#allocation2 + $0x249] sm:$0xff] }
 0x1a8   :  { %12496 = vmatprep.mubr.f32.mxu0 %v16860_v34  ;;  %v16882_v34 = vld [vmem:[#allocation2 + $0x1d1] sm:$0xff] }
 0x1a9   :  { %20728 = vst [vmem:[#allocation50_spill] sm:$0xff] %v16882_v34 }
 0x1ab   :  { %12497 = vmatmul.mubr.f32.gmra.mrb[24].mxu0 %v16864_v2  ;;  %v16884_v2 = vld [vmem:[#allocation2 + $0x1e9] sm:$0xff] }
 0x1ac   :  { %12499 = vmatprep.mubr.f32.mxu0 %v16866_v3  ;;  %20729 = vst [vmem:[#allocation51_spill] sm:$0xff] %v16884_v2  ;;  %v16888_v3 = vld [vmem:[#allocation2 + $0x1f1] sm:$0xff] }
 0x1ad   :  { %20730 = vst [vmem:[#allocation52_spill] sm:$0xff] %v16888_v3 }
 0x1af   :  { %12500 = vmatmul.mubr.f32.gmra.mrb[26].mxu0 %v16870_v24  ;;  %v16891_v24 = vld [vmem:[#allocation2 + $0x269] sm:$0xff] }
 0x1b0   :  { %12502 = vmatprep.mubr.f32.mxu0 %v16872_v61  ;;  %20731 = vst [vmem:[#allocation53_spill] sm:$0xff] %v16891_v24  ;;  %v16894_v61 = vld [vmem:[#allocation2 + $0x271] sm:$0xff] }
 0x1b1   :  { %20732 = vst [vmem:[#allocation54_spill] sm:$0xff] %v16894_v61 }
 0x1b3   :  { %12503 = vmatmul.mubr.f32.gmra.mrb[28].mxu0 %v16882_v34  ;;  %v16902_v34 = vld [vmem:[#allocation2 + $0x2a9] sm:$0xff] }
 0x1b4   :  { %12505 = vmatprep.mubr.f32.mxu0 %v16884_v2  ;;  %v16900_v2 = vld [vmem:[#allocation2 + $0x291] sm:$0xff]  ;;  %20735 = vst [vmem:[#allocation57_spill] sm:$0xff] %v16902_v34 }
 0x1b5   :  { %20734 = vst [vmem:[#allocation56_spill] sm:$0xff] %v16900_v2 }
 0x1b7   :  { %12506 = vmatmul.mubr.f32.gmra.mrb[30].mxu0 %v16888_v3  ;;  %v16973_v3 = vld [vmem:[#allocation3 + $0x1f8] sm:$0xff] }
 0x1b8   :  { %12508 = vmatprep.mubr.f32.mxu0 %v1304_v9  ;;  %v16906_v9 = vld [vmem:[#allocation2 + $0x2b1] sm:$0xff]  ;;  %340 = vst [vmem:[#allocation2 + $0x450] sm:$0xff] %v16973_v3 }
 0x1b9   :  { %20736 = vst [vmem:[#allocation58_spill] sm:$0xff] %v16906_v9 }
 0x1bb   :  { %12509 = vmatmul.mubr.f32.gmra.mrb[32].mxu0 %v1305_v18  ;;  %v16908_v18 = vld [vmem:[#allocation2 + $0x2c9] sm:$0xff] }
 0x1bc   :  { %12511 = vmatprep.mubr.f32.mxu0 %v16891_v24  ;;  %20737 = vst [vmem:[#allocation59_spill] sm:$0xff] %v16908_v18  ;;  %v16912_v24 = vld [vmem:[#allocation2 + $0x2d1] sm:$0xff] }
 0x1bd   :  { %20738 = vst [vmem:[#allocation60_spill] sm:$0xff] %v16912_v24 }
 0x1bf   :  { %12512 = vmatmul.mubr.f32.gmra.mrb[34].mxu0 %v16894_v61  ;;  %v16914_v61 = vld [vmem:[#allocation2 + $0x2e9] sm:$0xff] }
 0x1c0   :  { %12514 = vmatprep.mubr.f32.mxu0 %v16896_v31  ;;  %20739 = vst [vmem:[#allocation61_spill] sm:$0xff] %v16914_v61  ;;  %v16918_v31 = vld [vmem:[#allocation2 + $0x2f1] sm:$0xff] }
 0x1c1   :  { %20740 = vst [vmem:[#allocation62_spill] sm:$0xff] %v16918_v31 }
 0x1c3   :  { %12515 = vmatmul.mubr.f32.gmra.mrb[36].mxu0 %v16900_v2  ;;  %v16920_v2 = vld [vmem:[#allocation2 + $0x309] sm:$0xff] }
 0x1c4   :  { %12517 = vmatprep.mubr.f32.mxu0 %v16902_v34  ;;  %20741 = vst [vmem:[#allocation63_spill] sm:$0xff] %v16920_v2  ;;  %v16924_v34 = vld [vmem:[#allocation2 + $0x311] sm:$0xff] }
 0x1c5   :  { %20742 = vst [vmem:[#allocation64_spill] sm:$0xff] %v16924_v34 }
 0x1c7   :  { %12518 = vmatmul.mubr.f32.gmra.mrb[38].mxu0 %v16906_v9  ;;  %v16926_v9 = vld [vmem:[#allocation2 + $0x329] sm:$0xff] }
 0x1c8   :  { %12520 = vmatprep.mubr.f32.mxu0 %v16908_v18  ;;  %20743 = vst [vmem:[#allocation65_spill] sm:$0xff] %v16926_v9  ;;  %v16930_v18 = vld [vmem:[#allocation2 + $0x331] sm:$0xff] }
 0x1c9   :  { %20744 = vst [vmem:[#allocation66_spill] sm:$0xff] %v16930_v18 }
 0x1cb   :  { %12521 = vmatmul.mubr.f32.gmra.mrb[40].mxu0 %v16912_v24  ;;  %v16932_v24 = vld [vmem:[#allocation2 + $0x349] sm:$0xff] }
 0x1cc   :  { %12523 = vmatprep.mubr.f32.mxu0 %v16914_v61  ;;  %20745 = vst [vmem:[#allocation67_spill] sm:$0xff] %v16932_v24  ;;  %v16936_v61 = vld [vmem:[#allocation2 + $0x351] sm:$0xff] }
 0x1cd   :  { %20746 = vst [vmem:[#allocation68_spill] sm:$0xff] %v16936_v61 }
 0x1cf   :  { %12524 = vmatmul.mubr.f32.gmra.mrb[42].mxu0 %v16918_v31  ;;  %v16938_v31 = vld [vmem:[#allocation2 + $0x369] sm:$0xff] }
 0x1d0   :  { %12526 = vmatprep.mubr.f32.mxu0 %v16920_v2  ;;  %20747 = vst [vmem:[#allocation69_spill] sm:$0xff] %v16938_v31  ;;  %v16942_v2 = vld [vmem:[#allocation2 + $0x371] sm:$0xff] }
 0x1d1   :  { %20748 = vst [vmem:[#allocation70_spill] sm:$0xff] %v16942_v2 }
 0x1d3   :  { %12527 = vmatmul.mubr.f32.gmra.mrb[44].mxu0 %v16924_v34  ;;  %v16944_v34 = vld [vmem:[#allocation2 + $0x389] sm:$0xff] }
 0x1d4   :  { %12529 = vmatprep.mubr.f32.mxu0 %v16926_v9  ;;  %20749 = vst [vmem:[#allocation71_spill] sm:$0xff] %v16944_v34  ;;  %v16948_v9 = vld [vmem:[#allocation2 + $0x391] sm:$0xff] }
 0x1d5   :  { %20750 = vst [vmem:[#allocation72_spill] sm:$0xff] %v16948_v9 }
 0x1d7   :  { %12530 = vmatmul.mubr.f32.gmra.mrb[46].mxu0 %v16930_v18  ;;  %v16950_v18 = vld [vmem:[#allocation2 + $0x3a9] sm:$0xff] }
 0x1d8   :  { %12532 = vmatprep.mubr.f32.mxu0 %v16932_v24  ;;  %20751 = vst [vmem:[#allocation73_spill] sm:$0xff] %v16950_v18  ;;  %v16954_v24 = vld [vmem:[#allocation2 + $0x3b1] sm:$0xff] }
 0x1d9   :  { %20752 = vst [vmem:[#allocation74_spill] sm:$0xff] %v16954_v24 }
 0x1db   :  { %12533 = vmatmul.mubr.f32.gmra.mrb[48].mxu0 %v16936_v61  ;;  %v16956_v61 = vld [vmem:[#allocation2 + $0x3c9] sm:$0xff] }
 0x1dc   :  { %12535 = vmatprep.mubr.f32.mxu0 %v16938_v31  ;;  %20753 = vst [vmem:[#allocation75_spill] sm:$0xff] %v16956_v61  ;;  %v16960_v31 = vld [vmem:[#allocation2 + $0x3d1] sm:$0xff] }
 0x1dd   :  { %20754 = vst [vmem:[#allocation76_spill] sm:$0xff] %v16960_v31 }
 0x1df   :  { %12536 = vmatmul.mubr.f32.gmra.mrb[50].mxu0 %v16942_v2  ;;  %v16962_v2 = vld [vmem:[#allocation2 + $0x3e9] sm:$0xff] }
 0x1e0   :  { %12538 = vmatprep.mubr.f32.mxu0 %v16944_v34  ;;  %20755 = vst [vmem:[#allocation77_spill] sm:$0xff] %v16962_v2  ;;  %v16966_v34 = vld [vmem:[#allocation2 + $0x3f1] sm:$0xff] }
 0x1e1   :  { %20756 = vst [vmem:[#allocation78_spill] sm:$0xff] %v16966_v34 }
 0x1e3   :  { %12539 = vmatmul.mubr.f32.gmra.mrb[52].mxu0 %v16948_v9  ;;  %v16968_v9 = vld [vmem:[#allocation2 + $0x409] sm:$0xff] }
 0x1e4   :  { %12541 = vmatprep.mubr.f32.mxu0 %v16950_v18  ;;  %20757 = vst [vmem:[#allocation79_spill] sm:$0xff] %v16968_v9  ;;  %v16970_v18 = vld [vmem:[#allocation3 + $0x1f0] sm:$0xff] }
 0x1e5   :  { %339 = vst [vmem:[#allocation2 + $0x448] sm:$0xff] %v16970_v18 }
 0x1e7   :  { %12542 = vmatmul.mubr.f32.gmra.mrb[54].mxu0 %v16954_v24  ;;  %v2399_v24 = vld [vmem:[#allocation6 + $0x210] sm:$0xff] }
 0x1e8   :  { %12544 = vmatprep.mubr.f32.mxu0 %v16956_v61  ;;  %v16978_v61 = vld [vmem:[#allocation2 + $0x411] sm:$0xff] }
 0x1e9   :  { %20758 = vst [vmem:[#allocation80_spill] sm:$0xff] %v16978_v61 }
 0x1eb   :  { %12545 = vmatmul.mubr.f32.gmra.mrb[56].mxu0 %v16960_v31  ;;  %v16980_v31 = vld [vmem:[#allocation2 + $0x429] sm:$0xff] }
 0x1ec   :  { %12547 = vmatprep.mubr.f32.mxu0 %v16962_v2  ;;  %20759 = vst [vmem:[#allocation81_spill] sm:$0xff] %v16980_v31  ;;  %v16984_v2 = vld [vmem:[#allocation2 + $0x431] sm:$0xff] }
 0x1ef   :  { %12548 = vmatmul.mubr.f32.gmra.mrb[58].mxu0 %v16966_v34  ;;  %v14608_v34 = vpack.c.bf16 %v2400_v10, %v2399_v24  ;;  %v2405_v10 = vld [vmem:[#allocation6 + $0x240] sm:$0xff]  ;;  %v2406_v24 = vld [vmem:[#allocation6 + $0x248] sm:$0xff] }
 0x1f0   :  { %12550 = vmatprep.mubr.f32.mxu0 %v16968_v9  ;;  %v2404_v9 = vld [vmem:[#allocation6 + $0x238] sm:$0xff] }
 0x1f3   :  { %12551 = vmatmul.mubr.f32.gmra.mrb[60].mxu0 %v16978_v61  ;;  %v14612_v61 = vpack.c.bf16 %v2402_v62, %v2401_v23  ;;  %v2408_v62 = vld [vmem:[#allocation6 + $0x258] sm:$0xff]  ;;  %v2410_v23 = vld [vmem:[#allocation6 + $0x268] sm:$0xff] }
 0x1f4   :  { %12553 = vmatprep.mubr.f32.mxu0 %v16980_v31  ;;  %v2403_v31 = vld [vmem:[#allocation6 + $0x230] sm:$0xff] }
 0x1f7   :  { %12554 = vmatmul.mubr.f32.gmra.mrb[62].mxu0 %v16984_v2 }
 0x1f8   :  { %12588 = vmatprep.mubr.f32.mxu0 %v16608_v38  ;;  %v14616_v38 = vpack.c.bf16 %v2404_v9, %v2403_v31  ;;  %v2412_v31 = vld [vmem:[#allocation6 + $0x278] sm:$0xff]  ;;  %v17091_v9 = vld [vmem:[#allocation2 + $0xd0] sm:$0xff] }
 0x1fb   :  { %12589 = vmatmul.mubr.f32.vlgmr.msra.gmra.mrb[0].mxu0 %v16611_v42  ;;  %v14620_v42 = vpack.c.bf16 %v2406_v24, %v2405_v10  ;;  %v2941_v24 = vld [vmem:[#allocation6 + $0x2f0] sm:$0xff] }
 0x1fc   :  { %14607 = vmatpush3.bf16.msra.mxu0 %v16835_v4  ;;  %12591 = vmatprep.mubr.f32.mxu0 %v16613_v43  ;;  %v2407_v43 = vld [vmem:[#allocation6 + $0x250] sm:$0xff]  ;;  %v2928_v4 = vld [vmem:[#allocation6 + $0x288] sm:$0xff] }
 0x1fd   :  { %14609 = vmatprep.subr.bf16.mxu0 %v14608_v34 }
 0x1ff   :  { %12592 = vmatmul.mubr.f32.gmra.mrb[2].mxu0 %v16617_v48  ;;  %v14624_v48 = vpack.c.bf16 %v2408_v62, %v2407_v43  ;;  %v17097_v43 = vld [vmem:[#allocation2 + $0xf0] sm:$0xff]  ;;  %v17099_v62 = vld [vmem:[#allocation2 + $0x108] sm:$0xff] }
 0x200   :  { %12594 = vmatprep.mubr.f32.mxu0 %v16619_v51  ;;  %14611 = vmatpush3.bf16.msra.mxu0 %v14608_v34  ;;  %v2409_v51 = vld [vmem:[#allocation6 + $0x260] sm:$0xff] }
 0x201   :  { %14613 = vmatprep.subr.bf16.mxu0 %v14612_v61  ;;  %v2939_v34 = vld [vmem:[#allocation6 + $0x2e0] sm:$0xff] }
 0x203   :  { %12595 = vmatmul.mubr.f32.gmra.mrb[4].mxu0 %v16623_v55  ;;  %v14628_v55 = vpack.c.bf16 %v2410_v23, %v2409_v51  ;;  %v3458_v51 = vld [vmem:[#allocation6 + $0x300] sm:$0xff]  ;;  %v3459_v23 = vld [vmem:[#allocation6 + $0x308] sm:$0xff] }
 0x204   :  { %12597 = vmatprep.mubr.f32.mxu0 %v16625_v56  ;;  %14615 = vmatpush3.bf16.msra.mxu0 %v14612_v61  ;;  %v2411_v56 = vld [vmem:[#allocation6 + $0x270] sm:$0xff]  ;;  %v2940_v61 = vld [vmem:[#allocation6 + $0x2e8] sm:$0xff] }
 0x205   :  { %14617 = vmatprep.subr.bf16.mxu0 %v14616_v38  ;;  %v14660_v10 = vpack.c.bf16 %v2940_v61, %v2939_v34  ;;  %v17206_v34 = vld [vmem:[#allocation2 + $0x3a8] sm:$0xff]  ;;  %v17210_v61 = vld [vmem:[#allocation2 + $0x3b0] sm:$0xff] }
 0x207   :  { %12598 = vmatmul.mubr.f32.gmra.mrb[6].mxu0 %v16629_v63  ;;  %v14632_v63 = vpack.c.bf16 %v2412_v31, %v2411_v56  ;;  %v17105_v56 = vld [vmem:[#allocation2 + $0x128] sm:$0xff]  ;;  %v17107_v31 = vpack.c.bf16 %v3459_v23, %v3458_v51  ;;  %v17228_v23 = vld [vmem:[#allocation2 + $0x410] sm:$0xff] }
 0x208   :  { %12600 = vmatprep.mubr.f32.mxu0 %v16631_v1  ;;  %14619 = vmatpush3.bf16.msra.mxu0 %v14616_v38  ;;  %v2927_v1 = vld [vmem:[#allocation6 + $0x280] sm:$0xff]  ;;  %v17093_v38 = vld [vmem:[#allocation2 + $0xe8] sm:$0xff]  ;;  %20780 = vst [vmem:[#allocation82_spill] sm:$0xff] %v17228_v23 }
 0x209   :  { %14621 = vmatprep.subr.bf16.mxu0 %v14620_v42  ;;  %v17224_v51 = vld [vmem:[#allocation2 + $0x408] sm:$0xff] }
 0x20b   :  { %12601 = vmatmul.mubr.f32.gmra.mrb[8].mxu0 %v16635_v6  ;;  %v17003_v6 = vpack.c.bf16 %v2928_v4, %v2927_v1  ;;  %v17113_v1 = vld [vmem:[#allocation2 + $0x148] sm:$0xff]  ;;  %v17118_v4 = vld [vmem:[#allocation2 + $0x150] sm:$0xff] }
 0x20c   :  { %12603 = vmatprep.mubr.f32.mxu0 %v16637_v7  ;;  %14623 = vmatpush3.bf16.msra.mxu0 %v14620_v42  ;;  %v17020_v7 = vld [vmem:[#allocation2 + $0x207] sm:$0xff]  ;;  %v2942_v42 = vld [vmem:[#allocation6 + $0x2f8] sm:$0xff] }
 0x20d   :  { %14625 = vmatprep.subr.bf16.mxu0 %v14624_v48 }
 0x20f   :  { %12604 = vmatmul.mubr.f32.gmra.mrb[10].mxu0 %v16641_v21  ;;  %v17024_v21 = vld [vmem:[#allocation2 + $0x20f] sm:$0xff] }
 0x210   :  { %12606 = vmatprep.mubr.f32.mxu0 %v16643_v22  ;;  %14627 = vmatpush3.bf16.msra.mxu0 %v14624_v48  ;;  %v20760_v22 = vld [vmem:[#allocation13_spill] sm:$0xff]  ;;  %v14664_v48 = vpack.c.bf16 %v2942_v42, %v2941_v24  ;;  %v17216_v24 = vld [vmem:[#allocation2 + $0x3d0] sm:$0xff]  ;;  %v17218_v42 = vld [vmem:[#allocation2 + $0x3e8] sm:$0xff] }
 0x211   :  { %14629 = vmatprep.subr.bf16.mxu0 %v14628_v55 }
 0x213   :  { %12607 = vmatmul.mubr.f32.gmra.mrb[12].mxu0 %v16647_v58  ;;  %v20761_v58 = vld [vmem:[#allocation14_spill] sm:$0xff] }
 0x214   :  { %12609 = vmatprep.mubr.f32.mxu0 %v16649_v5  ;;  %14631 = vmatpush3.bf16.msra.mxu0 %v14628_v55  ;;  %v20762_v5 = vld [vmem:[#allocation15_spill] sm:$0xff] }
 0x215   :  { %14633 = vmatprep.subr.bf16.mxu0 %v14632_v63  ;;  %v17103_v55 = vld [vmem:[#allocation2 + $0x110] sm:$0xff] }
 0x217   :  { %12610 = vmatmul.mubr.f32.gmra.mrb[14].mxu0 %v16655_v8  ;;  %v20763_v8 = vld [vmem:[#allocation16_spill] sm:$0xff] }
 0x218   :  { %12612 = vmatprep.mubr.f32.mxu0 %v16657_v45  ;;  %14635 = vmatpush3.bf16.msra.mxu0 %v14632_v63  ;;  %v20764_v45 = vld [vmem:[#allocation17_spill] sm:$0xff]  ;;  %v17111_v63 = vld [vmem:[#allocation2 + $0x130] sm:$0xff]  ;;  %20773 = vst [vmem:[#allocation16_spill] sm:$0xff] %v17206_v34 }
 0x219   :  { %14637 = vmatprep.subr.bf16.mxu0 %v17003_v6  ;;  %20774 = vst [vmem:[#allocation17_spill] sm:$0xff] %v17210_v61 }
 0x21b   :  { %12613 = vmatmul.mubr.f32.gmra.mrb[16].mxu0 %v16662_v12  ;;  %v20765_v12 = vld [vmem:[#allocation18_spill] sm:$0xff] }
 0x21c   :  { %12615 = vmatprep.mubr.f32.mxu0 %v16664_v50  ;;  %v20766_v50 = vld [vmem:[#allocation19_spill] sm:$0xff] }
 0x21d   :  { %20776 = vst [vmem:[#allocation19_spill] sm:$0xff] %v17216_v24 }
 0x21f   :  { %12616 = vmatmul.mubr.f32.gmra.mrb[18].mxu0 %v16668_v49  ;;  %v20767_v49 = vld [vmem:[#allocation20_spill] sm:$0xff] }
 0x220   :  { %12618 = vmatprep.mubr.f32.mxu0 %v16670_v13  ;;  %v20768_v13 = vld [vmem:[#allocation21_spill] sm:$0xff]  ;;  %20777 = vst [vmem:[#allocation20_spill] sm:$0xff] %v17218_v42 }
 0x223   :  { %12619 = vmatmul.mubr.f32.gmra.mrb[20].mxu0 %v16674_v14  ;;  %v17056_v14 = vld [vmem:[#allocation2 + $0x447] sm:$0xff] }
 0x224   :  { %12621 = vmatprep.mubr.f32.mxu0 %v16676_v59  ;;  %v20769_v59 = vld [vmem:[#allocation22_spill] sm:$0xff] }
 0x225   :  { %20779 = vst [vmem:[#allocation22_spill] sm:$0xff] %v17224_v51 }
 0x227   :  { %12622 = vmatmul.mubr.f32.gmra.mrb[22].mxu0 %v16680_v0  ;;  %v17060_v0 = vld [vmem:[#allocation2 + $0x44f] sm:$0xff] }
 0x228   :  { %12624 = vmatprep.mubr.f32.mxu0 %v16682_v15  ;;  %v2332_v15 = vld [vmem:[#allocation2 + $0x28] sm:$0xff] }
 0x22b   :  { %12625 = vmatmul.mubr.f32.gmra.mrb[24].mxu0 %v16686_v16  ;;  %v2929_v16 = vld [vmem:[#allocation6 + $0x290] sm:$0xff] }
 0x22c   :  { %12627 = vmatprep.mubr.f32.mxu0 %v16688_v17  ;;  %v2930_v17 = vld [vmem:[#allocation6 + $0x298] sm:$0xff] }
 0x22f   :  { %12628 = vmatmul.mubr.f32.gmra.mrb[26].mxu0 %v16692_v19  ;;  %v2333_v19 = vld [vmem:[#allocation2 + $0x30] sm:$0xff] }
 0x230   :  { %12630 = vmatprep.mubr.f32.mxu0 %v16694_v32  ;;  %v17063_v32 = vld [vmem:[#allocation2 + $0x48] sm:$0xff] }
 0x233   :  { %12631 = vmatmul.mubr.f32.gmra.mrb[28].mxu0 %v16698_v20  ;;  %v14640_v20 = vpack.c.bf16 %v2930_v17, %v2929_v16  ;;  %v17153_v16 = vld [vmem:[#allocation2 + $0x288] sm:$0xff]  ;;  %v17156_v17 = vld [vmem:[#allocation2 + $0x290] sm:$0xff] }
 0x234   :  { %12633 = vmatprep.mubr.f32.mxu0 %v17020_v7 }
 0x237   :  { %12634 = vmatmul.mubr.f32.gmra.mrb[30].mxu0 %v17024_v21 }
 0x238   :  { %12636 = vmatprep.mubr.f32.mxu0 %v16701_v25  ;;  %v2931_v25 = vld [vmem:[#allocation6 + $0x2a0] sm:$0xff] }
 0x23b   :  { %12637 = vmatmul.mubr.f32.gmra.mrb[32].mxu0 %v16704_v26  ;;  %v2932_v26 = vld [vmem:[#allocation6 + $0x2a8] sm:$0xff] }
 0x23c   :  { %12639 = vmatprep.mubr.f32.mxu0 %v16706_v27  ;;  %v17067_v27 = vld [vmem:[#allocation2 + $0x50] sm:$0xff] }
 0x23f   :  { %12640 = vmatmul.mubr.f32.gmra.mrb[34].mxu0 %v16710_v28  ;;  %v17069_v28 = vld [vmem:[#allocation2 + $0x68] sm:$0xff] }
 0x240   :  { %12642 = vmatprep.mubr.f32.mxu0 %v16712_v29  ;;  %v14644_v29 = vpack.c.bf16 %v2932_v26, %v2931_v25  ;;  %v17170_v25 = vld [vmem:[#allocation2 + $0x2e8] sm:$0xff]  ;;  %v17174_v26 = vld [vmem:[#allocation2 + $0x2f0] sm:$0xff] }
 0x243   :  { %12643 = vmatmul.mubr.f32.gmra.mrb[36].mxu0 %v16716_v30  ;;  %v2933_v30 = vld [vmem:[#allocation6 + $0x2b0] sm:$0xff] }
 0x244   :  { %12645 = vmatprep.mubr.f32.mxu0 %v16718_v33  ;;  %v2934_v33 = vld [vmem:[#allocation6 + $0x2b8] sm:$0xff] }
 0x247   :  { %12646 = vmatmul.mubr.f32.gmra.mrb[38].mxu0 %v16722_v35  ;;  %v17073_v35 = vld [vmem:[#allocation2 + $0x70] sm:$0xff] }
 0x248   :  { %12648 = vmatprep.mubr.f32.mxu0 %v16724_v36  ;;  %v17075_v36 = vld [vmem:[#allocation2 + $0x88] sm:$0xff] }
 0x24b   :  { %12649 = vmatmul.mubr.f32.gmra.mrb[40].mxu0 %v16728_v37  ;;  %v14648_v37 = vpack.c.bf16 %v2934_v33, %v2933_v30  ;;  %v17180_v30 = vld [vmem:[#allocation2 + $0x310] sm:$0xff]  ;;  %v17182_v33 = vld [vmem:[#allocation2 + $0x328] sm:$0xff] }
 0x24c   :  { %12651 = vmatprep.mubr.f32.mxu0 %v16730_v39  ;;  %v2935_v39 = vld [vmem:[#allocation6 + $0x2c0] sm:$0xff] }
 0x24f   :  { %12652 = vmatmul.mubr.f32.gmra.mrb[42].mxu0 %v16734_v40  ;;  %v2936_v40 = vld [vmem:[#allocation6 + $0x2c8] sm:$0xff] }
 0x250   :  { %12654 = vmatprep.mubr.f32.mxu0 %v16736_v41  ;;  %v17079_v41 = vld [vmem:[#allocation2 + $0x90] sm:$0xff] }
 0x253   :  { %12655 = vmatmul.mubr.f32.gmra.mrb[44].mxu0 %v16740_v44  ;;  %v17081_v44 = vld [vmem:[#allocation2 + $0xa8] sm:$0xff] }
 0x254   :  { %12657 = vmatprep.mubr.f32.mxu0 %v16742_v46  ;;  %v14652_v46 = vpack.c.bf16 %v2936_v40, %v2935_v39  ;;  %v17188_v39 = vld [vmem:[#allocation2 + $0x348] sm:$0xff]  ;;  %v17192_v40 = vld [vmem:[#allocation2 + $0x350] sm:$0xff] }
 0x257   :  { %12658 = vmatmul.mubr.f32.gmra.mrb[46].mxu0 %v16746_v47  ;;  %v2937_v47 = vld [vmem:[#allocation6 + $0x2d0] sm:$0xff] }
 0x258   :  { %12660 = vmatprep.mubr.f32.mxu0 %v16748_v52  ;;  %v2938_v52 = vld [vmem:[#allocation6 + $0x2d8] sm:$0xff] }
 0x25b   :  { %12661 = vmatmul.mubr.f32.gmra.mrb[48].mxu0 %v16752_v53  ;;  %v17085_v53 = vld [vmem:[#allocation2 + $0xb0] sm:$0xff] }
 0x25c   :  { %12663 = vmatprep.mubr.f32.mxu0 %v16754_v54  ;;  %v17087_v54 = vld [vmem:[#allocation2 + $0xc8] sm:$0xff] }
 0x25f   :  { %12664 = vmatmul.mubr.f32.gmra.mrb[50].mxu0 %v16758_v57  ;;  %v14656_v57 = vpack.c.bf16 %v2938_v52, %v2937_v47  ;;  %v17198_v47 = vld [vmem:[#allocation2 + $0x370] sm:$0xff]  ;;  %v17200_v52 = vld [vmem:[#allocation2 + $0x388] sm:$0xff] }
 0x260   :  { %12666 = vmatprep.mubr.f32.mxu0 %v20760_v22  ;;  %v17124_v22 = vld [vmem:[#allocation2 + $0x170] sm:$0xff]  ;;  %20770 = vst [vmem:[#allocation13_spill] sm:$0xff] %v17198_v47  ;;  %20771 = vst [vmem:[#allocation14_spill] sm:$0xff] %v17200_v52 }
 0x263   :  { %12667 = vmatmul.mubr.f32.gmra.mrb[52].mxu0 %v20761_v58  ;;  %v17126_v58 = vld [vmem:[#allocation2 + $0x188] sm:$0xff] }
 0x264   :  { %12669 = vmatprep.mubr.f32.mxu0 %v20762_v5  ;;  %v17130_v5 = vld [vmem:[#allocation2 + $0x190] sm:$0xff] }
 0x267   :  { %12670 = vmatmul.mubr.f32.gmra.mrb[54].mxu0 %v20763_v8  ;;  %v17132_v8 = vld [vmem:[#allocation2 + $0x1a8] sm:$0xff] }
 0x268   :  { %12672 = vmatprep.mubr.f32.mxu0 %v20764_v45  ;;  %v17136_v45 = vld [vmem:[#allocation2 + $0x1b0] sm:$0xff] }
 0x26b   :  { %12673 = vmatmul.mubr.f32.gmra.mrb[56].mxu0 %v20765_v12  ;;  %v17138_v12 = vld [vmem:[#allocation2 + $0x1c8] sm:$0xff] }
 0x26c   :  { %12675 = vmatprep.mubr.f32.mxu0 %v20766_v50  ;;  %v17142_v50 = vld [vmem:[#allocation2 + $0x1d0] sm:$0xff] }
 0x26f   :  { %12676 = vmatmul.mubr.f32.gmra.mrb[58].mxu0 %v20767_v49  ;;  %v17144_v49 = vld [vmem:[#allocation2 + $0x1e8] sm:$0xff] }
 0x270   :  { %12678 = vmatprep.mubr.f32.mxu0 %v20768_v13  ;;  %v17148_v13 = vld [vmem:[#allocation2 + $0x1f0] sm:$0xff] }
 0x273   :  { %12679 = vmatmul.mubr.f32.gmra.mrb[60].mxu0 %v20769_v59  ;;  %v2364_v59 = vld [vmem:[#allocation2 + $0x268] sm:$0xff] }
 0x274   :  { %12681 = vmatprep.mubr.f32.mxu0 %v17056_v14 }
 0x277   :  { %12682 = vmatmul.mubr.f32.gmra.mrb[62].mxu0 %v17060_v0 }
 0x278   :  { %12716 = vmatprep.mubr.f32.mxu0 %v2332_v15  ;;  %v2365_v15 = vld [vmem:[#allocation2 + $0x270] sm:$0xff] }
 0x27b   :  { %12717 = vmatmul.mubr.f32.vlgmr.msra.gmra.mrb[0].mxu0 %v2333_v19  ;;  %v17158_v19 = vld [vmem:[#allocation2 + $0x2a8] sm:$0xff] }
 0x27c   :  { %14639 = vmatpush3.bf16.msra.mxu0 %v17003_v6  ;;  %12719 = vmatprep.mubr.f32.mxu0 %v17063_v32  ;;  %v17120_v6 = vld [vmem:[#allocation2 + $0x168] sm:$0xff] }
 0x27d   :  { %14641 = vmatprep.subr.bf16.mxu0 %v14640_v20 }
 0x27f   :  { %12720 = vmatmul.mubr.f32.gmra.mrb[2].mxu0 %v17067_v27 }
 0x280   :  { %12722 = vmatprep.mubr.f32.mxu0 %v17069_v28  ;;  %14643 = vmatpush3.bf16.msra.mxu0 %v14640_v20  ;;  %v17162_v20 = vld [vmem:[#allocation2 + $0x2b0] sm:$0xff] }
 0x281   :  { %14645 = vmatprep.subr.bf16.mxu0 %v14644_v29 }
 0x283   :  { %12723 = vmatmul.mubr.f32.gmra.mrb[4].mxu0 %v17073_v35 }
 0x284   :  { %12725 = vmatprep.mubr.f32.mxu0 %v17075_v36  ;;  %14647 = vmatpush3.bf16.msra.mxu0 %v14644_v29  ;;  %v17176_v29 = vld [vmem:[#allocation2 + $0x308] sm:$0xff] }
 0x285   :  { %14649 = vmatprep.subr.bf16.mxu0 %v14648_v37 }
 0x287   :  { %12726 = vmatmul.mubr.f32.gmra.mrb[6].mxu0 %v17079_v41 }
 0x288   :  { %12728 = vmatprep.mubr.f32.mxu0 %v17081_v44  ;;  %14651 = vmatpush3.bf16.msra.mxu0 %v14648_v37  ;;  %v17186_v37 = vld [vmem:[#allocation2 + $0x330] sm:$0xff] }
 0x289   :  { %14653 = vmatprep.subr.bf16.mxu0 %v14652_v46 }
 0x28b   :  { %12729 = vmatmul.mubr.f32.gmra.mrb[8].mxu0 %v17085_v53 }
 0x28c   :  { %12731 = vmatprep.mubr.f32.mxu0 %v17087_v54  ;;  %14655 = vmatpush3.bf16.msra.mxu0 %v14652_v46  ;;  %v17194_v46 = vld [vmem:[#allocation2 + $0x368] sm:$0xff] }
 0x28d   :  { %14657 = vmatprep.subr.bf16.mxu0 %v14656_v57 }
 0x28f   :  { %12732 = vmatmul.mubr.f32.gmra.mrb[10].mxu0 %v17091_v9 }
 0x290   :  { %12734 = vmatprep.mubr.f32.mxu0 %v17093_v38  ;;  %14659 = vmatpush3.bf16.msra.mxu0 %v14656_v57  ;;  %v17204_v57 = vld [vmem:[#allocation2 + $0x390] sm:$0xff] }
 0x291   :  { %14661 = vmatprep.subr.bf16.mxu0 %v14660_v10  ;;  %20772 = vst [vmem:[#allocation15_spill] sm:$0xff] %v17204_v57 }
 0x293   :  { %12735 = vmatmul.mubr.f32.gmra.mrb[12].mxu0 %v17097_v43 }
 0x294   :  { %12737 = vmatprep.mubr.f32.mxu0 %v17099_v62  ;;  %14663 = vmatpush3.bf16.msra.mxu0 %v14660_v10  ;;  %v17212_v10 = vld [vmem:[#allocation2 + $0x3c8] sm:$0xff] }
 0x295   :  { %14665 = vmatprep.subr.bf16.mxu0 %v14664_v48  ;;  %20775 = vst [vmem:[#allocation18_spill] sm:$0xff] %v17212_v10 }
 0x297   :  { %12738 = vmatmul.mubr.f32.gmra.mrb[14].mxu0 %v17103_v55 }
 0x298   :  { %12740 = vmatprep.mubr.f32.mxu0 %v17105_v56  ;;  %14667 = vmatpush3.bf16.msra.mxu0 %v14664_v48  ;;  %v17222_v48 = vld [vmem:[#allocation2 + $0x3f0] sm:$0xff] }
 0x299   :  { %14669 = vmatprep.subr.bf16.mxu0 %v17107_v31  ;;  %20778 = vst [vmem:[#allocation21_spill] sm:$0xff] %v17222_v48 }
 0x29b   :  { %12741 = vmatmul.mubr.f32.gmra.mrb[16].mxu0 %v17111_v63 }
 0x29c   :  { %12743 = vmatprep.mubr.f32.mxu0 %v17113_v1 }
 0x29f   :  { %12744 = vmatmul.mubr.f32.gmra.mrb[18].mxu0 %v17118_v4 }
 0x2a0   :  { %12746 = vmatprep.mubr.f32.mxu0 %v17120_v6 }
 0x2a3   :  { %12747 = vmatmul.mubr.f32.gmra.mrb[20].mxu0 %v17124_v22 }
 0x2a4   :  { %12749 = vmatprep.mubr.f32.mxu0 %v17126_v58 }
 0x2a7   :  { %12750 = vmatmul.mubr.f32.gmra.mrb[22].mxu0 %v17130_v5 }
 0x2a8   :  { %12752 = vmatprep.mubr.f32.mxu0 %v17132_v8 }
 0x2ab   :  { %12753 = vmatmul.mubr.f32.gmra.mrb[24].mxu0 %v17136_v45 }
 0x2ac   :  { %12755 = vmatprep.mubr.f32.mxu0 %v17138_v12 }
 0x2af   :  { %12756 = vmatmul.mubr.f32.gmra.mrb[26].mxu0 %v17142_v50 }
 0x2b0   :  { %12758 = vmatprep.mubr.f32.mxu0 %v17144_v49 }
 0x2b3   :  { %12759 = vmatmul.mubr.f32.gmra.mrb[28].mxu0 %v17148_v13 }
 0x2b4   :  { %12761 = vmatprep.mubr.f32.mxu0 %v16874_v11  ;;  %v17164_v11 = vld [vmem:[#allocation2 + $0x2c8] sm:$0xff] }
 0x2b7   :  { %12762 = vmatmul.mubr.f32.gmra.mrb[30].mxu0 %v16877_v60  ;;  %v17168_v60 = vld [vmem:[#allocation2 + $0x2d0] sm:$0xff] }
 0x2b8   :  { %12764 = vmatprep.mubr.f32.mxu0 %v2364_v59  ;;  %v17230_v59 = vld [vmem:[#allocation2 + $0x428] sm:$0xff] }
 0x2b9   :  { %20781 = vst [vmem:[#allocation83_spill] sm:$0xff] %v17230_v59 }
 0x2bb   :  { %12765 = vmatmul.mubr.f32.gmra.mrb[32].mxu0 %v2365_v15  ;;  %v17234_v15 = vld [vmem:[#allocation2 + $0x430] sm:$0xff] }
 0x2bc   :  { %12767 = vmatprep.mubr.f32.mxu0 %v17153_v16  ;;  %20782 = vst [vmem:[#allocation84_spill] sm:$0xff] %v17234_v15 }
 0x2bf   :  { %12768 = vmatmul.mubr.f32.gmra.mrb[34].mxu0 %v17156_v17 }
 0x2c0   :  { %12770 = vmatprep.mubr.f32.mxu0 %v17158_v19 }
 0x2c3   :  { %12771 = vmatmul.mubr.f32.gmra.mrb[36].mxu0 %v17162_v20 }
 0x2c4   :  { %12773 = vmatprep.mubr.f32.mxu0 %v17164_v11 }
 0x2c7   :  { %12774 = vmatmul.mubr.f32.gmra.mrb[38].mxu0 %v17168_v60 }
 0x2c8   :  { %12776 = vmatprep.mubr.f32.mxu0 %v17170_v25 }
 0x2cb   :  { %12777 = vmatmul.mubr.f32.gmra.mrb[40].mxu0 %v17174_v26 }
 0x2cc   :  { %12779 = vmatprep.mubr.f32.mxu0 %v17176_v29 }
 0x2cf   :  { %12780 = vmatmul.mubr.f32.gmra.mrb[42].mxu0 %v17180_v30 }
 0x2d0   :  { %12782 = vmatprep.mubr.f32.mxu0 %v17182_v33 }
 0x2d3   :  { %12783 = vmatmul.mubr.f32.gmra.mrb[44].mxu0 %v17186_v37 }
 0x2d4   :  { %12785 = vmatprep.mubr.f32.mxu0 %v17188_v39 }
 0x2d7   :  { %12786 = vmatmul.mubr.f32.gmra.mrb[46].mxu0 %v17192_v40 }
 0x2d8   :  { %12788 = vmatprep.mubr.f32.mxu0 %v17194_v46 }
 0x2db   :  { %12789 = vmatmul.mubr.f32.gmra.mrb[48].mxu0 %v17198_v47  ;;  %v20791_v47 = vld [vmem:[#allocation31_spill] sm:$0xff] }
 0x2dc   :  { %12791 = vmatprep.mubr.f32.mxu0 %v17200_v52  ;;  %v20787_v52 = vld [vmem:[#allocation27_spill] sm:$0xff] }
 0x2df   :  { %12792 = vmatmul.mubr.f32.gmra.mrb[50].mxu0 %v17204_v57  ;;  %v3465_v57 = vld [vmem:[#allocation6 + $0x338] sm:$0xff] }
 0x2e0   :  { %12794 = vmatprep.mubr.f32.mxu0 %v17206_v34  ;;  %v20784_v34 = vld [vmem:[#allocation24_spill] sm:$0xff] }
 0x2e3   :  { %12795 = vmatmul.mubr.f32.gmra.mrb[52].mxu0 %v17210_v61  ;;  %v3463_v61 = vld [vmem:[#allocation6 + $0x328] sm:$0xff] }
 0x2e4   :  { %12797 = vmatprep.mubr.f32.mxu0 %v17212_v10  ;;  %v3462_v10 = vld [vmem:[#allocation6 + $0x320] sm:$0xff] }
 0x2e7   :  { %12798 = vmatmul.mubr.f32.gmra.mrb[54].mxu0 %v17216_v24  ;;  %v3461_v24 = vld [vmem:[#allocation6 + $0x318] sm:$0xff] }
 0x2e8   :  { %12800 = vmatprep.mubr.f32.mxu0 %v17218_v42  ;;  %v3460_v42 = vld [vmem:[#allocation6 + $0x310] sm:$0xff] }
 0x2eb   :  { %12801 = vmatmul.mubr.f32.gmra.mrb[56].mxu0 %v17222_v48  ;;  %v20783_v48 = vld [vmem:[#allocation23_spill] sm:$0xff] }
 0x2ec   :  { %12803 = vmatprep.mubr.f32.mxu0 %v17224_v51  ;;  %v14672_v51 = vpack.c.bf16 %v3461_v24, %v3460_v42  ;;  %v3466_v24 = vld [vmem:[#allocation6 + $0x340] sm:$0xff]  ;;  %v3467_v42 = vld [vmem:[#allocation6 + $0x348] sm:$0xff] }
 0x2ef   :  { %12804 = vmatmul.mubr.f32.gmra.mrb[58].mxu0 %v17228_v23  ;;  %v14676_v23 = vpack.c.bf16 %v3463_v61, %v3462_v10  ;;  %v3469_v61 = vld [vmem:[#allocation6 + $0x358] sm:$0xff]  ;;  %v20790_v10 = vld [vmem:[#allocation30_spill] sm:$0xff] }
 0x2f0   :  { %12806 = vmatprep.mubr.f32.mxu0 %v17230_v59  ;;  %v20785_v59 = vld [vmem:[#allocation25_spill] sm:$0xff] }
 0x2f3   :  { %12807 = vmatmul.mubr.f32.gmra.mrb[60].mxu0 %v17234_v15  ;;  %v3464_v15 = vld [vmem:[#allocation6 + $0x330] sm:$0xff] }
 0x2f4   :  { %12809 = vmatprep.mubr.f32.mxu0 %v16970_v18  ;;  %v20786_v18 = vld [vmem:[#allocation26_spill] sm:$0xff] }
 0x2f7   :  { %12810 = vmatmul.mubr.f32.gmra.mrb[62].mxu0 %v16973_v3  ;;  %v14680_v3 = vpack.c.bf16 %v3465_v57, %v3464_v15  ;;  %v3471_v57 = vld [vmem:[#allocation6 + $0x368] sm:$0xff]  ;;  %v20792_v15 = vld [vmem:[#allocation32_spill] sm:$0xff] }
 0x2f8   :  { %12844 = vmatprep.mubr.f32.mxu0 %v20783_v48  ;;  %v20788_v48 = vld [vmem:[#allocation28_spill] sm:$0xff] }
 0x2fb   :  { %12845 = vmatmul.mubr.f32.vlgmr.msra.gmra.mrb[0].mxu0 %v20784_v34  ;;  %v20789_v34 = vld [vmem:[#allocation29_spill] sm:$0xff] }
 0x2fc   :  { %14671 = vmatpush3.bf16.msra.mxu0 %v17107_v31  ;;  %12847 = vmatprep.mubr.f32.mxu0 %v20785_v59  ;;  %v14684_v31 = vpack.c.bf16 %v3467_v42, %v3466_v24  ;;  %v3468_v59 = vld [vmem:[#allocation6 + $0x350] sm:$0xff]  ;;  %v3473_v24 = vld [vmem:[#allocation6 + $0x378] sm:$0xff]  ;;  %v20794_v42 = vld [vmem:[#allocation34_spill] sm:$0xff] }
 0x2fd   :  { %14673 = vmatprep.subr.bf16.mxu0 %v14672_v51 }
 0x2ff   :  { %12848 = vmatmul.mubr.f32.gmra.mrb[2].mxu0 %v20786_v18  ;;  %v20793_v18 = vld [vmem:[#allocation33_spill] sm:$0xff] }
 0x300   :  { %12850 = vmatprep.mubr.f32.mxu0 %v20787_v52  ;;  %14675 = vmatpush3.bf16.msra.mxu0 %v14672_v51  ;;  %v14688_v52 = vpack.c.bf16 %v3469_v61, %v3468_v59  ;;  %v3470_v51 = vld [vmem:[#allocation6 + $0x360] sm:$0xff]  ;;  %v3989_v59 = vld [vmem:[#allocation6 + $0x388] sm:$0xff]  ;;  %v20796_v61 = vld [vmem:[#allocation36_spill] sm:$0xff] }
 0x301   :  { %14677 = vmatprep.subr.bf16.mxu0 %v14676_v23 }
 0x303   :  { %12851 = vmatmul.mubr.f32.gmra.mrb[4].mxu0 %v20788_v48  ;;  %v3472_v48 = vld [vmem:[#allocation6 + $0x370] sm:$0xff] }
 0x304   :  { %12853 = vmatprep.mubr.f32.mxu0 %v20789_v34  ;;  %14679 = vmatpush3.bf16.msra.mxu0 %v14676_v23  ;;  %v14692_v23 = vpack.c.bf16 %v3471_v57, %v3470_v51  ;;  %v20795_v34 = vld [vmem:[#allocation35_spill] sm:$0xff]  ;;  %v20798_v51 = vld [vmem:[#allocation38_spill] sm:$0xff] }
 0x305   :  { %14681 = vmatprep.subr.bf16.mxu0 %v14680_v3  ;;  %v20799_v57 = vld [vmem:[#allocation39_spill] sm:$0xff] }
 0x307   :  { %12854 = vmatmul.mubr.f32.gmra.mrb[6].mxu0 %v20790_v10  ;;  %v20797_v10 = vld [vmem:[#allocation37_spill] sm:$0xff] }
 0x308   :  { %12856 = vmatprep.mubr.f32.mxu0 %v20791_v47  ;;  %14683 = vmatpush3.bf16.msra.mxu0 %v14680_v3  ;;  %v14696_v47 = vpack.c.bf16 %v3473_v24, %v3472_v48  ;;  %v3988_v3 = vld [vmem:[#allocation6 + $0x380] sm:$0xff]  ;;  %v20803_v48 = vld [vmem:[#allocation43_spill] sm:$0xff]  ;;  %v20804_v24 = vld [vmem:[#allocation44_spill] sm:$0xff] }
 0x309   :  { %14685 = vmatprep.subr.bf16.mxu0 %v14684_v31 }
 0x30b   :  { %12857 = vmatmul.mubr.f32.gmra.mrb[8].mxu0 %v20792_v15  ;;  %v20801_v15 = vld [vmem:[#allocation41_spill] sm:$0xff] }
 0x30c   :  { %12859 = vmatprep.mubr.f32.mxu0 %v20793_v18  ;;  %14687 = vmatpush3.bf16.msra.mxu0 %v14684_v31  ;;  %v17255_v31 = vpack.c.bf16 %v3989_v59, %v3988_v3  ;;  %v20802_v18 = vld [vmem:[#allocation42_spill] sm:$0xff]  ;;  %v20808_v3 = vld [vmem:[#allocation48_spill] sm:$0xff] }
 0x30d   :  { %14689 = vmatprep.subr.bf16.mxu0 %v14688_v52  ;;  %v20810_v59 = vld [vmem:[#allocation50_spill] sm:$0xff] }
 0x30f   :  { %12860 = vmatmul.mubr.f32.gmra.mrb[10].mxu0 %v20794_v42  ;;  %v20806_v42 = vld [vmem:[#allocation46_spill] sm:$0xff] }
 0x310   :  { %12862 = vmatprep.mubr.f32.mxu0 %v20795_v34  ;;  %14691 = vmatpush3.bf16.msra.mxu0 %v14688_v52  ;;  %v20800_v52 = vld [vmem:[#allocation40_spill] sm:$0xff]  ;;  %v20807_v34 = vld [vmem:[#allocation47_spill] sm:$0xff] }
 0x311   :  { %14693 = vmatprep.subr.bf16.mxu0 %v14692_v23 }
 0x313   :  { %12863 = vmatmul.mubr.f32.gmra.mrb[12].mxu0 %v20796_v61  ;;  %v20811_v61 = vld [vmem:[#allocation51_spill] sm:$0xff] }
 0x314   :  { %12865 = vmatprep.mubr.f32.mxu0 %v20797_v10  ;;  %14695 = vmatpush3.bf16.msra.mxu0 %v14692_v23  ;;  %v20805_v23 = vld [vmem:[#allocation45_spill] sm:$0xff]  ;;  %v17272_v10 = vld [vmem:[#allocation2 + $0x209] sm:$0xff] }
 0x315   :  { %14697 = vmatprep.subr.bf16.mxu0 %v14696_v47  ;;  %20812 = vst [vmem:[#allocation23_spill] sm:$0xff] %v17272_v10 }
 0x317   :  { %12866 = vmatmul.mubr.f32.gmra.mrb[14].mxu0 %v20798_v51  ;;  %v20813_v51 = vld [vmem:[#allocation52_spill] sm:$0xff] }
 0x318   :  { %12868 = vmatprep.mubr.f32.mxu0 %v20799_v57  ;;  %14699 = vmatpush3.bf16.msra.mxu0 %v14696_v47  ;;  %v20809_v47 = vld [vmem:[#allocation49_spill] sm:$0xff]  ;;  %v17276_v57 = vld [vmem:[#allocation2 + $0x211] sm:$0xff] }
 0x319   :  { %14701 = vmatprep.subr.bf16.mxu0 %v17255_v31  ;;  %20814 = vst [vmem:[#allocation24_spill] sm:$0xff] %v17276_v57 }
 0x31b   :  { %12869 = vmatmul.mubr.f32.gmra.mrb[16].mxu0 %v20800_v52  ;;  %v20815_v52 = vld [vmem:[#allocation53_spill] sm:$0xff] }
 0x31c   :  { %12871 = vmatprep.mubr.f32.mxu0 %v20801_v15  ;;  %v20816_v15 = vld [vmem:[#allocation54_spill] sm:$0xff] }
 0x31f   :  { %12872 = vmatmul.mubr.f32.gmra.mrb[18].mxu0 %v20802_v18  ;;  %v20817_v18 = vld [vmem:[#allocation55_spill] sm:$0xff] }
 0x320   :  { %12874 = vmatprep.mubr.f32.mxu0 %v20803_v48  ;;  %v20818_v48 = vld [vmem:[#allocation56_spill] sm:$0xff] }
 0x323   :  { %12875 = vmatmul.mubr.f32.gmra.mrb[20].mxu0 %v20804_v24  ;;  %v20819_v24 = vld [vmem:[#allocation57_spill] sm:$0xff] }
 0x324   :  { %12877 = vmatprep.mubr.f32.mxu0 %v20805_v23  ;;  %v20820_v23 = vld [vmem:[#allocation58_spill] sm:$0xff] }
 0x327   :  { %12878 = vmatmul.mubr.f32.gmra.mrb[22].mxu0 %v20806_v42  ;;  %v20821_v42 = vld [vmem:[#allocation59_spill] sm:$0xff] }
 0x328   :  { %12880 = vmatprep.mubr.f32.mxu0 %v20807_v34  ;;  %v20822_v34 = vld [vmem:[#allocation60_spill] sm:$0xff] }
 0x32b   :  { %12881 = vmatmul.mubr.f32.gmra.mrb[24].mxu0 %v20808_v3  ;;  %v20823_v3 = vld [vmem:[#allocation61_spill] sm:$0xff] }
 0x32c   :  { %12883 = vmatprep.mubr.f32.mxu0 %v20809_v47  ;;  %v20824_v47 = vld [vmem:[#allocation62_spill] sm:$0xff] }
 0x32f   :  { %12884 = vmatmul.mubr.f32.gmra.mrb[26].mxu0 %v20810_v59  ;;  %v20825_v59 = vld [vmem:[#allocation63_spill] sm:$0xff] }
 0x330   :  { %12886 = vmatprep.mubr.f32.mxu0 %v20811_v61  ;;  %v20826_v61 = vld [vmem:[#allocation64_spill] sm:$0xff] }
 0x333   :  { %12887 = vmatmul.mubr.f32.gmra.mrb[28].mxu0 %v20813_v51  ;;  %v20827_v51 = vld [vmem:[#allocation65_spill] sm:$0xff] }
 0x334   :  { %12889 = vmatprep.mubr.f32.mxu0 %v17272_v10  ;;  %v3998_v10 = vld [vmem:[#allocation6 + $0x3d0] sm:$0xff] }
 0x337   :  { %12890 = vmatmul.mubr.f32.gmra.mrb[30].mxu0 %v17276_v57  ;;  %v3398_v57 = vld [vmem:[#allocation2 + $0x8f] sm:$0xff] }
 0x338   :  { %12892 = vmatprep.mubr.f32.mxu0 %v20815_v52  ;;  %v20828_v52 = vld [vmem:[#allocation66_spill] sm:$0xff] }
 0x33b   :  { %12893 = vmatmul.mubr.f32.gmra.mrb[32].mxu0 %v20816_v15  ;;  %v20829_v15 = vld [vmem:[#allocation67_spill] sm:$0xff] }
 0x33c   :  { %12895 = vmatprep.mubr.f32.mxu0 %v20817_v18  ;;  %v20830_v18 = vld [vmem:[#allocation68_spill] sm:$0xff] }
 0x33f   :  { %12896 = vmatmul.mubr.f32.gmra.mrb[34].mxu0 %v20818_v48  ;;  %v20831_v48 = vld [vmem:[#allocation69_spill] sm:$0xff] }
 0x340   :  { %12898 = vmatprep.mubr.f32.mxu0 %v20819_v24  ;;  %v20832_v24 = vld [vmem:[#allocation70_spill] sm:$0xff] }
 0x343   :  { %12899 = vmatmul.mubr.f32.gmra.mrb[36].mxu0 %v20820_v23  ;;  %v20833_v23 = vld [vmem:[#allocation71_spill] sm:$0xff] }
 0x344   :  { %12901 = vmatprep.mubr.f32.mxu0 %v20821_v42  ;;  %v20834_v42 = vld [vmem:[#allocation72_spill] sm:$0xff] }
 0x347   :  { %12902 = vmatmul.mubr.f32.gmra.mrb[38].mxu0 %v20822_v34  ;;  %v20835_v34 = vld [vmem:[#allocation73_spill] sm:$0xff] }
 0x348   :  { %12904 = vmatprep.mubr.f32.mxu0 %v20823_v3  ;;  %v20836_v3 = vld [vmem:[#allocation74_spill] sm:$0xff] }
 0x34b   :  { %12905 = vmatmul.mubr.f32.gmra.mrb[40].mxu0 %v20824_v47  ;;  %v20837_v47 = vld [vmem:[#allocation75_spill] sm:$0xff] }
 0x34c   :  { %12907 = vmatprep.mubr.f32.mxu0 %v20825_v59  ;;  %v20838_v59 = vld [vmem:[#allocation76_spill] sm:$0xff] }
 0x34f   :  { %12908 = vmatmul.mubr.f32.gmra.mrb[42].mxu0 %v20826_v61  ;;  %v20839_v61 = vld [vmem:[#allocation77_spill] sm:$0xff] }
 0x350   :  { %12910 = vmatprep.mubr.f32.mxu0 %v20827_v51  ;;  %v20840_v51 = vld [vmem:[#allocation78_spill] sm:$0xff] }
 0x353   :  { %12911 = vmatmul.mubr.f32.gmra.mrb[44].mxu0 %v20828_v52  ;;  %v20841_v52 = vld [vmem:[#allocation79_spill] sm:$0xff] }
 0x354   :  { %12913 = vmatprep.mubr.f32.mxu0 %v20829_v15  ;;  %v20842_v15 = vld [vmem:[#allocation80_spill] sm:$0xff] }
 0x357   :  { %12914 = vmatmul.mubr.f32.gmra.mrb[46].mxu0 %v20830_v18  ;;  %v20843_v18 = vld [vmem:[#allocation81_spill] sm:$0xff] }
 0x358   :  { %12916 = vmatprep.mubr.f32.mxu0 %v20831_v48  ;;  %v17308_v48 = vld [vmem:[#allocation2 + $0x449] sm:$0xff] }
 0x359   :  { %20844 = vst [vmem:[#allocation25_spill] sm:$0xff] %v17308_v48 }
 0x35b   :  { %12917 = vmatmul.mubr.f32.gmra.mrb[48].mxu0 %v20832_v24  ;;  %v17312_v24 = vld [vmem:[#allocation2 + $0x451] sm:$0xff] }
 0x35c   :  { %12919 = vmatprep.mubr.f32.mxu0 %v20833_v23  ;;  %20845 = vst [vmem:[#allocation26_spill] sm:$0xff] %v17312_v24  ;;  %v3393_v23 = vld [vmem:[#allocation2 + $0x47] sm:$0xff] }
 0x35f   :  { %12920 = vmatmul.mubr.f32.gmra.mrb[50].mxu0 %v20834_v42  ;;  %v3990_v42 = vld [vmem:[#allocation6 + $0x390] sm:$0xff] }
 0x360   :  { %12922 = vmatprep.mubr.f32.mxu0 %v20835_v34  ;;  %v3991_v34 = vld [vmem:[#allocation6 + $0x398] sm:$0xff] }
 0x363   :  { %12923 = vmatmul.mubr.f32.gmra.mrb[52].mxu0 %v20836_v3  ;;  %v3394_v3 = vld [vmem:[#allocation2 + $0x4f] sm:$0xff] }
 0x364   :  { %12925 = vmatprep.mubr.f32.mxu0 %v20837_v47  ;;  %v3395_v47 = vld [vmem:[#allocation2 + $0x67] sm:$0xff] }
 0x367   :  { %12926 = vmatmul.mubr.f32.gmra.mrb[54].mxu0 %v20838_v59  ;;  %v14704_v59 = vpack.c.bf16 %v3991_v34, %v3990_v42  ;;  %v3996_v42 = vld [vmem:[#allocation6 + $0x3c0] sm:$0xff]  ;;  %v3997_v34 = vld [vmem:[#allocation6 + $0x3c8] sm:$0xff] }
 0x368   :  { %12928 = vmatprep.mubr.f32.mxu0 %v20839_v61  ;;  %v3992_v61 = vld [vmem:[#allocation6 + $0x3a0] sm:$0xff] }
 0x36b   :  { %12929 = vmatmul.mubr.f32.gmra.mrb[56].mxu0 %v20840_v51  ;;  %v3993_v51 = vld [vmem:[#allocation6 + $0x3a8] sm:$0xff] }
 0x36c   :  { %12931 = vmatprep.mubr.f32.mxu0 %v20841_v52  ;;  %v3397_v52 = vld [vmem:[#allocation2 + $0x87] sm:$0xff] }
 0x36f   :  { %12932 = vmatmul.mubr.f32.gmra.mrb[58].mxu0 %v20842_v15  ;;  %v14708_v15 = vpack.c.bf16 %v3993_v51, %v3992_v61  ;;  %v3999_v61 = vld [vmem:[#allocation6 + $0x3d8] sm:$0xff]  ;;  %v3402_v51 = vld [vmem:[#allocation2 + $0xcf] sm:$0xff] }
 0x370   :  { %12934 = vmatprep.mubr.f32.mxu0 %v20843_v18  ;;  %v3994_v18 = vld [vmem:[#allocation6 + $0x3b0] sm:$0xff] }
 0x373   :  { %12935 = vmatmul.mubr.f32.gmra.mrb[60].mxu0 %v16984_v2  ;;  %v3396_v2 = vld [vmem:[#allocation2 + $0x6f] sm:$0xff] }
 0x374   :  { %12937 = vmatprep.mubr.f32.mxu0 %v17308_v48  ;;  %v3995_v48 = vld [vmem:[#allocation6 + $0x3b8] sm:$0xff] }
 0x377   :  { %12938 = vmatmul.mubr.f32.gmra.mrb[62].mxu0 %v17312_v24  ;;  %v14712_v24 = vpack.c.bf16 %v3995_v48, %v3994_v18  ;;  %v4001_v48 = vld [vmem:[#allocation6 + $0x3e8] sm:$0xff] }
 0x378   :  { %12972 = vmatprep.mubr.f32.mxu0 %v3393_v23  ;;  %v3399_v23 = vld [vmem:[#allocation2 + $0xa7] sm:$0xff] }
 0x379   :  { %v3405_v18 = vld [vmem:[#allocation2 + $0x107] sm:$0xff] }
 0x37b   :  { %12973 = vmatmul.mubr.f32.vlgmr.msra.gmra.mrb[0].mxu0 %v3394_v3  ;;  %v3400_v3 = vld [vmem:[#allocation2 + $0xaf] sm:$0xff] }
 0x37c   :  { %14703 = vmatpush3.bf16.msra.mxu0 %v17255_v31  ;;  %12975 = vmatprep.mubr.f32.mxu0 %v3395_v47  ;;  %v3401_v31 = vld [vmem:[#allocation2 + $0xc7] sm:$0xff]  ;;  %v14716_v47 = vpack.c.bf16 %v3997_v34, %v3996_v42  ;;  %v4003_v42 = vld [vmem:[#allocation6 + $0x3f8] sm:$0xff]  ;;  %v3406_v34 = vld [vmem:[#allocation2 + $0x10f] sm:$0xff] }
 0x37d   :  { %14705 = vmatprep.subr.bf16.mxu0 %v14704_v59 }
 0x37f   :  { %12976 = vmatmul.mubr.f32.gmra.mrb[2].mxu0 %v3396_v2  ;;  %v3403_v2 = vld [vmem:[#allocation2 + $0xe7] sm:$0xff] }
 0x380   :  { %12978 = vmatprep.mubr.f32.mxu0 %v3397_v52  ;;  %14707 = vmatpush3.bf16.msra.mxu0 %v14704_v59  ;;  %v14720_v59 = vpack.c.bf16 %v3999_v61, %v3998_v10  ;;  %v4000_v52 = vld [vmem:[#allocation6 + $0x3e0] sm:$0xff]  ;;  %v4519_v10 = vld [vmem:[#allocation6 + $0x408] sm:$0xff] }
 0x381   :  { %14709 = vmatprep.subr.bf16.mxu0 %v14708_v15  ;;  %v3408_v61 = vld [vmem:[#allocation2 + $0x12f] sm:$0xff] }
 0x383   :  { %12979 = vmatmul.mubr.f32.gmra.mrb[4].mxu0 %v3398_v57  ;;  %v3404_v57 = vld [vmem:[#allocation2 + $0xef] sm:$0xff] }
 0x384   :  { %12981 = vmatprep.mubr.f32.mxu0 %v3399_v23  ;;  %14711 = vmatpush3.bf16.msra.mxu0 %v14708_v15  ;;  %v14724_v15 = vpack.c.bf16 %v4001_v48, %v4000_v52  ;;  %v4002_v23 = vld [vmem:[#allocation6 + $0x3f0] sm:$0xff]  ;;  %v3411_v52 = vld [vmem:[#allocation2 + $0x167] sm:$0xff] }
 0x385   :  { %14713 = vmatprep.subr.bf16.mxu0 %v14712_v24  ;;  %v3413_v48 = vld [vmem:[#allocation2 + $0x187] sm:$0xff] }
 0x387   :  { %12982 = vmatmul.mubr.f32.gmra.mrb[6].mxu0 %v3400_v3  ;;  %v3407_v3 = vld [vmem:[#allocation2 + $0x127] sm:$0xff] }
 0x388   :  { %12984 = vmatprep.mubr.f32.mxu0 %v3401_v31  ;;  %14715 = vmatpush3.bf16.msra.mxu0 %v14712_v24  ;;  %v14728_v24 = vpack.c.bf16 %v4003_v42, %v4002_v23  ;;  %v4518_v31 = vld [vmem:[#allocation6 + $0x400] sm:$0xff]  ;;  %v3418_v42 = vld [vmem:[#allocation2 + $0x1cf] sm:$0xff] }
 0x389   :  { %14717 = vmatprep.subr.bf16.mxu0 %v14716_v47  ;;  %v3417_v23 = vld [vmem:[#allocation2 + $0x1c7] sm:$0xff] }
 0x38b   :  { %12985 = vmatmul.mubr.f32.gmra.mrb[8].mxu0 %v3402_v51  ;;  %v3409_v51 = vld [vmem:[#allocation2 + $0x147] sm:$0xff] }
 0x38c   :  { %12987 = vmatprep.mubr.f32.mxu0 %v3403_v2  ;;  %14719 = vmatpush3.bf16.msra.mxu0 %v14716_v47  ;;  %v17316_v47 = vpack.c.bf16 %v4519_v10, %v4518_v31  ;;  %v3410_v2 = vld [vmem:[#allocation2 + $0x14f] sm:$0xff]  ;;  %v3425_v10 = vld [vmem:[#allocation2 + $0x287] sm:$0xff] }
 0x38d   :  { %14721 = vmatprep.subr.bf16.mxu0 %v14720_v59  ;;  %v3424_v31 = vld [vmem:[#allocation2 + $0x22f] sm:$0xff] }
 0x38f   :  { %12988 = vmatmul.mubr.f32.gmra.mrb[10].mxu0 %v3404_v57  ;;  %v3414_v57 = vld [vmem:[#allocation2 + $0x18f] sm:$0xff] }
 0x390   :  { %12990 = vmatprep.mubr.f32.mxu0 %v3405_v18  ;;  %14723 = vmatpush3.bf16.msra.mxu0 %v14720_v59  ;;  %v3412_v59 = vld [vmem:[#allocation2 + $0x16f] sm:$0xff]  ;;  %v3415_v18 = vld [vmem:[#allocation2 + $0x1a7] sm:$0xff] }
 0x391   :  { %14725 = vmatprep.subr.bf16.mxu0 %v14724_v15 }
 0x393   :  { %12991 = vmatmul.mubr.f32.gmra.mrb[12].mxu0 %v3406_v34  ;;  %v3419_v34 = vld [vmem:[#allocation2 + $0x1e7] sm:$0xff] }
 0x394   :  { %12993 = vmatprep.mubr.f32.mxu0 %v3407_v3  ;;  %14727 = vmatpush3.bf16.msra.mxu0 %v14724_v15  ;;  %v3416_v15 = vld [vmem:[#allocation2 + $0x1af] sm:$0xff] }
 0x395   :  { %14729 = vmatprep.subr.bf16.mxu0 %v14728_v24  ;;  %v3420_v3 = vld [vmem:[#allocation2 + $0x1ef] sm:$0xff] }
 0x397   :  { %12994 = vmatmul.mubr.f32.gmra.mrb[14].mxu0 %v3408_v61  ;;  %v3426_v61 = vld [vmem:[#allocation2 + $0x28f] sm:$0xff] }
 0x398   :  { %12996 = vmatprep.mubr.f32.mxu0 %v3409_v51  ;;  %14731 = vmatpush3.bf16.msra.mxu0 %v14728_v24  ;;  %v3423_v24 = vld [vmem:[#allocation2 + $0x227] sm:$0xff] }
 0x399   :  { %14733 = vmatprep.subr.bf16.mxu0 %v17316_v47  ;;  %v3427_v51 = vld [vmem:[#allocation2 + $0x2a7] sm:$0xff] }
 0x39b   :  { %12997 = vmatmul.mubr.f32.gmra.mrb[16].mxu0 %v3410_v2  ;;  %v3428_v2 = vld [vmem:[#allocation2 + $0x2af] sm:$0xff] }
 0x39c   :  { %12999 = vmatprep.mubr.f32.mxu0 %v3411_v52  ;;  %v3429_v52 = vld [vmem:[#allocation2 + $0x2c7] sm:$0xff] }
 0x39f   :  { %13000 = vmatmul.mubr.f32.gmra.mrb[18].mxu0 %v3412_v59  ;;  %v3430_v59 = vld [vmem:[#allocation2 + $0x2cf] sm:$0xff] }
 0x3a0   :  { %13002 = vmatprep.mubr.f32.mxu0 %v3413_v48  ;;  %v3431_v48 = vld [vmem:[#allocation2 + $0x2e7] sm:$0xff] }
 0x3a3   :  { %13003 = vmatmul.mubr.f32.gmra.mrb[20].mxu0 %v3414_v57  ;;  %v3433_v57 = vld [vmem:[#allocation2 + $0x307] sm:$0xff] }
 0x3a4   :  { %13005 = vmatprep.mubr.f32.mxu0 %v3415_v18  ;;  %v3435_v18 = vld [vmem:[#allocation2 + $0x327] sm:$0xff] }
 0x3a7   :  { %13006 = vmatmul.mubr.f32.gmra.mrb[22].mxu0 %v3416_v15  ;;  %v3436_v15 = vld [vmem:[#allocation2 + $0x32f] sm:$0xff] }
 0x3a8   :  { %13008 = vmatprep.mubr.f32.mxu0 %v3417_v23  ;;  %v3437_v23 = vld [vmem:[#allocation2 + $0x347] sm:$0xff] }
 0x3ab   :  { %13009 = vmatmul.mubr.f32.gmra.mrb[24].mxu0 %v3418_v42  ;;  %v3438_v42 = vld [vmem:[#allocation2 + $0x34f] sm:$0xff] }
 0x3ac   :  { %13011 = vmatprep.mubr.f32.mxu0 %v3419_v34  ;;  %v3439_v34 = vld [vmem:[#allocation2 + $0x367] sm:$0xff] }
 0x3af   :  { %13012 = vmatmul.mubr.f32.gmra.mrb[26].mxu0 %v3420_v3  ;;  %v3440_v3 = vld [vmem:[#allocation2 + $0x36f] sm:$0xff] }
 0x3b0   :  { %13014 = vmatprep.mubr.f32.mxu0 %v17020_v7  ;;  %v3432_v7 = vld [vmem:[#allocation2 + $0x2ef] sm:$0xff] }
 0x3b3   :  { %13015 = vmatmul.mubr.f32.gmra.mrb[28].mxu0 %v17024_v21  ;;  %v3434_v21 = vld [vmem:[#allocation2 + $0x30f] sm:$0xff] }
 0x3b4   :  { %13017 = vmatprep.mubr.f32.mxu0 %v3423_v24  ;;  %v3441_v24 = vld [vmem:[#allocation2 + $0x387] sm:$0xff] }
 0x3b7   :  { %13018 = vmatmul.mubr.f32.gmra.mrb[30].mxu0 %v3424_v31  ;;  %v3442_v31 = vld [vmem:[#allocation2 + $0x38f] sm:$0xff] }
 0x3b8   :  { %13020 = vmatprep.mubr.f32.mxu0 %v3425_v10  ;;  %v3443_v10 = vld [vmem:[#allocation2 + $0x3a7] sm:$0xff] }
 0x3bb   :  { %13021 = vmatmul.mubr.f32.gmra.mrb[32].mxu0 %v3426_v61  ;;  %v3444_v61 = vld [vmem:[#allocation2 + $0x3af] sm:$0xff] }
 0x3bc   :  { %13023 = vmatprep.mubr.f32.mxu0 %v3427_v51  ;;  %v3445_v51 = vld [vmem:[#allocation2 + $0x3c7] sm:$0xff] }
 0x3bf   :  { %13024 = vmatmul.mubr.f32.gmra.mrb[34].mxu0 %v3428_v2  ;;  %v3446_v2 = vld [vmem:[#allocation2 + $0x3cf] sm:$0xff] }
 0x3c0   :  { %13026 = vmatprep.mubr.f32.mxu0 %v3429_v52  ;;  %v3447_v52 = vld [vmem:[#allocation2 + $0x3e7] sm:$0xff] }
 0x3c3   :  { %13027 = vmatmul.mubr.f32.gmra.mrb[36].mxu0 %v3430_v59  ;;  %v3448_v59 = vld [vmem:[#allocation2 + $0x3ef] sm:$0xff] }
 0x3c4   :  { %13029 = vmatprep.mubr.f32.mxu0 %v3431_v48  ;;  %v3449_v48 = vld [vmem:[#allocation2 + $0x407] sm:$0xff] }
 0x3c7   :  { %13030 = vmatmul.mubr.f32.gmra.mrb[38].mxu0 %v3432_v7  ;;  %v3450_v7 = vld [vmem:[#allocation2 + $0x40f] sm:$0xff] }
 0x3c8   :  { %13032 = vmatprep.mubr.f32.mxu0 %v3433_v57  ;;  %v3451_v57 = vld [vmem:[#allocation2 + $0x427] sm:$0xff] }
 0x3cb   :  { %13033 = vmatmul.mubr.f32.gmra.mrb[40].mxu0 %v3434_v21  ;;  %v3452_v21 = vld [vmem:[#allocation2 + $0x42f] sm:$0xff] }
 0x3cc   :  { %13035 = vmatprep.mubr.f32.mxu0 %v3435_v18  ;;  %v3455_v18 = vld [vmem:[#allocation2 + $0x467] sm:$0xff] }
 0x3cf   :  { %13036 = vmatmul.mubr.f32.gmra.mrb[42].mxu0 %v3436_v15  ;;  %v3456_v15 = vld [vmem:[#allocation2 + $0x46f] sm:$0xff] }
 0x3d0   :  { %13038 = vmatprep.mubr.f32.mxu0 %v3437_v23  ;;  %v4520_v23 = vld [vmem:[#allocation6 + $0x410] sm:$0xff] }
 0x3d3   :  { %13039 = vmatmul.mubr.f32.gmra.mrb[44].mxu0 %v3438_v42  ;;  %v4521_v42 = vld [vmem:[#allocation6 + $0x418] sm:$0xff] }
 0x3d4   :  { %13041 = vmatprep.mubr.f32.mxu0 %v3439_v34  ;;  %v14736_v34 = vpack.c.bf16 %v4521_v42, %v4520_v23  ;;  %v4478_v23 = vld [vmem:[#allocation2 + $0x1d1] sm:$0xff]  ;;  %v4479_v42 = vld [vmem:[#allocation2 + $0x1e9] sm:$0xff] }
 0x3d7   :  { %13042 = vmatmul.mubr.f32.gmra.mrb[46].mxu0 %v3440_v3  ;;  %v4522_v3 = vld [vmem:[#allocation6 + $0x420] sm:$0xff] }
 0x3d8   :  { %13044 = vmatprep.mubr.f32.mxu0 %v3441_v24  ;;  %v4523_v24 = vld [vmem:[#allocation6 + $0x428] sm:$0xff] }
 0x3db   :  { %13045 = vmatmul.mubr.f32.gmra.mrb[48].mxu0 %v3442_v31  ;;  %v4524_v31 = vld [vmem:[#allocation6 + $0x430] sm:$0xff] }
 0x3dc   :  { %13047 = vmatprep.mubr.f32.mxu0 %v3443_v10  ;;  %v4526_v10 = vld [vmem:[#allocation6 + $0x440] sm:$0xff] }
 0x3df   :  { %13048 = vmatmul.mubr.f32.gmra.mrb[50].mxu0 %v3444_v61  ;;  %v4527_v61 = vld [vmem:[#allocation6 + $0x448] sm:$0xff] }
 0x3e0   :  { %13050 = vmatprep.mubr.f32.mxu0 %v3445_v51  ;;  %v4531_v51 = vld [vmem:[#allocation6 + $0x468] sm:$0xff] }
 0x3e3   :  { %13051 = vmatmul.mubr.f32.gmra.mrb[52].mxu0 %v3446_v2  ;;  %v4533_v2 = vld [vmem:[#allocation6 + $0x478] sm:$0xff] }
 0x3e4   :  { %13053 = vmatprep.mubr.f32.mxu0 %v3447_v52  ;;  %v4470_v52 = vld [vmem:[#allocation2 + $0x151] sm:$0xff] }
 0x3e7   :  { %13054 = vmatmul.mubr.f32.gmra.mrb[54].mxu0 %v3448_v59  ;;  %v4471_v59 = vld [vmem:[#allocation2 + $0x169] sm:$0xff] }
 0x3e8   :  { %13056 = vmatprep.mubr.f32.mxu0 %v3449_v48  ;;  %v4472_v48 = vld [vmem:[#allocation2 + $0x171] sm:$0xff] }
 0x3eb   :  { %13057 = vmatmul.mubr.f32.gmra.mrb[56].mxu0 %v3450_v7  ;;  %v4473_v7 = vld [vmem:[#allocation2 + $0x189] sm:$0xff] }
 0x3ec   :  { %13059 = vmatprep.mubr.f32.mxu0 %v3451_v57  ;;  %v4474_v57 = vld [vmem:[#allocation2 + $0x191] sm:$0xff] }
 0x3ef   :  { %13060 = vmatmul.mubr.f32.gmra.mrb[58].mxu0 %v3452_v21  ;;  %v4475_v21 = vld [vmem:[#allocation2 + $0x1a9] sm:$0xff] }
 0x3f0   :  { %13062 = vmatprep.mubr.f32.mxu0 %v17056_v14  ;;  %v14740_v14 = vpack.c.bf16 %v4523_v24, %v4522_v3  ;;  %v20859_v3 = vld [vmem:[#allocation23_spill] sm:$0xff] }
 0x3f1   :  { %v4483_v24 = vld [vmem:[#allocation2 + $0x229] sm:$0xff] }
 0x3f3   :  { %13063 = vmatmul.mubr.f32.gmra.mrb[60].mxu0 %v17060_v0  ;;  %v4525_v0 = vld [vmem:[#allocation6 + $0x438] sm:$0xff] }
 0x3f4   :  { %13065 = vmatprep.mubr.f32.mxu0 %v3455_v18  ;;  %v4476_v18 = vld [vmem:[#allocation2 + $0x1b1] sm:$0xff] }
 0x3f7   :  { %13066 = vmatmul.mubr.f32.gmra.mrb[62].mxu0 %v3456_v15  ;;  %v4477_v15 = vld [vmem:[#allocation2 + $0x1c9] sm:$0xff] }
 0x3f8   :  { %13100 = vmatprep.mubr.f32.mxu0 %v17063_v32  ;;  %v14744_v32 = vpack.c.bf16 %v4525_v0, %v4524_v31  ;;  %v4484_v31 = vld [vmem:[#allocation2 + $0x231] sm:$0xff]  ;;  %v4485_v0 = vld [vmem:[#allocation2 + $0x289] sm:$0xff] }
 0x3fb   :  { %13101 = vmatmul.mubr.f32.vlgmr.msra.gmra.mrb[0].mxu0 %v17067_v27  ;;  %v14748_v27 = vpack.c.bf16 %v4527_v61, %v4526_v10  ;;  %v4487_v10 = vld [vmem:[#allocation2 + $0x2a9] sm:$0xff]  ;;  %v4488_v61 = vld [vmem:[#allocation2 + $0x2b1] sm:$0xff] }
 0x3fc   :  { %14735 = vmatpush3.bf16.msra.mxu0 %v17316_v47  ;;  %13103 = vmatprep.mubr.f32.mxu0 %v17069_v28  ;;  %v4528_v28 = vld [vmem:[#allocation6 + $0x450] sm:$0xff]  ;;  %v4529_v47 = vld [vmem:[#allocation6 + $0x458] sm:$0xff] }
 0x3fd   :  { %14737 = vmatprep.subr.bf16.mxu0 %v14736_v34 }
 0x3ff   :  { %13104 = vmatmul.mubr.f32.gmra.mrb[2].mxu0 %v17073_v35  ;;  %v14752_v35 = vpack.c.bf16 %v4529_v47, %v4528_v28  ;;  %v4490_v28 = vld [vmem:[#allocation2 + $0x2d1] sm:$0xff]  ;;  %v4491_v47 = vld [vmem:[#allocation2 + $0x2e9] sm:$0xff] }
 0x400   :  { %13106 = vmatprep.mubr.f32.mxu0 %v17075_v36  ;;  %14739 = vmatpush3.bf16.msra.mxu0 %v14736_v34  ;;  %v4530_v36 = vld [vmem:[#allocation6 + $0x460] sm:$0xff]  ;;  %v4480_v34 = vld [vmem:[#allocation2 + $0x1f1] sm:$0xff] }
 0x401   :  { %14741 = vmatprep.subr.bf16.mxu0 %v14740_v14 }
 0x403   :  { %13107 = vmatmul.mubr.f32.gmra.mrb[4].mxu0 %v17079_v41  ;;  %v14756_v41 = vpack.c.bf16 %v4531_v51, %v4530_v36  ;;  %v4493_v36 = vld [vmem:[#allocation2 + $0x309] sm:$0xff]  ;;  %v4494_v51 = vld [vmem:[#allocation2 + $0x311] sm:$0xff] }
 0x404   :  { %13109 = vmatprep.mubr.f32.mxu0 %v17081_v44  ;;  %14743 = vmatpush3.bf16.msra.mxu0 %v14740_v14  ;;  %v4532_v44 = vld [vmem:[#allocation6 + $0x470] sm:$0xff]  ;;  %v20860_v14 = vld [vmem:[#allocation24_spill] sm:$0xff] }
 0x405   :  { %14745 = vmatprep.subr.bf16.mxu0 %v14744_v32 }
 0x407   :  { %13110 = vmatmul.mubr.f32.gmra.mrb[6].mxu0 %v17085_v53  ;;  %v14760_v53 = vpack.c.bf16 %v4533_v2, %v4532_v44  ;;  %v4496_v44 = vld [vmem:[#allocation2 + $0x331] sm:$0xff]  ;;  %v4497_v2 = vld [vmem:[#allocation2 + $0x349] sm:$0xff] }
 0x408   :  { %13112 = vmatprep.mubr.f32.mxu0 %v17087_v54  ;;  %14747 = vmatpush3.bf16.msra.mxu0 %v14744_v32  ;;  %v3951_v54 = vld [vmem:[#allocation2 + $0x208] sm:$0xff]  ;;  %v4486_v32 = vld [vmem:[#allocation2 + $0x291] sm:$0xff] }
 0x409   :  { %14749 = vmatprep.subr.bf16.mxu0 %v14748_v27 }
 0x40b   :  { %13113 = vmatmul.mubr.f32.gmra.mrb[8].mxu0 %v17091_v9  ;;  %v3952_v9 = vld [vmem:[#allocation2 + $0x210] sm:$0xff] }
 0x40c   :  { %13115 = vmatprep.mubr.f32.mxu0 %v17093_v38  ;;  %14751 = vmatpush3.bf16.msra.mxu0 %v14748_v27  ;;  %v17352_v38 = vld [vmem:[#allocation2 + $0x8] sm:$0xff] }
 0x40d   :  { %14753 = vmatprep.subr.bf16.mxu0 %v14752_v35  ;;  %v4489_v27 = vld [vmem:[#allocation2 + $0x2c9] sm:$0xff] }
 0x40f   :  { %13116 = vmatmul.mubr.f32.gmra.mrb[10].mxu0 %v17097_v43  ;;  %v20846_v43 = vld [vmem:[#allocation13_spill] sm:$0xff] }
 0x410   :  { %13118 = vmatprep.mubr.f32.mxu0 %v17099_v62  ;;  %14755 = vmatpush3.bf16.msra.mxu0 %v14752_v35  ;;  %v20847_v62 = vld [vmem:[#allocation14_spill] sm:$0xff]  ;;  %v4492_v35 = vld [vmem:[#allocation2 + $0x2f1] sm:$0xff] }
 0x411   :  { %14757 = vmatprep.subr.bf16.mxu0 %v14756_v41 }
 0x413   :  { %13119 = vmatmul.mubr.f32.gmra.mrb[12].mxu0 %v17103_v55  ;;  %v20848_v55 = vld [vmem:[#allocation15_spill] sm:$0xff] }
 0x414   :  { %13121 = vmatprep.mubr.f32.mxu0 %v17105_v56  ;;  %14759 = vmatpush3.bf16.msra.mxu0 %v14756_v41  ;;  %v20849_v56 = vld [vmem:[#allocation16_spill] sm:$0xff]  ;;  %v4495_v41 = vld [vmem:[#allocation2 + $0x329] sm:$0xff] }
 0x415   :  { %14761 = vmatprep.subr.bf16.mxu0 %v14760_v53 }
 0x417   :  { %13122 = vmatmul.mubr.f32.gmra.mrb[14].mxu0 %v17111_v63  ;;  %v20850_v63 = vld [vmem:[#allocation17_spill] sm:$0xff] }
 0x418   :  { %13124 = vmatprep.mubr.f32.mxu0 %v17113_v1  ;;  %14763 = vmatpush3.bf16.msra.mxu0 %v14760_v53  ;;  %v20851_v1 = vld [vmem:[#allocation18_spill] sm:$0xff]  ;;  %v4498_v53 = vld [vmem:[#allocation2 + $0x351] sm:$0xff] }
 0x41b   :  { %13125 = vmatmul.mubr.f32.gmra.mrb[16].mxu0 %v17118_v4  ;;  %v20852_v4 = vld [vmem:[#allocation19_spill] sm:$0xff] }
 0x41c   :  { %13127 = vmatprep.mubr.f32.mxu0 %v17120_v6  ;;  %v20853_v6 = vld [vmem:[#allocation20_spill] sm:$0xff] }
 0x41f   :  { %13128 = vmatmul.mubr.f32.gmra.mrb[18].mxu0 %v17124_v22  ;;  %v20854_v22 = vld [vmem:[#allocation21_spill] sm:$0xff] }
 0x420   :  { %13130 = vmatprep.mubr.f32.mxu0 %v17126_v58  ;;  %v20855_v58 = vld [vmem:[#allocation22_spill] sm:$0xff] }
 0x423   :  { %13131 = vmatmul.mubr.f32.gmra.mrb[20].mxu0 %v17130_v5  ;;  %v20856_v5 = vld [vmem:[#allocation82_spill] sm:$0xff] }
 0x424   :  { %13133 = vmatprep.mubr.f32.mxu0 %v17132_v8  ;;  %v20857_v8 = vld [vmem:[#allocation83_spill] sm:$0xff] }
 0x427   :  { %13134 = vmatmul.mubr.f32.gmra.mrb[22].mxu0 %v17136_v45  ;;  %v3983_v45 = vld [vmem:[#allocation2 + $0x448] sm:$0xff] }
 0x428   :  { %13136 = vmatprep.mubr.f32.mxu0 %v17138_v12  ;;  %v20858_v12 = vld [vmem:[#allocation84_spill] sm:$0xff] }
 0x42b   :  { %13137 = vmatmul.mubr.f32.gmra.mrb[24].mxu0 %v17142_v50  ;;  %v3984_v50 = vld [vmem:[#allocation2 + $0x450] sm:$0xff] }
 0x42c   :  { %13139 = vmatprep.mubr.f32.mxu0 %v17144_v49  ;;  %v4453_v49 = vld [vmem:[#allocation2 + $0x49] sm:$0xff] }
 0x42f   :  { %13140 = vmatmul.mubr.f32.gmra.mrb[26].mxu0 %v17148_v13  ;;  %v4454_v13 = vld [vmem:[#allocation2 + $0x51] sm:$0xff] }
 0x430   :  { %13142 = vmatprep.mubr.f32.mxu0 %v3951_v54  ;;  %v4499_v54 = vld [vmem:[#allocation2 + $0x369] sm:$0xff] }
 0x433   :  { %13143 = vmatmul.mubr.f32.gmra.mrb[28].mxu0 %v3952_v9  ;;  %v4500_v9 = vld [vmem:[#allocation2 + $0x371] sm:$0xff] }
 0x434   :  { %13145 = vmatprep.mubr.f32.mxu0 %v17352_v38 }
 0x437   :  { %13146 = vmatmul.mubr.f32.gmra.mrb[30].mxu0 %v17352_v38 }
 0x438   :  { %13148 = vmatprep.mubr.f32.mxu0 %v17153_v16  ;;  %v4455_v16 = vld [vmem:[#allocation2 + $0x69] sm:$0xff] }
 0x43b   :  { %13149 = vmatmul.mubr.f32.gmra.mrb[32].mxu0 %v17156_v17  ;;  %v4456_v17 = vld [vmem:[#allocation2 + $0x71] sm:$0xff] }
 0x43c   :  { %13151 = vmatprep.mubr.f32.mxu0 %v17158_v19  ;;  %v4457_v19 = vld [vmem:[#allocation2 + $0x89] sm:$0xff] }
 0x43f   :  { %13152 = vmatmul.mubr.f32.gmra.mrb[34].mxu0 %v17162_v20  ;;  %v4458_v20 = vld [vmem:[#allocation2 + $0x91] sm:$0xff] }
 0x440   :  { %13154 = vmatprep.mubr.f32.mxu0 %v17164_v11  ;;  %v4459_v11 = vld [vmem:[#allocation2 + $0xa9] sm:$0xff] }
 0x443   :  { %13155 = vmatmul.mubr.f32.gmra.mrb[36].mxu0 %v17168_v60  ;;  %v4460_v60 = vld [vmem:[#allocation2 + $0xb1] sm:$0xff] }
 0x444   :  { %13157 = vmatprep.mubr.f32.mxu0 %v17170_v25  ;;  %v4461_v25 = vld [vmem:[#allocation2 + $0xc9] sm:$0xff] }
 0x447   :  { %13158 = vmatmul.mubr.f32.gmra.mrb[38].mxu0 %v17174_v26  ;;  %v4462_v26 = vld [vmem:[#allocation2 + $0xd1] sm:$0xff] }
 0x448   :  { %13160 = vmatprep.mubr.f32.mxu0 %v17176_v29  ;;  %v4463_v29 = vld [vmem:[#allocation2 + $0xe9] sm:$0xff] }
 0x44b   :  { %13161 = vmatmul.mubr.f32.gmra.mrb[40].mxu0 %v17180_v30  ;;  %v4464_v30 = vld [vmem:[#allocation2 + $0xf1] sm:$0xff] }
 0x44c   :  { %13163 = vmatprep.mubr.f32.mxu0 %v17182_v33  ;;  %v4465_v33 = vld [vmem:[#allocation2 + $0x109] sm:$0xff] }
 0x44f   :  { %13164 = vmatmul.mubr.f32.gmra.mrb[42].mxu0 %v17186_v37  ;;  %v4466_v37 = vld [vmem:[#allocation2 + $0x111] sm:$0xff] }
 0x450   :  { %13166 = vmatprep.mubr.f32.mxu0 %v17188_v39  ;;  %v4467_v39 = vld [vmem:[#allocation2 + $0x129] sm:$0xff] }
 0x453   :  { %13167 = vmatmul.mubr.f32.gmra.mrb[44].mxu0 %v17192_v40  ;;  %v4468_v40 = vld [vmem:[#allocation2 + $0x131] sm:$0xff] }
 0x454   :  { %13169 = vmatprep.mubr.f32.mxu0 %v17194_v46  ;;  %v4469_v46 = vld [vmem:[#allocation2 + $0x149] sm:$0xff] }
 0x457   :  { %13170 = vmatmul.mubr.f32.gmra.mrb[46].mxu0 %v20846_v43  ;;  %v4501_v43 = vld [vmem:[#allocation2 + $0x389] sm:$0xff] }
 0x458   :  { %13172 = vmatprep.mubr.f32.mxu0 %v20847_v62  ;;  %v4502_v62 = vld [vmem:[#allocation2 + $0x391] sm:$0xff] }
 0x45b   :  { %13173 = vmatmul.mubr.f32.gmra.mrb[48].mxu0 %v20848_v55  ;;  %v4503_v55 = vld [vmem:[#allocation2 + $0x3a9] sm:$0xff] }
 0x45c   :  { %13175 = vmatprep.mubr.f32.mxu0 %v20849_v56  ;;  %v4504_v56 = vld [vmem:[#allocation2 + $0x3b1] sm:$0xff] }
 0x45f   :  { %13176 = vmatmul.mubr.f32.gmra.mrb[50].mxu0 %v20850_v63  ;;  %v4505_v63 = vld [vmem:[#allocation2 + $0x3c9] sm:$0xff] }
 0x460   :  { %13178 = vmatprep.mubr.f32.mxu0 %v20851_v1  ;;  %v4506_v1 = vld [vmem:[#allocation2 + $0x3d1] sm:$0xff] }
 0x463   :  { %13179 = vmatmul.mubr.f32.gmra.mrb[52].mxu0 %v20852_v4  ;;  %v4507_v4 = vld [vmem:[#allocation2 + $0x3e9] sm:$0xff] }
 0x464   :  { %13181 = vmatprep.mubr.f32.mxu0 %v20853_v6  ;;  %v4508_v6 = vld [vmem:[#allocation2 + $0x3f1] sm:$0xff] }
 0x467   :  { %13182 = vmatmul.mubr.f32.gmra.mrb[54].mxu0 %v20854_v22  ;;  %v4509_v22 = vld [vmem:[#allocation2 + $0x409] sm:$0xff] }
 0x468   :  { %13184 = vmatprep.mubr.f32.mxu0 %v20855_v58  ;;  %v4510_v58 = vld [vmem:[#allocation2 + $0x411] sm:$0xff] }
 0x46b   :  { %13185 = vmatmul.mubr.f32.gmra.mrb[56].mxu0 %v20856_v5  ;;  %v4511_v5 = vld [vmem:[#allocation2 + $0x429] sm:$0xff] }
 0x46c   :  { %13187 = vmatprep.mubr.f32.mxu0 %v20857_v8  ;;  %v4512_v8 = vld [vmem:[#allocation2 + $0x431] sm:$0xff] }
 0x46f   :  { %13188 = vmatmul.mubr.f32.gmra.mrb[58].mxu0 %v20858_v12  ;;  %v4515_v12 = vld [vmem:[#allocation2 + $0x469] sm:$0xff] }
 0x470   :  { %13190 = vmatprep.mubr.f32.mxu0 %v3983_v45  ;;  %v20861_v45 = vld [vmem:[#allocation25_spill] sm:$0xff] }
 0x473   :  { %13191 = vmatmul.mubr.f32.gmra.mrb[60].mxu0 %v3984_v50  ;;  %v20862_v50 = vld [vmem:[#allocation26_spill] sm:$0xff] }
 0x474   :  { %13193 = vmatprep.mubr.f32.mxu0 %v17352_v38 }
 0x477   :  { %13194 = vmatmul.mubr.f32.gmra.mrb[62].mxu0 %v17352_v38 }
 0x478   :  { %13228 = vmatprep.mubr.f32.mxu0 %v4453_v49  ;;  %v4516_v49 = vld [vmem:[#allocation2 + $0x471] sm:$0xff] }
 0x47b   :  { %13229 = vmatmul.mubr.f32.vlgmr.msra.gmra.mrb[0].mxu0 %v4454_v13 }
 0x47c   :  { %13231 = vmatprep.mubr.f32.mxu0 %v4455_v16 }
 0x47f   :  { %13232 = vmatmul.mubr.f32.gmra.mrb[2].mxu0 %v4456_v17 }
 0x480   :  { %13234 = vmatprep.mubr.f32.mxu0 %v4457_v19 }
 0x483   :  { %13235 = vmatmul.mubr.f32.gmra.mrb[4].mxu0 %v4458_v20 }
 0x484   :  { %13237 = vmatprep.mubr.f32.mxu0 %v4459_v11 }
 0x487   :  { %13238 = vmatmul.mubr.f32.gmra.mrb[6].mxu0 %v4460_v60 }
 0x488   :  { %13240 = vmatprep.mubr.f32.mxu0 %v4461_v25 }
 0x48b   :  { %13241 = vmatmul.mubr.f32.gmra.mrb[8].mxu0 %v4462_v26 }
 0x48c   :  { %13243 = vmatprep.mubr.f32.mxu0 %v4463_v29 }
 0x48f   :  { %13244 = vmatmul.mubr.f32.gmra.mrb[10].mxu0 %v4464_v30 }
 0x490   :  { %13246 = vmatprep.mubr.f32.mxu0 %v4465_v33 }
 0x493   :  { %13247 = vmatmul.mubr.f32.gmra.mrb[12].mxu0 %v4466_v37 }
 0x494   :  { %13249 = vmatprep.mubr.f32.mxu0 %v4467_v39 }
 0x497   :  { %13250 = vmatmul.mubr.f32.gmra.mrb[14].mxu0 %v4468_v40 }
 0x498   :  { %13252 = vmatprep.mubr.f32.mxu0 %v4469_v46 }
 0x49b   :  { %13253 = vmatmul.mubr.f32.gmra.mrb[16].mxu0 %v4470_v52 }
 0x49c   :  { %13255 = vmatprep.mubr.f32.mxu0 %v4471_v59 }
 0x49f   :  { %13256 = vmatmul.mubr.f32.gmra.mrb[18].mxu0 %v4472_v48 }
 0x4a0   :  { %13258 = vmatprep.mubr.f32.mxu0 %v4473_v7 }
 0x4a3   :  { %13259 = vmatmul.mubr.f32.gmra.mrb[20].mxu0 %v4474_v57 }
 0x4a4   :  { %13261 = vmatprep.mubr.f32.mxu0 %v4475_v21 }
 0x4a7   :  { %13262 = vmatmul.mubr.f32.gmra.mrb[22].mxu0 %v4476_v18 }
 0x4a8   :  { %13264 = vmatprep.mubr.f32.mxu0 %v4477_v15 }
 0x4ab   :  { %13265 = vmatmul.mubr.f32.gmra.mrb[24].mxu0 %v4478_v23 }
 0x4ac   :  { %13267 = vmatprep.mubr.f32.mxu0 %v4479_v42 }
 0x4af   :  { %13268 = vmatmul.mubr.f32.gmra.mrb[26].mxu0 %v4480_v34 }
 0x4b0   :  { %13270 = vmatprep.mubr.f32.mxu0 %v20859_v3 }
 0x4b3   :  { %13271 = vmatmul.mubr.f32.gmra.mrb[28].mxu0 %v20860_v14 }
 0x4b4   :  { %13273 = vmatprep.mubr.f32.mxu0 %v4483_v24 }
 0x4b7   :  { %13274 = vmatmul.mubr.f32.gmra.mrb[30].mxu0 %v4484_v31 }
 0x4b8   :  { %13276 = vmatprep.mubr.f32.mxu0 %v4485_v0 }
 0x4bb   :  { %13277 = vmatmul.mubr.f32.gmra.mrb[32].mxu0 %v4486_v32 }
 0x4bc   :  { %13279 = vmatprep.mubr.f32.mxu0 %v4487_v10 }
 0x4bf   :  { %13280 = vmatmul.mubr.f32.gmra.mrb[34].mxu0 %v4488_v61 }
 0x4c0   :  { %13282 = vmatprep.mubr.f32.mxu0 %v4489_v27 }
 0x4c3   :  { %13283 = vmatmul.mubr.f32.gmra.mrb[36].mxu0 %v4490_v28 }
 0x4c4   :  { %13285 = vmatprep.mubr.f32.mxu0 %v4491_v47 }
 0x4c7   :  { %13286 = vmatmul.mubr.f32.gmra.mrb[38].mxu0 %v4492_v35 }
 0x4c8   :  { %13288 = vmatprep.mubr.f32.mxu0 %v4493_v36 }
 0x4cb   :  { %13289 = vmatmul.mubr.f32.gmra.mrb[40].mxu0 %v4494_v51 }
 0x4cc   :  { %13291 = vmatprep.mubr.f32.mxu0 %v4495_v41 }
 0x4cf   :  { %13292 = vmatmul.mubr.f32.gmra.mrb[42].mxu0 %v4496_v44 }
 0x4d0   :  { %13294 = vmatprep.mubr.f32.mxu0 %v4497_v2 }
 0x4d3   :  { %13295 = vmatmul.mubr.f32.gmra.mrb[44].mxu0 %v4498_v53 }
 0x4d4   :  { %13297 = vmatprep.mubr.f32.mxu0 %v4499_v54 }
 0x4d7   :  { %13298 = vmatmul.mubr.f32.gmra.mrb[46].mxu0 %v4500_v9 }
 0x4d8   :  { %13300 = vmatprep.mubr.f32.mxu0 %v4501_v43 }
 0x4db   :  { %13301 = vmatmul.mubr.f32.gmra.mrb[48].mxu0 %v4502_v62 }
 0x4dc   :  { %13303 = vmatprep.mubr.f32.mxu0 %v4503_v55 }
 0x4df   :  { %13304 = vmatmul.mubr.f32.gmra.mrb[50].mxu0 %v4504_v56 }
 0x4e0   :  { %13306 = vmatprep.mubr.f32.mxu0 %v4505_v63 }
 0x4e3   :  { %13307 = vmatmul.mubr.f32.gmra.mrb[52].mxu0 %v4506_v1 }
 0x4e4   :  { %13309 = vmatprep.mubr.f32.mxu0 %v4507_v4 }
 0x4e7   :  { %13310 = vmatmul.mubr.f32.gmra.mrb[54].mxu0 %v4508_v6 }
 0x4e8   :  { %13312 = vmatprep.mubr.f32.mxu0 %v4509_v22 }
 0x4eb   :  { %13313 = vmatmul.mubr.f32.gmra.mrb[56].mxu0 %v4510_v58 }
 0x4ec   :  { %13315 = vmatprep.mubr.f32.mxu0 %v4511_v5 }
 0x4ef   :  { %13316 = vmatmul.mubr.f32.gmra.mrb[58].mxu0 %v4512_v8 }
 0x4f0   :  { %13318 = vmatprep.mubr.f32.mxu0 %v20861_v45 }
 0x4f3   :  { %13319 = vmatmul.mubr.f32.gmra.mrb[60].mxu0 %v20862_v50 }
 0x4f4   :  { %13321 = vmatprep.mubr.f32.mxu0 %v4515_v12 }
 0x4f7   :  { %13322 = vmatmul.mubr.f32.gmra.mrb[62].mxu0 %v4516_v49 }
 0x54e   :  { %v17390_v13 = vpop.f32.mrb[0].mxu0 }
 0x54f   :  { %v5053_v16 = vmul.f32 %v17390_v13, %v17390_v13  ;;  %v17394_v17 = vpop.f32.mrb[1].mxu0 }
 0x550   :  { %v4983_v19 = vadd.f32 %v17390_v13, %v17394_v17  ;;  %v5052_v20 = vmul.f32 %v17394_v17, %v17394_v17 }
 0x552   :  { %v5116_v11 = vadd.f32 %v5053_v16, %v5052_v20  ;;  %v17400_v60 = vpop.f32.mrb[2].mxu0 }
 0x553   :  { %v17402_v25 = vpop.f32.mrb[3].mxu0  ;;  %v5055_v30 = vmul.f32 %v17400_v60, %v17400_v60 }
 0x554   :  { %v4984_v26 = vadd.f32 %v4983_v19, %v17402_v25  ;;  %v5054_v29 = vmul.f32 %v17402_v25, %v17402_v25 }
 0x556   :  { %v4985_v33 = vadd.f32 %v17400_v60, %v4984_v26  ;;  %v5117_v37 = vadd.f32 %v5116_v11, %v5054_v29  ;;  %v17410_v39 = vpop.f32.mrb[4].mxu0 }
 0x557   :  { %v17412_v40 = vpop.f32.mrb[5].mxu0  ;;  %v5057_v48 = vmul.f32 %v17410_v39, %v17410_v39 }
 0x558   :  { %v5118_v46 = vadd.f32 %v5117_v37, %v5055_v30  ;;  %v4986_v52 = vadd.f32 %v4985_v33, %v17412_v40  ;;  %v5056_v59 = vmul.f32 %v17412_v40, %v17412_v40 }
 0x55a   :  { %v5119_v7 = vadd.f32 %v5118_v46, %v5056_v59  ;;  %v17419_v57 = vpop.f32.mrb[6].mxu0  ;;  %v4987_v21 = vadd.f32 %v17410_v39, %v4986_v52 }
 0x55b   :  { %v17422_v18 = vpop.f32.mrb[7].mxu0  ;;  %v5059_v34 = vmul.f32 %v17419_v57, %v17419_v57 }
 0x55c   :  { %v4988_v15 = vadd.f32 %v4987_v21, %v17422_v18  ;;  %v5058_v23 = vmul.f32 %v17422_v18, %v17422_v18  ;;  %v5120_v42 = vadd.f32 %v5119_v7, %v5057_v48 }
 0x55e   :  { %v5121_v3 = vadd.f32 %v5120_v42, %v5058_v23  ;;  %v17429_v24 = vpop.f32.mrb[8].mxu0  ;;  %v4989_v14 = vadd.f32 %v17419_v57, %v4988_v15 }
 0x55f   :  { %v17432_v31 = vpop.f32.mrb[9].mxu0  ;;  %v5061_v61 = vmul.f32 %v17429_v24, %v17429_v24 }
 0x560   :  { %v4990_v0 = vadd.f32 %v4989_v14, %v17432_v31  ;;  %v5060_v32 = vmul.f32 %v17432_v31, %v17432_v31  ;;  %v5122_v10 = vadd.f32 %v5121_v3, %v5059_v34 }
 0x562   :  { %v5123_v27 = vadd.f32 %v5122_v10, %v5060_v32  ;;  %v17439_v28 = vpop.f32.mrb[10].mxu0  ;;  %v4991_v47 = vadd.f32 %v17429_v24, %v4990_v0 }
 0x563   :  { %v17442_v35 = vpop.f32.mrb[11].mxu0  ;;  %v5063_v44 = vmul.f32 %v17439_v28, %v17439_v28 }
 0x564   :  { %v4992_v36 = vadd.f32 %v4991_v47, %v17442_v35  ;;  %v5062_v51 = vmul.f32 %v17442_v35, %v17442_v35  ;;  %v5124_v41 = vadd.f32 %v5123_v27, %v5061_v61 }
 0x566   :  { %v5125_v2 = vadd.f32 %v5124_v41, %v5062_v51  ;;  %v17449_v53 = vpop.f32.mrb[12].mxu0  ;;  %v4993_v54 = vadd.f32 %v17439_v28, %v4992_v36 }
 0x567   :  { %v17452_v9 = vpop.f32.mrb[13].mxu0  ;;  %v5065_v56 = vmul.f32 %v17449_v53, %v17449_v53 }
 0x568   :  { %v4994_v43 = vadd.f32 %v4993_v54, %v17452_v9  ;;  %v5064_v62 = vmul.f32 %v17452_v9, %v17452_v9  ;;  %v5126_v55 = vadd.f32 %v5125_v2, %v5063_v44  ;;  %v5609_v54 = vld [vmem:[#allocation8 + $0x80] sm:$0xff] }
 0x56a   :  { %v5127_v63 = vadd.f32 %v5126_v55, %v5064_v62  ;;  %v17459_v1 = vpop.f32.mrb[14].mxu0  ;;  %v4995_v4 = vadd.f32 %v17449_v53, %v4994_v43  ;;  %v5610_v43 = vld [vmem:[#allocation8 + $0x88] sm:$0xff] }
 0x56b   :  { %v17462_v6 = vpop.f32.mrb[15].mxu0  ;;  %v5067_v8 = vmul.f32 %v17459_v1, %v17459_v1 }
 0x56c   :  { %v4996_v22 = vadd.f32 %v4995_v4, %v17462_v6  ;;  %v5066_v58 = vmul.f32 %v17462_v6, %v17462_v6  ;;  %v5128_v5 = vadd.f32 %v5127_v63, %v5065_v56  ;;  %v14764_v63 = vpack.c.bf16 %v5610_v43, %v5609_v54 }
 0x56e   :  { %v5129_v45 = vadd.f32 %v5128_v5, %v5066_v58  ;;  %v17469_v12 = vpop.f32.mrb[16].mxu0  ;;  %v4997_v50 = vadd.f32 %v17459_v1, %v4996_v22  ;;  %14765 = vmatprep.subr.bf16.mxu1 %v14764_v63 }
 0x56f   :  { %v17472_v49 = vpop.f32.mrb[17].mxu0  ;;  %v5069_v11 = vmul.f32 %v17469_v12, %v17469_v12  ;;  %14767 = vmatpush3.bf16.msra.mxu1 %v14764_v63 }
 0x570   :  { %v4998_v16 = vadd.f32 %v4997_v50, %v17472_v49  ;;  %v5068_v19 = vmul.f32 %v17472_v49, %v17472_v49  ;;  %v5130_v20 = vadd.f32 %v5129_v45, %v5067_v8  ;;  %v5611_v45 = vld [vmem:[#allocation8 + $0x90] sm:$0xff]  ;;  %v5612_v50 = vld [vmem:[#allocation8 + $0x98] sm:$0xff] }
 0x572   :  { %v5131_v26 = vadd.f32 %v5130_v20, %v5068_v19  ;;  %v17479_v29 = vpop.f32.mrb[18].mxu0  ;;  %v4999_v30 = vadd.f32 %v17469_v12, %v4998_v16 }
 0x573   :  { %v17482_v33 = vpop.f32.mrb[19].mxu0  ;;  %v5071_v59 = vmul.f32 %v17479_v29, %v17479_v29 }
 0x574   :  { %v5000_v37 = vadd.f32 %v4999_v30, %v17482_v33  ;;  %v5070_v46 = vmul.f32 %v17482_v33, %v17482_v33  ;;  %v5132_v52 = vadd.f32 %v5131_v26, %v5069_v11  ;;  %v14768_v11 = vpack.c.bf16 %v5612_v50, %v5611_v45 }
 0x576   :  { %v5133_v48 = vadd.f32 %v5132_v52, %v5070_v46  ;;  %v17489_v7 = vpop.f32.mrb[20].mxu0  ;;  %v5001_v21 = vadd.f32 %v17479_v29, %v5000_v37  ;;  %14769 = vmatprep.subr.bf16.mxu1 %v14768_v11 }
 0x577   :  { %v17492_v15 = vpop.f32.mrb[21].mxu0  ;;  %v5073_v3 = vmul.f32 %v17489_v7, %v17489_v7  ;;  %14771 = vmatpush3.bf16.msra.mxu1 %v14768_v11 }
 0x578   :  { %v5002_v23 = vadd.f32 %v5001_v21, %v17492_v15  ;;  %v5072_v42 = vmul.f32 %v17492_v15, %v17492_v15  ;;  %v5134_v34 = vadd.f32 %v5133_v48, %v5071_v59  ;;  %v5613_v59 = vld [vmem:[#allocation8 + $0xa0] sm:$0xff]  ;;  %v5614_v48 = vld [vmem:[#allocation8 + $0xa8] sm:$0xff] }
 0x57a   :  { %v5135_v14 = vadd.f32 %v5134_v34, %v5072_v42  ;;  %v17499_v0 = vpop.f32.mrb[22].mxu0  ;;  %v5003_v32 = vadd.f32 %v17489_v7, %v5002_v23  ;;  %v14772_v34 = vpack.c.bf16 %v5614_v48, %v5613_v59  ;;  %v5619_v59 = vld [vmem:[#allocation8 + $0xd0] sm:$0xff]  ;;  %v5620_v48 = vld [vmem:[#allocation8 + $0xd8] sm:$0xff] }
 0x57b   :  { %v17502_v10 = vpop.f32.mrb[23].mxu0  ;;  %v5075_v36 = vmul.f32 %v17499_v0, %v17499_v0 }
 0x57c   :  { %v5004_v61 = vadd.f32 %v5003_v32, %v17502_v10  ;;  %v5074_v27 = vmul.f32 %v17502_v10, %v17502_v10  ;;  %v5136_v47 = vadd.f32 %v5135_v14, %v5073_v3  ;;  %14773 = vmatprep.subr.bf16.mxu1 %v14772_v34 }
 0x57d   :  { %14775 = vmatpush3.bf16.msra.mxu1 %v14772_v34  ;;  %v14784_v34 = vpack.c.bf16 %v5620_v48, %v5619_v59 }
 0x57e   :  { %v5137_v51 = vadd.f32 %v5136_v47, %v5074_v27  ;;  %v17509_v41 = vpop.f32.mrb[24].mxu0  ;;  %v5005_v44 = vadd.f32 %v17499_v0, %v5004_v61  ;;  %v5615_v47 = vld [vmem:[#allocation8 + $0xb0] sm:$0xff] }
 0x57f   :  { %v17512_v2 = vpop.f32.mrb[25].mxu0  ;;  %v5077_v4 = vmul.f32 %v17509_v41, %v17509_v41 }
 0x580   :  { %v5006_v62 = vadd.f32 %v5005_v44, %v17512_v2  ;;  %v5076_v55 = vmul.f32 %v17512_v2, %v17512_v2  ;;  %v5138_v56 = vadd.f32 %v5137_v51, %v5075_v36  ;;  %v5616_v36 = vld [vmem:[#allocation8 + $0xb8] sm:$0xff] }
 0x581   :  { %v14776_v43 = vpack.c.bf16 %v5616_v36, %v5615_v47 }
 0x582   :  { %v5139_v22 = vadd.f32 %v5138_v56, %v5076_v55  ;;  %v17519_v58 = vpop.f32.mrb[26].mxu0  ;;  %v5007_v5 = vadd.f32 %v17509_v41, %v5006_v62 }
 0x583   :  { %v17522_v8 = vpop.f32.mrb[27].mxu0  ;;  %v5079_v26 = vmul.f32 %v17519_v58, %v17519_v58  ;;  %14777 = vmatprep.subr.bf16.mxu1 %v14776_v43 }
 0x584   :  { %v5008_v16 = vadd.f32 %v5007_v5, %v17522_v8  ;;  %v5078_v19 = vmul.f32 %v17522_v8, %v17522_v8  ;;  %v5140_v20 = vadd.f32 %v5139_v22, %v5077_v4  ;;  %14779 = vmatpush3.bf16.msra.mxu1 %v14776_v43  ;;  %v5617_v22 = vld [vmem:[#allocation8 + $0xc0] sm:$0xff]  ;;  %v5618_v5 = vld [vmem:[#allocation8 + $0xc8] sm:$0xff] }
 0x586   :  { %v5141_v30 = vadd.f32 %v5140_v20, %v5078_v19  ;;  %v17529_v37 = vpop.f32.mrb[28].mxu0  ;;  %v5009_v46 = vadd.f32 %v17519_v58, %v5008_v16  ;;  %v14780_v19 = vpack.c.bf16 %v5618_v5, %v5617_v22 }
 0x587   :  { %v17532_v52 = vpop.f32.mrb[29].mxu0  ;;  %v5081_v3 = vmul.f32 %v17529_v37, %v17529_v37 }
 0x588   :  { %v5010_v21 = vadd.f32 %v5009_v46, %v17532_v52  ;;  %v5080_v23 = vmul.f32 %v17532_v52, %v17532_v52  ;;  %v5142_v42 = vadd.f32 %v5141_v30, %v5079_v26  ;;  %14781 = vmatprep.subr.bf16.mxu1 %v14780_v19 }
 0x589   :  { %14783 = vmatpush3.bf16.msra.mxu1 %v14780_v19  ;;  %v5624_v19 = vld [vmem:[#allocation8 + $0xf8] sm:$0xff] }
 0x58a   :  { %v5143_v14 = vadd.f32 %v5142_v42, %v5080_v23  ;;  %v17539_v32 = vpop.f32.mrb[30].mxu0  ;;  %v5011_v61 = vadd.f32 %v17529_v37, %v5010_v21  ;;  %14785 = vmatprep.subr.bf16.mxu1 %v14784_v34 }
 0x58b   :  { %v17542_v27 = vpop.f32.mrb[31].mxu0  ;;  %v5083_v62 = vmul.f32 %v17539_v32, %v17539_v32 }
 0x58c   :  { %v5012_v51 = vadd.f32 %v5011_v61, %v17542_v27  ;;  %v5082_v44 = vmul.f32 %v17542_v27, %v17542_v27  ;;  %v5144_v54 = vadd.f32 %v5143_v14, %v5081_v3 }
 0x58d   :  { %14787 = vmatpush3.bf16.msra.mxu1 %v14784_v34 }
 0x58e   :  { %v5145_v55 = vadd.f32 %v5144_v54, %v5082_v44  ;;  %v17549_v56 = vpop.f32.mrb[32].mxu0  ;;  %v5013_v63 = vadd.f32 %v17539_v32, %v5012_v51  ;;  %v5621_v51 = vld [vmem:[#allocation8 + $0xe0] sm:$0xff]  ;;  %v5622_v44 = vld [vmem:[#allocation8 + $0xe8] sm:$0xff] }
 0x58f   :  { %v17552_v4 = vpop.f32.mrb[33].mxu0  ;;  %v5085_v20 = vmul.f32 %v17549_v56, %v17549_v56 }
 0x590   :  { %v5014_v45 = vadd.f32 %v5013_v63, %v17552_v4  ;;  %v5084_v50 = vmul.f32 %v17552_v4, %v17552_v4  ;;  %v5146_v16 = vadd.f32 %v5145_v55, %v5083_v62  ;;  %v14788_v55 = vpack.c.bf16 %v5622_v44, %v5621_v51 }
 0x592   :  { %v5147_v11 = vadd.f32 %v5146_v16, %v5084_v50  ;;  %v17559_v26 = vpop.f32.mrb[34].mxu0  ;;  %v5015_v30 = vadd.f32 %v17549_v56, %v5014_v45  ;;  %14789 = vmatprep.subr.bf16.mxu1 %v14788_v55  ;;  %v5623_v16 = vld [vmem:[#allocation8 + $0xf0] sm:$0xff] }
 0x593   :  { %v17562_v46 = vpop.f32.mrb[35].mxu0  ;;  %v5087_v3 = vmul.f32 %v17559_v26, %v17559_v26  ;;  %14791 = vmatpush3.bf16.msra.mxu1 %v14788_v55  ;;  %v14792_v59 = vpack.c.bf16 %v5624_v19, %v5623_v16  ;;  %v5529_v16 = vld [vmem:[#allocation8 + $0x8] sm:$0xff]  ;;  %v5530_v19 = vld [vmem:[#allocation8 + $0x10] sm:$0xff] }
 0x594   :  { %v5016_v21 = vadd.f32 %v5015_v30, %v17562_v46  ;;  %v5086_v23 = vmul.f32 %v17562_v46, %v17562_v46  ;;  %v5148_v42 = vadd.f32 %v5147_v11, %v5085_v20 }
 0x595   :  { %14793 = vmatprep.subr.bf16.mxu1 %v14792_v59 }
 0x596   :  { %v5149_v14 = vadd.f32 %v5148_v42, %v5086_v23  ;;  %v17569_v61 = vpop.f32.mrb[36].mxu0  ;;  %v5017_v47 = vadd.f32 %v17559_v26, %v5016_v21 }
 0x597   :  { %v17572_v36 = vpop.f32.mrb[37].mxu0  ;;  %v5089_v63 = vmul.f32 %v17569_v61, %v17569_v61  ;;  %14795 = vmatpush3.bf16.msra.mxu1 %v14792_v59 }
 0x598   :  { %v5018_v54 = vadd.f32 %v5017_v47, %v17572_v36  ;;  %v5088_v43 = vmul.f32 %v17572_v36, %v17572_v36  ;;  %v5150_v62 = vadd.f32 %v5149_v14, %v5087_v3 }
 0x59a   :  { %v5151_v22 = vadd.f32 %v5150_v62, %v5088_v43  ;;  %v17579_v5 = vpop.f32.mrb[38].mxu0  ;;  %v5019_v45 = vadd.f32 %v17569_v61, %v5018_v54  ;;  %13357 = vmatmul.mubr.f32.vlgmr.msra.gmra.mrb[0].mxu1 %v17352_v38 }
 0x59b   :  { %v17582_v50 = vpop.f32.mrb[39].mxu0  ;;  %v5091_v48 = vmul.f32 %v17579_v5, %v17579_v5 }
 0x59c   :  { %v5020_v20 = vadd.f32 %v5019_v45, %v17582_v50  ;;  %v5090_v11 = vmul.f32 %v17582_v50, %v17582_v50  ;;  %v5152_v30 = vadd.f32 %v5151_v22, %v5089_v63  ;;  %v5528_v45 = vld [vmem:[#allocation8] sm:$0xff] }
 0x59d   :  { %v14796_v38 = vpack.c.bf16 %v5529_v16, %v5528_v45 }
 0x59e   :  { %v5153_v21 = vadd.f32 %v5152_v30, %v5090_v11  ;;  %v17589_v23 = vpop.f32.mrb[40].mxu0  ;;  %v5021_v42 = vadd.f32 %v17579_v5, %v5020_v20 }
 0x59f   :  { %20863 = vst [vmem:[#allocation27_spill] sm:$0xff] %v17589_v23  ;;  %v17592_v34 = vpop.f32.mrb[41].mxu0  ;;  %v5093_v51 = vmul.f32 %v17589_v23, %v17589_v23  ;;  %14797 = vmatprep.subr.bf16.mxu1 %v14796_v38 }
 0x5a0   :  { %20864 = vst [vmem:[#allocation28_spill] sm:$0xff] %v17592_v34  ;;  %v5022_v3 = vadd.f32 %v5021_v42, %v17592_v34  ;;  %v5092_v14 = vmul.f32 %v17592_v34, %v17592_v34  ;;  %v5154_v47 = vadd.f32 %v5153_v21, %v5091_v48  ;;  %v5531_v48 = vld [vmem:[#allocation8 + $0x18] sm:$0xff]  ;;  %14799 = vmatpush3.bf16.msra.mxu1 %v14796_v38 }
 0x5a1   :  { %v14800_v42 = vpack.c.bf16 %v5531_v48, %v5530_v19 }
 0x5a2   :  { %v5155_v44 = vadd.f32 %v5154_v47, %v5092_v14  ;;  %v17599_v54 = vpop.f32.mrb[42].mxu0  ;;  %v5023_v43 = vadd.f32 %v17589_v23, %v5022_v3 }
 0x5a3   :  { %20865 = vst [vmem:[#allocation29_spill] sm:$0xff] %v17599_v54  ;;  %v17603_v62 = vpop.f32.mrb[43].mxu0  ;;  %v5095_v20 = vmul.f32 %v17599_v54, %v17599_v54  ;;  %14801 = vmatprep.subr.bf16.mxu1 %v14800_v42 }
 0x5a4   :  { %20866 = vst [vmem:[#allocation30_spill] sm:$0xff] %v17603_v62  ;;  %v5024_v55 = vadd.f32 %v5023_v43, %v17603_v62  ;;  %v5094_v63 = vmul.f32 %v17603_v62, %v17603_v62  ;;  %v5156_v22 = vadd.f32 %v5155_v44, %v5093_v51  ;;  %14803 = vmatpush3.bf16.msra.mxu1 %v14800_v42 }
 0x5a6   :  { %v5157_v11 = vadd.f32 %v5156_v22, %v5094_v63  ;;  %v17610_v30 = vpop.f32.mrb[44].mxu0  ;;  %v5025_v59 = vadd.f32 %v17599_v54, %v5024_v55 }
 0x5a7   :  { %20867 = vst [vmem:[#allocation31_spill] sm:$0xff] %v17610_v30  ;;  %v17613_v21 = vpop.f32.mrb[45].mxu0  ;;  %v5097_v51 = vmul.f32 %v17610_v30, %v17610_v30 }
 0x5a8   :  { %20868 = vst [vmem:[#allocation32_spill] sm:$0xff] %v17613_v21  ;;  %v5026_v3 = vadd.f32 %v5025_v59, %v17613_v21  ;;  %v5096_v14 = vmul.f32 %v17613_v21, %v17613_v21  ;;  %v5158_v47 = vadd.f32 %v5157_v11, %v5095_v20  ;;  %v5536_v21 = vld [vmem:[#allocation8 + $0x40] sm:$0xff] }
 0x5aa   :  { %v5159_v44 = vadd.f32 %v5158_v47, %v5096_v14  ;;  %v17620_v43 = vpop.f32.mrb[46].mxu0  ;;  %v5027_v55 = vadd.f32 %v17610_v30, %v5026_v3 }
 0x5ab   :  { %20869 = vst [vmem:[#allocation33_spill] sm:$0xff] %v17620_v43  ;;  %v17623_v63 = vpop.f32.mrb[47].mxu0  ;;  %v5099_v19 = vmul.f32 %v17620_v43, %v17620_v43 }
 0x5ac   :  { %20870 = vst [vmem:[#allocation34_spill] sm:$0xff] %v17623_v63  ;;  %v5028_v22 = vadd.f32 %v5027_v55, %v17623_v63  ;;  %v5098_v45 = vmul.f32 %v17623_v63, %v17623_v63  ;;  %v5160_v16 = vadd.f32 %v5159_v44, %v5097_v51  ;;  %v5532_v55 = vld [vmem:[#allocation8 + $0x20] sm:$0xff] }
 0x5ae   :  { %v5161_v20 = vadd.f32 %v5160_v16, %v5098_v45  ;;  %v17630_v11 = vpop.f32.mrb[48].mxu0  ;;  %v5029_v59 = vadd.f32 %v17620_v43, %v5028_v22  ;;  %v5533_v45 = vld [vmem:[#allocation8 + $0x28] sm:$0xff] }
 0x5af   :  { %20871 = vst [vmem:[#allocation35_spill] sm:$0xff] %v17630_v11  ;;  %v17633_v38 = vpop.f32.mrb[49].mxu0  ;;  %v5101_v47 = vmul.f32 %v17630_v11, %v17630_v11  ;;  %v14804_v22 = vpack.c.bf16 %v5533_v45, %v5532_v55 }
 0x5b0   :  { %20872 = vst [vmem:[#allocation36_spill] sm:$0xff] %v17633_v38  ;;  %v5030_v48 = vadd.f32 %v5029_v59, %v17633_v38  ;;  %v5100_v3 = vmul.f32 %v17633_v38, %v17633_v38  ;;  %v5162_v14 = vadd.f32 %v5161_v20, %v5099_v19 }
 0x5b1   :  { %14805 = vmatprep.subr.bf16.mxu1 %v14804_v22 }
 0x5b2   :  { %v5163_v42 = vadd.f32 %v5162_v14, %v5100_v3  ;;  %v17640_v51 = vpop.f32.mrb[50].mxu0  ;;  %v5031_v44 = vadd.f32 %v17630_v11, %v5030_v48  ;;  %14807 = vmatpush3.bf16.msra.mxu1 %v14804_v22 }
 0x5b3   :  { %20873 = vst [vmem:[#allocation37_spill] sm:$0xff] %v17640_v51  ;;  %v17643_v16 = vpop.f32.mrb[51].mxu0  ;;  %v5103_v19 = vmul.f32 %v17640_v51, %v17640_v51 }
 0x5b4   :  { %20874 = vst [vmem:[#allocation38_spill] sm:$0xff] %v17643_v16  ;;  %v5032_v43 = vadd.f32 %v5031_v44, %v17643_v16  ;;  %v5102_v59 = vmul.f32 %v17643_v16, %v17643_v16  ;;  %v5164_v38 = vadd.f32 %v5163_v42, %v5101_v47 }
 0x5b6   :  { %v5165_v20 = vadd.f32 %v5164_v38, %v5102_v59  ;;  %v17650_v3 = vpop.f32.mrb[52].mxu0  ;;  %v5033_v48 = vadd.f32 %v17640_v51, %v5032_v43  ;;  %v5535_v51 = vld [vmem:[#allocation8 + $0x38] sm:$0xff] }
 0x5b7   :  { %20875 = vst [vmem:[#allocation39_spill] sm:$0xff] %v17650_v3  ;;  %v17653_v14 = vpop.f32.mrb[53].mxu0  ;;  %v5105_v47 = vmul.f32 %v17650_v3, %v17650_v3 }
 0x5b8   :  { %20876 = vst [vmem:[#allocation40_spill] sm:$0xff] %v17653_v14  ;;  %v5034_v55 = vadd.f32 %v5033_v48, %v17653_v14  ;;  %v5104_v44 = vmul.f32 %v17653_v14, %v17653_v14  ;;  %v5166_v45 = vadd.f32 %v5165_v20, %v5103_v19 }
 0x5ba   :  { %v5167_v42 = vadd.f32 %v5166_v45, %v5104_v44  ;;  %v17660_v16 = vpop.f32.mrb[54].mxu0  ;;  %v5035_v38 = vadd.f32 %v17650_v3, %v5034_v55 }
 0x5bb   :  { %20877 = vst [vmem:[#allocation41_spill] sm:$0xff] %v17660_v16  ;;  %v17663_v59 = vpop.f32.mrb[55].mxu0  ;;  %v5107_v14 = vmul.f32 %v17660_v16, %v17660_v16 }
 0x5bc   :  { %20878 = vst [vmem:[#allocation42_spill] sm:$0xff] %v17663_v59  ;;  %v5036_v43 = vadd.f32 %v5035_v38, %v17663_v59  ;;  %v5106_v22 = vmul.f32 %v17663_v59, %v17663_v59  ;;  %v5168_v48 = vadd.f32 %v5167_v42, %v5105_v47 }
 0x5be   :  { %v5169_v19 = vadd.f32 %v5168_v48, %v5106_v22  ;;  %v17670_v20 = vpop.f32.mrb[56].mxu0  ;;  %v5037_v44 = vadd.f32 %v17660_v16, %v5036_v43  ;;  %v5534_v48 = vld [vmem:[#allocation8 + $0x30] sm:$0xff] }
 0x5bf   :  { %20879 = vst [vmem:[#allocation43_spill] sm:$0xff] %v17670_v20  ;;  %v17673_v45 = vpop.f32.mrb[57].mxu0  ;;  %v5109_v59 = vmul.f32 %v17670_v20, %v17670_v20  ;;  %v14808_v43 = vpack.c.bf16 %v5535_v51, %v5534_v48 }
 0x5c0   :  { %20880 = vst [vmem:[#allocation44_spill] sm:$0xff] %v17673_v45  ;;  %v5038_v55 = vadd.f32 %v5037_v44, %v17673_v45  ;;  %v5108_v3 = vmul.f32 %v17673_v45, %v17673_v45  ;;  %v5170_v38 = vadd.f32 %v5169_v19, %v5107_v14 }
 0x5c1   :  { %14809 = vmatprep.subr.bf16.mxu1 %v14808_v43 }
 0x5c2   :  { %v5171_v47 = vadd.f32 %v5170_v38, %v5108_v3  ;;  %v17680_v42 = vpop.f32.mrb[58].mxu0  ;;  %v5039_v22 = vadd.f32 %v17670_v20, %v5038_v55  ;;  %14811 = vmatpush3.bf16.msra.mxu1 %v14808_v43 }
 0x5c3   :  { %20881 = vst [vmem:[#allocation45_spill] sm:$0xff] %v17680_v42  ;;  %v17683_v11 = vpop.f32.mrb[59].mxu0  ;;  %v5111_v14 = vmul.f32 %v17680_v42, %v17680_v42 }
 0x5c4   :  { %20882 = vst [vmem:[#allocation46_spill] sm:$0xff] %v17683_v11  ;;  %v5040_v16 = vadd.f32 %v5039_v22, %v17683_v11  ;;  %v5110_v44 = vmul.f32 %v17683_v11, %v17683_v11  ;;  %v5172_v45 = vadd.f32 %v5171_v47, %v5109_v59 }
 0x5c6   :  { %v5173_v3 = vadd.f32 %v5172_v45, %v5110_v44  ;;  %v17690_v19 = vpop.f32.mrb[60].mxu0  ;;  %v5041_v55 = vadd.f32 %v17680_v42, %v5040_v16 }
 0x5c7   :  { %20883 = vst [vmem:[#allocation47_spill] sm:$0xff] %v17690_v19  ;;  %v17693_v38 = vpop.f32.mrb[61].mxu0  ;;  %v5113_v59 = vmul.f32 %v17690_v19, %v17690_v19 }
 0x5c8   :  { %20884 = vst [vmem:[#allocation48_spill] sm:$0xff] %v17693_v38  ;;  %v5042_v51 = vadd.f32 %v5041_v55, %v17693_v38  ;;  %v5112_v22 = vmul.f32 %v17693_v38, %v17693_v38  ;;  %v5174_v48 = vadd.f32 %v5173_v3, %v5111_v14 }
 0x5ca   :  { %v5175_v47 = vadd.f32 %v5174_v48, %v5112_v22  ;;  %v17700_v11 = vpop.f32.mrb[62].mxu0  ;;  %v5043_v45 = vadd.f32 %v17690_v19, %v5042_v51  ;;  %v5537_v22 = vld [vmem:[#allocation8 + $0x48] sm:$0xff] }
 0x5cb   :  { %20885 = vst [vmem:[#allocation49_spill] sm:$0xff] %v17700_v11  ;;  %v4910_v44 = vpop.f32.mrb[63].mxu0  ;;  %v5115_v42 = vmul.f32 %v17700_v11, %v17700_v11  ;;  %v14812_v48 = vpack.c.bf16 %v5537_v22, %v5536_v21  ;;  %v5197_v21 = vlaneseq }
 0x5cc   :  { %v5044_v20 = vadd.f32 %v5043_v45, %v4910_v44  ;;  %v5114_v16 = vmul.f32 %v4910_v44, %v4910_v44  ;;  %v5176_v43 = vadd.f32 %v5175_v47, %v5113_v59 }
 0x5cd   :  { %14813 = vmatprep.subr.bf16.mxu1 %v14812_v48 }
 0x5ce   :  { %v5045_v55 = vadd.f32 %v17700_v11, %v5044_v20  ;;  %v5177_v63 = vadd.f32 %v5176_v43, %v5114_v16  ;;  %14815 = vmatpush3.bf16.msra.mxu1 %v14812_v48 }
 0x5d0   :  { %v5046_v38 = vrot.slane %v5045_v55, 4  ;;  %v5178_v14 = vadd.f32 %v5177_v63, %v5115_v42 }
 0x5d2   :  { %v5047_v3 = vadd.f32 %v5046_v38, %v5045_v55  ;;  %v5179_v30 = vrot.slane %v5178_v14, 4  ;;  %v5538_v38 = vld [vmem:[#allocation8 + $0x50] sm:$0xff]  ;;  %v5539_v55 = vld [vmem:[#allocation8 + $0x58] sm:$0xff] }
 0x5d3   :  { %v14816_v11 = vpack.c.bf16 %v5539_v55, %v5538_v38  ;;  %v20890_v38 = vld [vmem:[#allocation29_spill] sm:$0xff]  ;;  %v20891_v55 = vld [vmem:[#allocation32_spill] sm:$0xff] }
 0x5d4   :  { %v5048_v54 = vrot.slane %v5047_v3, 2  ;;  %v5180_v62 = vadd.f32 %v5179_v30, %v5178_v14 }
 0x5d5   :  { %14817 = vmatprep.subr.bf16.mxu1 %v14816_v11 }
 0x5d6   :  { %v5049_v51 = vadd.f32 %v5048_v54, %v5047_v3  ;;  %v5181_v45 = vrot.slane %v5180_v62, 2  ;;  %14819 = vmatpush3.bf16.msra.mxu1 %v14816_v11  ;;  %v5198_v54 = vshrl.u32 %v5197_v21, 7  ;;  %v20892_v21 = vld [vmem:[#allocation31_spill] sm:$0xff] }
 0x5d8   :  { %v5050_v59 = vrot.slane %v5049_v51, 1  ;;  %v5182_v47 = vadd.f32 %v5181_v45, %v5180_v62  ;;  %v5189_v62 = vld [vmem:[%s20391_s2] sm:$0x1]  ;;  %v17709_v30 = vsub.s32 0, %v5198_v54 }
 0x5da   :  { %v5051_v19 = vadd.f32 %v5050_v59, %v5049_v51  ;;  %v5183_v23 = vrot.slane %v5182_v47, 1  ;;  %20886 = vst [vmem:[#allocation50_spill] sm:$0xff] %v17709_v30 }
 0x5dc   :  { %v5184_v34 = vadd.f32 %v5183_v23, %v5182_v47  ;;  %v5185_v20 = vmul.f32 0.001953125, %v5051_v19 }
 0x5de   :  { %v5186_v16 = vmul.f32 0.001953125, %v5184_v34  ;;  %v5187_v43 = vmul.f32 %v5185_v20, %v5185_v20  ;;  %v5193_v34 = vld [vmem:[%s20392_s3] sm:$0x1] }
 0x5e0   :  { %v5188_v63 = vsub.f32 %v5186_v16, %v5187_v43  ;;  %v20887_v43 = vld [vmem:[#allocation28_spill] sm:$0xff] }
 0x5e2   :  { %v5190_v42 = vadd.f32 1e-05, %v5188_v63  ;;  %v20888_v63 = vld [vmem:[#allocation27_spill] sm:$0xff] }
 0x5e4   :  { %16083 = vrsqrt.f32 %v5190_v42  ;;  %v20889_v42 = vld [vmem:[#allocation30_spill] sm:$0xff] }
 0x5ee   :  { %v16084_v23 = vpop.eup %16083 }
 0x5ef   :  { %v5192_v19 = vmul.f32 %v16084_v23, %v5189_v62  ;;  %v20893_v62 = vld [vmem:[#allocation34_spill] sm:$0xff] }
 0x5f1   :  { %v5194_v14 = vmul.f32 %v5192_v19, %v5185_v20  ;;  %v17715_v3 = vrot.slane %v5192_v19, %v17709_v30  ;;  %v20894_v19 = vld [vmem:[#allocation33_spill] sm:$0xff] }
 0x5f3   :  { %v5195_v22 = vsub.f32 %v5193_v34, %v5194_v14  ;;  %v5264_v11 = vmul.f32 %v17715_v3, %v4910_v44  ;;  %v17720_v48 = vmul.f32 %v17715_v3, %v17394_v17  ;;  %v17724_v51 = vmul.f32 %v17390_v13, %v17715_v3  ;;  %v20895_v14 = vld [vmem:[#allocation36_spill] sm:$0xff] }
 0x5f4   :  { %v17728_v45 = vmul.f32 %v17715_v3, %v17402_v25  ;;  %v17732_v59 = vmul.f32 %v17400_v60, %v17715_v3  ;;  %v17736_v47 = vmul.f32 %v17715_v3, %v17412_v40  ;;  %v17740_v17 = vmul.f32 %v17410_v39, %v17715_v3 }
 0x5f5   :  { %v17743_v44 = vrot.slane %v5195_v22, %v17709_v30  ;;  %v17747_v13 = vmul.f32 %v17715_v3, %v17422_v18  ;;  %v17751_v25 = vmul.f32 %v17419_v57, %v17715_v3  ;;  %v17755_v60 = vmul.f32 %v17715_v3, %v17432_v31  ;;  %v20908_v30 = vld [vmem:[#allocation44_spill] sm:$0xff] }
 0x5f6   :  { %v17759_v40 = vmul.f32 %v17429_v24, %v17715_v3  ;;  %v17763_v39 = vmul.f32 %v17715_v3, %v17442_v35  ;;  %v17767_v18 = vmul.f32 %v17439_v28, %v17715_v3  ;;  %v17771_v57 = vmul.f32 %v17715_v3, %v17452_v9 }
 0x5f7   :  { %v5334_v20 = vadd.f32 %v17743_v44, %v5264_v11  ;;  %v17776_v31 = vmul.f32 %v17449_v53, %v17715_v3  ;;  %v17780_v24 = vmul.f32 %v17715_v3, %v17462_v6  ;;  %v17784_v35 = vmul.f32 %v17459_v1, %v17715_v3  ;;  %v20896_v11 = vld [vmem:[#allocation35_spill] sm:$0xff] }
 0x5f8   :  { %v17788_v28 = vmul.f32 %v17715_v3, %v17472_v49  ;;  %v17792_v9 = vmul.f32 %v17469_v12, %v17715_v3  ;;  %v17796_v53 = vmul.f32 %v17715_v3, %v17482_v33  ;;  %v17800_v6 = vmul.f32 %v17479_v29, %v17715_v3 }
 0x5f9   :  { %v5398_v16 = vmax.f32 %v5334_v20, 0.0  ;;  %v17804_v1 = vmul.f32 %v17715_v3, %v17492_v15  ;;  %v17808_v49 = vmul.f32 %v17489_v7, %v17715_v3  ;;  %v17812_v12 = vmul.f32 %v17715_v3, %v17502_v10 }
 0x5fa   :  { %v17816_v33 = vmul.f32 %v17499_v0, %v17715_v3  ;;  %v17820_v29 = vmul.f32 %v17715_v3, %v17512_v2  ;;  %v17824_v15 = vmul.f32 %v17509_v41, %v17715_v3  ;;  %v17828_v7 = vmul.f32 %v17715_v3, %v17522_v8 }
 0x5fb   :  { %v17832_v10 = vmul.f32 %v17519_v58, %v17715_v3  ;;  %v17836_v0 = vmul.f32 %v17715_v3, %v17532_v52  ;;  %v17840_v2 = vmul.f32 %v17529_v37, %v17715_v3  ;;  %v17844_v41 = vmul.f32 %v17715_v3, %v17542_v27  ;;  %5462 = vst [vmem:[#allocation2 + $0x448] sm:$0xff] %v5398_v16  ;;  %v20897_v16 = vld [vmem:[#allocation38_spill] sm:$0xff] }
 0x5fc   :  { %v17848_v8 = vmul.f32 %v17539_v32, %v17715_v3  ;;  %v17852_v58 = vmul.f32 %v17715_v3, %v17552_v4  ;;  %v17856_v52 = vmul.f32 %v17549_v56, %v17715_v3  ;;  %v17860_v37 = vmul.f32 %v17715_v3, %v17562_v46 }
 0x5fd   :  { %v17864_v27 = vmul.f32 %v17559_v26, %v17715_v3  ;;  %v17868_v32 = vmul.f32 %v17715_v3, %v17572_v36  ;;  %v17872_v4 = vmul.f32 %v17569_v61, %v17715_v3  ;;  %v17876_v56 = vmul.f32 %v17715_v3, %v17582_v50 }
 0x5fe   :  { %v17880_v46 = vmul.f32 %v17579_v5, %v17715_v3  ;;  %v17884_v26 = vmul.f32 %v17715_v3, %v20887_v43  ;;  %v17888_v36 = vmul.f32 %v20888_v63, %v17715_v3  ;;  %v17892_v61 = vmul.f32 %v17715_v3, %v20889_v42  ;;  %v20898_v63 = vld [vmem:[#allocation37_spill] sm:$0xff] }
 0x5ff   :  { %v17896_v50 = vmul.f32 %v20890_v38, %v17715_v3  ;;  %v17900_v5 = vmul.f32 %v17715_v3, %v20891_v55  ;;  %v17904_v54 = vmul.f32 %v20892_v21, %v17715_v3  ;;  %v17908_v23 = vmul.f32 %v17715_v3, %v20893_v62  ;;  %v20900_v38 = vld [vmem:[#allocation40_spill] sm:$0xff]  ;;  %v20902_v21 = vld [vmem:[#allocation39_spill] sm:$0xff] }
 0x600   :  { %v17912_v34 = vmul.f32 %v20894_v19, %v17715_v3  ;;  %v17916_v22 = vmul.f32 %v17715_v3, %v20895_v14  ;;  %v17920_v20 = vmul.f32 %v20896_v11, %v17715_v3  ;;  %v17924_v43 = vmul.f32 %v17715_v3, %v20897_v16  ;;  %v20904_v19 = vld [vmem:[#allocation42_spill] sm:$0xff]  ;;  %v20906_v11 = vld [vmem:[#allocation41_spill] sm:$0xff] }
 0x601   :  { %v17928_v42 = vmul.f32 %v20898_v63, %v17715_v3  ;;  %v17932_v55 = vmul.f32 %v17715_v3, %v20900_v38  ;;  %v17936_v62 = vmul.f32 %v20902_v21, %v17715_v3  ;;  %v17940_v14 = vmul.f32 %v17715_v3, %v20904_v19 }
 0x602   :  { %v17944_v16 = vmul.f32 %v20906_v11, %v17715_v3  ;;  %v17948_v63 = vmul.f32 %v17715_v3, %v20908_v30 }
 0x603   :  { %20899 = vst [vmem:[#allocation51_spill] sm:$0xff] %v17928_v42  ;;  %20901 = vst [vmem:[#allocation52_spill] sm:$0xff] %v17932_v55  ;;  %v20910_v42 = vld [vmem:[#allocation43_spill] sm:$0xff]  ;;  %v20911_v55 = vld [vmem:[#allocation46_spill] sm:$0xff] }
 0x604   :  { %20903 = vst [vmem:[#allocation53_spill] sm:$0xff] %v17936_v62  ;;  %20905 = vst [vmem:[#allocation54_spill] sm:$0xff] %v17940_v14  ;;  %v17952_v38 = vmul.f32 %v20910_v42, %v17715_v3  ;;  %v17956_v21 = vmul.f32 %v17715_v3, %v20911_v55  ;;  %v20912_v62 = vld [vmem:[#allocation45_spill] sm:$0xff]  ;;  %v20913_v14 = vld [vmem:[#allocation48_spill] sm:$0xff]  ;;  %v17976_v55 = vadd.f32 %v17743_v44, %v17720_v48 }
 0x605   :  { %20907 = vst [vmem:[#allocation55_spill] sm:$0xff] %v17944_v16  ;;  %20909 = vst [vmem:[#allocation56_spill] sm:$0xff] %v17948_v63  ;;  %v17960_v19 = vmul.f32 %v20912_v62, %v17715_v3  ;;  %v17964_v11 = vmul.f32 %v17715_v3, %v20913_v14  ;;  %v20914_v16 = vld [vmem:[#allocation47_spill] sm:$0xff]  ;;  %v20915_v63 = vld [vmem:[#allocation49_spill] sm:$0xff]  ;;  %v17980_v62 = vadd.f32 %v17743_v44, %v17724_v51 }
 0x606   :  { %v17968_v30 = vmul.f32 %v20914_v16, %v17715_v3  ;;  %v17972_v42 = vmul.f32 %v20915_v63, %v17715_v3  ;;  %v17984_v14 = vadd.f32 %v17743_v44, %v17728_v45  ;;  %v17988_v16 = vadd.f32 %v17743_v44, %v17732_v59 }
 0x607   :  { %v17992_v3 = vadd.f32 %v17743_v44, %v17736_v47  ;;  %v17996_v48 = vadd.f32 %v17743_v44, %v17740_v17  ;;  %v18000_v51 = vadd.f32 %v17743_v44, %v17747_v13  ;;  %v18004_v45 = vadd.f32 %v17743_v44, %v17751_v25 }
 0x608   :  { %v18008_v59 = vadd.f32 %v17743_v44, %v17755_v60  ;;  %v18012_v47 = vadd.f32 %v17743_v44, %v17759_v40  ;;  %v18016_v17 = vadd.f32 %v17743_v44, %v17763_v39  ;;  %v18020_v13 = vadd.f32 %v17743_v44, %v17767_v18 }
 0x609   :  { %v18024_v25 = vadd.f32 %v17743_v44, %v17771_v57  ;;  %v18028_v60 = vadd.f32 %v17743_v44, %v17776_v31  ;;  %v18032_v40 = vadd.f32 %v17743_v44, %v17780_v24  ;;  %v18036_v39 = vadd.f32 %v17743_v44, %v17784_v35 }
 0x60a   :  { %v18040_v18 = vadd.f32 %v17743_v44, %v17788_v28  ;;  %v18044_v57 = vadd.f32 %v17743_v44, %v17792_v9  ;;  %v18048_v31 = vadd.f32 %v17743_v44, %v17796_v53  ;;  %v18052_v24 = vadd.f32 %v17743_v44, %v17800_v6  ;;  %v20922_v63 = vld [vmem:[#allocation51_spill] sm:$0xff] }
 0x60b   :  { %v18056_v35 = vadd.f32 %v17743_v44, %v17804_v1  ;;  %v18060_v28 = vadd.f32 %v17743_v44, %v17808_v49  ;;  %v18064_v9 = vadd.f32 %v17743_v44, %v17812_v12  ;;  %v18068_v53 = vadd.f32 %v17743_v44, %v17816_v33 }
 0x60c   :  { %v18072_v6 = vadd.f32 %v17743_v44, %v17820_v29  ;;  %v18076_v1 = vadd.f32 %v17743_v44, %v17824_v15  ;;  %v18080_v49 = vadd.f32 %v17743_v44, %v17828_v7  ;;  %v18084_v12 = vadd.f32 %v17743_v44, %v17832_v10 }
 0x60d   :  { %v18088_v33 = vadd.f32 %v17743_v44, %v17836_v0  ;;  %v18092_v29 = vadd.f32 %v17743_v44, %v17840_v2  ;;  %v18096_v15 = vadd.f32 %v17743_v44, %v17844_v41  ;;  %v18100_v7 = vadd.f32 %v17743_v44, %v17848_v8 }
 0x60e   :  { %v18104_v10 = vadd.f32 %v17743_v44, %v17852_v58  ;;  %v18108_v0 = vadd.f32 %v17743_v44, %v17856_v52  ;;  %v18112_v2 = vadd.f32 %v17743_v44, %v17860_v37  ;;  %v18116_v41 = vadd.f32 %v17743_v44, %v17864_v27 }
 0x60f   :  { %v18120_v8 = vadd.f32 %v17743_v44, %v17868_v32  ;;  %v18124_v58 = vadd.f32 %v17743_v44, %v17872_v4  ;;  %v18128_v52 = vadd.f32 %v17743_v44, %v17876_v56  ;;  %v18132_v37 = vadd.f32 %v17743_v44, %v17880_v46 }
 0x610   :  { %v18136_v27 = vadd.f32 %v17743_v44, %v17884_v26  ;;  %v18140_v32 = vadd.f32 %v17743_v44, %v17888_v36  ;;  %v18144_v4 = vadd.f32 %v17743_v44, %v17892_v61  ;;  %v18148_v56 = vadd.f32 %v17743_v44, %v17896_v50 }
 0x611   :  { %v18152_v46 = vadd.f32 %v17743_v44, %v17900_v5  ;;  %v18156_v26 = vadd.f32 %v17743_v44, %v17904_v54  ;;  %v18160_v36 = vadd.f32 %v17743_v44, %v17908_v23  ;;  %v18164_v61 = vadd.f32 %v17743_v44, %v17912_v34 }
 0x612   :  { %v18168_v50 = vadd.f32 %v17743_v44, %v17916_v22  ;;  %v18172_v5 = vadd.f32 %v17743_v44, %v17920_v20  ;;  %v18176_v54 = vadd.f32 %v17743_v44, %v17924_v43  ;;  %v18180_v23 = vadd.f32 %v17743_v44, %v20922_v63 }
 0x613   :  { %20916 = vst [vmem:[#allocation57_spill] sm:$0xff] %v18156_v26  ;;  %20917 = vst [vmem:[#allocation58_spill] sm:$0xff] %v18160_v36  ;;  %v20923_v36 = vld [vmem:[#allocation52_spill] sm:$0xff] }
 0x614   :  { %20918 = vst [vmem:[#allocation59_spill] sm:$0xff] %v18164_v61  ;;  %20919 = vst [vmem:[#allocation60_spill] sm:$0xff] %v18168_v50  ;;  %v18184_v34 = vadd.f32 %v17743_v44, %v20923_v36  ;;  %v20924_v61 = vld [vmem:[#allocation53_spill] sm:$0xff]  ;;  %v20925_v50 = vld [vmem:[#allocation54_spill] sm:$0xff]  ;;  %v18204_v36 = vadd.f32 %v17743_v44, %v17952_v38  ;;  %v18224_v38 = vadd.f32 %v17743_v44, %v17972_v42  ;;  %v20532_v42 = vmax.f32 %v18016_v17, 0.0 }
 0x615   :  { %20920 = vst [vmem:[#allocation61_spill] sm:$0xff] %v18172_v5  ;;  %20921 = vst [vmem:[#allocation62_spill] sm:$0xff] %v18176_v54  ;;  %v18188_v22 = vadd.f32 %v17743_v44, %v20924_v61  ;;  %v18192_v20 = vadd.f32 %v17743_v44, %v20925_v50  ;;  %v20926_v5 = vld [vmem:[#allocation55_spill] sm:$0xff]  ;;  %v20927_v54 = vld [vmem:[#allocation56_spill] sm:$0xff]  ;;  %v18208_v61 = vadd.f32 %v17743_v44, %v17956_v21  ;;  %v5337_v21 = vmax.f32 %v17980_v62, 0.0 }
 0x616   :  { %v18196_v43 = vadd.f32 %v17743_v44, %v20926_v5  ;;  %v18200_v63 = vadd.f32 %v17743_v44, %v20927_v54  ;;  %20928 = vst [vmem:[#allocation63_spill] sm:$0xff] %v18204_v36  ;;  %v18212_v50 = vadd.f32 %v17743_v44, %v17960_v19  ;;  %v18216_v5 = vadd.f32 %v17743_v44, %v17964_v11 }
 0x617   :  { %20929 = vst [vmem:[#allocation64_spill] sm:$0xff] %v18208_v61  ;;  %v18220_v54 = vadd.f32 %v17743_v44, %v17968_v30  ;;  %v5336_v36 = vmax.f32 %v17976_v55, 0.0  ;;  %v5338_v61 = vmax.f32 %v17984_v14, 0.0  ;;  %v5339_v19 = vmax.f32 %v17988_v16, 0.0  ;;  %5401 = vst [vmem:[#allocation2 + $0x30] sm:$0xff] %v5337_v21 }
 0x618   :  { %20930 = vst [vmem:[#allocation65_spill] sm:$0xff] %v18212_v50  ;;  %20931 = vst [vmem:[#allocation66_spill] sm:$0xff] %v18216_v5  ;;  %v5340_v50 = vmax.f32 %v17992_v3, 0.0  ;;  %v20535_v11 = vmax.f32 %v17996_v48, 0.0  ;;  %v20530_v5 = vmax.f32 %v18000_v51, 0.0  ;;  %v20529_v30 = vmax.f32 %v18004_v45, 0.0 }
 0x619   :  { %20932 = vst [vmem:[#allocation67_spill] sm:$0xff] %v18220_v54  ;;  %v20528_v54 = vmax.f32 %v18008_v59, 0.0  ;;  %5400 = vst [vmem:[#allocation2 + $0x28] sm:$0xff] %v5336_v36  ;;  %13359 = vmatprep.mubr.f32.mxu1 %v5336_v36  ;;  %v20531_v44 = vmax.f32 %v18012_v47, 0.0  ;;  %v20533_v55 = vmax.f32 %v18020_v13, 0.0  ;;  %v20534_v62 = vmax.f32 %v18024_v25, 0.0 }
 0x61a   :  { %5402 = vst [vmem:[#allocation2 + $0x48] sm:$0xff] %v5338_v61  ;;  %5403 = vst [vmem:[#allocation2 + $0x50] sm:$0xff] %v5339_v19  ;;  %13360 = vmatmul.mubr.f32.gmra.mrb[2].mxu1 %v5337_v21  ;;  %v20536_v14 = vmax.f32 %v18028_v60, 0.0  ;;  %v20548_v21 = vmax.f32 %v18044_v57, 0.0  ;;  %v20539_v16 = vmax.f32 %v18048_v31, 0.0  ;;  %v20537_v3 = vmax.f32 %v18052_v24, 0.0 }
 0x61b   :  { %5404 = vst [vmem:[#allocation2 + $0x68] sm:$0xff] %v5340_v50  ;;  %5405 = vst [vmem:[#allocation2 + $0x70] sm:$0xff] %v20535_v11  ;;  %13362 = vmatprep.mubr.f32.mxu1 %v5338_v61  ;;  %v20538_v36 = vmax.f32 %v18056_v35, 0.0  ;;  %v20547_v61 = vmax.f32 %v18060_v28, 0.0  ;;  %v20543_v11 = vmax.f32 %v18080_v49, 0.0 }
 0x61c   :  { %5406 = vst [vmem:[#allocation2 + $0x88] sm:$0xff] %v20530_v5  ;;  %5407 = vst [vmem:[#allocation2 + $0x90] sm:$0xff] %v20529_v30  ;;  %v20541_v30 = vmax.f32 %v18084_v12, 0.0  ;;  %v20542_v5 = vmax.f32 %v18088_v33, 0.0 }
 0x61d   :  { %5408 = vst [vmem:[#allocation2 + $0xa8] sm:$0xff] %v20528_v54  ;;  %5409 = vst [vmem:[#allocation2 + $0xb0] sm:$0xff] %v20531_v44  ;;  %v20540_v54 = vmax.f32 %v18064_v9, 0.0  ;;  %v20933_v44 = vmax.f32 %v18032_v40, 0.0 }
 0x61e   :  { %5410 = vst [vmem:[#allocation2 + $0xc8] sm:$0xff] %v20532_v42  ;;  %5411 = vst [vmem:[#allocation2 + $0xd0] sm:$0xff] %v20533_v55  ;;  %v20934_v42 = vmax.f32 %v18036_v39, 0.0  ;;  %v20935_v55 = vmax.f32 %v18040_v18, 0.0  ;;  %13363 = vmatmul.mubr.f32.gmra.mrb[4].mxu1 %v5339_v19  ;;  %v20549_v19 = vmax.f32 %v18108_v0, 0.0 }
 0x61f   :  { %5412 = vst [vmem:[#allocation2 + $0xe8] sm:$0xff] %v20534_v62  ;;  %5413 = vst [vmem:[#allocation2 + $0xf0] sm:$0xff] %v20536_v14  ;;  %v20544_v62 = vmax.f32 %v18076_v1, 0.0  ;;  %v20545_v14 = vmax.f32 %v18104_v10, 0.0  ;;  %13365 = vmatprep.mubr.f32.mxu1 %v5340_v50  ;;  %v20553_v50 = vmax.f32 %v18124_v58, 0.0 }
 0x620   :  { %5414 = vst [vmem:[#allocation2 + $0x108] sm:$0xff] %v20933_v44  ;;  %5415 = vst [vmem:[#allocation2 + $0x110] sm:$0xff] %v20934_v42  ;;  %v20546_v44 = vmax.f32 %v18092_v29, 0.0  ;;  %v5366_v42 = vmax.f32 %v18096_v15, 0.0  ;;  %v20552_v15 = vmax.f32 %v18112_v2, 0.0 }
 0x621   :  { %5416 = vst [vmem:[#allocation2 + $0x128] sm:$0xff] %v20935_v55  ;;  %5417 = vst [vmem:[#allocation2 + $0x130] sm:$0xff] %v20548_v21  ;;  %v5367_v55 = vmax.f32 %v18100_v7, 0.0  ;;  %v20551_v7 = vmax.f32 %v18116_v41, 0.0 }
 0x622   :  { %5418 = vst [vmem:[#allocation2 + $0x148] sm:$0xff] %v20539_v16  ;;  %5419 = vst [vmem:[#allocation2 + $0x150] sm:$0xff] %v20537_v3  ;;  %v20936_v3 = vmax.f32 %v18068_v53, 0.0  ;;  %v20550_v16 = vmax.f32 %v18120_v8, 0.0 }
 0x623   :  { %5420 = vst [vmem:[#allocation2 + $0x168] sm:$0xff] %v20538_v36  ;;  %5421 = vst [vmem:[#allocation2 + $0x170] sm:$0xff] %v20547_v61  ;;  %v20937_v36 = vmax.f32 %v18072_v6, 0.0  ;;  %v20940_v61 = vld [vmem:[#allocation59_spill] sm:$0xff] }
 0x624   :  { %5422 = vst [vmem:[#allocation2 + $0x188] sm:$0xff] %v20540_v54  ;;  %5423 = vst [vmem:[#allocation2 + $0x190] sm:$0xff] %v20936_v3  ;;  %v20556_v3 = vmax.f32 %v18128_v52, 0.0  ;;  %v20554_v54 = vmax.f32 %v18136_v27, 0.0  ;;  %v20563_v21 = vmax.f32 %v20940_v61, 0.0 }
 0x625   :  { %5424 = vst [vmem:[#allocation2 + $0x1a8] sm:$0xff] %v20937_v36  ;;  %5425 = vst [vmem:[#allocation2 + $0x1b0] sm:$0xff] %v20544_v62  ;;  %v20555_v36 = vmax.f32 %v18132_v37, 0.0  ;;  %v20941_v62 = vld [vmem:[#allocation60_spill] sm:$0xff] }
 0x626   :  { %5426 = vst [vmem:[#allocation2 + $0x1c8] sm:$0xff] %v20543_v11  ;;  %5427 = vst [vmem:[#allocation2 + $0x1d0] sm:$0xff] %v20541_v30  ;;  %v20559_v30 = vmax.f32 %v18140_v32, 0.0  ;;  %v20557_v11 = vmax.f32 %v18148_v56, 0.0 }
 0x627   :  { %5428 = vst [vmem:[#allocation2 + $0x1e8] sm:$0xff] %v20542_v5  ;;  %5429 = vst [vmem:[#allocation2 + $0x1f0] sm:$0xff] %v20546_v44  ;;  %v20558_v5 = vmax.f32 %v18144_v4, 0.0 }
 0x628   :  { %5430 = vst [vmem:[#allocation2 + $0x208] sm:$0xff] %v5366_v42  ;;  %5431 = vst [vmem:[#allocation2 + $0x210] sm:$0xff] %v5367_v55  ;;  %v20938_v42 = vmax.f32 %v17996_v48, 0.0  ;;  %v20561_v55 = vmax.f32 %v18156_v26, 0.0  ;;  %v20942_v48 = vmax.f32 %v18000_v51, 0.0  ;;  %v20945_v51 = vmax.f32 %v18152_v46, 0.0 }
 0x629   :  { %5432 = vst [vmem:[#allocation2 + $0x268] sm:$0xff] %v20545_v14  ;;  %5433 = vst [vmem:[#allocation2 + $0x270] sm:$0xff] %v20549_v19  ;;  %v20939_v14 = vld [vmem:[#allocation58_spill] sm:$0xff]  ;;  %v5399_v19 = vmax.f32 %v18224_v38, 0.0  ;;  %v20957_v26 = vmax.f32 %v18188_v22, 0.0 }
 0x62a   :  { %5434 = vst [vmem:[#allocation2 + $0x288] sm:$0xff] %v20552_v15  ;;  %5435 = vst [vmem:[#allocation2 + $0x290] sm:$0xff] %v20551_v7  ;;  %13366 = vmatmul.mubr.f32.gmra.mrb[6].mxu1 %v20938_v42  ;;  %v20562_v44 = vmax.f32 %v20939_v14, 0.0  ;;  %v20943_v42 = vld [vmem:[#allocation61_spill] sm:$0xff]  ;;  %v20944_v7 = vld [vmem:[#allocation62_spill] sm:$0xff] }
 0x62b   :  { %5436 = vst [vmem:[#allocation2 + $0x2a8] sm:$0xff] %v20550_v16  ;;  %5437 = vst [vmem:[#allocation2 + $0x2b0] sm:$0xff] %v20553_v50  ;;  %13368 = vmatprep.mubr.f32.mxu1 %v20942_v48  ;;  %v5540_v48 = vld [vmem:[#allocation8 + $0x60] sm:$0xff]  ;;  %v20950_v16 = vld [vmem:[#allocation66_spill] sm:$0xff] }
 0x62c   :  { %5438 = vst [vmem:[#allocation2 + $0x2c8] sm:$0xff] %v20556_v3  ;;  %5439 = vst [vmem:[#allocation2 + $0x2d0] sm:$0xff] %v20555_v36  ;;  %v20948_v36 = vld [vmem:[#allocation64_spill] sm:$0xff]  ;;  %v20949_v15 = vld [vmem:[#allocation65_spill] sm:$0xff]  ;;  %v20955_v3 = vmax.f32 %v18004_v45, 0.0 }
 0x62d   :  { %5440 = vst [vmem:[#allocation2 + $0x2e8] sm:$0xff] %v20554_v54  ;;  %5441 = vst [vmem:[#allocation2 + $0x2f0] sm:$0xff] %v20559_v30  ;;  %v5541_v54 = vld [vmem:[#allocation8 + $0x68] sm:$0xff]  ;;  %v20947_v30 = vld [vmem:[#allocation63_spill] sm:$0xff]  ;;  %v20963_v38 = vmax.f32 %v20948_v36, 0.0 }
 0x62e   :  { %5442 = vst [vmem:[#allocation2 + $0x308] sm:$0xff] %v20558_v5  ;;  %5443 = vst [vmem:[#allocation2 + $0x310] sm:$0xff] %v20557_v11  ;;  %v5542_v11 = vld [vmem:[#allocation8 + $0x70] sm:$0xff]  ;;  %v5543_v5 = vld [vmem:[#allocation8 + $0x78] sm:$0xff]  ;;  %13369 = vmatmul.mubr.f32.gmra.mrb[8].mxu1 %v20955_v3  ;;  %v14820_v45 = vpack.c.bf16 %v5541_v54, %v5540_v48  ;;  %v20962_v3 = vmax.f32 %v20947_v30, 0.0  ;;  %v20966_v48 = vmax.f32 %v18012_v47, 0.0 }
 0x62f   :  { %5444 = vst [vmem:[#allocation2 + $0x328] sm:$0xff] %v20945_v51  ;;  %5445 = vst [vmem:[#allocation2 + $0x330] sm:$0xff] %v20561_v55  ;;  %v20946_v51 = vmax.f32 %v20941_v62, 0.0  ;;  %v20951_v55 = vmax.f32 %v20943_v42, 0.0  ;;  %v20956_v50 = vld [vmem:[#allocation67_spill] sm:$0xff]  ;;  %v6461_v54 = vld [vmem:[#allocation8 + $0x108] sm:$0xff] }
 0x630   :  { %5446 = vst [vmem:[#allocation2 + $0x348] sm:$0xff] %v20562_v44  ;;  %5447 = vst [vmem:[#allocation2 + $0x350] sm:$0xff] %v20563_v21  ;;  %v20952_v44 = vmax.f32 %v20944_v7, 0.0  ;;  %v20953_v21 = vmax.f32 %v18180_v23, 0.0  ;;  %v5397_v62 = vmax.f32 %v20956_v50, 0.0  ;;  %14821 = vmatprep.subr.bf16.mxu1 %v14820_v45  ;;  %v20971_v47 = vmax.f32 %v18032_v40, 0.0 }
 0x631   :  { %5448 = vst [vmem:[#allocation2 + $0x368] sm:$0xff] %v20946_v51  ;;  %5449 = vst [vmem:[#allocation2 + $0x370] sm:$0xff] %v20951_v55  ;;  %v20954_v51 = vmax.f32 %v18184_v34, 0.0  ;;  %v20958_v55 = vmax.f32 %v18192_v20, 0.0  ;;  %14823 = vmatpush3.bf16.msra.mxu1 %v14820_v45  ;;  %v20976_v45 = vmax.f32 %v18052_v24, 0.0  ;;  %v20978_v40 = vmax.f32 %v18060_v28, 0.0 }
 0x632   :  { %5450 = vst [vmem:[#allocation2 + $0x388] sm:$0xff] %v20952_v44  ;;  %5451 = vst [vmem:[#allocation2 + $0x390] sm:$0xff] %v20953_v21  ;;  %v20959_v44 = vmax.f32 %v18196_v43, 0.0  ;;  %v20960_v21 = vmax.f32 %v18200_v63, 0.0  ;;  %v20983_v24 = vmax.f32 %v18080_v49, 0.0  ;;  %v20985_v28 = vmax.f32 %v18088_v33, 0.0 }
 0x633   :  { %5452 = vst [vmem:[#allocation2 + $0x3a8] sm:$0xff] %v20954_v51  ;;  %5453 = vst [vmem:[#allocation2 + $0x3b0] sm:$0xff] %v20957_v26  ;;  %v20961_v51 = vmax.f32 %v18008_v59, 0.0  ;;  %v20964_v26 = vmax.f32 %v20949_v15, 0.0  ;;  %v6460_v59 = vld [vmem:[#allocation8 + $0x100] sm:$0xff]  ;;  %v20989_v49 = vmax.f32 %v18112_v2, 0.0 }
 0x634   :  { %5454 = vst [vmem:[#allocation2 + $0x3c8] sm:$0xff] %v20958_v55  ;;  %5455 = vst [vmem:[#allocation2 + $0x3d0] sm:$0xff] %v20959_v44  ;;  %v20965_v55 = vmax.f32 %v20950_v16, 0.0  ;;  %v14824_v44 = vpack.c.bf16 %v5543_v5, %v5542_v11  ;;  %v20969_v5 = vmax.f32 %v18024_v25, 0.0  ;;  %v20970_v11 = vmax.f32 %v18028_v60, 0.0 }
 0x635   :  { %5456 = vst [vmem:[#allocation2 + $0x3e8] sm:$0xff] %v20960_v21  ;;  %13371 = vmatprep.mubr.f32.mxu1 %v20961_v51  ;;  %5457 = vst [vmem:[#allocation2 + $0x3f0] sm:$0xff] %v20962_v3  ;;  %v20967_v21 = vmax.f32 %v18016_v17, 0.0  ;;  %v18411_v51 = vpack.c.bf16 %v6461_v54, %v6460_v59  ;;  %v20968_v3 = vmax.f32 %v18020_v13, 0.0  ;;  %v20972_v17 = vmax.f32 %v18036_v39, 0.0  ;;  %v6462_v54 = vld [vmem:[#allocation8 + $0x110] sm:$0xff] }
 0x636   :  { %5458 = vst [vmem:[#allocation2 + $0x408] sm:$0xff] %v20963_v38  ;;  %5459 = vst [vmem:[#allocation2 + $0x410] sm:$0xff] %v20964_v26  ;;  %13372 = vmatmul.mubr.f32.gmra.mrb[10].mxu1 %v20966_v48  ;;  %14825 = vmatprep.subr.bf16.mxu1 %v14824_v44  ;;  %v20974_v13 = vmax.f32 %v18044_v57, 0.0  ;;  %v20975_v25 = vmax.f32 %v18048_v31, 0.0  ;;  %v20977_v60 = vmax.f32 %v18056_v35, 0.0  ;;  %v20979_v39 = vmax.f32 %v18064_v9, 0.0 }
 0x637   :  { %5460 = vst [vmem:[#allocation2 + $0x428] sm:$0xff] %v20965_v55  ;;  %5461 = vst [vmem:[#allocation2 + $0x430] sm:$0xff] %v5397_v62  ;;  %13374 = vmatprep.mubr.f32.mxu1 %v20967_v21  ;;  %14827 = vmatpush3.bf16.msra.mxu1 %v14824_v44  ;;  %v20981_v57 = vmax.f32 %v18072_v6, 0.0  ;;  %v20982_v31 = vmax.f32 %v18076_v1, 0.0  ;;  %v20984_v35 = vmax.f32 %v18084_v12, 0.0  ;;  %v20986_v9 = vmax.f32 %v18092_v29, 0.0 }
 0x638   :  { %5463 = vst [vmem:[#allocation2 + $0x450] sm:$0xff] %v5399_v19  ;;  %14829 = vmatprep.subr.bf16.mxu1 %v18411_v51  ;;  %v20973_v19 = vmax.f32 %v18040_v18, 0.0  ;;  %v20980_v18 = vmax.f32 %v18068_v53, 0.0  ;;  %v16088_v53 = vld [vmem:[#allocation2 + $0x8] sm:$0xff]  ;;  %v20987_v6 = vmax.f32 %v18104_v10, 0.0  ;;  %v20988_v1 = vmax.f32 %v18108_v0, 0.0 }
 0x639   :  { %v20990_v12 = vmax.f32 %v18116_v41, 0.0  ;;  %v20991_v33 = vmax.f32 %v18120_v8, 0.0  ;;  %v20992_v29 = vmax.f32 %v18124_v58, 0.0  ;;  %v20993_v38 = vmax.f32 %v18128_v52, 0.0  ;;  %v21000_v52 = vld [vmem:[#allocation57_spill] sm:$0xff]  ;;  %v6463_v48 = vld [vmem:[#allocation8 + $0x118] sm:$0xff] }
 0x63a   :  { %13375 = vmatmul.mubr.f32.gmra.mrb[12].mxu1 %v20968_v3  ;;  %v20994_v10 = vmax.f32 %v18132_v37, 0.0  ;;  %v20995_v0 = vmax.f32 %v18136_v27, 0.0  ;;  %v20996_v2 = vmax.f32 %v18140_v32, 0.0  ;;  %v20997_v41 = vmax.f32 %v18144_v4, 0.0  ;;  %v21004_v32 = vld [vmem:[#allocation60_spill] sm:$0xff]  ;;  %v6465_v21 = vld [vmem:[#allocation8 + $0x128] sm:$0xff] }
 0x63b   :  { %13377 = vmatprep.mubr.f32.mxu1 %v20969_v5  ;;  %v20998_v8 = vmax.f32 %v18148_v56, 0.0  ;;  %v20999_v58 = vmax.f32 %v18152_v46, 0.0  ;;  %v21001_v26 = vmax.f32 %v21000_v52, 0.0  ;;  %v21002_v37 = vmax.f32 %v20939_v14, 0.0  ;;  %v6466_v3 = vld [vmem:[#allocation8 + $0x130] sm:$0xff]  ;;  %v6467_v5 = vld [vmem:[#allocation8 + $0x138] sm:$0xff] }
 0x63c   :  { %v21003_v27 = vmax.f32 %v20940_v61, 0.0  ;;  %v21005_v55 = vmax.f32 %v21004_v32, 0.0  ;;  %v21006_v4 = vmax.f32 %v20943_v42, 0.0  ;;  %v21007_v56 = vmax.f32 %v20944_v7, 0.0  ;;  %v18576_v52 = vld [vmem:[#allocation2 + $0x167] sm:$0xff] }
 0x63d   :  { %v21008_v46 = vmax.f32 %v18180_v23, 0.0  ;;  %v21009_v44 = vmax.f32 %v18184_v34, 0.0  ;;  %v21010_v14 = vmax.f32 %v18188_v22, 0.0  ;;  %v21011_v61 = vmax.f32 %v18192_v20, 0.0  ;;  %v5464_v20 = vld [vmem:[#allocation2 + $0x7] sm:$0xff] }
 0x63e   :  { %13378 = vmatmul.mubr.f32.gmra.mrb[14].mxu1 %v20970_v11  ;;  %v21012_v59 = vmax.f32 %v18196_v43, 0.0  ;;  %v21013_v42 = vmax.f32 %v18200_v63, 0.0  ;;  %v21014_v7 = vmax.f32 %v20947_v30, 0.0  ;;  %v21015_v23 = vmax.f32 %v20948_v36, 0.0  ;;  %v5465_v43 = vld [vmem:[#allocation2 + $0xf] sm:$0xff]  ;;  %v6464_v30 = vld [vmem:[#allocation8 + $0x120] sm:$0xff] }
 0x63f   :  { %13380 = vmatprep.mubr.f32.mxu1 %v20971_v47  ;;  %v21016_v34 = vmax.f32 %v20949_v15, 0.0  ;;  %v21017_v22 = vmax.f32 %v20950_v16, 0.0  ;;  %v14832_v63 = vpack.c.bf16 %v6463_v48, %v6462_v54  ;;  %v18512_v36 = vld [vmem:[#allocation2 + $0x27] sm:$0xff]  ;;  %v14836_v16 = vpack.c.bf16 %v6465_v21, %v6464_v30  ;;  %v18516_v15 = vld [vmem:[#allocation2 + $0x2f] sm:$0xff] }
 0x640   :  { %v14840_v50 = vpack.c.bf16 %v6467_v5, %v6466_v3  ;;  %v18522_v11 = vld [vmem:[#allocation2 + $0x4f] sm:$0xff]  ;;  %v6468_v47 = vld [vmem:[#allocation8 + $0x140] sm:$0xff] }
 0x641   :  { %v18588_v32 = vld [vmem:[#allocation2 + $0x1a7] sm:$0xff]  ;;  %v18627_v54 = vld [vmem:[#allocation2 + $0x2cf] sm:$0xff] }
 0x642   :  { %13381 = vmatmul.mubr.f32.gmra.mrb[16].mxu1 %v20972_v17  ;;  %v6469_v17 = vld [vmem:[#allocation8 + $0x148] sm:$0xff] }
 0x643   :  { %13383 = vmatprep.mubr.f32.mxu1 %v20973_v19  ;;  %v14844_v19 = vpack.c.bf16 %v6469_v17, %v6468_v47  ;;  %v18630_v48 = vld [vmem:[#allocation2 + $0x2e7] sm:$0xff]  ;;  %v18639_v30 = vld [vmem:[#allocation2 + $0x30f] sm:$0xff] }
 0x644   :  { %v18642_v21 = vld [vmem:[#allocation2 + $0x327] sm:$0xff]  ;;  %v18651_v5 = vld [vmem:[#allocation2 + $0x34f] sm:$0xff] }
 0x645   :  { %v18648_v3 = vld [vmem:[#allocation2 + $0x347] sm:$0xff]  ;;  %v18657_v47 = vld [vmem:[#allocation2 + $0x36f] sm:$0xff] }
 0x646   :  { %13384 = vmatmul.mubr.f32.gmra.mrb[18].mxu1 %v20974_v13  ;;  %v18528_v13 = vld [vmem:[#allocation2 + $0x6f] sm:$0xff]  ;;  %v18660_v17 = vld [vmem:[#allocation2 + $0x387] sm:$0xff] }
 0x647   :  { %13386 = vmatprep.mubr.f32.mxu1 %v20975_v25  ;;  %v6470_v25 = vld [vmem:[#allocation8 + $0x150] sm:$0xff] }
 0x64a   :  { %13387 = vmatmul.mubr.f32.gmra.mrb[20].mxu1 %v20976_v45  ;;  %v6471_v45 = vld [vmem:[#allocation8 + $0x158] sm:$0xff] }
 0x64b   :  { %13389 = vmatprep.mubr.f32.mxu1 %v20977_v60  ;;  %v18531_v60 = vld [vmem:[#allocation2 + $0x87] sm:$0xff] }
 0x64e   :  { %13390 = vmatmul.mubr.f32.gmra.mrb[22].mxu1 %v20978_v40  ;;  %v14848_v40 = vpack.c.bf16 %v6471_v45, %v6470_v25  ;;  %v18666_v25 = vld [vmem:[#allocation2 + $0x3a7] sm:$0xff]  ;;  %v18669_v45 = vld [vmem:[#allocation2 + $0x3af] sm:$0xff] }
 0x64f   :  { %13392 = vmatprep.mubr.f32.mxu1 %v20979_v39  ;;  %v18534_v39 = vld [vmem:[#allocation2 + $0x8f] sm:$0xff]  ;;  %21018 = vst [vmem:[#allocation68_spill] sm:$0xff] %v18666_v25  ;;  %21019 = vst [vmem:[#allocation69_spill] sm:$0xff] %v18669_v45 }
 0x652   :  { %13393 = vmatmul.mubr.f32.gmra.mrb[24].mxu1 %v20980_v18  ;;  %v6472_v18 = vld [vmem:[#allocation8 + $0x160] sm:$0xff] }
 0x653   :  { %13395 = vmatprep.mubr.f32.mxu1 %v20981_v57  ;;  %v6473_v57 = vld [vmem:[#allocation8 + $0x168] sm:$0xff] }
 0x656   :  { %13396 = vmatmul.mubr.f32.gmra.mrb[26].mxu1 %v20982_v31  ;;  %v18537_v31 = vld [vmem:[#allocation2 + $0xa7] sm:$0xff] }
 0x657   :  { %13398 = vmatprep.mubr.f32.mxu1 %v20983_v24  ;;  %v14852_v24 = vpack.c.bf16 %v6473_v57, %v6472_v18  ;;  %v18675_v18 = vld [vmem:[#allocation2 + $0x3cf] sm:$0xff]  ;;  %v18678_v57 = vld [vmem:[#allocation2 + $0x3e7] sm:$0xff] }
 0x658   :  { %21021 = vst [vmem:[#allocation71_spill] sm:$0xff] %v18675_v18  ;;  %21022 = vst [vmem:[#allocation72_spill] sm:$0xff] %v18678_v57 }
 0x65a   :  { %13399 = vmatmul.mubr.f32.gmra.mrb[28].mxu1 %v20984_v35  ;;  %v18540_v35 = vld [vmem:[#allocation2 + $0xaf] sm:$0xff] }
 0x65b   :  { %13401 = vmatprep.mubr.f32.mxu1 %v20985_v28  ;;  %v6474_v28 = vld [vmem:[#allocation8 + $0x170] sm:$0xff] }
 0x65e   :  { %13402 = vmatmul.mubr.f32.gmra.mrb[30].mxu1 %v20986_v9  ;;  %v6475_v9 = vld [vmem:[#allocation8 + $0x178] sm:$0xff] }
 0x65f   :  { %13404 = vmatprep.mubr.f32.mxu1 %v16088_v53 }
 0x662   :  { %13405 = vmatmul.mubr.f32.gmra.mrb[32].mxu1 %v16088_v53  ;;  %v18543_v53 = vld [vmem:[#allocation2 + $0xc7] sm:$0xff] }
 0x663   :  { %13407 = vmatprep.mubr.f32.mxu1 %v20987_v6  ;;  %v14856_v6 = vpack.c.bf16 %v6475_v9, %v6474_v28  ;;  %v18684_v28 = vld [vmem:[#allocation2 + $0x407] sm:$0xff]  ;;  %v18687_v9 = vld [vmem:[#allocation2 + $0x40f] sm:$0xff] }
 0x664   :  { %21024 = vst [vmem:[#allocation74_spill] sm:$0xff] %v18684_v28  ;;  %21025 = vst [vmem:[#allocation75_spill] sm:$0xff] %v18687_v9 }
 0x666   :  { %13408 = vmatmul.mubr.f32.gmra.mrb[34].mxu1 %v20988_v1  ;;  %v18546_v1 = vld [vmem:[#allocation2 + $0xcf] sm:$0xff] }
 0x667   :  { %13410 = vmatprep.mubr.f32.mxu1 %v20989_v49  ;;  %v6990_v49 = vld [vmem:[#allocation8 + $0x180] sm:$0xff] }
 0x66a   :  { %13411 = vmatmul.mubr.f32.gmra.mrb[36].mxu1 %v20990_v12  ;;  %v6991_v12 = vld [vmem:[#allocation8 + $0x188] sm:$0xff] }
 0x66b   :  { %13413 = vmatprep.mubr.f32.mxu1 %v20991_v33  ;;  %v18549_v33 = vld [vmem:[#allocation2 + $0xe7] sm:$0xff] }
 0x66e   :  { %13414 = vmatmul.mubr.f32.gmra.mrb[38].mxu1 %v20992_v29  ;;  %v18552_v29 = vpack.c.bf16 %v6991_v12, %v6990_v49  ;;  %v6395_v49 = vld [vmem:[#allocation2 + $0x9] sm:$0xff] }
 0x66f   :  { %13416 = vmatprep.mubr.f32.mxu1 %v20993_v38  ;;  %v18554_v38 = vld [vmem:[#allocation2 + $0xef] sm:$0xff] }
 0x670   :  { %v18693_v12 = vld [vmem:[#allocation2 + $0x42f] sm:$0xff] }
 0x672   :  { %13417 = vmatmul.mubr.f32.gmra.mrb[40].mxu1 %v20994_v10  ;;  %v18557_v10 = vld [vmem:[#allocation2 + $0x107] sm:$0xff] }
 0x673   :  { %13419 = vmatprep.mubr.f32.mxu1 %v20995_v0  ;;  %v18561_v0 = vld [vmem:[#allocation2 + $0x10f] sm:$0xff] }
 0x676   :  { %13420 = vmatmul.mubr.f32.gmra.mrb[42].mxu1 %v20996_v2  ;;  %v18564_v2 = vld [vmem:[#allocation2 + $0x127] sm:$0xff] }
 0x677   :  { %13422 = vmatprep.mubr.f32.mxu1 %v20997_v41  ;;  %v18567_v41 = vld [vmem:[#allocation2 + $0x12f] sm:$0xff] }
 0x67a   :  { %13423 = vmatmul.mubr.f32.gmra.mrb[44].mxu1 %v20998_v8  ;;  %v18570_v8 = vld [vmem:[#allocation2 + $0x147] sm:$0xff] }
 0x67b   :  { %13425 = vmatprep.mubr.f32.mxu1 %v20999_v58  ;;  %v18573_v58 = vld [vmem:[#allocation2 + $0x14f] sm:$0xff] }
 0x67e   :  { %13426 = vmatmul.mubr.f32.gmra.mrb[46].mxu1 %v21001_v26  ;;  %v18579_v26 = vld [vmem:[#allocation2 + $0x16f] sm:$0xff] }
 0x67f   :  { %13428 = vmatprep.mubr.f32.mxu1 %v21002_v37  ;;  %v18582_v37 = vld [vmem:[#allocation2 + $0x187] sm:$0xff] }
 0x682   :  { %13429 = vmatmul.mubr.f32.gmra.mrb[48].mxu1 %v21003_v27  ;;  %v18585_v27 = vld [vmem:[#allocation2 + $0x18f] sm:$0xff] }
 0x683   :  { %13431 = vmatprep.mubr.f32.mxu1 %v21005_v55  ;;  %v18591_v55 = vld [vmem:[#allocation2 + $0x1af] sm:$0xff] }
 0x686   :  { %13432 = vmatmul.mubr.f32.gmra.mrb[50].mxu1 %v21006_v4  ;;  %v18594_v4 = vld [vmem:[#allocation2 + $0x1c7] sm:$0xff] }
 0x687   :  { %13434 = vmatprep.mubr.f32.mxu1 %v21007_v56  ;;  %v18597_v56 = vld [vmem:[#allocation2 + $0x1cf] sm:$0xff] }
 0x68a   :  { %13435 = vmatmul.mubr.f32.gmra.mrb[52].mxu1 %v21008_v46  ;;  %v18600_v46 = vld [vmem:[#allocation2 + $0x1e7] sm:$0xff] }
 0x68b   :  { %13437 = vmatprep.mubr.f32.mxu1 %v21009_v44  ;;  %v5496_v44 = vld [vmem:[#allocation2 + $0x247] sm:$0xff] }
 0x68e   :  { %13438 = vmatmul.mubr.f32.gmra.mrb[54].mxu1 %v21010_v14  ;;  %v18603_v14 = vld [vmem:[#allocation2 + $0x1ef] sm:$0xff] }
 0x68f   :  { %13440 = vmatprep.mubr.f32.mxu1 %v21011_v61  ;;  %v5497_v61 = vld [vmem:[#allocation2 + $0x24f] sm:$0xff] }
 0x692   :  { %13441 = vmatmul.mubr.f32.gmra.mrb[56].mxu1 %v21012_v59  ;;  %v18606_v59 = vld [vmem:[#allocation2 + $0x267] sm:$0xff] }
 0x693   :  { %13443 = vmatprep.mubr.f32.mxu1 %v21013_v42  ;;  %v18609_v42 = vld [vmem:[#allocation2 + $0x26f] sm:$0xff] }
 0x696   :  { %13444 = vmatmul.mubr.f32.gmra.mrb[58].mxu1 %v21014_v7  ;;  %v18612_v7 = vld [vmem:[#allocation2 + $0x287] sm:$0xff] }
 0x697   :  { %13446 = vmatprep.mubr.f32.mxu1 %v21015_v23  ;;  %v18615_v23 = vld [vmem:[#allocation2 + $0x28f] sm:$0xff] }
 0x69a   :  { %13447 = vmatmul.mubr.f32.gmra.mrb[60].mxu1 %v21016_v34  ;;  %v18618_v34 = vld [vmem:[#allocation2 + $0x2a7] sm:$0xff] }
 0x69b   :  { %13449 = vmatprep.mubr.f32.mxu1 %v21017_v22  ;;  %v18621_v22 = vld [vmem:[#allocation2 + $0x2af] sm:$0xff] }
 0x69e   :  { %13450 = vmatmul.mubr.f32.gmra.mrb[62].mxu1 %v5397_v62  ;;  %v18519_v62 = vld [vmem:[#allocation2 + $0x47] sm:$0xff] }
 0x69f   :  { %13484 = vmatprep.mubr.f32.mxu1 %v5464_v20  ;;  %v18624_v20 = vld [vmem:[#allocation2 + $0x2c7] sm:$0xff] }
 0x6a2   :  { %13485 = vmatmul.mubr.f32.vlgmr.msra.gmra.mrb[0].mxu1 %v5465_v43  ;;  %v18633_v43 = vld [vmem:[#allocation2 + $0x2ef] sm:$0xff] }
 0x6a3   :  { %13487 = vmatprep.mubr.f32.mxu1 %v18512_v36  ;;  %14831 = vmatpush3.bf16.msra.mxu1 %v18411_v51  ;;  %v18525_v51 = vld [vmem:[#allocation2 + $0x67] sm:$0xff] }
 0x6a4   :  { %14833 = vmatprep.subr.bf16.mxu1 %v14832_v63 }
 0x6a6   :  { %13488 = vmatmul.mubr.f32.gmra.mrb[2].mxu1 %v18516_v15 }
 0x6a7   :  { %13490 = vmatprep.mubr.f32.mxu1 %v18519_v62  ;;  %14835 = vmatpush3.bf16.msra.mxu1 %v14832_v63  ;;  %v18636_v63 = vld [vmem:[#allocation2 + $0x307] sm:$0xff] }
 0x6a8   :  { %14837 = vmatprep.subr.bf16.mxu1 %v14836_v16 }
 0x6aa   :  { %13491 = vmatmul.mubr.f32.gmra.mrb[4].mxu1 %v18522_v11 }
 0x6ab   :  { %13493 = vmatprep.mubr.f32.mxu1 %v18525_v51  ;;  %14839 = vmatpush3.bf16.msra.mxu1 %v14836_v16  ;;  %v18645_v16 = vld [vmem:[#allocation2 + $0x32f] sm:$0xff] }
 0x6ac   :  { %14841 = vmatprep.subr.bf16.mxu1 %v14840_v50 }
 0x6ae   :  { %13494 = vmatmul.mubr.f32.gmra.mrb[6].mxu1 %v18528_v13 }
 0x6af   :  { %13496 = vmatprep.mubr.f32.mxu1 %v18531_v60  ;;  %14843 = vmatpush3.bf16.msra.mxu1 %v14840_v50  ;;  %v18654_v50 = vld [vmem:[#allocation2 + $0x367] sm:$0xff] }
 0x6b0   :  { %14845 = vmatprep.subr.bf16.mxu1 %v14844_v19 }
 0x6b2   :  { %13497 = vmatmul.mubr.f32.gmra.mrb[8].mxu1 %v18534_v39 }
 0x6b3   :  { %13499 = vmatprep.mubr.f32.mxu1 %v18537_v31  ;;  %14847 = vmatpush3.bf16.msra.mxu1 %v14844_v19  ;;  %v18663_v19 = vld [vmem:[#allocation2 + $0x38f] sm:$0xff] }
 0x6b4   :  { %14849 = vmatprep.subr.bf16.mxu1 %v14848_v40 }
 0x6b6   :  { %13500 = vmatmul.mubr.f32.gmra.mrb[10].mxu1 %v18540_v35 }
 0x6b7   :  { %13502 = vmatprep.mubr.f32.mxu1 %v18543_v53  ;;  %14851 = vmatpush3.bf16.msra.mxu1 %v14848_v40  ;;  %v18672_v40 = vld [vmem:[#allocation2 + $0x3c7] sm:$0xff] }
 0x6b8   :  { %14853 = vmatprep.subr.bf16.mxu1 %v14852_v24  ;;  %21020 = vst [vmem:[#allocation70_spill] sm:$0xff] %v18672_v40 }
 0x6ba   :  { %13503 = vmatmul.mubr.f32.gmra.mrb[12].mxu1 %v18546_v1 }
 0x6bb   :  { %13505 = vmatprep.mubr.f32.mxu1 %v18549_v33  ;;  %14855 = vmatpush3.bf16.msra.mxu1 %v14852_v24  ;;  %v18681_v24 = vld [vmem:[#allocation2 + $0x3ef] sm:$0xff] }
 0x6bc   :  { %14857 = vmatprep.subr.bf16.mxu1 %v14856_v6  ;;  %21023 = vst [vmem:[#allocation73_spill] sm:$0xff] %v18681_v24 }
 0x6be   :  { %13506 = vmatmul.mubr.f32.gmra.mrb[14].mxu1 %v18554_v38 }
 0x6bf   :  { %13508 = vmatprep.mubr.f32.mxu1 %v18557_v10  ;;  %14859 = vmatpush3.bf16.msra.mxu1 %v14856_v6  ;;  %v18690_v6 = vld [vmem:[#allocation2 + $0x427] sm:$0xff] }
 0x6c0   :  { %14861 = vmatprep.subr.bf16.mxu1 %v18552_v29  ;;  %21026 = vst [vmem:[#allocation76_spill] sm:$0xff] %v18690_v6 }
 0x6c2   :  { %13509 = vmatmul.mubr.f32.gmra.mrb[16].mxu1 %v18561_v0 }
 0x6c3   :  { %13511 = vmatprep.mubr.f32.mxu1 %v18564_v2 }
 0x6c6   :  { %13512 = vmatmul.mubr.f32.gmra.mrb[18].mxu1 %v18567_v41 }
 0x6c7   :  { %13514 = vmatprep.mubr.f32.mxu1 %v18570_v8 }
 0x6ca   :  { %13515 = vmatmul.mubr.f32.gmra.mrb[20].mxu1 %v18573_v58 }
 0x6cb   :  { %13517 = vmatprep.mubr.f32.mxu1 %v18576_v52 }
 0x6ce   :  { %13518 = vmatmul.mubr.f32.gmra.mrb[22].mxu1 %v18579_v26 }
 0x6cf   :  { %13520 = vmatprep.mubr.f32.mxu1 %v18582_v37 }
 0x6d2   :  { %13521 = vmatmul.mubr.f32.gmra.mrb[24].mxu1 %v18585_v27 }
 0x6d3   :  { %13523 = vmatprep.mubr.f32.mxu1 %v18588_v32 }
 0x6d6   :  { %13524 = vmatmul.mubr.f32.gmra.mrb[26].mxu1 %v18591_v55 }
 0x6d7   :  { %13526 = vmatprep.mubr.f32.mxu1 %v18594_v4 }
 0x6da   :  { %13527 = vmatmul.mubr.f32.gmra.mrb[28].mxu1 %v18597_v56 }
 0x6db   :  { %13529 = vmatprep.mubr.f32.mxu1 %v18600_v46 }
 0x6de   :  { %13530 = vmatmul.mubr.f32.gmra.mrb[30].mxu1 %v18603_v14 }
 0x6df   :  { %13532 = vmatprep.mubr.f32.mxu1 %v5496_v44  ;;  %v6992_v44 = vld [vmem:[#allocation8 + $0x190] sm:$0xff] }
 0x6e2   :  { %13533 = vmatmul.mubr.f32.gmra.mrb[32].mxu1 %v5497_v61  ;;  %v6993_v61 = vld [vmem:[#allocation8 + $0x198] sm:$0xff] }
 0x6e3   :  { %13535 = vmatprep.mubr.f32.mxu1 %v18606_v59 }
 0x6e6   :  { %13536 = vmatmul.mubr.f32.gmra.mrb[34].mxu1 %v18609_v42 }
 0x6e7   :  { %13538 = vmatprep.mubr.f32.mxu1 %v18612_v7 }
 0x6ea   :  { %13539 = vmatmul.mubr.f32.gmra.mrb[36].mxu1 %v18615_v23 }
 0x6eb   :  { %13541 = vmatprep.mubr.f32.mxu1 %v18618_v34 }
 0x6ee   :  { %13542 = vmatmul.mubr.f32.gmra.mrb[38].mxu1 %v18621_v22 }
 0x6ef   :  { %13544 = vmatprep.mubr.f32.mxu1 %v18624_v20 }
 0x6f2   :  { %13545 = vmatmul.mubr.f32.gmra.mrb[40].mxu1 %v18627_v54 }
 0x6f3   :  { %13547 = vmatprep.mubr.f32.mxu1 %v18630_v48 }
 0x6f6   :  { %13548 = vmatmul.mubr.f32.gmra.mrb[42].mxu1 %v18633_v43 }
 0x6f7   :  { %13550 = vmatprep.mubr.f32.mxu1 %v18636_v63 }
 0x6fa   :  { %13551 = vmatmul.mubr.f32.gmra.mrb[44].mxu1 %v18639_v30 }
 0x6fb   :  { %13553 = vmatprep.mubr.f32.mxu1 %v18642_v21 }
 0x6fe   :  { %13554 = vmatmul.mubr.f32.gmra.mrb[46].mxu1 %v18645_v16 }
 0x6ff   :  { %13556 = vmatprep.mubr.f32.mxu1 %v18648_v3 }
 0x702   :  { %13557 = vmatmul.mubr.f32.gmra.mrb[48].mxu1 %v18651_v5 }
 0x703   :  { %13559 = vmatprep.mubr.f32.mxu1 %v18654_v50 }
 0x706   :  { %13560 = vmatmul.mubr.f32.gmra.mrb[50].mxu1 %v18657_v47 }
 0x707   :  { %13562 = vmatprep.mubr.f32.mxu1 %v18660_v17 }
 0x70a   :  { %13563 = vmatmul.mubr.f32.gmra.mrb[52].mxu1 %v18663_v19 }
 0x70b   :  { %13565 = vmatprep.mubr.f32.mxu1 %v18666_v25  ;;  %v6997_v25 = vld [vmem:[#allocation8 + $0x1b8] sm:$0xff] }
 0x70e   :  { %13566 = vmatmul.mubr.f32.gmra.mrb[54].mxu1 %v18669_v45  ;;  %v6996_v45 = vld [vmem:[#allocation8 + $0x1b0] sm:$0xff] }
 0x70f   :  { %13568 = vmatprep.mubr.f32.mxu1 %v18672_v40  ;;  %v18696_v40 = vld [vmem:[#allocation2 + $0x29] sm:$0xff] }
 0x710   :  { %21027 = vst [vmem:[#allocation77_spill] sm:$0xff] %v18696_v40 }
 0x712   :  { %13569 = vmatmul.mubr.f32.gmra.mrb[56].mxu1 %v18675_v18  ;;  %v6994_v18 = vld [vmem:[#allocation8 + $0x1a0] sm:$0xff] }
 0x713   :  { %13571 = vmatprep.mubr.f32.mxu1 %v18678_v57  ;;  %v14864_v57 = vpack.c.bf16 %v6993_v61, %v6992_v44  ;;  %v18706_v44 = vld [vmem:[#allocation2 + $0x51] sm:$0xff]  ;;  %v6998_v61 = vld [vmem:[#allocation8 + $0x1c0] sm:$0xff] }
 0x714   :  { %21030 = vst [vmem:[#allocation80_spill] sm:$0xff] %v18706_v44 }
 0x716   :  { %13572 = vmatmul.mubr.f32.gmra.mrb[58].mxu1 %v18681_v24  ;;  %v6396_v24 = vld [vmem:[#allocation2 + $0x11] sm:$0xff] }
 0x717   :  { %13574 = vmatprep.mubr.f32.mxu1 %v18684_v28  ;;  %v6995_v28 = vld [vmem:[#allocation8 + $0x1a8] sm:$0xff] }
 0x71a   :  { %13575 = vmatmul.mubr.f32.gmra.mrb[60].mxu1 %v18687_v9  ;;  %v18700_v9 = vld [vmem:[#allocation2 + $0x31] sm:$0xff] }
 0x71b   :  { %13577 = vmatprep.mubr.f32.mxu1 %v18690_v6  ;;  %v14868_v6 = vpack.c.bf16 %v6995_v28, %v6994_v18  ;;  %21028 = vst [vmem:[#allocation78_spill] sm:$0xff] %v18700_v9  ;;  %v18712_v28 = vld [vmem:[#allocation2 + $0x71] sm:$0xff] }
 0x71c   :  { %21032 = vst [vmem:[#allocation13_spill] sm:$0xff] %v18712_v28 }
 0x71e   :  { %13578 = vmatmul.mubr.f32.gmra.mrb[62].mxu1 %v18693_v12 }
 0x71f   :  { %13612 = vmatprep.mubr.f32.mxu1 %v6395_v49  ;;  %v18703_v49 = vld [vmem:[#allocation2 + $0x49] sm:$0xff] }
 0x720   :  { %21029 = vst [vmem:[#allocation79_spill] sm:$0xff] %v18703_v49 }
 0x722   :  { %13613 = vmatmul.mubr.f32.vlgmr.msra.gmra.mrb[0].mxu1 %v6396_v24  ;;  %v14872_v24 = vpack.c.bf16 %v6997_v25, %v6996_v45  ;;  %v18715_v25 = vld [vmem:[#allocation2 + $0x89] sm:$0xff] }
 0x723   :  { %13615 = vmatprep.mubr.f32.mxu1 %v18696_v40  ;;  %14863 = vmatpush3.bf16.msra.mxu1 %v18552_v29  ;;  %v6999_v40 = vld [vmem:[#allocation8 + $0x1c8] sm:$0xff]  ;;  %21033 = vst [vmem:[#allocation14_spill] sm:$0xff] %v18715_v25 }
 0x724   :  { %14865 = vmatprep.subr.bf16.mxu1 %v14864_v57  ;;  %v18709_v29 = vld [vmem:[#allocation2 + $0x69] sm:$0xff]  ;;  %v14876_v18 = vpack.c.bf16 %v6999_v40, %v6998_v61  ;;  %v18724_v61 = vld [vmem:[#allocation2 + $0xb1] sm:$0xff] }
 0x725   :  { %21031 = vst [vmem:[#allocation81_spill] sm:$0xff] %v18709_v29  ;;  %v18721_v40 = vld [vmem:[#allocation2 + $0xa9] sm:$0xff] }
 0x726   :  { %13616 = vmatmul.mubr.f32.gmra.mrb[2].mxu1 %v18700_v9  ;;  %v7000_v9 = vld [vmem:[#allocation8 + $0x1d0] sm:$0xff]  ;;  %21035 = vst [vmem:[#allocation16_spill] sm:$0xff] %v18721_v40 }
 0x727   :  { %13618 = vmatprep.mubr.f32.mxu1 %v18703_v49  ;;  %14867 = vmatpush3.bf16.msra.mxu1 %v14864_v57  ;;  %v7001_v49 = vld [vmem:[#allocation8 + $0x1d8] sm:$0xff] }
 0x728   :  { %14869 = vmatprep.subr.bf16.mxu1 %v14868_v6  ;;  %v14880_v45 = vpack.c.bf16 %v7001_v49, %v7000_v9  ;;  %v18718_v57 = vld [vmem:[#allocation2 + $0x91] sm:$0xff]  ;;  %v18727_v9 = vld [vmem:[#allocation2 + $0xc9] sm:$0xff] }
 0x729   :  { %21034 = vst [vmem:[#allocation15_spill] sm:$0xff] %v18718_v57 }
 0x72a   :  { %13619 = vmatmul.mubr.f32.gmra.mrb[4].mxu1 %v18706_v44  ;;  %v7002_v44 = vld [vmem:[#allocation8 + $0x1e0] sm:$0xff] }
 0x72b   :  { %13621 = vmatprep.mubr.f32.mxu1 %v18709_v29  ;;  %14871 = vmatpush3.bf16.msra.mxu1 %v14868_v6  ;;  %v7003_v29 = vld [vmem:[#allocation8 + $0x1e8] sm:$0xff] }
 0x72c   :  { %14873 = vmatprep.subr.bf16.mxu1 %v14872_v24  ;;  %v14884_v6 = vpack.c.bf16 %v7003_v29, %v7002_v44  ;;  %v18733_v44 = vld [vmem:[#allocation2 + $0xe9] sm:$0xff] }
 0x72d   :  { %21036 = vst [vmem:[#allocation17_spill] sm:$0xff] %v18733_v44 }
 0x72e   :  { %13622 = vmatmul.mubr.f32.gmra.mrb[6].mxu1 %v18712_v28  ;;  %v7004_v28 = vld [vmem:[#allocation8 + $0x1f0] sm:$0xff] }
 0x72f   :  { %13624 = vmatprep.mubr.f32.mxu1 %v18715_v25  ;;  %14875 = vmatpush3.bf16.msra.mxu1 %v14872_v24  ;;  %v7005_v25 = vld [vmem:[#allocation8 + $0x1f8] sm:$0xff] }
 0x730   :  { %14877 = vmatprep.subr.bf16.mxu1 %v14876_v18  ;;  %v14888_v49 = vpack.c.bf16 %v7005_v25, %v7004_v28  ;;  %v18730_v24 = vld [vmem:[#allocation2 + $0xd1] sm:$0xff]  ;;  %v18748_v25 = vld [vmem:[#allocation2 + $0x129] sm:$0xff] }
 0x731   :  { %v18745_v28 = vld [vmem:[#allocation2 + $0x111] sm:$0xff]  ;;  %21040 = vst [vmem:[#allocation21_spill] sm:$0xff] %v18748_v25 }
 0x732   :  { %13625 = vmatmul.mubr.f32.gmra.mrb[8].mxu1 %v18718_v57  ;;  %v7520_v57 = vld [vmem:[#allocation8 + $0x200] sm:$0xff]  ;;  %21039 = vst [vmem:[#allocation20_spill] sm:$0xff] %v18745_v28 }
 0x733   :  { %13627 = vmatprep.mubr.f32.mxu1 %v18721_v40  ;;  %14879 = vmatpush3.bf16.msra.mxu1 %v14876_v18  ;;  %v7521_v40 = vld [vmem:[#allocation8 + $0x208] sm:$0xff]  ;;  %v18738_v18 = vld [vmem:[#allocation2 + $0xf1] sm:$0xff] }
 0x734   :  { %14881 = vmatprep.subr.bf16.mxu1 %v14880_v45  ;;  %v18736_v29 = vpack.c.bf16 %v7521_v40, %v7520_v57  ;;  %21037 = vst [vmem:[#allocation18_spill] sm:$0xff] %v18738_v18  ;;  %v18751_v57 = vld [vmem:[#allocation2 + $0x131] sm:$0xff]  ;;  %v18754_v40 = vld [vmem:[#allocation2 + $0x149] sm:$0xff] }
 0x735   :  { %21041 = vst [vmem:[#allocation22_spill] sm:$0xff] %v18751_v57  ;;  %21042 = vst [vmem:[#allocation82_spill] sm:$0xff] %v18754_v40 }
 0x736   :  { %13628 = vmatmul.mubr.f32.gmra.mrb[10].mxu1 %v18724_v61 }
 0x737   :  { %13630 = vmatprep.mubr.f32.mxu1 %v18727_v9  ;;  %14883 = vmatpush3.bf16.msra.mxu1 %v14880_v45  ;;  %v18741_v45 = vld [vmem:[#allocation2 + $0x109] sm:$0xff] }
 0x738   :  { %14885 = vmatprep.subr.bf16.mxu1 %v14884_v6  ;;  %21038 = vst [vmem:[#allocation19_spill] sm:$0xff] %v18741_v45 }
 0x73a   :  { %13631 = vmatmul.mubr.f32.gmra.mrb[12].mxu1 %v18730_v24 }
 0x73b   :  { %13633 = vmatprep.mubr.f32.mxu1 %v18733_v44  ;;  %14887 = vmatpush3.bf16.msra.mxu1 %v14884_v6  ;;  %v18757_v6 = vld [vmem:[#allocation2 + $0x151] sm:$0xff]  ;;  %v7525_v44 = vld [vmem:[#allocation8 + $0x228] sm:$0xff] }
 0x73c   :  { %14889 = vmatprep.subr.bf16.mxu1 %v14888_v49  ;;  %21043 = vst [vmem:[#allocation83_spill] sm:$0xff] %v18757_v6 }
 0x73e   :  { %13634 = vmatmul.mubr.f32.gmra.mrb[14].mxu1 %v18738_v18  ;;  %v7524_v18 = vld [vmem:[#allocation8 + $0x220] sm:$0xff] }
 0x73f   :  { %13636 = vmatprep.mubr.f32.mxu1 %v18741_v45  ;;  %14891 = vmatpush3.bf16.msra.mxu1 %v14888_v49  ;;  %v18760_v49 = vld [vmem:[#allocation2 + $0x169] sm:$0xff]  ;;  %v18787_v45 = vld [vmem:[#allocation2 + $0x1f1] sm:$0xff] }
 0x740   :  { %14893 = vmatprep.subr.bf16.mxu1 %v18736_v29  ;;  %21044 = vst [vmem:[#allocation84_spill] sm:$0xff] %v18760_v49  ;;  %21053 = vst [vmem:[#allocation32_spill] sm:$0xff] %v18787_v45 }
 0x742   :  { %13637 = vmatmul.mubr.f32.gmra.mrb[16].mxu1 %v18745_v28  ;;  %v18763_v28 = vld [vmem:[#allocation2 + $0x171] sm:$0xff] }
 0x743   :  { %13639 = vmatprep.mubr.f32.mxu1 %v18748_v25  ;;  %21045 = vst [vmem:[#allocation23_spill] sm:$0xff] %v18763_v28  ;;  %v18766_v25 = vld [vmem:[#allocation2 + $0x189] sm:$0xff] }
 0x744   :  { %21046 = vst [vmem:[#allocation24_spill] sm:$0xff] %v18766_v25 }
 0x746   :  { %13640 = vmatmul.mubr.f32.gmra.mrb[18].mxu1 %v18751_v57  ;;  %v18769_v57 = vld [vmem:[#allocation2 + $0x191] sm:$0xff] }
 0x747   :  { %13642 = vmatprep.mubr.f32.mxu1 %v18754_v40  ;;  %21047 = vst [vmem:[#allocation25_spill] sm:$0xff] %v18769_v57  ;;  %v18772_v40 = vld [vmem:[#allocation2 + $0x1a9] sm:$0xff] }
 0x748   :  { %21048 = vst [vmem:[#allocation26_spill] sm:$0xff] %v18772_v40 }
 0x74a   :  { %13643 = vmatmul.mubr.f32.gmra.mrb[20].mxu1 %v18757_v6  ;;  %v18775_v6 = vld [vmem:[#allocation2 + $0x1b1] sm:$0xff] }
 0x74b   :  { %13645 = vmatprep.mubr.f32.mxu1 %v18760_v49  ;;  %21049 = vst [vmem:[#allocation28_spill] sm:$0xff] %v18775_v6  ;;  %v18778_v49 = vld [vmem:[#allocation2 + $0x1c9] sm:$0xff] }
 0x74c   :  { %21050 = vst [vmem:[#allocation27_spill] sm:$0xff] %v18778_v49 }
 0x74e   :  { %13646 = vmatmul.mubr.f32.gmra.mrb[22].mxu1 %v18763_v28  ;;  %v18781_v28 = vld [vmem:[#allocation2 + $0x1d1] sm:$0xff] }
 0x74f   :  { %13648 = vmatprep.mubr.f32.mxu1 %v18766_v25  ;;  %21051 = vst [vmem:[#allocation30_spill] sm:$0xff] %v18781_v28  ;;  %v18784_v25 = vld [vmem:[#allocation2 + $0x1e9] sm:$0xff] }
 0x750   :  { %21052 = vst [vmem:[#allocation29_spill] sm:$0xff] %v18784_v25 }
 0x752   :  { %13649 = vmatmul.mubr.f32.gmra.mrb[24].mxu1 %v18769_v57  ;;  %v6427_v57 = vld [vmem:[#allocation2 + $0x249] sm:$0xff] }
 0x753   :  { %13651 = vmatprep.mubr.f32.mxu1 %v18772_v40  ;;  %v6428_v40 = vld [vmem:[#allocation2 + $0x251] sm:$0xff] }
 0x756   :  { %13652 = vmatmul.mubr.f32.gmra.mrb[26].mxu1 %v18775_v6  ;;  %v18790_v6 = vld [vmem:[#allocation2 + $0x269] sm:$0xff] }
 0x757   :  { %13654 = vmatprep.mubr.f32.mxu1 %v18778_v49  ;;  %21054 = vst [vmem:[#allocation31_spill] sm:$0xff] %v18790_v6  ;;  %v18793_v49 = vld [vmem:[#allocation2 + $0x271] sm:$0xff] }
 0x758   :  { %21055 = vst [vmem:[#allocation34_spill] sm:$0xff] %v18793_v49 }
 0x75a   :  { %13655 = vmatmul.mubr.f32.gmra.mrb[28].mxu1 %v18781_v28  ;;  %v18796_v28 = vld [vmem:[#allocation2 + $0x289] sm:$0xff] }
 0x75b   :  { %13657 = vmatprep.mubr.f32.mxu1 %v18784_v25  ;;  %21056 = vst [vmem:[#allocation33_spill] sm:$0xff] %v18796_v28  ;;  %v18799_v25 = vld [vmem:[#allocation2 + $0x291] sm:$0xff] }
 0x75c   :  { %21057 = vst [vmem:[#allocation36_spill] sm:$0xff] %v18799_v25 }
 0x75e   :  { %13658 = vmatmul.mubr.f32.gmra.mrb[30].mxu1 %v18787_v45  ;;  %v18802_v45 = vld [vmem:[#allocation2 + $0x2a9] sm:$0xff] }
 0x75f   :  { %13660 = vmatprep.mubr.f32.mxu1 %v6427_v57  ;;  %21058 = vst [vmem:[#allocation35_spill] sm:$0xff] %v18802_v45  ;;  %v18805_v57 = vld [vmem:[#allocation2 + $0x2b1] sm:$0xff] }
 0x760   :  { %21059 = vst [vmem:[#allocation38_spill] sm:$0xff] %v18805_v57 }
 0x762   :  { %13661 = vmatmul.mubr.f32.gmra.mrb[32].mxu1 %v6428_v40  ;;  %v18808_v40 = vld [vmem:[#allocation2 + $0x2c9] sm:$0xff] }
 0x763   :  { %13663 = vmatprep.mubr.f32.mxu1 %v18790_v6  ;;  %21060 = vst [vmem:[#allocation37_spill] sm:$0xff] %v18808_v40  ;;  %v7522_v6 = vld [vmem:[#allocation8 + $0x210] sm:$0xff] }
 0x766   :  { %13664 = vmatmul.mubr.f32.gmra.mrb[34].mxu1 %v18793_v49  ;;  %v18811_v49 = vld [vmem:[#allocation2 + $0x2d1] sm:$0xff] }
 0x767   :  { %13666 = vmatprep.mubr.f32.mxu1 %v18796_v28  ;;  %21061 = vst [vmem:[#allocation40_spill] sm:$0xff] %v18811_v49  ;;  %v18814_v28 = vld [vmem:[#allocation2 + $0x2e9] sm:$0xff] }
 0x768   :  { %21062 = vst [vmem:[#allocation39_spill] sm:$0xff] %v18814_v28 }
 0x76a   :  { %13667 = vmatmul.mubr.f32.gmra.mrb[36].mxu1 %v18799_v25  ;;  %v18817_v25 = vld [vmem:[#allocation2 + $0x2f1] sm:$0xff] }
 0x76b   :  { %13669 = vmatprep.mubr.f32.mxu1 %v18802_v45  ;;  %21063 = vst [vmem:[#allocation42_spill] sm:$0xff] %v18817_v25  ;;  %v18820_v45 = vld [vmem:[#allocation2 + $0x309] sm:$0xff] }
 0x76c   :  { %21064 = vst [vmem:[#allocation41_spill] sm:$0xff] %v18820_v45 }
 0x76e   :  { %13670 = vmatmul.mubr.f32.gmra.mrb[38].mxu1 %v18805_v57  ;;  %v18823_v57 = vld [vmem:[#allocation2 + $0x311] sm:$0xff] }
 0x76f   :  { %13672 = vmatprep.mubr.f32.mxu1 %v18808_v40  ;;  %21065 = vst [vmem:[#allocation44_spill] sm:$0xff] %v18823_v57  ;;  %v18826_v40 = vld [vmem:[#allocation2 + $0x329] sm:$0xff] }
 0x770   :  { %21066 = vst [vmem:[#allocation43_spill] sm:$0xff] %v18826_v40 }
 0x772   :  { %13673 = vmatmul.mubr.f32.gmra.mrb[40].mxu1 %v18811_v49  ;;  %v18829_v49 = vld [vmem:[#allocation2 + $0x331] sm:$0xff] }
 0x773   :  { %13675 = vmatprep.mubr.f32.mxu1 %v18814_v28  ;;  %21067 = vst [vmem:[#allocation46_spill] sm:$0xff] %v18829_v49  ;;  %v18832_v28 = vld [vmem:[#allocation2 + $0x349] sm:$0xff] }
 0x774   :  { %21068 = vst [vmem:[#allocation45_spill] sm:$0xff] %v18832_v28 }
 0x776   :  { %13676 = vmatmul.mubr.f32.gmra.mrb[42].mxu1 %v18817_v25  ;;  %v18835_v25 = vld [vmem:[#allocation2 + $0x351] sm:$0xff] }
 0x777   :  { %13678 = vmatprep.mubr.f32.mxu1 %v18820_v45  ;;  %21069 = vst [vmem:[#allocation48_spill] sm:$0xff] %v18835_v25  ;;  %v18838_v45 = vld [vmem:[#allocation2 + $0x369] sm:$0xff] }
 0x778   :  { %21070 = vst [vmem:[#allocation47_spill] sm:$0xff] %v18838_v45 }
 0x77a   :  { %13679 = vmatmul.mubr.f32.gmra.mrb[44].mxu1 %v18823_v57  ;;  %v18841_v57 = vld [vmem:[#allocation2 + $0x371] sm:$0xff] }
 0x77b   :  { %13681 = vmatprep.mubr.f32.mxu1 %v18826_v40  ;;  %21071 = vst [vmem:[#allocation49_spill] sm:$0xff] %v18841_v57  ;;  %v18844_v40 = vld [vmem:[#allocation2 + $0x389] sm:$0xff] }
 0x77c   :  { %21072 = vst [vmem:[#allocation51_spill] sm:$0xff] %v18844_v40 }
 0x77e   :  { %13682 = vmatmul.mubr.f32.gmra.mrb[46].mxu1 %v18829_v49  ;;  %v18847_v49 = vld [vmem:[#allocation2 + $0x391] sm:$0xff] }
 0x77f   :  { %13684 = vmatprep.mubr.f32.mxu1 %v18832_v28  ;;  %21073 = vst [vmem:[#allocation52_spill] sm:$0xff] %v18847_v49  ;;  %v18850_v28 = vld [vmem:[#allocation2 + $0x3a9] sm:$0xff] }
 0x780   :  { %21074 = vst [vmem:[#allocation53_spill] sm:$0xff] %v18850_v28 }
 0x782   :  { %13685 = vmatmul.mubr.f32.gmra.mrb[48].mxu1 %v18835_v25  ;;  %v18853_v25 = vld [vmem:[#allocation2 + $0x3b1] sm:$0xff] }
 0x783   :  { %13687 = vmatprep.mubr.f32.mxu1 %v18838_v45  ;;  %21075 = vst [vmem:[#allocation54_spill] sm:$0xff] %v18853_v25  ;;  %v18856_v45 = vld [vmem:[#allocation2 + $0x3c9] sm:$0xff] }
 0x784   :  { %21076 = vst [vmem:[#allocation55_spill] sm:$0xff] %v18856_v45 }
 0x786   :  { %13688 = vmatmul.mubr.f32.gmra.mrb[50].mxu1 %v18841_v57  ;;  %v18859_v57 = vld [vmem:[#allocation2 + $0x3d1] sm:$0xff] }
 0x787   :  { %13690 = vmatprep.mubr.f32.mxu1 %v18844_v40  ;;  %21077 = vst [vmem:[#allocation56_spill] sm:$0xff] %v18859_v57  ;;  %v18862_v40 = vld [vmem:[#allocation2 + $0x3e9] sm:$0xff] }
 0x788   :  { %21078 = vst [vmem:[#allocation58_spill] sm:$0xff] %v18862_v40 }
 0x78a   :  { %13691 = vmatmul.mubr.f32.gmra.mrb[52].mxu1 %v18847_v49  ;;  %v18865_v49 = vld [vmem:[#allocation2 + $0x3f1] sm:$0xff] }
 0x78b   :  { %13693 = vmatprep.mubr.f32.mxu1 %v18850_v28  ;;  %21079 = vst [vmem:[#allocation59_spill] sm:$0xff] %v18865_v49  ;;  %v18868_v28 = vld [vmem:[#allocation2 + $0x409] sm:$0xff] }
 0x78c   :  { %21080 = vst [vmem:[#allocation61_spill] sm:$0xff] %v18868_v28 }
 0x78e   :  { %13694 = vmatmul.mubr.f32.gmra.mrb[54].mxu1 %v18853_v25  ;;  %v18871_v25 = vld [vmem:[#allocation2 + $0x411] sm:$0xff] }
 0x78f   :  { %13696 = vmatprep.mubr.f32.mxu1 %v18856_v45  ;;  %21081 = vst [vmem:[#allocation62_spill] sm:$0xff] %v18871_v25  ;;  %v18874_v45 = vld [vmem:[#allocation2 + $0x429] sm:$0xff] }
 0x790   :  { %21082 = vst [vmem:[#allocation63_spill] sm:$0xff] %v18874_v45 }
 0x792   :  { %13697 = vmatmul.mubr.f32.gmra.mrb[56].mxu1 %v18859_v57  ;;  %v18877_v57 = vld [vmem:[#allocation2 + $0x431] sm:$0xff] }
 0x793   :  { %13699 = vmatprep.mubr.f32.mxu1 %v18862_v40  ;;  %v7523_v40 = vld [vmem:[#allocation8 + $0x218] sm:$0xff] }
 0x796   :  { %13700 = vmatmul.mubr.f32.gmra.mrb[58].mxu1 %v18865_v49  ;;  %v14896_v49 = vpack.c.bf16 %v7523_v40, %v7522_v6  ;;  %v7528_v6 = vld [vmem:[#allocation8 + $0x240] sm:$0xff]  ;;  %v7529_v40 = vld [vmem:[#allocation8 + $0x248] sm:$0xff] }
 0x797   :  { %13702 = vmatprep.mubr.f32.mxu1 %v18868_v28  ;;  %v7527_v28 = vld [vmem:[#allocation8 + $0x238] sm:$0xff] }
 0x79a   :  { %13703 = vmatmul.mubr.f32.gmra.mrb[60].mxu1 %v18871_v25  ;;  %v14900_v25 = vpack.c.bf16 %v7525_v44, %v7524_v18  ;;  %v7531_v44 = vld [vmem:[#allocation8 + $0x258] sm:$0xff] }
 0x79b   :  { %13705 = vmatprep.mubr.f32.mxu1 %v18874_v45  ;;  %v7526_v45 = vld [vmem:[#allocation8 + $0x230] sm:$0xff]  ;;  %v7535_v18 = vld [vmem:[#allocation8 + $0x278] sm:$0xff] }
 0x79e   :  { %13706 = vmatmul.mubr.f32.gmra.mrb[62].mxu1 %v18877_v57 }
 0x79f   :  { %13740 = vmatprep.mubr.f32.mxu1 %v18512_v36  ;;  %v14904_v36 = vpack.c.bf16 %v7527_v28, %v7526_v45  ;;  %v8051_v45 = vld [vmem:[#allocation8 + $0x288] sm:$0xff] }
 0x7a2   :  { %13741 = vmatmul.mubr.f32.vlgmr.msra.gmra.mrb[0].mxu1 %v18516_v15  ;;  %v14908_v15 = vpack.c.bf16 %v7529_v40, %v7528_v6  ;;  %v18987_v6 = vld [vmem:[#allocation2 + $0xe8] sm:$0xff] }
 0x7a3   :  { %13743 = vmatprep.mubr.f32.mxu1 %v18519_v62  ;;  %14895 = vmatpush3.bf16.msra.mxu1 %v18736_v29  ;;  %v7530_v62 = vld [vmem:[#allocation8 + $0x250] sm:$0xff]  ;;  %v7533_v29 = vld [vmem:[#allocation8 + $0x268] sm:$0xff] }
 0x7a4   :  { %14897 = vmatprep.subr.bf16.mxu1 %v14896_v49 }
 0x7a6   :  { %13744 = vmatmul.mubr.f32.gmra.mrb[2].mxu1 %v18522_v11  ;;  %v14912_v11 = vpack.c.bf16 %v7531_v44, %v7530_v62  ;;  %v8580_v62 = vld [vmem:[#allocation8 + $0x300] sm:$0xff]  ;;  %v8581_v44 = vld [vmem:[#allocation8 + $0x308] sm:$0xff] }
 0x7a7   :  { %13746 = vmatprep.mubr.f32.mxu1 %v18525_v51  ;;  %14899 = vmatpush3.bf16.msra.mxu1 %v14896_v49  ;;  %v7532_v51 = vld [vmem:[#allocation8 + $0x260] sm:$0xff]  ;;  %v8064_v49 = vld [vmem:[#allocation8 + $0x2f0] sm:$0xff] }
 0x7a8   :  { %14901 = vmatprep.subr.bf16.mxu1 %v14900_v25 }
 0x7aa   :  { %13747 = vmatmul.mubr.f32.gmra.mrb[4].mxu1 %v18528_v13  ;;  %v14916_v13 = vpack.c.bf16 %v7533_v29, %v7532_v51  ;;  %v18996_v51 = vpack.c.bf16 %v8581_v44, %v8580_v62  ;;  %v18998_v29 = vld [vmem:[#allocation2 + $0x110] sm:$0xff]  ;;  %v19116_v44 = vld [vmem:[#allocation2 + $0x3e8] sm:$0xff] }
 0x7ab   :  { %13749 = vmatprep.mubr.f32.mxu1 %v18531_v60  ;;  %14903 = vmatpush3.bf16.msra.mxu1 %v14900_v25  ;;  %v7534_v60 = vld [vmem:[#allocation8 + $0x270] sm:$0xff] }
 0x7ac   :  { %14905 = vmatprep.subr.bf16.mxu1 %v14904_v36  ;;  %v18984_v25 = vld [vmem:[#allocation2 + $0xd0] sm:$0xff] }
 0x7ad   :  { %v19113_v62 = vld [vmem:[#allocation2 + $0x3d0] sm:$0xff] }
 0x7ae   :  { %13750 = vmatmul.mubr.f32.gmra.mrb[6].mxu1 %v18534_v39  ;;  %v14920_v39 = vpack.c.bf16 %v7535_v18, %v7534_v60  ;;  %v19005_v60 = vld [vmem:[#allocation2 + $0x130] sm:$0xff]  ;;  %v19008_v18 = vld [vmem:[#allocation2 + $0x148] sm:$0xff] }
 0x7af   :  { %13752 = vmatprep.mubr.f32.mxu1 %v18537_v31  ;;  %14907 = vmatpush3.bf16.msra.mxu1 %v14904_v36  ;;  %v8050_v31 = vld [vmem:[#allocation8 + $0x280] sm:$0xff]  ;;  %v8065_v36 = vld [vmem:[#allocation8 + $0x2f8] sm:$0xff] }
 0x7b0   :  { %14909 = vmatprep.subr.bf16.mxu1 %v14908_v15  ;;  %v14952_v40 = vpack.c.bf16 %v8065_v36, %v8064_v49  ;;  %v19104_v49 = vld [vmem:[#allocation2 + $0x3a8] sm:$0xff]  ;;  %v19107_v36 = vld [vmem:[#allocation2 + $0x3b0] sm:$0xff] }
 0x7b2   :  { %13753 = vmatmul.mubr.f32.gmra.mrb[8].mxu1 %v18540_v35  ;;  %v18896_v35 = vpack.c.bf16 %v8051_v45, %v8050_v31  ;;  %v19014_v31 = vld [vmem:[#allocation2 + $0x168] sm:$0xff]  ;;  %v19017_v45 = vld [vmem:[#allocation2 + $0x170] sm:$0xff] }
 0x7b3   :  { %13755 = vmatprep.mubr.f32.mxu1 %v18543_v53  ;;  %14911 = vmatpush3.bf16.msra.mxu1 %v14908_v15  ;;  %v18914_v53 = vld [vmem:[#allocation2 + $0x207] sm:$0xff]  ;;  %v18990_v15 = vld [vmem:[#allocation2 + $0xf0] sm:$0xff] }
 0x7b4   :  { %14913 = vmatprep.subr.bf16.mxu1 %v14912_v11 }
 0x7b6   :  { %13756 = vmatmul.mubr.f32.gmra.mrb[10].mxu1 %v18546_v1  ;;  %v18917_v1 = vld [vmem:[#allocation2 + $0x20f] sm:$0xff] }
 0x7b7   :  { %13758 = vmatprep.mubr.f32.mxu1 %v18549_v33  ;;  %14915 = vmatpush3.bf16.msra.mxu1 %v14912_v11  ;;  %v21083_v33 = vld [vmem:[#allocation68_spill] sm:$0xff]  ;;  %v18993_v11 = vld [vmem:[#allocation2 + $0x108] sm:$0xff] }
 0x7b8   :  { %14917 = vmatprep.subr.bf16.mxu1 %v14916_v13 }
 0x7ba   :  { %13759 = vmatmul.mubr.f32.gmra.mrb[12].mxu1 %v18554_v38  ;;  %v21084_v38 = vld [vmem:[#allocation69_spill] sm:$0xff] }
 0x7bb   :  { %13761 = vmatprep.mubr.f32.mxu1 %v18557_v10  ;;  %14919 = vmatpush3.bf16.msra.mxu1 %v14916_v13  ;;  %v21085_v10 = vld [vmem:[#allocation70_spill] sm:$0xff] }
 0x7bc   :  { %14921 = vmatprep.subr.bf16.mxu1 %v14920_v39  ;;  %v19001_v13 = vld [vmem:[#allocation2 + $0x128] sm:$0xff]  ;;  %21100 = vst [vmem:[#allocation70_spill] sm:$0xff] %v19104_v49 }
 0x7be   :  { %13762 = vmatmul.mubr.f32.gmra.mrb[14].mxu1 %v18561_v0  ;;  %v21086_v0 = vld [vmem:[#allocation71_spill] sm:$0xff] }
 0x7bf   :  { %13764 = vmatprep.mubr.f32.mxu1 %v18564_v2  ;;  %14923 = vmatpush3.bf16.msra.mxu1 %v14920_v39  ;;  %v21087_v2 = vld [vmem:[#allocation72_spill] sm:$0xff]  ;;  %v19011_v39 = vld [vmem:[#allocation2 + $0x150] sm:$0xff]  ;;  %21101 = vst [vmem:[#allocation71_spill] sm:$0xff] %v19107_v36 }
 0x7c0   :  { %14925 = vmatprep.subr.bf16.mxu1 %v18896_v35 }
 0x7c2   :  { %13765 = vmatmul.mubr.f32.gmra.mrb[16].mxu1 %v18567_v41  ;;  %v21088_v41 = vld [vmem:[#allocation73_spill] sm:$0xff] }
 0x7c3   :  { %13767 = vmatprep.mubr.f32.mxu1 %v18570_v8  ;;  %v21089_v8 = vld [vmem:[#allocation74_spill] sm:$0xff]  ;;  %21103 = vst [vmem:[#allocation73_spill] sm:$0xff] %v19113_v62 }
 0x7c4   :  { %21104 = vst [vmem:[#allocation74_spill] sm:$0xff] %v19116_v44 }
 0x7c6   :  { %13768 = vmatmul.mubr.f32.gmra.mrb[18].mxu1 %v18573_v58  ;;  %v21090_v58 = vld [vmem:[#allocation75_spill] sm:$0xff] }
 0x7c7   :  { %13770 = vmatprep.mubr.f32.mxu1 %v18576_v52  ;;  %v21091_v52 = vld [vmem:[#allocation76_spill] sm:$0xff] }
 0x7ca   :  { %13771 = vmatmul.mubr.f32.gmra.mrb[20].mxu1 %v18579_v26  ;;  %v18950_v26 = vld [vmem:[#allocation2 + $0x447] sm:$0xff] }
 0x7cb   :  { %13773 = vmatprep.mubr.f32.mxu1 %v18582_v37  ;;  %v18953_v37 = vld [vmem:[#allocation2 + $0x44f] sm:$0xff] }
 0x7ce   :  { %13774 = vmatmul.mubr.f32.gmra.mrb[22].mxu1 %v18585_v27  ;;  %v8052_v27 = vld [vmem:[#allocation8 + $0x290] sm:$0xff] }
 0x7cf   :  { %13776 = vmatprep.mubr.f32.mxu1 %v18588_v32  ;;  %v8053_v32 = vld [vmem:[#allocation8 + $0x298] sm:$0xff] }
 0x7d2   :  { %13777 = vmatmul.mubr.f32.gmra.mrb[24].mxu1 %v18591_v55  ;;  %v7455_v55 = vld [vmem:[#allocation2 + $0x28] sm:$0xff] }
 0x7d3   :  { %13779 = vmatprep.mubr.f32.mxu1 %v18594_v4  ;;  %v14928_v4 = vpack.c.bf16 %v8053_v32, %v8052_v27  ;;  %v7487_v27 = vld [vmem:[#allocation2 + $0x268] sm:$0xff]  ;;  %v7488_v32 = vld [vmem:[#allocation2 + $0x270] sm:$0xff] }
 0x7d6   :  { %13780 = vmatmul.mubr.f32.gmra.mrb[26].mxu1 %v18597_v56  ;;  %v7456_v56 = vld [vmem:[#allocation2 + $0x30] sm:$0xff] }
 0x7d7   :  { %13782 = vmatprep.mubr.f32.mxu1 %v18600_v46  ;;  %v8054_v46 = vld [vmem:[#allocation8 + $0x2a0] sm:$0xff] }
 0x7da   :  { %13783 = vmatmul.mubr.f32.gmra.mrb[28].mxu1 %v18603_v14  ;;  %v8055_v14 = vld [vmem:[#allocation8 + $0x2a8] sm:$0xff] }
 0x7db   :  { %13785 = vmatprep.mubr.f32.mxu1 %v18914_v53 }
 0x7de   :  { %13786 = vmatmul.mubr.f32.gmra.mrb[30].mxu1 %v18917_v1 }
 0x7df   :  { %13788 = vmatprep.mubr.f32.mxu1 %v18606_v59  ;;  %v18956_v59 = vld [vmem:[#allocation2 + $0x48] sm:$0xff] }
 0x7e2   :  { %13789 = vmatmul.mubr.f32.gmra.mrb[32].mxu1 %v18609_v42  ;;  %v14932_v42 = vpack.c.bf16 %v8055_v14, %v8054_v46  ;;  %v19059_v46 = vld [vmem:[#allocation2 + $0x2b0] sm:$0xff]  ;;  %v19062_v14 = vld [vmem:[#allocation2 + $0x2c8] sm:$0xff] }
 0x7e3   :  { %13791 = vmatprep.mubr.f32.mxu1 %v18612_v7  ;;  %v18960_v7 = vld [vmem:[#allocation2 + $0x50] sm:$0xff] }
 0x7e6   :  { %13792 = vmatmul.mubr.f32.gmra.mrb[34].mxu1 %v18615_v23  ;;  %v8056_v23 = vld [vmem:[#allocation8 + $0x2b0] sm:$0xff] }
 0x7e7   :  { %13794 = vmatprep.mubr.f32.mxu1 %v18618_v34  ;;  %v8057_v34 = vld [vmem:[#allocation8 + $0x2b8] sm:$0xff] }
 0x7ea   :  { %13795 = vmatmul.mubr.f32.gmra.mrb[36].mxu1 %v18621_v22  ;;  %v18963_v22 = vld [vmem:[#allocation2 + $0x68] sm:$0xff] }
 0x7eb   :  { %13797 = vmatprep.mubr.f32.mxu1 %v18624_v20  ;;  %v14936_v20 = vpack.c.bf16 %v8057_v34, %v8056_v23  ;;  %v19068_v23 = vld [vmem:[#allocation2 + $0x2e8] sm:$0xff]  ;;  %v19071_v34 = vld [vmem:[#allocation2 + $0x2f0] sm:$0xff] }
 0x7ee   :  { %13798 = vmatmul.mubr.f32.gmra.mrb[38].mxu1 %v18627_v54  ;;  %v18966_v54 = vld [vmem:[#allocation2 + $0x70] sm:$0xff] }
 0x7ef   :  { %13800 = vmatprep.mubr.f32.mxu1 %v18630_v48  ;;  %v8058_v48 = vld [vmem:[#allocation8 + $0x2c0] sm:$0xff] }
 0x7f2   :  { %13801 = vmatmul.mubr.f32.gmra.mrb[40].mxu1 %v18633_v43  ;;  %v8059_v43 = vld [vmem:[#allocation8 + $0x2c8] sm:$0xff] }
 0x7f3   :  { %13803 = vmatprep.mubr.f32.mxu1 %v18636_v63  ;;  %v18969_v63 = vld [vmem:[#allocation2 + $0x88] sm:$0xff] }
 0x7f6   :  { %13804 = vmatmul.mubr.f32.gmra.mrb[42].mxu1 %v18639_v30  ;;  %v14940_v30 = vpack.c.bf16 %v8059_v43, %v8058_v48  ;;  %v19077_v48 = vld [vmem:[#allocation2 + $0x310] sm:$0xff]  ;;  %v19080_v43 = vld [vmem:[#allocation2 + $0x328] sm:$0xff] }
 0x7f7   :  { %13806 = vmatprep.mubr.f32.mxu1 %v18642_v21  ;;  %v18972_v21 = vld [vmem:[#allocation2 + $0x90] sm:$0xff]  ;;  %21092 = vst [vmem:[#allocation64_spill] sm:$0xff] %v19080_v43 }
 0x7fa   :  { %13807 = vmatmul.mubr.f32.gmra.mrb[44].mxu1 %v18645_v16  ;;  %v8060_v16 = vld [vmem:[#allocation8 + $0x2d0] sm:$0xff] }
 0x7fb   :  { %13809 = vmatprep.mubr.f32.mxu1 %v18648_v3  ;;  %v8061_v3 = vld [vmem:[#allocation8 + $0x2d8] sm:$0xff] }
 0x7fe   :  { %13810 = vmatmul.mubr.f32.gmra.mrb[46].mxu1 %v18651_v5  ;;  %v18975_v5 = vld [vmem:[#allocation2 + $0xa8] sm:$0xff] }
 0x7ff   :  { %13812 = vmatprep.mubr.f32.mxu1 %v18654_v50  ;;  %v14944_v50 = vpack.c.bf16 %v8061_v3, %v8060_v16  ;;  %v19086_v16 = vld [vmem:[#allocation2 + $0x348] sm:$0xff]  ;;  %v19089_v3 = vld [vmem:[#allocation2 + $0x350] sm:$0xff] }
 0x800   :  { %21094 = vst [vmem:[#allocation66_spill] sm:$0xff] %v19086_v16  ;;  %21095 = vst [vmem:[#allocation67_spill] sm:$0xff] %v19089_v3 }
 0x802   :  { %13813 = vmatmul.mubr.f32.gmra.mrb[48].mxu1 %v18657_v47  ;;  %v18978_v47 = vld [vmem:[#allocation2 + $0xb0] sm:$0xff] }
 0x803   :  { %13815 = vmatprep.mubr.f32.mxu1 %v18660_v17  ;;  %v8062_v17 = vld [vmem:[#allocation8 + $0x2e0] sm:$0xff] }
 0x806   :  { %13816 = vmatmul.mubr.f32.gmra.mrb[50].mxu1 %v18663_v19  ;;  %v8063_v19 = vld [vmem:[#allocation8 + $0x2e8] sm:$0xff] }
 0x807   :  { %13818 = vmatprep.mubr.f32.mxu1 %v21083_v33  ;;  %v14948_v28 = vpack.c.bf16 %v8063_v19, %v8062_v17  ;;  %v19023_v33 = vld [vmem:[#allocation2 + $0x190] sm:$0xff]  ;;  %v19098_v19 = vld [vmem:[#allocation2 + $0x388] sm:$0xff] }
 0x808   :  { %v19095_v17 = vld [vmem:[#allocation2 + $0x370] sm:$0xff]  ;;  %21098 = vst [vmem:[#allocation68_spill] sm:$0xff] %v19098_v19 }
 0x809   :  { %21097 = vst [vmem:[#allocation60_spill] sm:$0xff] %v19095_v17 }
 0x80a   :  { %13819 = vmatmul.mubr.f32.gmra.mrb[52].mxu1 %v21084_v38  ;;  %v19026_v38 = vld [vmem:[#allocation2 + $0x1a8] sm:$0xff] }
 0x80b   :  { %13821 = vmatprep.mubr.f32.mxu1 %v21085_v10  ;;  %v19029_v10 = vld [vmem:[#allocation2 + $0x1b0] sm:$0xff] }
 0x80e   :  { %13822 = vmatmul.mubr.f32.gmra.mrb[54].mxu1 %v21086_v0  ;;  %v19032_v0 = vld [vmem:[#allocation2 + $0x1c8] sm:$0xff] }
 0x80f   :  { %13824 = vmatprep.mubr.f32.mxu1 %v21087_v2  ;;  %v19035_v2 = vld [vmem:[#allocation2 + $0x1d0] sm:$0xff] }
 0x812   :  { %13825 = vmatmul.mubr.f32.gmra.mrb[56].mxu1 %v21088_v41  ;;  %v19038_v41 = vld [vmem:[#allocation2 + $0x1e8] sm:$0xff] }
 0x813   :  { %13827 = vmatprep.mubr.f32.mxu1 %v21089_v8  ;;  %v19041_v8 = vld [vmem:[#allocation2 + $0x1f0] sm:$0xff] }
 0x816   :  { %13828 = vmatmul.mubr.f32.gmra.mrb[58].mxu1 %v21090_v58  ;;  %v19044_v58 = vld [vmem:[#allocation2 + $0x208] sm:$0xff] }
 0x817   :  { %13830 = vmatprep.mubr.f32.mxu1 %v21091_v52  ;;  %v19047_v52 = vld [vmem:[#allocation2 + $0x210] sm:$0xff] }
 0x81a   :  { %13831 = vmatmul.mubr.f32.gmra.mrb[60].mxu1 %v18693_v12  ;;  %v18981_v12 = vld [vmem:[#allocation2 + $0xc8] sm:$0xff] }
 0x81b   :  { %13833 = vmatprep.mubr.f32.mxu1 %v18950_v26 }
 0x81e   :  { %13834 = vmatmul.mubr.f32.gmra.mrb[62].mxu1 %v18953_v37 }
 0x81f   :  { %13868 = vmatprep.mubr.f32.mxu1 %v7455_v55  ;;  %v19050_v55 = vld [vmem:[#allocation2 + $0x288] sm:$0xff] }
 0x822   :  { %13869 = vmatmul.mubr.f32.vlgmr.msra.gmra.mrb[0].mxu1 %v7456_v56  ;;  %v19056_v56 = vld [vmem:[#allocation2 + $0x2a8] sm:$0xff] }
 0x823   :  { %13871 = vmatprep.mubr.f32.mxu1 %v18956_v59  ;;  %14927 = vmatpush3.bf16.msra.mxu1 %v18896_v35  ;;  %v19020_v35 = vld [vmem:[#allocation2 + $0x188] sm:$0xff] }
 0x824   :  { %14929 = vmatprep.subr.bf16.mxu1 %v14928_v4 }
 0x826   :  { %13872 = vmatmul.mubr.f32.gmra.mrb[2].mxu1 %v18960_v7 }
 0x827   :  { %13874 = vmatprep.mubr.f32.mxu1 %v18963_v22  ;;  %14931 = vmatpush3.bf16.msra.mxu1 %v14928_v4  ;;  %v19053_v4 = vld [vmem:[#allocation2 + $0x290] sm:$0xff] }
 0x828   :  { %14933 = vmatprep.subr.bf16.mxu1 %v14932_v42 }
 0x82a   :  { %13875 = vmatmul.mubr.f32.gmra.mrb[4].mxu1 %v18966_v54 }
 0x82b   :  { %13877 = vmatprep.mubr.f32.mxu1 %v18969_v63  ;;  %14935 = vmatpush3.bf16.msra.mxu1 %v14932_v42  ;;  %v19065_v42 = vld [vmem:[#allocation2 + $0x2d0] sm:$0xff] }
 0x82c   :  { %14937 = vmatprep.subr.bf16.mxu1 %v14936_v20 }
 0x82e   :  { %13878 = vmatmul.mubr.f32.gmra.mrb[6].mxu1 %v18972_v21 }
 0x82f   :  { %13880 = vmatprep.mubr.f32.mxu1 %v18975_v5  ;;  %14939 = vmatpush3.bf16.msra.mxu1 %v14936_v20  ;;  %v19074_v20 = vld [vmem:[#allocation2 + $0x308] sm:$0xff] }
 0x830   :  { %14941 = vmatprep.subr.bf16.mxu1 %v14940_v30 }
 0x832   :  { %13881 = vmatmul.mubr.f32.gmra.mrb[8].mxu1 %v18978_v47 }
 0x833   :  { %13883 = vmatprep.mubr.f32.mxu1 %v18981_v12  ;;  %14943 = vmatpush3.bf16.msra.mxu1 %v14940_v30  ;;  %v19083_v30 = vld [vmem:[#allocation2 + $0x330] sm:$0xff] }
 0x834   :  { %14945 = vmatprep.subr.bf16.mxu1 %v14944_v50  ;;  %21093 = vst [vmem:[#allocation65_spill] sm:$0xff] %v19083_v30 }
 0x836   :  { %13884 = vmatmul.mubr.f32.gmra.mrb[10].mxu1 %v18984_v25 }
 0x837   :  { %13886 = vmatprep.mubr.f32.mxu1 %v18987_v6  ;;  %14947 = vmatpush3.bf16.msra.mxu1 %v14944_v50  ;;  %v19092_v50 = vld [vmem:[#allocation2 + $0x368] sm:$0xff] }
 0x838   :  { %14949 = vmatprep.subr.bf16.mxu1 %v14948_v28  ;;  %21096 = vst [vmem:[#allocation57_spill] sm:$0xff] %v19092_v50 }
 0x83a   :  { %13887 = vmatmul.mubr.f32.gmra.mrb[12].mxu1 %v18990_v15 }
 0x83b   :  { %13889 = vmatprep.mubr.f32.mxu1 %v18993_v11  ;;  %14951 = vmatpush3.bf16.msra.mxu1 %v14948_v28  ;;  %v19101_v28 = vld [vmem:[#allocation2 + $0x390] sm:$0xff] }
 0x83c   :  { %14953 = vmatprep.subr.bf16.mxu1 %v14952_v40  ;;  %21099 = vst [vmem:[#allocation69_spill] sm:$0xff] %v19101_v28 }
 0x83e   :  { %13890 = vmatmul.mubr.f32.gmra.mrb[14].mxu1 %v18998_v29 }
 0x83f   :  { %13892 = vmatprep.mubr.f32.mxu1 %v19001_v13  ;;  %14955 = vmatpush3.bf16.msra.mxu1 %v14952_v40  ;;  %v19110_v40 = vld [vmem:[#allocation2 + $0x3c8] sm:$0xff] }
 0x840   :  { %14957 = vmatprep.subr.bf16.mxu1 %v18996_v51  ;;  %21102 = vst [vmem:[#allocation72_spill] sm:$0xff] %v19110_v40 }
 0x842   :  { %13893 = vmatmul.mubr.f32.gmra.mrb[16].mxu1 %v19005_v60 }
 0x843   :  { %13895 = vmatprep.mubr.f32.mxu1 %v19008_v18 }
 0x846   :  { %13896 = vmatmul.mubr.f32.gmra.mrb[18].mxu1 %v19011_v39 }
 0x847   :  { %13898 = vmatprep.mubr.f32.mxu1 %v19014_v31 }
 0x84a   :  { %13899 = vmatmul.mubr.f32.gmra.mrb[20].mxu1 %v19017_v45 }
 0x84b   :  { %13901 = vmatprep.mubr.f32.mxu1 %v19020_v35 }
 0x84e   :  { %13902 = vmatmul.mubr.f32.gmra.mrb[22].mxu1 %v19023_v33 }
 0x84f   :  { %13904 = vmatprep.mubr.f32.mxu1 %v19026_v38 }
 0x852   :  { %13905 = vmatmul.mubr.f32.gmra.mrb[24].mxu1 %v19029_v10 }
 0x853   :  { %13907 = vmatprep.mubr.f32.mxu1 %v19032_v0 }
 0x856   :  { %13908 = vmatmul.mubr.f32.gmra.mrb[26].mxu1 %v19035_v2 }
 0x857   :  { %13910 = vmatprep.mubr.f32.mxu1 %v19038_v41 }
 0x85a   :  { %13911 = vmatmul.mubr.f32.gmra.mrb[28].mxu1 %v19041_v8 }
 0x85b   :  { %13913 = vmatprep.mubr.f32.mxu1 %v19044_v58 }
 0x85e   :  { %13914 = vmatmul.mubr.f32.gmra.mrb[30].mxu1 %v19047_v52 }
 0x85f   :  { %13916 = vmatprep.mubr.f32.mxu1 %v7487_v27  ;;  %v19119_v27 = vld [vmem:[#allocation2 + $0x3f0] sm:$0xff] }
 0x860   :  { %21105 = vst [vmem:[#allocation75_spill] sm:$0xff] %v19119_v27 }
 0x862   :  { %13917 = vmatmul.mubr.f32.gmra.mrb[32].mxu1 %v7488_v32  ;;  %v19122_v32 = vld [vmem:[#allocation2 + $0x408] sm:$0xff] }
 0x863   :  { %13919 = vmatprep.mubr.f32.mxu1 %v19050_v55  ;;  %21106 = vst [vmem:[#allocation76_spill] sm:$0xff] %v19122_v32 }
 0x866   :  { %13920 = vmatmul.mubr.f32.gmra.mrb[34].mxu1 %v19053_v4 }
 0x867   :  { %13922 = vmatprep.mubr.f32.mxu1 %v19056_v56 }
 0x86a   :  { %13923 = vmatmul.mubr.f32.gmra.mrb[36].mxu1 %v19059_v46 }
 0x86b   :  { %13925 = vmatprep.mubr.f32.mxu1 %v19062_v14 }
 0x86e   :  { %13926 = vmatmul.mubr.f32.gmra.mrb[38].mxu1 %v19065_v42 }
 0x86f   :  { %13928 = vmatprep.mubr.f32.mxu1 %v19068_v23 }
 0x872   :  { %13929 = vmatmul.mubr.f32.gmra.mrb[40].mxu1 %v19071_v34 }
 0x873   :  { %13931 = vmatprep.mubr.f32.mxu1 %v19074_v20 }
 0x876   :  { %13932 = vmatmul.mubr.f32.gmra.mrb[42].mxu1 %v19077_v48 }
 0x877   :  { %13934 = vmatprep.mubr.f32.mxu1 %v19080_v43  ;;  %v21120_v43 = vld [vmem:[#allocation16_spill] sm:$0xff] }
 0x87a   :  { %13935 = vmatmul.mubr.f32.gmra.mrb[44].mxu1 %v19083_v30  ;;  %v21116_v30 = vld [vmem:[#allocation81_spill] sm:$0xff] }
 0x87b   :  { %13937 = vmatprep.mubr.f32.mxu1 %v19086_v16  ;;  %v21115_v16 = vld [vmem:[#allocation80_spill] sm:$0xff] }
 0x87e   :  { %13938 = vmatmul.mubr.f32.gmra.mrb[46].mxu1 %v19089_v3  ;;  %v8587_v3 = vld [vmem:[#allocation8 + $0x338] sm:$0xff] }
 0x87f   :  { %13940 = vmatprep.mubr.f32.mxu1 %v19092_v50  ;;  %v21114_v50 = vld [vmem:[#allocation79_spill] sm:$0xff] }
 0x882   :  { %13941 = vmatmul.mubr.f32.gmra.mrb[48].mxu1 %v19095_v17  ;;  %v8585_v17 = vld [vmem:[#allocation8 + $0x328] sm:$0xff] }
 0x883   :  { %13943 = vmatprep.mubr.f32.mxu1 %v19098_v19  ;;  %v8584_v19 = vld [vmem:[#allocation8 + $0x320] sm:$0xff] }
 0x886   :  { %13944 = vmatmul.mubr.f32.gmra.mrb[50].mxu1 %v19101_v28  ;;  %v21112_v28 = vld [vmem:[#allocation77_spill] sm:$0xff] }
 0x887   :  { %13946 = vmatprep.mubr.f32.mxu1 %v19104_v49  ;;  %v8582_v49 = vld [vmem:[#allocation8 + $0x310] sm:$0xff] }
 0x88a   :  { %13947 = vmatmul.mubr.f32.gmra.mrb[52].mxu1 %v19107_v36  ;;  %v19125_v36 = vld [vmem:[#allocation2 + $0x410] sm:$0xff] }
 0x88b   :  { %13949 = vmatprep.mubr.f32.mxu1 %v19110_v40  ;;  %21107 = vst [vmem:[#allocation85_spill] sm:$0xff] %v19125_v36  ;;  %v19128_v40 = vld [vmem:[#allocation2 + $0x428] sm:$0xff] }
 0x88c   :  { %21108 = vst [vmem:[#allocation86_spill] sm:$0xff] %v19128_v40 }
 0x88e   :  { %13950 = vmatmul.mubr.f32.gmra.mrb[54].mxu1 %v19113_v62  ;;  %v19131_v62 = vld [vmem:[#allocation2 + $0x430] sm:$0xff] }
 0x88f   :  { %13952 = vmatprep.mubr.f32.mxu1 %v19116_v44  ;;  %21109 = vst [vmem:[#allocation87_spill] sm:$0xff] %v19131_v62  ;;  %v19134_v44 = vld [vmem:[#allocation2 + $0x448] sm:$0xff] }
 0x890   :  { %21110 = vst [vmem:[#allocation88_spill] sm:$0xff] %v19134_v44 }
 0x892   :  { %13953 = vmatmul.mubr.f32.gmra.mrb[56].mxu1 %v19119_v27  ;;  %v19137_v27 = vld [vmem:[#allocation2 + $0x450] sm:$0xff] }
 0x893   :  { %13955 = vmatprep.mubr.f32.mxu1 %v19122_v32  ;;  %21111 = vst [vmem:[#allocation89_spill] sm:$0xff] %v19137_v27  ;;  %v8583_v32 = vld [vmem:[#allocation8 + $0x318] sm:$0xff] }
 0x896   :  { %13956 = vmatmul.mubr.f32.gmra.mrb[58].mxu1 %v19125_v36  ;;  %v14960_v36 = vpack.c.bf16 %v8583_v32, %v8582_v49  ;;  %v8588_v49 = vld [vmem:[#allocation8 + $0x340] sm:$0xff]  ;;  %v8589_v32 = vld [vmem:[#allocation8 + $0x348] sm:$0xff] }
 0x897   :  { %13958 = vmatprep.mubr.f32.mxu1 %v19128_v40  ;;  %v21113_v40 = vld [vmem:[#allocation78_spill] sm:$0xff] }
 0x89a   :  { %13959 = vmatmul.mubr.f32.gmra.mrb[60].mxu1 %v19131_v62  ;;  %v14964_v62 = vpack.c.bf16 %v8585_v17, %v8584_v19  ;;  %v8591_v17 = vld [vmem:[#allocation8 + $0x358] sm:$0xff]  ;;  %v21119_v19 = vld [vmem:[#allocation15_spill] sm:$0xff] }
 0x89b   :  { %13961 = vmatprep.mubr.f32.mxu1 %v19134_v44  ;;  %v8586_v44 = vld [vmem:[#allocation8 + $0x330] sm:$0xff] }
 0x89e   :  { %13962 = vmatmul.mubr.f32.gmra.mrb[62].mxu1 %v19137_v27  ;;  %v21117_v27 = vld [vmem:[#allocation13_spill] sm:$0xff] }
 0x89f   :  { %13996 = vmatprep.mubr.f32.mxu1 %v21112_v28  ;;  %v14968_v28 = vpack.c.bf16 %v8587_v3, %v8586_v44  ;;  %v8593_v3 = vld [vmem:[#allocation8 + $0x368] sm:$0xff]  ;;  %v8595_v44 = vld [vmem:[#allocation8 + $0x378] sm:$0xff] }
 0x8a2   :  { %13997 = vmatmul.mubr.f32.vlgmr.msra.gmra.mrb[0].mxu1 %v21113_v40  ;;  %v21118_v40 = vld [vmem:[#allocation14_spill] sm:$0xff] }
 0x8a3   :  { %13999 = vmatprep.mubr.f32.mxu1 %v21114_v50  ;;  %14959 = vmatpush3.bf16.msra.mxu1 %v18996_v51  ;;  %v14972_v51 = vpack.c.bf16 %v8589_v32, %v8588_v49  ;;  %v8590_v50 = vld [vmem:[#allocation8 + $0x350] sm:$0xff]  ;;  %v9111_v49 = vld [vmem:[#allocation8 + $0x388] sm:$0xff] }
 0x8a4   :  { %14961 = vmatprep.subr.bf16.mxu1 %v14960_v36  ;;  %v21122_v32 = vld [vmem:[#allocation18_spill] sm:$0xff] }
 0x8a6   :  { %14000 = vmatmul.mubr.f32.gmra.mrb[2].mxu1 %v21115_v16  ;;  %v8592_v16 = vld [vmem:[#allocation8 + $0x360] sm:$0xff] }
 0x8a7   :  { %14002 = vmatprep.mubr.f32.mxu1 %v21116_v30  ;;  %14963 = vmatpush3.bf16.msra.mxu1 %v14960_v36  ;;  %v14976_v30 = vpack.c.bf16 %v8591_v17, %v8590_v50  ;;  %v14980_v36 = vpack.c.bf16 %v8593_v3, %v8592_v16  ;;  %v21127_v50 = vld [vmem:[#allocation82_spill] sm:$0xff]  ;;  %v21128_v17 = vld [vmem:[#allocation83_spill] sm:$0xff]  ;;  %v21131_v16 = vld [vmem:[#allocation24_spill] sm:$0xff] }
 0x8a8   :  { %14965 = vmatprep.subr.bf16.mxu1 %v14964_v62  ;;  %v21132_v3 = vld [vmem:[#allocation25_spill] sm:$0xff] }
 0x8aa   :  { %14003 = vmatmul.mubr.f32.gmra.mrb[4].mxu1 %v21117_v27  ;;  %v21121_v27 = vld [vmem:[#allocation17_spill] sm:$0xff] }
 0x8ab   :  { %14005 = vmatprep.mubr.f32.mxu1 %v21118_v40  ;;  %14967 = vmatpush3.bf16.msra.mxu1 %v14964_v62  ;;  %v8594_v62 = vld [vmem:[#allocation8 + $0x370] sm:$0xff] }
 0x8ac   :  { %14969 = vmatprep.subr.bf16.mxu1 %v14968_v28  ;;  %v21123_v40 = vld [vmem:[#allocation19_spill] sm:$0xff] }
 0x8ae   :  { %14006 = vmatmul.mubr.f32.gmra.mrb[6].mxu1 %v21119_v19  ;;  %v21129_v19 = vld [vmem:[#allocation84_spill] sm:$0xff] }
 0x8af   :  { %14008 = vmatprep.mubr.f32.mxu1 %v21120_v43  ;;  %14971 = vmatpush3.bf16.msra.mxu1 %v14968_v28  ;;  %v14984_v43 = vpack.c.bf16 %v8595_v44, %v8594_v62  ;;  %v9110_v28 = vld [vmem:[#allocation8 + $0x380] sm:$0xff]  ;;  %v21134_v62 = vld [vmem:[#allocation28_spill] sm:$0xff]  ;;  %v21135_v44 = vld [vmem:[#allocation27_spill] sm:$0xff] }
 0x8b0   :  { %14973 = vmatprep.subr.bf16.mxu1 %v14972_v51 }
 0x8b2   :  { %14009 = vmatmul.mubr.f32.gmra.mrb[8].mxu1 %v18724_v61  ;;  %v19156_v61 = vpack.c.bf16 %v9111_v49, %v9110_v28  ;;  %v21138_v28 = vld [vmem:[#allocation32_spill] sm:$0xff]  ;;  %v19174_v49 = vld [vmem:[#allocation2 + $0x209] sm:$0xff] }
 0x8b3   :  { %14011 = vmatprep.mubr.f32.mxu1 %v18727_v9  ;;  %14975 = vmatpush3.bf16.msra.mxu1 %v14972_v51  ;;  %v21124_v9 = vld [vmem:[#allocation20_spill] sm:$0xff]  ;;  %v21125_v51 = vld [vmem:[#allocation21_spill] sm:$0xff] }
 0x8b4   :  { %14977 = vmatprep.subr.bf16.mxu1 %v14976_v30 }
 0x8b6   :  { %14012 = vmatmul.mubr.f32.gmra.mrb[10].mxu1 %v18730_v24  ;;  %v21126_v24 = vld [vmem:[#allocation22_spill] sm:$0xff] }
 0x8b7   :  { %14014 = vmatprep.mubr.f32.mxu1 %v21121_v27  ;;  %14979 = vmatpush3.bf16.msra.mxu1 %v14976_v30  ;;  %v21130_v30 = vld [vmem:[#allocation23_spill] sm:$0xff]  ;;  %v21136_v27 = vld [vmem:[#allocation30_spill] sm:$0xff] }
 0x8b8   :  { %14981 = vmatprep.subr.bf16.mxu1 %v14980_v36 }
 0x8ba   :  { %14015 = vmatmul.mubr.f32.gmra.mrb[12].mxu1 %v21122_v32  ;;  %v19177_v32 = vld [vmem:[#allocation2 + $0x211] sm:$0xff] }
 0x8bb   :  { %14017 = vmatprep.mubr.f32.mxu1 %v21123_v40  ;;  %14983 = vmatpush3.bf16.msra.mxu1 %v14980_v36  ;;  %v21133_v36 = vld [vmem:[#allocation26_spill] sm:$0xff]  ;;  %v21139_v40 = vld [vmem:[#allocation31_spill] sm:$0xff] }
 0x8bc   :  { %14985 = vmatprep.subr.bf16.mxu1 %v14984_v43 }
 0x8be   :  { %14018 = vmatmul.mubr.f32.gmra.mrb[14].mxu1 %v21124_v9  ;;  %v21140_v9 = vld [vmem:[#allocation34_spill] sm:$0xff] }
 0x8bf   :  { %14020 = vmatprep.mubr.f32.mxu1 %v21125_v51  ;;  %14987 = vmatpush3.bf16.msra.mxu1 %v14984_v43  ;;  %v21137_v43 = vld [vmem:[#allocation29_spill] sm:$0xff] }
 0x8c0   :  { %14989 = vmatprep.subr.bf16.mxu1 %v19156_v61  ;;  %v21141_v51 = vld [vmem:[#allocation33_spill] sm:$0xff] }
 0x8c2   :  { %14021 = vmatmul.mubr.f32.gmra.mrb[16].mxu1 %v21126_v24  ;;  %v21142_v24 = vld [vmem:[#allocation36_spill] sm:$0xff] }
 0x8c3   :  { %14023 = vmatprep.mubr.f32.mxu1 %v21127_v50  ;;  %v21143_v50 = vld [vmem:[#allocation35_spill] sm:$0xff] }
 0x8c6   :  { %14024 = vmatmul.mubr.f32.gmra.mrb[18].mxu1 %v21128_v17  ;;  %v21144_v17 = vld [vmem:[#allocation38_spill] sm:$0xff] }
 0x8c7   :  { %14026 = vmatprep.mubr.f32.mxu1 %v21129_v19  ;;  %v21145_v19 = vld [vmem:[#allocation37_spill] sm:$0xff] }
 0x8ca   :  { %14027 = vmatmul.mubr.f32.gmra.mrb[20].mxu1 %v21130_v30  ;;  %v21146_v30 = vld [vmem:[#allocation40_spill] sm:$0xff] }
 0x8cb   :  { %14029 = vmatprep.mubr.f32.mxu1 %v21131_v16  ;;  %v21147_v16 = vld [vmem:[#allocation39_spill] sm:$0xff] }
 0x8ce   :  { %14030 = vmatmul.mubr.f32.gmra.mrb[22].mxu1 %v21132_v3  ;;  %v21148_v3 = vld [vmem:[#allocation42_spill] sm:$0xff] }
 0x8cf   :  { %14032 = vmatprep.mubr.f32.mxu1 %v21133_v36  ;;  %v21149_v36 = vld [vmem:[#allocation41_spill] sm:$0xff] }
 0x8d2   :  { %14033 = vmatmul.mubr.f32.gmra.mrb[24].mxu1 %v21134_v62  ;;  %v21150_v62 = vld [vmem:[#allocation44_spill] sm:$0xff] }
 0x8d3   :  { %14035 = vmatprep.mubr.f32.mxu1 %v21135_v44  ;;  %v21151_v44 = vld [vmem:[#allocation43_spill] sm:$0xff] }
 0x8d6   :  { %14036 = vmatmul.mubr.f32.gmra.mrb[26].mxu1 %v21136_v27  ;;  %v21152_v27 = vld [vmem:[#allocation46_spill] sm:$0xff] }
 0x8d7   :  { %14038 = vmatprep.mubr.f32.mxu1 %v21137_v43  ;;  %v21153_v43 = vld [vmem:[#allocation45_spill] sm:$0xff] }
 0x8da   :  { %14039 = vmatmul.mubr.f32.gmra.mrb[28].mxu1 %v21138_v28  ;;  %v21154_v28 = vld [vmem:[#allocation48_spill] sm:$0xff] }
 0x8db   :  { %14041 = vmatprep.mubr.f32.mxu1 %v19174_v49 }
 0x8de   :  { %14042 = vmatmul.mubr.f32.gmra.mrb[30].mxu1 %v19177_v32 }
 0x8df   :  { %14044 = vmatprep.mubr.f32.mxu1 %v21139_v40  ;;  %v21155_v40 = vld [vmem:[#allocation47_spill] sm:$0xff] }
 0x8e2   :  { %14045 = vmatmul.mubr.f32.gmra.mrb[32].mxu1 %v21140_v9  ;;  %v21156_v9 = vld [vmem:[#allocation49_spill] sm:$0xff] }
 0x8e3   :  { %14047 = vmatprep.mubr.f32.mxu1 %v21141_v51  ;;  %v21157_v51 = vld [vmem:[#allocation51_spill] sm:$0xff] }
 0x8e6   :  { %14048 = vmatmul.mubr.f32.gmra.mrb[34].mxu1 %v21142_v24  ;;  %v21158_v24 = vld [vmem:[#allocation52_spill] sm:$0xff] }
 0x8e7   :  { %14050 = vmatprep.mubr.f32.mxu1 %v21143_v50  ;;  %v21159_v50 = vld [vmem:[#allocation53_spill] sm:$0xff] }
 0x8ea   :  { %14051 = vmatmul.mubr.f32.gmra.mrb[36].mxu1 %v21144_v17  ;;  %v21160_v17 = vld [vmem:[#allocation54_spill] sm:$0xff] }
 0x8eb   :  { %14053 = vmatprep.mubr.f32.mxu1 %v21145_v19  ;;  %v21161_v19 = vld [vmem:[#allocation55_spill] sm:$0xff] }
 0x8ee   :  { %14054 = vmatmul.mubr.f32.gmra.mrb[38].mxu1 %v21146_v30  ;;  %v21162_v30 = vld [vmem:[#allocation56_spill] sm:$0xff] }
 0x8ef   :  { %14056 = vmatprep.mubr.f32.mxu1 %v21147_v16  ;;  %v21163_v16 = vld [vmem:[#allocation58_spill] sm:$0xff] }
 0x8f2   :  { %14057 = vmatmul.mubr.f32.gmra.mrb[40].mxu1 %v21148_v3  ;;  %v21164_v3 = vld [vmem:[#allocation59_spill] sm:$0xff] }
 0x8f3   :  { %14059 = vmatprep.mubr.f32.mxu1 %v21149_v36  ;;  %v21165_v36 = vld [vmem:[#allocation61_spill] sm:$0xff] }
 0x8f6   :  { %14060 = vmatmul.mubr.f32.gmra.mrb[42].mxu1 %v21150_v62  ;;  %v21166_v62 = vld [vmem:[#allocation62_spill] sm:$0xff] }
 0x8f7   :  { %14062 = vmatprep.mubr.f32.mxu1 %v21151_v44  ;;  %v21167_v44 = vld [vmem:[#allocation63_spill] sm:$0xff] }
 0x8fa   :  { %14063 = vmatmul.mubr.f32.gmra.mrb[44].mxu1 %v21152_v27  ;;  %v19210_v27 = vld [vmem:[#allocation2 + $0x449] sm:$0xff] }
 0x8fb   :  { %14065 = vmatprep.mubr.f32.mxu1 %v21153_v43  ;;  %v19213_v43 = vld [vmem:[#allocation2 + $0x451] sm:$0xff] }
 0x8fe   :  { %14066 = vmatmul.mubr.f32.gmra.mrb[46].mxu1 %v21154_v28  ;;  %v9112_v28 = vld [vmem:[#allocation8 + $0x390] sm:$0xff] }
 0x8ff   :  { %14068 = vmatprep.mubr.f32.mxu1 %v21155_v40  ;;  %v9113_v40 = vld [vmem:[#allocation8 + $0x398] sm:$0xff] }
 0x902   :  { %14069 = vmatmul.mubr.f32.gmra.mrb[48].mxu1 %v21156_v9  ;;  %v8515_v9 = vld [vmem:[#allocation2 + $0x47] sm:$0xff] }
 0x903   :  { %14071 = vmatprep.mubr.f32.mxu1 %v21157_v51  ;;  %v14992_v51 = vpack.c.bf16 %v9113_v40, %v9112_v28  ;;  %v9118_v28 = vld [vmem:[#allocation8 + $0x3c0] sm:$0xff]  ;;  %v9119_v40 = vld [vmem:[#allocation8 + $0x3c8] sm:$0xff] }
 0x906   :  { %14072 = vmatmul.mubr.f32.gmra.mrb[50].mxu1 %v21158_v24  ;;  %v8516_v24 = vld [vmem:[#allocation2 + $0x4f] sm:$0xff] }
 0x907   :  { %14074 = vmatprep.mubr.f32.mxu1 %v21159_v50  ;;  %v9114_v50 = vld [vmem:[#allocation8 + $0x3a0] sm:$0xff] }
 0x90a   :  { %14075 = vmatmul.mubr.f32.gmra.mrb[52].mxu1 %v21160_v17  ;;  %v9115_v17 = vld [vmem:[#allocation8 + $0x3a8] sm:$0xff] }
 0x90b   :  { %14077 = vmatprep.mubr.f32.mxu1 %v21161_v19  ;;  %v8517_v19 = vld [vmem:[#allocation2 + $0x67] sm:$0xff] }
 0x90e   :  { %14078 = vmatmul.mubr.f32.gmra.mrb[54].mxu1 %v21162_v30  ;;  %v8518_v30 = vld [vmem:[#allocation2 + $0x6f] sm:$0xff] }
 0x90f   :  { %14080 = vmatprep.mubr.f32.mxu1 %v21163_v16  ;;  %v9116_v16 = vld [vmem:[#allocation8 + $0x3b0] sm:$0xff] }
 0x912   :  { %14081 = vmatmul.mubr.f32.gmra.mrb[56].mxu1 %v21164_v3  ;;  %v9117_v3 = vld [vmem:[#allocation8 + $0x3b8] sm:$0xff] }
 0x913   :  { %14083 = vmatprep.mubr.f32.mxu1 %v21165_v36  ;;  %v8519_v36 = vld [vmem:[#allocation2 + $0x87] sm:$0xff] }
 0x916   :  { %14084 = vmatmul.mubr.f32.gmra.mrb[58].mxu1 %v21166_v62  ;;  %v15000_v62 = vpack.c.bf16 %v9117_v3, %v9116_v16  ;;  %v9122_v16 = vld [vmem:[#allocation8 + $0x3e0] sm:$0xff]  ;;  %v9123_v3 = vld [vmem:[#allocation8 + $0x3e8] sm:$0xff] }
 0x917   :  { %14086 = vmatprep.mubr.f32.mxu1 %v21167_v44  ;;  %v8520_v44 = vld [vmem:[#allocation2 + $0x8f] sm:$0xff] }
 0x91a   :  { %14087 = vmatmul.mubr.f32.gmra.mrb[60].mxu1 %v18877_v57  ;;  %v14996_v57 = vpack.c.bf16 %v9115_v17, %v9114_v50  ;;  %v9120_v50 = vld [vmem:[#allocation8 + $0x3d0] sm:$0xff]  ;;  %v9121_v17 = vld [vmem:[#allocation8 + $0x3d8] sm:$0xff] }
 0x91b   :  { %14089 = vmatprep.mubr.f32.mxu1 %v19210_v27 }
 0x91e   :  { %14090 = vmatmul.mubr.f32.gmra.mrb[62].mxu1 %v19213_v43 }
 0x91f   :  { %14124 = vmatprep.mubr.f32.mxu1 %v8515_v9  ;;  %v8521_v9 = vld [vmem:[#allocation2 + $0xa7] sm:$0xff] }
 0x922   :  { %14125 = vmatmul.mubr.f32.vlgmr.msra.gmra.mrb[0].mxu1 %v8516_v24  ;;  %v8522_v24 = vld [vmem:[#allocation2 + $0xaf] sm:$0xff] }
 0x923   :  { %14127 = vmatprep.mubr.f32.mxu1 %v8517_v19  ;;  %14991 = vmatpush3.bf16.msra.mxu1 %v19156_v61  ;;  %v15004_v61 = vpack.c.bf16 %v9119_v40, %v9118_v28  ;;  %v8523_v19 = vld [vmem:[#allocation2 + $0xc7] sm:$0xff]  ;;  %v9124_v28 = vld [vmem:[#allocation8 + $0x3f0] sm:$0xff]  ;;  %v9125_v40 = vld [vmem:[#allocation8 + $0x3f8] sm:$0xff] }
 0x924   :  { %14993 = vmatprep.subr.bf16.mxu1 %v14992_v51 }
 0x926   :  { %14128 = vmatmul.mubr.f32.gmra.mrb[2].mxu1 %v8518_v30  ;;  %v8524_v30 = vld [vmem:[#allocation2 + $0xcf] sm:$0xff] }
 0x927   :  { %14130 = vmatprep.mubr.f32.mxu1 %v8519_v36  ;;  %14995 = vmatpush3.bf16.msra.mxu1 %v14992_v51  ;;  %v15008_v51 = vpack.c.bf16 %v9121_v17, %v9120_v50  ;;  %v8525_v36 = vld [vmem:[#allocation2 + $0xe7] sm:$0xff] }
 0x928   :  { %14997 = vmatprep.subr.bf16.mxu1 %v14996_v57  ;;  %v9640_v50 = vld [vmem:[#allocation8 + $0x400] sm:$0xff]  ;;  %v9641_v17 = vld [vmem:[#allocation8 + $0x408] sm:$0xff] }
 0x92a   :  { %14131 = vmatmul.mubr.f32.gmra.mrb[4].mxu1 %v8520_v44  ;;  %v8526_v44 = vld [vmem:[#allocation2 + $0xef] sm:$0xff] }
 0x92b   :  { %14133 = vmatprep.mubr.f32.mxu1 %v8521_v9  ;;  %14999 = vmatpush3.bf16.msra.mxu1 %v14996_v57  ;;  %v15012_v57 = vpack.c.bf16 %v9123_v3, %v9122_v16  ;;  %v8527_v9 = vld [vmem:[#allocation2 + $0x107] sm:$0xff] }
 0x92c   :  { %15001 = vmatprep.subr.bf16.mxu1 %v15000_v62  ;;  %v8531_v16 = vld [vmem:[#allocation2 + $0x147] sm:$0xff] }
 0x92d   :  { %v8533_v3 = vld [vmem:[#allocation2 + $0x167] sm:$0xff] }
 0x92e   :  { %14134 = vmatmul.mubr.f32.gmra.mrb[6].mxu1 %v8522_v24  ;;  %v8528_v24 = vld [vmem:[#allocation2 + $0x10f] sm:$0xff] }
 0x92f   :  { %14136 = vmatprep.mubr.f32.mxu1 %v8523_v19  ;;  %15003 = vmatpush3.bf16.msra.mxu1 %v15000_v62  ;;  %v15016_v62 = vpack.c.bf16 %v9125_v40, %v9124_v28  ;;  %v8529_v19 = vld [vmem:[#allocation2 + $0x127] sm:$0xff]  ;;  %v8536_v28 = vld [vmem:[#allocation2 + $0x18f] sm:$0xff] }
 0x930   :  { %15005 = vmatprep.subr.bf16.mxu1 %v15004_v61  ;;  %v8538_v40 = vld [vmem:[#allocation2 + $0x1af] sm:$0xff] }
 0x932   :  { %14137 = vmatmul.mubr.f32.gmra.mrb[8].mxu1 %v8524_v30  ;;  %v8530_v30 = vld [vmem:[#allocation2 + $0x12f] sm:$0xff] }
 0x933   :  { %14139 = vmatprep.mubr.f32.mxu1 %v8525_v36  ;;  %15007 = vmatpush3.bf16.msra.mxu1 %v15004_v61  ;;  %v19217_v61 = vpack.c.bf16 %v9641_v17, %v9640_v50  ;;  %v8534_v36 = vld [vmem:[#allocation2 + $0x16f] sm:$0xff]  ;;  %v8545_v17 = vld [vmem:[#allocation2 + $0x227] sm:$0xff] }
 0x934   :  { %15009 = vmatprep.subr.bf16.mxu1 %v15008_v51  ;;  %v8542_v50 = vld [vmem:[#allocation2 + $0x1ef] sm:$0xff] }
 0x936   :  { %14140 = vmatmul.mubr.f32.gmra.mrb[10].mxu1 %v8526_v44  ;;  %v8535_v44 = vld [vmem:[#allocation2 + $0x187] sm:$0xff] }
 0x937   :  { %14142 = vmatprep.mubr.f32.mxu1 %v8527_v9  ;;  %15011 = vmatpush3.bf16.msra.mxu1 %v15008_v51  ;;  %v8532_v51 = vld [vmem:[#allocation2 + $0x14f] sm:$0xff]  ;;  %v8539_v9 = vld [vmem:[#allocation2 + $0x1c7] sm:$0xff] }
 0x938   :  { %15013 = vmatprep.subr.bf16.mxu1 %v15012_v57 }
 0x93a   :  { %14143 = vmatmul.mubr.f32.gmra.mrb[12].mxu1 %v8528_v24  ;;  %v8540_v24 = vld [vmem:[#allocation2 + $0x1cf] sm:$0xff] }
 0x93b   :  { %14145 = vmatprep.mubr.f32.mxu1 %v8529_v19  ;;  %15015 = vmatpush3.bf16.msra.mxu1 %v15012_v57  ;;  %v8537_v57 = vld [vmem:[#allocation2 + $0x1a7] sm:$0xff]  ;;  %v8546_v19 = vld [vmem:[#allocation2 + $0x22f] sm:$0xff] }
 0x93c   :  { %15017 = vmatprep.subr.bf16.mxu1 %v15016_v62 }
 0x93e   :  { %14146 = vmatmul.mubr.f32.gmra.mrb[14].mxu1 %v8530_v30  ;;  %v8547_v30 = vld [vmem:[#allocation2 + $0x287] sm:$0xff] }
 0x93f   :  { %14148 = vmatprep.mubr.f32.mxu1 %v8531_v16  ;;  %15019 = vmatpush3.bf16.msra.mxu1 %v15016_v62  ;;  %v8541_v62 = vld [vmem:[#allocation2 + $0x1e7] sm:$0xff]  ;;  %v8548_v16 = vld [vmem:[#allocation2 + $0x28f] sm:$0xff] }
 0x940   :  { %15021 = vmatprep.subr.bf16.mxu1 %v19217_v61 }
 0x942   :  { %14149 = vmatmul.mubr.f32.gmra.mrb[16].mxu1 %v8532_v51  ;;  %v8549_v51 = vld [vmem:[#allocation2 + $0x2a7] sm:$0xff] }
 0x943   :  { %14151 = vmatprep.mubr.f32.mxu1 %v8533_v3  ;;  %v8550_v3 = vld [vmem:[#allocation2 + $0x2af] sm:$0xff] }
 0x946   :  { %14152 = vmatmul.mubr.f32.gmra.mrb[18].mxu1 %v8534_v36  ;;  %v8551_v36 = vld [vmem:[#allocation2 + $0x2c7] sm:$0xff] }
 0x947   :  { %14154 = vmatprep.mubr.f32.mxu1 %v8535_v44  ;;  %v8552_v44 = vld [vmem:[#allocation2 + $0x2cf] sm:$0xff] }
 0x94a   :  { %14155 = vmatmul.mubr.f32.gmra.mrb[20].mxu1 %v8536_v28  ;;  %v8553_v28 = vld [vmem:[#allocation2 + $0x2e7] sm:$0xff] }
 0x94b   :  { %14157 = vmatprep.mubr.f32.mxu1 %v8537_v57  ;;  %v8556_v57 = vld [vmem:[#allocation2 + $0x30f] sm:$0xff] }
 0x94e   :  { %14158 = vmatmul.mubr.f32.gmra.mrb[22].mxu1 %v8538_v40  ;;  %v8557_v40 = vld [vmem:[#allocation2 + $0x327] sm:$0xff] }
 0x94f   :  { %14160 = vmatprep.mubr.f32.mxu1 %v8539_v9  ;;  %v8558_v9 = vld [vmem:[#allocation2 + $0x32f] sm:$0xff] }
 0x952   :  { %14161 = vmatmul.mubr.f32.gmra.mrb[24].mxu1 %v8540_v24  ;;  %v8559_v24 = vld [vmem:[#allocation2 + $0x347] sm:$0xff] }
 0x953   :  { %14163 = vmatprep.mubr.f32.mxu1 %v8541_v62  ;;  %v8560_v62 = vld [vmem:[#allocation2 + $0x34f] sm:$0xff] }
 0x956   :  { %14164 = vmatmul.mubr.f32.gmra.mrb[26].mxu1 %v8542_v50  ;;  %v8561_v50 = vld [vmem:[#allocation2 + $0x367] sm:$0xff] }
 0x957   :  { %14166 = vmatprep.mubr.f32.mxu1 %v18914_v53  ;;  %v8554_v53 = vld [vmem:[#allocation2 + $0x2ef] sm:$0xff] }
 0x95a   :  { %14167 = vmatmul.mubr.f32.gmra.mrb[28].mxu1 %v18917_v1  ;;  %v8555_v1 = vld [vmem:[#allocation2 + $0x307] sm:$0xff] }
 0x95b   :  { %14169 = vmatprep.mubr.f32.mxu1 %v8545_v17  ;;  %v8562_v17 = vld [vmem:[#allocation2 + $0x36f] sm:$0xff] }
 0x95e   :  { %14170 = vmatmul.mubr.f32.gmra.mrb[30].mxu1 %v8546_v19  ;;  %v8563_v19 = vld [vmem:[#allocation2 + $0x387] sm:$0xff] }
 0x95f   :  { %14172 = vmatprep.mubr.f32.mxu1 %v8547_v30  ;;  %v8564_v30 = vld [vmem:[#allocation2 + $0x38f] sm:$0xff] }
 0x962   :  { %14173 = vmatmul.mubr.f32.gmra.mrb[32].mxu1 %v8548_v16  ;;  %v8565_v16 = vld [vmem:[#allocation2 + $0x3a7] sm:$0xff] }
 0x963   :  { %14175 = vmatprep.mubr.f32.mxu1 %v8549_v51  ;;  %v8566_v51 = vld [vmem:[#allocation2 + $0x3af] sm:$0xff] }
 0x966   :  { %14176 = vmatmul.mubr.f32.gmra.mrb[34].mxu1 %v8550_v3  ;;  %v8567_v3 = vld [vmem:[#allocation2 + $0x3c7] sm:$0xff] }
 0x967   :  { %14178 = vmatprep.mubr.f32.mxu1 %v8551_v36  ;;  %v8568_v36 = vld [vmem:[#allocation2 + $0x3cf] sm:$0xff] }
 0x96a   :  { %14179 = vmatmul.mubr.f32.gmra.mrb[36].mxu1 %v8552_v44  ;;  %v8569_v44 = vld [vmem:[#allocation2 + $0x3e7] sm:$0xff] }
 0x96b   :  { %14181 = vmatprep.mubr.f32.mxu1 %v8553_v28  ;;  %v8570_v28 = vld [vmem:[#allocation2 + $0x3ef] sm:$0xff] }
 0x96e   :  { %14182 = vmatmul.mubr.f32.gmra.mrb[38].mxu1 %v8554_v53  ;;  %v8571_v53 = vld [vmem:[#allocation2 + $0x407] sm:$0xff] }
 0x96f   :  { %14184 = vmatprep.mubr.f32.mxu1 %v8555_v1  ;;  %v8572_v1 = vld [vmem:[#allocation2 + $0x40f] sm:$0xff] }
 0x972   :  { %14185 = vmatmul.mubr.f32.gmra.mrb[40].mxu1 %v8556_v57  ;;  %v8573_v57 = vld [vmem:[#allocation2 + $0x427] sm:$0xff] }
 0x973   :  { %14187 = vmatprep.mubr.f32.mxu1 %v8557_v40  ;;  %v8574_v40 = vld [vmem:[#allocation2 + $0x42f] sm:$0xff] }
 0x976   :  { %14188 = vmatmul.mubr.f32.gmra.mrb[42].mxu1 %v8558_v9  ;;  %v8577_v9 = vld [vmem:[#allocation2 + $0x467] sm:$0xff] }
 0x977   :  { %14190 = vmatprep.mubr.f32.mxu1 %v8559_v24  ;;  %v8578_v24 = vld [vmem:[#allocation2 + $0x46f] sm:$0xff] }
 0x97a   :  { %14191 = vmatmul.mubr.f32.gmra.mrb[44].mxu1 %v8560_v62  ;;  %v9642_v62 = vld [vmem:[#allocation8 + $0x410] sm:$0xff] }
 0x97b   :  { %14193 = vmatprep.mubr.f32.mxu1 %v8561_v50  ;;  %v9643_v50 = vld [vmem:[#allocation8 + $0x418] sm:$0xff] }
 0x97e   :  { %14194 = vmatmul.mubr.f32.gmra.mrb[46].mxu1 %v8562_v17  ;;  %v15024_v17 = vpack.c.bf16 %v9643_v50, %v9642_v62  ;;  %v9593_v62 = vld [vmem:[#allocation2 + $0x169] sm:$0xff]  ;;  %v9594_v50 = vld [vmem:[#allocation2 + $0x171] sm:$0xff] }
 0x97f   :  { %14196 = vmatprep.mubr.f32.mxu1 %v8563_v19  ;;  %v9644_v19 = vld [vmem:[#allocation8 + $0x420] sm:$0xff] }
 0x982   :  { %14197 = vmatmul.mubr.f32.gmra.mrb[48].mxu1 %v8564_v30  ;;  %v9645_v30 = vld [vmem:[#allocation8 + $0x428] sm:$0xff] }
 0x983   :  { %14199 = vmatprep.mubr.f32.mxu1 %v8565_v16  ;;  %v9646_v16 = vld [vmem:[#allocation8 + $0x430] sm:$0xff] }
 0x986   :  { %14200 = vmatmul.mubr.f32.gmra.mrb[50].mxu1 %v8566_v51  ;;  %v9648_v51 = vld [vmem:[#allocation8 + $0x440] sm:$0xff] }
 0x987   :  { %14202 = vmatprep.mubr.f32.mxu1 %v8567_v3  ;;  %v9649_v3 = vld [vmem:[#allocation8 + $0x448] sm:$0xff] }
 0x98a   :  { %14203 = vmatmul.mubr.f32.gmra.mrb[52].mxu1 %v8568_v36  ;;  %v9653_v36 = vld [vmem:[#allocation8 + $0x468] sm:$0xff] }
 0x98b   :  { %14205 = vmatprep.mubr.f32.mxu1 %v8569_v44  ;;  %v9655_v44 = vld [vmem:[#allocation8 + $0x478] sm:$0xff] }
 0x98e   :  { %14206 = vmatmul.mubr.f32.gmra.mrb[54].mxu1 %v8570_v28  ;;  %v9586_v28 = vld [vmem:[#allocation2 + $0xf1] sm:$0xff] }
 0x98f   :  { %14208 = vmatprep.mubr.f32.mxu1 %v8571_v53  ;;  %v9587_v53 = vld [vmem:[#allocation2 + $0x109] sm:$0xff] }
 0x992   :  { %14209 = vmatmul.mubr.f32.gmra.mrb[56].mxu1 %v8572_v1  ;;  %v9588_v1 = vld [vmem:[#allocation2 + $0x111] sm:$0xff] }
 0x993   :  { %14211 = vmatprep.mubr.f32.mxu1 %v8573_v57  ;;  %v9589_v57 = vld [vmem:[#allocation2 + $0x129] sm:$0xff] }
 0x996   :  { %14212 = vmatmul.mubr.f32.gmra.mrb[58].mxu1 %v8574_v40  ;;  %v9590_v40 = vld [vmem:[#allocation2 + $0x131] sm:$0xff] }
 0x997   :  { %14214 = vmatprep.mubr.f32.mxu1 %v18950_v26  ;;  %v15028_v26 = vpack.c.bf16 %v9645_v30, %v9644_v19  ;;  %v9596_v19 = vld [vmem:[#allocation2 + $0x191] sm:$0xff]  ;;  %v9597_v30 = vld [vmem:[#allocation2 + $0x1a9] sm:$0xff] }
 0x99a   :  { %14215 = vmatmul.mubr.f32.gmra.mrb[60].mxu1 %v18953_v37  ;;  %v9647_v37 = vld [vmem:[#allocation8 + $0x438] sm:$0xff] }
 0x99b   :  { %14217 = vmatprep.mubr.f32.mxu1 %v8577_v9  ;;  %v9591_v9 = vld [vmem:[#allocation2 + $0x149] sm:$0xff] }
 0x99e   :  { %14218 = vmatmul.mubr.f32.gmra.mrb[62].mxu1 %v8578_v24  ;;  %v9592_v24 = vld [vmem:[#allocation2 + $0x151] sm:$0xff] }
 0x99f   :  { %14252 = vmatprep.mubr.f32.mxu1 %v18956_v59  ;;  %v15032_v59 = vpack.c.bf16 %v9647_v37, %v9646_v16  ;;  %v9599_v16 = vld [vmem:[#allocation2 + $0x1c9] sm:$0xff]  ;;  %v9600_v37 = vld [vmem:[#allocation2 + $0x1d1] sm:$0xff] }
 0x9a2   :  { %14253 = vmatmul.mubr.f32.vlgmr.msra.gmra.mrb[0].mxu1 %v18960_v7  ;;  %v15036_v7 = vpack.c.bf16 %v9649_v3, %v9648_v51  ;;  %v9602_v51 = vld [vmem:[#allocation2 + $0x1f1] sm:$0xff]  ;;  %v9605_v3 = vld [vmem:[#allocation2 + $0x229] sm:$0xff] }
 0x9a3   :  { %14255 = vmatprep.mubr.f32.mxu1 %v18963_v22  ;;  %15023 = vmatpush3.bf16.msra.mxu1 %v19217_v61  ;;  %v9650_v22 = vld [vmem:[#allocation8 + $0x450] sm:$0xff]  ;;  %v9651_v61 = vld [vmem:[#allocation8 + $0x458] sm:$0xff] }
 0x9a4   :  { %15025 = vmatprep.subr.bf16.mxu1 %v15024_v17 }
 0x9a6   :  { %14256 = vmatmul.mubr.f32.gmra.mrb[2].mxu1 %v18966_v54  ;;  %v15040_v54 = vpack.c.bf16 %v9651_v61, %v9650_v22  ;;  %v9607_v22 = vld [vmem:[#allocation2 + $0x289] sm:$0xff]  ;;  %v9608_v61 = vld [vmem:[#allocation2 + $0x291] sm:$0xff] }
 0x9a7   :  { %14258 = vmatprep.mubr.f32.mxu1 %v18969_v63  ;;  %15027 = vmatpush3.bf16.msra.mxu1 %v15024_v17  ;;  %v9652_v63 = vld [vmem:[#allocation8 + $0x460] sm:$0xff]  ;;  %v9595_v17 = vld [vmem:[#allocation2 + $0x189] sm:$0xff] }
 0x9a8   :  { %15029 = vmatprep.subr.bf16.mxu1 %v15028_v26 }
 0x9aa   :  { %14259 = vmatmul.mubr.f32.gmra.mrb[4].mxu1 %v18972_v21  ;;  %v15044_v21 = vpack.c.bf16 %v9653_v36, %v9652_v63  ;;  %v9610_v63 = vld [vmem:[#allocation2 + $0x2b1] sm:$0xff]  ;;  %v9611_v36 = vld [vmem:[#allocation2 + $0x2c9] sm:$0xff] }
 0x9ab   :  { %14261 = vmatprep.mubr.f32.mxu1 %v18975_v5  ;;  %15031 = vmatpush3.bf16.msra.mxu1 %v15028_v26  ;;  %v9654_v5 = vld [vmem:[#allocation8 + $0x470] sm:$0xff] }
 0x9ac   :  { %15033 = vmatprep.subr.bf16.mxu1 %v15032_v59  ;;  %v9598_v26 = vld [vmem:[#allocation2 + $0x1b1] sm:$0xff] }
 0x9ae   :  { %14262 = vmatmul.mubr.f32.gmra.mrb[6].mxu1 %v18978_v47  ;;  %v15048_v47 = vpack.c.bf16 %v9655_v44, %v9654_v5  ;;  %v9613_v5 = vld [vmem:[#allocation2 + $0x2e9] sm:$0xff]  ;;  %v9616_v44 = vld [vmem:[#allocation2 + $0x311] sm:$0xff] }
 0x9af   :  { %14264 = vmatprep.mubr.f32.mxu1 %v18981_v12  ;;  %15035 = vmatpush3.bf16.msra.mxu1 %v15032_v59  ;;  %v16089_v12 = vld [vmem:[#allocation2 + $0x8] sm:$0xff] }
 0x9b0   :  { %15037 = vmatprep.subr.bf16.mxu1 %v15036_v7  ;;  %v9601_v59 = vld [vmem:[#allocation2 + $0x1e9] sm:$0xff] }
 0x9b2   :  { %14265 = vmatmul.mubr.f32.gmra.mrb[8].mxu1 %v18984_v25  ;;  %v21168_v25 = vld [vmem:[#allocation64_spill] sm:$0xff] }
 0x9b3   :  { %14267 = vmatprep.mubr.f32.mxu1 %v18987_v6  ;;  %15039 = vmatpush3.bf16.msra.mxu1 %v15036_v7  ;;  %v21169_v6 = vld [vmem:[#allocation65_spill] sm:$0xff]  ;;  %v9606_v7 = vld [vmem:[#allocation2 + $0x231] sm:$0xff] }
 0x9b4   :  { %15041 = vmatprep.subr.bf16.mxu1 %v15040_v54 }
 0x9b6   :  { %14268 = vmatmul.mubr.f32.gmra.mrb[10].mxu1 %v18990_v15  ;;  %v21170_v15 = vld [vmem:[#allocation66_spill] sm:$0xff] }
 0x9b7   :  { %14270 = vmatprep.mubr.f32.mxu1 %v18993_v11  ;;  %15043 = vmatpush3.bf16.msra.mxu1 %v15040_v54  ;;  %v21171_v11 = vld [vmem:[#allocation67_spill] sm:$0xff] }
 0x9b8   :  { %15045 = vmatprep.subr.bf16.mxu1 %v15044_v21  ;;  %v9609_v54 = vld [vmem:[#allocation2 + $0x2a9] sm:$0xff] }
 0x9ba   :  { %14271 = vmatmul.mubr.f32.gmra.mrb[12].mxu1 %v18998_v29  ;;  %v21172_v29 = vld [vmem:[#allocation57_spill] sm:$0xff] }
 0x9bb   :  { %14273 = vmatprep.mubr.f32.mxu1 %v19001_v13  ;;  %15047 = vmatpush3.bf16.msra.mxu1 %v15044_v21  ;;  %v21173_v13 = vld [vmem:[#allocation60_spill] sm:$0xff] }
 0x9bc   :  { %15049 = vmatprep.subr.bf16.mxu1 %v15048_v47  ;;  %v9612_v21 = vld [vmem:[#allocation2 + $0x2d1] sm:$0xff] }
 0x9be   :  { %14274 = vmatmul.mubr.f32.gmra.mrb[14].mxu1 %v19005_v60  ;;  %v21174_v60 = vld [vmem:[#allocation68_spill] sm:$0xff] }
 0x9bf   :  { %14276 = vmatprep.mubr.f32.mxu1 %v19008_v18  ;;  %15051 = vmatpush3.bf16.msra.mxu1 %v15048_v47  ;;  %v21175_v18 = vld [vmem:[#allocation69_spill] sm:$0xff]  ;;  %v9617_v47 = vld [vmem:[#allocation2 + $0x329] sm:$0xff] }
 0x9c2   :  { %14277 = vmatmul.mubr.f32.gmra.mrb[16].mxu1 %v19011_v39  ;;  %v21176_v39 = vld [vmem:[#allocation70_spill] sm:$0xff] }
 0x9c3   :  { %14279 = vmatprep.mubr.f32.mxu1 %v19014_v31  ;;  %v21177_v31 = vld [vmem:[#allocation71_spill] sm:$0xff] }
 0x9c6   :  { %14280 = vmatmul.mubr.f32.gmra.mrb[18].mxu1 %v19017_v45  ;;  %v21178_v45 = vld [vmem:[#allocation72_spill] sm:$0xff] }
 0x9c7   :  { %14282 = vmatprep.mubr.f32.mxu1 %v19020_v35  ;;  %v21179_v35 = vld [vmem:[#allocation73_spill] sm:$0xff] }
 0x9ca   :  { %14283 = vmatmul.mubr.f32.gmra.mrb[20].mxu1 %v19023_v33  ;;  %v21180_v33 = vld [vmem:[#allocation74_spill] sm:$0xff] }
 0x9cb   :  { %14285 = vmatprep.mubr.f32.mxu1 %v19026_v38  ;;  %v21181_v38 = vld [vmem:[#allocation75_spill] sm:$0xff] }
 0x9ce   :  { %14286 = vmatmul.mubr.f32.gmra.mrb[22].mxu1 %v19029_v10  ;;  %v21182_v10 = vld [vmem:[#allocation76_spill] sm:$0xff] }
 0x9cf   :  { %14288 = vmatprep.mubr.f32.mxu1 %v19032_v0  ;;  %v21183_v0 = vld [vmem:[#allocation85_spill] sm:$0xff] }
 0x9d2   :  { %14289 = vmatmul.mubr.f32.gmra.mrb[24].mxu1 %v19035_v2  ;;  %v21184_v2 = vld [vmem:[#allocation86_spill] sm:$0xff] }
 0x9d3   :  { %14291 = vmatprep.mubr.f32.mxu1 %v19038_v41  ;;  %v21185_v41 = vld [vmem:[#allocation87_spill] sm:$0xff] }
 0x9d6   :  { %14292 = vmatmul.mubr.f32.gmra.mrb[26].mxu1 %v19041_v8  ;;  %v21186_v8 = vld [vmem:[#allocation88_spill] sm:$0xff] }
 0x9d7   :  { %14294 = vmatprep.mubr.f32.mxu1 %v19044_v58  ;;  %v21187_v58 = vld [vmem:[#allocation89_spill] sm:$0xff] }
 0x9da   :  { %14295 = vmatmul.mubr.f32.gmra.mrb[28].mxu1 %v19047_v52  ;;  %v9575_v52 = vld [vmem:[#allocation2 + $0x49] sm:$0xff] }
 0x9db   :  { %14297 = vmatprep.mubr.f32.mxu1 %v16089_v12 }
 0x9de   :  { %14298 = vmatmul.mubr.f32.gmra.mrb[30].mxu1 %v16089_v12 }
 0x9df   :  { %14300 = vmatprep.mubr.f32.mxu1 %v19050_v55  ;;  %v9576_v55 = vld [vmem:[#allocation2 + $0x51] sm:$0xff] }
 0x9e2   :  { %14301 = vmatmul.mubr.f32.gmra.mrb[32].mxu1 %v19053_v4  ;;  %v9577_v4 = vld [vmem:[#allocation2 + $0x69] sm:$0xff] }
 0x9e3   :  { %14303 = vmatprep.mubr.f32.mxu1 %v19056_v56  ;;  %v9578_v56 = vld [vmem:[#allocation2 + $0x71] sm:$0xff] }
 0x9e6   :  { %14304 = vmatmul.mubr.f32.gmra.mrb[34].mxu1 %v19059_v46  ;;  %v9579_v46 = vld [vmem:[#allocation2 + $0x89] sm:$0xff] }
 0x9e7   :  { %14306 = vmatprep.mubr.f32.mxu1 %v19062_v14  ;;  %v9580_v14 = vld [vmem:[#allocation2 + $0x91] sm:$0xff] }
 0x9ea   :  { %14307 = vmatmul.mubr.f32.gmra.mrb[36].mxu1 %v19065_v42  ;;  %v9581_v42 = vld [vmem:[#allocation2 + $0xa9] sm:$0xff] }
 0x9eb   :  { %14309 = vmatprep.mubr.f32.mxu1 %v19068_v23  ;;  %v9582_v23 = vld [vmem:[#allocation2 + $0xb1] sm:$0xff] }
 0x9ee   :  { %14310 = vmatmul.mubr.f32.gmra.mrb[38].mxu1 %v19071_v34  ;;  %v9583_v34 = vld [vmem:[#allocation2 + $0xc9] sm:$0xff] }
 0x9ef   :  { %14312 = vmatprep.mubr.f32.mxu1 %v19074_v20  ;;  %v9584_v20 = vld [vmem:[#allocation2 + $0xd1] sm:$0xff] }
 0x9f2   :  { %14313 = vmatmul.mubr.f32.gmra.mrb[40].mxu1 %v19077_v48  ;;  %v9585_v48 = vld [vmem:[#allocation2 + $0xe9] sm:$0xff] }
 0x9f3   :  { %14315 = vmatprep.mubr.f32.mxu1 %v21168_v25  ;;  %v9619_v25 = vld [vmem:[#allocation2 + $0x349] sm:$0xff] }
 0x9f6   :  { %14316 = vmatmul.mubr.f32.gmra.mrb[42].mxu1 %v21169_v6  ;;  %v9620_v6 = vld [vmem:[#allocation2 + $0x351] sm:$0xff] }
 0x9f7   :  { %14318 = vmatprep.mubr.f32.mxu1 %v21170_v15  ;;  %v9621_v15 = vld [vmem:[#allocation2 + $0x369] sm:$0xff] }
 0x9fa   :  { %14319 = vmatmul.mubr.f32.gmra.mrb[44].mxu1 %v21171_v11  ;;  %v9622_v11 = vld [vmem:[#allocation2 + $0x371] sm:$0xff] }
 0x9fb   :  { %14321 = vmatprep.mubr.f32.mxu1 %v21172_v29  ;;  %v9623_v29 = vld [vmem:[#allocation2 + $0x389] sm:$0xff] }
 0x9fe   :  { %14322 = vmatmul.mubr.f32.gmra.mrb[46].mxu1 %v21173_v13  ;;  %v9624_v13 = vld [vmem:[#allocation2 + $0x391] sm:$0xff] }
 0x9ff   :  { %14324 = vmatprep.mubr.f32.mxu1 %v21174_v60  ;;  %v9625_v60 = vld [vmem:[#allocation2 + $0x3a9] sm:$0xff] }
 0xa02   :  { %14325 = vmatmul.mubr.f32.gmra.mrb[48].mxu1 %v21175_v18  ;;  %v9626_v18 = vld [vmem:[#allocation2 + $0x3b1] sm:$0xff] }
 0xa03   :  { %14327 = vmatprep.mubr.f32.mxu1 %v21176_v39  ;;  %v9627_v39 = vld [vmem:[#allocation2 + $0x3c9] sm:$0xff] }
 0xa06   :  { %14328 = vmatmul.mubr.f32.gmra.mrb[50].mxu1 %v21177_v31  ;;  %v9628_v31 = vld [vmem:[#allocation2 + $0x3d1] sm:$0xff] }
 0xa07   :  { %14330 = vmatprep.mubr.f32.mxu1 %v21178_v45  ;;  %v9629_v45 = vld [vmem:[#allocation2 + $0x3e9] sm:$0xff] }
 0xa0a   :  { %14331 = vmatmul.mubr.f32.gmra.mrb[52].mxu1 %v21179_v35  ;;  %v9630_v35 = vld [vmem:[#allocation2 + $0x3f1] sm:$0xff] }
 0xa0b   :  { %14333 = vmatprep.mubr.f32.mxu1 %v21180_v33  ;;  %v9631_v33 = vld [vmem:[#allocation2 + $0x409] sm:$0xff] }
 0xa0e   :  { %14334 = vmatmul.mubr.f32.gmra.mrb[54].mxu1 %v21181_v38  ;;  %v9632_v38 = vld [vmem:[#allocation2 + $0x411] sm:$0xff] }
 0xa0f   :  { %14336 = vmatprep.mubr.f32.mxu1 %v21182_v10  ;;  %v9633_v10 = vld [vmem:[#allocation2 + $0x429] sm:$0xff] }
 0xa12   :  { %14337 = vmatmul.mubr.f32.gmra.mrb[56].mxu1 %v21183_v0  ;;  %v9634_v0 = vld [vmem:[#allocation2 + $0x431] sm:$0xff] }
 0xa13   :  { %14339 = vmatprep.mubr.f32.mxu1 %v21184_v2  ;;  %v9637_v2 = vld [vmem:[#allocation2 + $0x469] sm:$0xff] }
 0xa16   :  { %14340 = vmatmul.mubr.f32.gmra.mrb[58].mxu1 %v21185_v41  ;;  %v9638_v41 = vld [vmem:[#allocation2 + $0x471] sm:$0xff] }
 0xa17   :  { %14342 = vmatprep.mubr.f32.mxu1 %v21186_v8 }
 0xa1a   :  { %14343 = vmatmul.mubr.f32.gmra.mrb[60].mxu1 %v21187_v58 }
 0xa1b   :  { %14345 = vmatprep.mubr.f32.mxu1 %v16089_v12 }
 0xa1e   :  { %14346 = vmatmul.mubr.f32.gmra.mrb[62].mxu1 %v16089_v12  ;;  %v9618_v12 = vld [vmem:[#allocation2 + $0x331] sm:$0xff] }
 0xa1f   :  { %14380 = vmatprep.mubr.f32.mxu1 %v9575_v52 }
 0xa22   :  { %14381 = vmatmul.mubr.f32.vlgmr.msra.gmra.mrb[0].mxu1 %v9576_v55 }
 0xa23   :  { %14383 = vmatprep.mubr.f32.mxu1 %v9577_v4 }
 0xa26   :  { %14384 = vmatmul.mubr.f32.gmra.mrb[2].mxu1 %v9578_v56 }
 0xa27   :  { %14386 = vmatprep.mubr.f32.mxu1 %v9579_v46 }
 0xa2a   :  { %14387 = vmatmul.mubr.f32.gmra.mrb[4].mxu1 %v9580_v14 }
 0xa2b   :  { %14389 = vmatprep.mubr.f32.mxu1 %v9581_v42 }
 0xa2e   :  { %14390 = vmatmul.mubr.f32.gmra.mrb[6].mxu1 %v9582_v23 }
 0xa2f   :  { %14392 = vmatprep.mubr.f32.mxu1 %v9583_v34 }
 0xa32   :  { %14393 = vmatmul.mubr.f32.gmra.mrb[8].mxu1 %v9584_v20 }
 0xa33   :  { %14395 = vmatprep.mubr.f32.mxu1 %v9585_v48 }
 0xa36   :  { %14396 = vmatmul.mubr.f32.gmra.mrb[10].mxu1 %v9586_v28 }
 0xa37   :  { %14398 = vmatprep.mubr.f32.mxu1 %v9587_v53 }
 0xa3a   :  { %14399 = vmatmul.mubr.f32.gmra.mrb[12].mxu1 %v9588_v1 }
 0xa3b   :  { %14401 = vmatprep.mubr.f32.mxu1 %v9589_v57 }
 0xa3e   :  { %14402 = vmatmul.mubr.f32.gmra.mrb[14].mxu1 %v9590_v40 }
 0xa3f   :  { %14404 = vmatprep.mubr.f32.mxu1 %v9591_v9 }
 0xa42   :  { %14405 = vmatmul.mubr.f32.gmra.mrb[16].mxu1 %v9592_v24 }
 0xa43   :  { %14407 = vmatprep.mubr.f32.mxu1 %v9593_v62 }
 0xa46   :  { %14408 = vmatmul.mubr.f32.gmra.mrb[18].mxu1 %v9594_v50 }
 0xa47   :  { %14410 = vmatprep.mubr.f32.mxu1 %v9595_v17 }
 0xa4a   :  { %14411 = vmatmul.mubr.f32.gmra.mrb[20].mxu1 %v9596_v19 }
 0xa4b   :  { %14413 = vmatprep.mubr.f32.mxu1 %v9597_v30 }
 0xa4e   :  { %14414 = vmatmul.mubr.f32.gmra.mrb[22].mxu1 %v9598_v26 }
 0xa4f   :  { %14416 = vmatprep.mubr.f32.mxu1 %v9599_v16 }
 0xa52   :  { %14417 = vmatmul.mubr.f32.gmra.mrb[24].mxu1 %v9600_v37 }
 0xa53   :  { %14419 = vmatprep.mubr.f32.mxu1 %v9601_v59 }
 0xa56   :  { %14420 = vmatmul.mubr.f32.gmra.mrb[26].mxu1 %v9602_v51 }
 0xa57   :  { %14422 = vmatprep.mubr.f32.mxu1 %v19174_v49  ;;  %v9614_v49 = vld [vmem:[#allocation2 + $0x2f1] sm:$0xff] }
 0xa5a   :  { %14423 = vmatmul.mubr.f32.gmra.mrb[28].mxu1 %v19177_v32  ;;  %v9615_v32 = vld [vmem:[#allocation2 + $0x309] sm:$0xff] }
 0xa5b   :  { %14425 = vmatprep.mubr.f32.mxu1 %v9605_v3 }
 0xa5e   :  { %14426 = vmatmul.mubr.f32.gmra.mrb[30].mxu1 %v9606_v7 }
 0xa5f   :  { %14428 = vmatprep.mubr.f32.mxu1 %v9607_v22 }
 0xa62   :  { %14429 = vmatmul.mubr.f32.gmra.mrb[32].mxu1 %v9608_v61 }
 0xa63   :  { %14431 = vmatprep.mubr.f32.mxu1 %v9609_v54 }
 0xa66   :  { %14432 = vmatmul.mubr.f32.gmra.mrb[34].mxu1 %v9610_v63 }
 0xa67   :  { %14434 = vmatprep.mubr.f32.mxu1 %v9611_v36 }
 0xa6a   :  { %14435 = vmatmul.mubr.f32.gmra.mrb[36].mxu1 %v9612_v21 }
 0xa6b   :  { %14437 = vmatprep.mubr.f32.mxu1 %v9613_v5 }
 0xa6e   :  { %14438 = vmatmul.mubr.f32.gmra.mrb[38].mxu1 %v9614_v49 }
 0xa6f   :  { %14440 = vmatprep.mubr.f32.mxu1 %v9615_v32 }
 0xa72   :  { %14441 = vmatmul.mubr.f32.gmra.mrb[40].mxu1 %v9616_v44 }
 0xa73   :  { %14443 = vmatprep.mubr.f32.mxu1 %v9617_v47 }
 0xa76   :  { %14444 = vmatmul.mubr.f32.gmra.mrb[42].mxu1 %v9618_v12 }
 0xa77   :  { %14446 = vmatprep.mubr.f32.mxu1 %v9619_v25 }
 0xa7a   :  { %14447 = vmatmul.mubr.f32.gmra.mrb[44].mxu1 %v9620_v6 }
 0xa7b   :  { %14449 = vmatprep.mubr.f32.mxu1 %v9621_v15 }
 0xa7e   :  { %14450 = vmatmul.mubr.f32.gmra.mrb[46].mxu1 %v9622_v11 }
 0xa7f   :  { %14452 = vmatprep.mubr.f32.mxu1 %v9623_v29 }
 0xa82   :  { %14453 = vmatmul.mubr.f32.gmra.mrb[48].mxu1 %v9624_v13 }
 0xa83   :  { %14455 = vmatprep.mubr.f32.mxu1 %v9625_v60 }
 0xa86   :  { %14456 = vmatmul.mubr.f32.gmra.mrb[50].mxu1 %v9626_v18 }
 0xa87   :  { %14458 = vmatprep.mubr.f32.mxu1 %v9627_v39 }
 0xa8a   :  { %14459 = vmatmul.mubr.f32.gmra.mrb[52].mxu1 %v9628_v31 }
 0xa8b   :  { %14461 = vmatprep.mubr.f32.mxu1 %v9629_v45 }
 0xa8e   :  { %14462 = vmatmul.mubr.f32.gmra.mrb[54].mxu1 %v9630_v35 }
 0xa8f   :  { %14464 = vmatprep.mubr.f32.mxu1 %v9631_v33 }
 0xa92   :  { %14465 = vmatmul.mubr.f32.gmra.mrb[56].mxu1 %v9632_v38 }
 0xa93   :  { %14467 = vmatprep.mubr.f32.mxu1 %v9633_v10 }
 0xa96   :  { %14468 = vmatmul.mubr.f32.gmra.mrb[58].mxu1 %v9634_v0 }
 0xa97   :  { %14470 = vmatprep.mubr.f32.mxu1 %v19210_v27 }
 0xa9a   :  { %14471 = vmatmul.mubr.f32.gmra.mrb[60].mxu1 %v19213_v43 }
 0xa9b   :  { %14473 = vmatprep.mubr.f32.mxu1 %v9637_v2 }
 0xa9e   :  { %14474 = vmatmul.mubr.f32.gmra.mrb[62].mxu1 %v9638_v41 }
 0xaf5   :  { %v19289_v8 = vpop.f32.mrb[0].mxu1 }
 0xaf6   :  { %v10175_v58 = vmul.f32 %v19289_v8, %v19289_v8  ;;  %v19293_v52 = vpop.f32.mrb[1].mxu1 }
 0xaf7   :  { %v10105_v55 = vadd.f32 %v19289_v8, %v19293_v52  ;;  %v10174_v4 = vmul.f32 %v19293_v52, %v19293_v52 }
 0xaf9   :  { %v10238_v27 = vadd.f32 %v10175_v58, %v10174_v4  ;;  %v19299_v56 = vpop.f32.mrb[2].mxu1 }
 0xafa   :  { %v19301_v43 = vpop.f32.mrb[3].mxu1  ;;  %v10177_v42 = vmul.f32 %v19299_v56, %v19299_v56 }
 0xafb   :  { %v10106_v46 = vadd.f32 %v10105_v55, %v19301_v43  ;;  %v10176_v14 = vmul.f32 %v19301_v43, %v19301_v43 }
 0xafd   :  { %v10107_v23 = vadd.f32 %v19299_v56, %v10106_v46  ;;  %v10239_v34 = vadd.f32 %v10238_v27, %v10176_v14  ;;  %v19309_v20 = vpop.f32.mrb[4].mxu1 }
 0xafe   :  { %v19311_v48 = vpop.f32.mrb[5].mxu1  ;;  %v10179_v57 = vmul.f32 %v19309_v20, %v19309_v20 }
 0xaff   :  { %v10240_v28 = vadd.f32 %v10239_v34, %v10177_v42  ;;  %v10108_v53 = vadd.f32 %v10107_v23, %v19311_v48  ;;  %v10178_v1 = vmul.f32 %v19311_v48, %v19311_v48 }
 0xb01   :  { %v10241_v40 = vadd.f32 %v10240_v28, %v10178_v1  ;;  %v19318_v9 = vpop.f32.mrb[6].mxu1  ;;  %v10109_v24 = vadd.f32 %v19309_v20, %v10108_v53 }
 0xb02   :  { %v19321_v62 = vpop.f32.mrb[7].mxu1  ;;  %v10181_v30 = vmul.f32 %v19318_v9, %v19318_v9 }
 0xb03   :  { %v10110_v50 = vadd.f32 %v10109_v24, %v19321_v62  ;;  %v10180_v17 = vmul.f32 %v19321_v62, %v19321_v62  ;;  %v10242_v19 = vadd.f32 %v10241_v40, %v10179_v57 }
 0xb05   :  { %v10243_v26 = vadd.f32 %v10242_v19, %v10180_v17  ;;  %v19328_v16 = vpop.f32.mrb[8].mxu1  ;;  %v10111_v37 = vadd.f32 %v19318_v9, %v10110_v50 }
 0xb06   :  { %v19331_v59 = vpop.f32.mrb[9].mxu1  ;;  %v10183_v22 = vmul.f32 %v19328_v16, %v19328_v16 }
 0xb07   :  { %v10112_v51 = vadd.f32 %v10111_v37, %v19331_v59  ;;  %v10182_v3 = vmul.f32 %v19331_v59, %v19331_v59  ;;  %v10244_v7 = vadd.f32 %v10243_v26, %v10181_v30 }
 0xb09   :  { %v10245_v61 = vadd.f32 %v10244_v7, %v10182_v3  ;;  %v19338_v54 = vpop.f32.mrb[10].mxu1  ;;  %v10113_v63 = vadd.f32 %v19328_v16, %v10112_v51 }
 0xb0a   :  { %v19341_v36 = vpop.f32.mrb[11].mxu1  ;;  %v10185_v32 = vmul.f32 %v19338_v54, %v19338_v54 }
 0xb0b   :  { %v10114_v21 = vadd.f32 %v10113_v63, %v19341_v36  ;;  %v10184_v5 = vmul.f32 %v19341_v36, %v19341_v36  ;;  %v10246_v49 = vadd.f32 %v10245_v61, %v10183_v22 }
 0xb0d   :  { %v10247_v44 = vadd.f32 %v10246_v49, %v10184_v5  ;;  %v19348_v47 = vpop.f32.mrb[12].mxu1  ;;  %v10115_v12 = vadd.f32 %v19338_v54, %v10114_v21 }
 0xb0e   :  { %v19351_v25 = vpop.f32.mrb[13].mxu1  ;;  %v10187_v29 = vmul.f32 %v19348_v47, %v19348_v47 }
 0xb0f   :  { %v10116_v6 = vadd.f32 %v10115_v12, %v19351_v25  ;;  %v10186_v15 = vmul.f32 %v19351_v25, %v19351_v25  ;;  %v10248_v11 = vadd.f32 %v10247_v44, %v10185_v32 }
 0xb11   :  { %v10249_v13 = vadd.f32 %v10248_v11, %v10186_v15  ;;  %v19358_v60 = vpop.f32.mrb[14].mxu1  ;;  %v10117_v18 = vadd.f32 %v19348_v47, %v10116_v6 }
 0xb12   :  { %v19361_v39 = vpop.f32.mrb[15].mxu1  ;;  %v10189_v33 = vmul.f32 %v19358_v60, %v19358_v60 }
 0xb13   :  { %v10118_v31 = vadd.f32 %v10117_v18, %v19361_v39  ;;  %v10188_v45 = vmul.f32 %v19361_v39, %v19361_v39  ;;  %v10250_v35 = vadd.f32 %v10249_v13, %v10187_v29 }
 0xb15   :  { %v10251_v38 = vadd.f32 %v10250_v35, %v10188_v45  ;;  %v19368_v10 = vpop.f32.mrb[16].mxu1  ;;  %v10119_v0 = vadd.f32 %v19358_v60, %v10118_v31 }
 0xb16   :  { %v19371_v2 = vpop.f32.mrb[17].mxu1  ;;  %v10191_v4 = vmul.f32 %v19368_v10, %v19368_v10 }
 0xb17   :  { %v10120_v41 = vadd.f32 %v10119_v0, %v19371_v2  ;;  %v10190_v58 = vmul.f32 %v19371_v2, %v19371_v2  ;;  %v10252_v55 = vadd.f32 %v10251_v38, %v10189_v33 }
 0xb19   :  { %v10253_v27 = vadd.f32 %v10252_v55, %v10190_v58  ;;  %v19378_v46 = vpop.f32.mrb[18].mxu1  ;;  %v10121_v14 = vadd.f32 %v19368_v10, %v10120_v41 }
 0xb1a   :  { %v19381_v42 = vpop.f32.mrb[19].mxu1  ;;  %v10193_v53 = vmul.f32 %v19378_v46, %v19378_v46 }
 0xb1b   :  { %v10122_v23 = vadd.f32 %v10121_v14, %v19381_v42  ;;  %v10192_v34 = vmul.f32 %v19381_v42, %v19381_v42  ;;  %v10254_v28 = vadd.f32 %v10253_v27, %v10191_v4 }
 0xb1d   :  { %v10255_v1 = vadd.f32 %v10254_v28, %v10192_v34  ;;  %v19388_v57 = vpop.f32.mrb[20].mxu1  ;;  %v10123_v40 = vadd.f32 %v19378_v46, %v10122_v23 }
 0xb1e   :  { %v19391_v24 = vpop.f32.mrb[21].mxu1  ;;  %v10195_v30 = vmul.f32 %v19388_v57, %v19388_v57 }
 0xb1f   :  { %v10124_v50 = vadd.f32 %v10123_v40, %v19391_v24  ;;  %v10194_v17 = vmul.f32 %v19391_v24, %v19391_v24  ;;  %v10256_v19 = vadd.f32 %v10255_v1, %v10193_v53 }
 0xb21   :  { %v10257_v26 = vadd.f32 %v10256_v19, %v10194_v17  ;;  %v19398_v37 = vpop.f32.mrb[22].mxu1  ;;  %v10125_v51 = vadd.f32 %v19388_v57, %v10124_v50 }
 0xb22   :  { %v19401_v3 = vpop.f32.mrb[23].mxu1  ;;  %v10197_v63 = vmul.f32 %v19398_v37, %v19398_v37 }
 0xb23   :  { %v10126_v7 = vadd.f32 %v10125_v51, %v19401_v3  ;;  %v10196_v22 = vmul.f32 %v19401_v3, %v19401_v3  ;;  %v10258_v61 = vadd.f32 %v10257_v26, %v10195_v30 }
 0xb25   :  { %v10259_v21 = vadd.f32 %v10258_v61, %v10196_v22  ;;  %v19408_v5 = vpop.f32.mrb[24].mxu1  ;;  %v10127_v49 = vadd.f32 %v19398_v37, %v10126_v7 }
 0xb26   :  { %v19411_v32 = vpop.f32.mrb[25].mxu1  ;;  %v10199_v15 = vmul.f32 %v19408_v5, %v19408_v5 }
 0xb27   :  { %v10128_v44 = vadd.f32 %v10127_v49, %v19411_v32  ;;  %v10198_v12 = vmul.f32 %v19411_v32, %v19411_v32  ;;  %v10260_v6 = vadd.f32 %v10259_v21, %v10197_v63 }
 0xb29   :  { %v10261_v11 = vadd.f32 %v10260_v6, %v10198_v12  ;;  %v19418_v29 = vpop.f32.mrb[26].mxu1  ;;  %v10129_v13 = vadd.f32 %v19408_v5, %v10128_v44 }
 0xb2a   :  { %v19421_v18 = vpop.f32.mrb[27].mxu1  ;;  %v10201_v33 = vmul.f32 %v19418_v29, %v19418_v29 }
 0xb2b   :  { %v10130_v31 = vadd.f32 %v10129_v13, %v19421_v18  ;;  %v10200_v45 = vmul.f32 %v19421_v18, %v19421_v18  ;;  %v10262_v35 = vadd.f32 %v10261_v11, %v10199_v15 }
 0xb2d   :  { %v10263_v38 = vadd.f32 %v10262_v35, %v10200_v45  ;;  %v19428_v0 = vpop.f32.mrb[28].mxu1  ;;  %v10131_v41 = vadd.f32 %v19418_v29, %v10130_v31 }
 0xb2e   :  { %v19431_v58 = vpop.f32.mrb[29].mxu1  ;;  %v10203_v14 = vmul.f32 %v19428_v0, %v19428_v0 }
 0xb2f   :  { %v10132_v55 = vadd.f32 %v10131_v41, %v19431_v58  ;;  %v10202_v4 = vmul.f32 %v19431_v58, %v19431_v58  ;;  %v10264_v27 = vadd.f32 %v10263_v38, %v10201_v33 }
 0xb31   :  { %v10265_v23 = vadd.f32 %v10264_v27, %v10202_v4  ;;  %v19438_v34 = vpop.f32.mrb[30].mxu1  ;;  %v10133_v28 = vadd.f32 %v19428_v0, %v10132_v55 }
 0xb32   :  { %v19441_v53 = vpop.f32.mrb[31].mxu1  ;;  %v10205_v17 = vmul.f32 %v19438_v34, %v19438_v34 }
 0xb33   :  { %v10134_v1 = vadd.f32 %v10133_v28, %v19441_v53  ;;  %v10204_v40 = vmul.f32 %v19441_v53, %v19441_v53  ;;  %v10266_v50 = vadd.f32 %v10265_v23, %v10203_v14 }
 0xb35   :  { %v10267_v19 = vadd.f32 %v10266_v50, %v10204_v40  ;;  %v19448_v30 = vpop.f32.mrb[32].mxu1  ;;  %v10135_v26 = vadd.f32 %v19438_v34, %v10134_v1 }
 0xb36   :  { %v19451_v51 = vpop.f32.mrb[33].mxu1  ;;  %v10207_v63 = vmul.f32 %v19448_v30, %v19448_v30 }
 0xb37   :  { %v10136_v7 = vadd.f32 %v10135_v26, %v19451_v51  ;;  %v10206_v22 = vmul.f32 %v19451_v51, %v19451_v51  ;;  %v10268_v61 = vadd.f32 %v10267_v19, %v10205_v17 }
 0xb39   :  { %v10269_v21 = vadd.f32 %v10268_v61, %v10206_v22  ;;  %v19458_v49 = vpop.f32.mrb[34].mxu1  ;;  %v10137_v44 = vadd.f32 %v19448_v30, %v10136_v7 }
 0xb3a   :  { %v19461_v12 = vpop.f32.mrb[35].mxu1  ;;  %v10209_v13 = vmul.f32 %v19458_v49, %v19458_v49 }
 0xb3b   :  { %v10138_v6 = vadd.f32 %v10137_v44, %v19461_v12  ;;  %v10208_v15 = vmul.f32 %v19461_v12, %v19461_v12  ;;  %v10270_v11 = vadd.f32 %v10269_v21, %v10207_v63 }
 0xb3d   :  { %v10271_v31 = vadd.f32 %v10270_v11, %v10208_v15  ;;  %v19468_v45 = vpop.f32.mrb[36].mxu1  ;;  %v10139_v35 = vadd.f32 %v19458_v49, %v10138_v6 }
 0xb3e   :  { %v19471_v33 = vpop.f32.mrb[37].mxu1  ;;  %v10211_v4 = vmul.f32 %v19468_v45, %v19468_v45 }
 0xb3f   :  { %v10140_v38 = vadd.f32 %v10139_v35, %v19471_v33  ;;  %v10210_v41 = vmul.f32 %v19471_v33, %v19471_v33  ;;  %v10272_v55 = vadd.f32 %v10271_v31, %v10209_v13 }
 0xb41   :  { %v10273_v27 = vadd.f32 %v10272_v55, %v10210_v41  ;;  %v19478_v14 = vpop.f32.mrb[38].mxu1  ;;  %v10141_v23 = vadd.f32 %v19468_v45, %v10140_v38 }
 0xb42   :  { %21188 = vst [vmem:[#allocation77_spill] sm:$0xff] %v19478_v14  ;;  %v19481_v28 = vpop.f32.mrb[39].mxu1  ;;  %v10213_v17 = vmul.f32 %v19478_v14, %v19478_v14 }
 0xb43   :  { %21189 = vst [vmem:[#allocation78_spill] sm:$0xff] %v19481_v28  ;;  %v10142_v1 = vadd.f32 %v10141_v23, %v19481_v28  ;;  %v10212_v40 = vmul.f32 %v19481_v28, %v19481_v28  ;;  %v10274_v50 = vadd.f32 %v10273_v27, %v10211_v4 }
 0xb45   :  { %v10275_v19 = vadd.f32 %v10274_v50, %v10212_v40  ;;  %v19488_v26 = vpop.f32.mrb[40].mxu1  ;;  %v10143_v7 = vadd.f32 %v19478_v14, %v10142_v1 }
 0xb46   :  { %21190 = vst [vmem:[#allocation79_spill] sm:$0xff] %v19488_v26  ;;  %v19491_v22 = vpop.f32.mrb[41].mxu1  ;;  %v10215_v44 = vmul.f32 %v19488_v26, %v19488_v26 }
 0xb47   :  { %21191 = vst [vmem:[#allocation80_spill] sm:$0xff] %v19491_v22  ;;  %v10144_v61 = vadd.f32 %v10143_v7, %v19491_v22  ;;  %v10214_v63 = vmul.f32 %v19491_v22, %v19491_v22  ;;  %v10276_v21 = vadd.f32 %v10275_v19, %v10213_v17 }
 0xb49   :  { %v10277_v6 = vadd.f32 %v10276_v21, %v10214_v63  ;;  %v19498_v15 = vpop.f32.mrb[42].mxu1  ;;  %v10145_v11 = vadd.f32 %v19488_v26, %v10144_v61 }
 0xb4a   :  { %21192 = vst [vmem:[#allocation81_spill] sm:$0xff] %v19498_v15  ;;  %v19501_v13 = vpop.f32.mrb[43].mxu1  ;;  %v10217_v41 = vmul.f32 %v19498_v15, %v19498_v15 }
 0xb4b   :  { %21193 = vst [vmem:[#allocation13_spill] sm:$0xff] %v19501_v13  ;;  %v10146_v31 = vadd.f32 %v10145_v11, %v19501_v13  ;;  %v10216_v35 = vmul.f32 %v19501_v13, %v19501_v13  ;;  %v10278_v38 = vadd.f32 %v10277_v6, %v10215_v44 }
 0xb4d   :  { %v10279_v55 = vadd.f32 %v10278_v38, %v10216_v35  ;;  %v19508_v4 = vpop.f32.mrb[44].mxu1  ;;  %v10147_v27 = vadd.f32 %v19498_v15, %v10146_v31 }
 0xb4e   :  { %21194 = vst [vmem:[#allocation14_spill] sm:$0xff] %v19508_v4  ;;  %v19511_v23 = vpop.f32.mrb[45].mxu1  ;;  %v10219_v17 = vmul.f32 %v19508_v4, %v19508_v4 }
 0xb4f   :  { %21195 = vst [vmem:[#allocation15_spill] sm:$0xff] %v19511_v23  ;;  %v10148_v1 = vadd.f32 %v10147_v27, %v19511_v23  ;;  %v10218_v40 = vmul.f32 %v19511_v23, %v19511_v23  ;;  %v10280_v50 = vadd.f32 %v10279_v55, %v10217_v41 }
 0xb51   :  { %v10281_v19 = vadd.f32 %v10280_v50, %v10218_v40  ;;  %v19518_v7 = vpop.f32.mrb[46].mxu1  ;;  %v10149_v61 = vadd.f32 %v19508_v4, %v10148_v1 }
 0xb52   :  { %21196 = vst [vmem:[#allocation16_spill] sm:$0xff] %v19518_v7  ;;  %v19521_v63 = vpop.f32.mrb[47].mxu1  ;;  %v10221_v11 = vmul.f32 %v19518_v7, %v19518_v7 }
 0xb53   :  { %21197 = vst [vmem:[#allocation17_spill] sm:$0xff] %v19521_v63  ;;  %v10150_v21 = vadd.f32 %v10149_v61, %v19521_v63  ;;  %v10220_v44 = vmul.f32 %v19521_v63, %v19521_v63  ;;  %v10282_v6 = vadd.f32 %v10281_v19, %v10219_v17 }
 0xb55   :  { %v10283_v31 = vadd.f32 %v10282_v6, %v10220_v44  ;;  %v19528_v35 = vpop.f32.mrb[48].mxu1  ;;  %v10151_v38 = vadd.f32 %v19518_v7, %v10150_v21 }
 0xb56   :  { %21198 = vst [vmem:[#allocation18_spill] sm:$0xff] %v19528_v35  ;;  %v19531_v41 = vpop.f32.mrb[49].mxu1  ;;  %v10223_v40 = vmul.f32 %v19528_v35, %v19528_v35 }
 0xb57   :  { %21199 = vst [vmem:[#allocation19_spill] sm:$0xff] %v19531_v41  ;;  %v10152_v55 = vadd.f32 %v10151_v38, %v19531_v41  ;;  %v10222_v27 = vmul.f32 %v19531_v41, %v19531_v41  ;;  %v10284_v1 = vadd.f32 %v10283_v31, %v10221_v11 }
 0xb59   :  { %v10285_v50 = vadd.f32 %v10284_v1, %v10222_v27  ;;  %v19538_v17 = vpop.f32.mrb[50].mxu1  ;;  %v10153_v19 = vadd.f32 %v19528_v35, %v10152_v55 }
 0xb5a   :  { %21200 = vst [vmem:[#allocation20_spill] sm:$0xff] %v19538_v17  ;;  %v19541_v61 = vpop.f32.mrb[51].mxu1  ;;  %v10225_v38 = vmul.f32 %v19538_v17, %v19538_v17 }
 0xb5b   :  { %21201 = vst [vmem:[#allocation21_spill] sm:$0xff] %v19541_v61  ;;  %v10154_v21 = vadd.f32 %v10153_v19, %v19541_v61  ;;  %v10224_v44 = vmul.f32 %v19541_v61, %v19541_v61  ;;  %v10286_v6 = vadd.f32 %v10285_v50, %v10223_v40 }
 0xb5d   :  { %v10287_v11 = vadd.f32 %v10286_v6, %v10224_v44  ;;  %v19548_v31 = vpop.f32.mrb[52].mxu1  ;;  %v10155_v27 = vadd.f32 %v19538_v17, %v10154_v21 }
 0xb5e   :  { %21202 = vst [vmem:[#allocation22_spill] sm:$0xff] %v19548_v31  ;;  %v19551_v1 = vpop.f32.mrb[53].mxu1  ;;  %v10227_v61 = vmul.f32 %v19548_v31, %v19548_v31 }
 0xb5f   :  { %21203 = vst [vmem:[#allocation82_spill] sm:$0xff] %v19551_v1  ;;  %v10156_v55 = vadd.f32 %v10155_v27, %v19551_v1  ;;  %v10226_v35 = vmul.f32 %v19551_v1, %v19551_v1  ;;  %v10288_v19 = vadd.f32 %v10287_v11, %v10225_v38 }
 0xb61   :  { %v10289_v40 = vadd.f32 %v10288_v19, %v10226_v35  ;;  %v19558_v50 = vpop.f32.mrb[54].mxu1  ;;  %v10157_v44 = vadd.f32 %v19548_v31, %v10156_v55 }
 0xb62   :  { %21204 = vst [vmem:[#allocation83_spill] sm:$0xff] %v19558_v50  ;;  %v19561_v6 = vpop.f32.mrb[55].mxu1  ;;  %v10229_v1 = vmul.f32 %v19558_v50, %v19558_v50 }
 0xb63   :  { %21205 = vst [vmem:[#allocation84_spill] sm:$0xff] %v19561_v6  ;;  %v10158_v21 = vadd.f32 %v10157_v44, %v19561_v6  ;;  %v10228_v17 = vmul.f32 %v19561_v6, %v19561_v6  ;;  %v10290_v27 = vadd.f32 %v10289_v40, %v10227_v61 }
 0xb65   :  { %v10291_v38 = vadd.f32 %v10290_v27, %v10228_v17  ;;  %v19568_v11 = vpop.f32.mrb[56].mxu1  ;;  %v10159_v35 = vadd.f32 %v19558_v50, %v10158_v21 }
 0xb66   :  { %21206 = vst [vmem:[#allocation23_spill] sm:$0xff] %v19568_v11  ;;  %v19571_v19 = vpop.f32.mrb[57].mxu1  ;;  %v10231_v6 = vmul.f32 %v19568_v11, %v19568_v11 }
 0xb67   :  { %21207 = vst [vmem:[#allocation24_spill] sm:$0xff] %v19571_v19  ;;  %v10160_v55 = vadd.f32 %v10159_v35, %v19571_v19  ;;  %v10230_v31 = vmul.f32 %v19571_v19, %v19571_v19  ;;  %v10292_v44 = vadd.f32 %v10291_v38, %v10229_v1 }
 0xb69   :  { %v10293_v61 = vadd.f32 %v10292_v44, %v10230_v31  ;;  %v19578_v40 = vpop.f32.mrb[58].mxu1  ;;  %v10161_v17 = vadd.f32 %v19568_v11, %v10160_v55 }
 0xb6a   :  { %21208 = vst [vmem:[#allocation25_spill] sm:$0xff] %v19578_v40  ;;  %v19581_v27 = vpop.f32.mrb[59].mxu1  ;;  %v10233_v19 = vmul.f32 %v19578_v40, %v19578_v40 }
 0xb6b   :  { %21209 = vst [vmem:[#allocation26_spill] sm:$0xff] %v19581_v27  ;;  %v10162_v21 = vadd.f32 %v10161_v17, %v19581_v27  ;;  %v10232_v50 = vmul.f32 %v19581_v27, %v19581_v27  ;;  %v10294_v35 = vadd.f32 %v10293_v61, %v10231_v6 }
 0xb6d   :  { %v10295_v1 = vadd.f32 %v10294_v35, %v10232_v50  ;;  %v19588_v38 = vpop.f32.mrb[60].mxu1  ;;  %v10163_v31 = vadd.f32 %v19578_v40, %v10162_v21 }
 0xb6e   :  { %21210 = vst [vmem:[#allocation28_spill] sm:$0xff] %v19588_v38  ;;  %v19591_v44 = vpop.f32.mrb[61].mxu1  ;;  %v10235_v27 = vmul.f32 %v19588_v38, %v19588_v38 }
 0xb6f   :  { %21211 = vst [vmem:[#allocation27_spill] sm:$0xff] %v19591_v44  ;;  %v10164_v55 = vadd.f32 %v10163_v31, %v19591_v44  ;;  %v10234_v11 = vmul.f32 %v19591_v44, %v19591_v44  ;;  %v10296_v17 = vadd.f32 %v10295_v1, %v10233_v19 }
 0xb71   :  { %v10297_v6 = vadd.f32 %v10296_v17, %v10234_v11  ;;  %v19598_v61 = vpop.f32.mrb[62].mxu1  ;;  %v10165_v50 = vadd.f32 %v19588_v38, %v10164_v55 }
 0xb72   :  { %v10032_v35 = vpop.f32.mrb[63].mxu1  ;;  %v10237_v40 = vmul.f32 %v19598_v61, %v19598_v61 }
 0xb73   :  { %v10166_v41 = vadd.f32 %v10165_v50, %v10032_v35  ;;  %v10236_v7 = vmul.f32 %v10032_v35, %v10032_v35  ;;  %v10298_v21 = vadd.f32 %v10297_v6, %v10235_v27 }
 0xb75   :  { %v10167_v31 = vadd.f32 %v19598_v61, %v10166_v41  ;;  %v10299_v63 = vadd.f32 %v10298_v21, %v10236_v7  ;;  %v10311_v7 = vld [vmem:[%s20394_s5] sm:$0x1]  ;;  %s16190_s5 = smov [#allocation9]  }
 0xb77   :  { %v10168_v44 = vrot.slane %v10167_v31, 4  ;;  %v10300_v19 = vadd.f32 %v10299_v63, %v10237_v40 }
 0xb79   :  { %v10169_v1 = vadd.f32 %v10168_v44, %v10167_v31  ;;  %v10301_v4 = vrot.slane %v10300_v19, 4 }
 0xb7b   :  { %v10170_v23 = vrot.slane %v10169_v1, 2  ;;  %v10302_v11 = vadd.f32 %v10301_v4, %v10300_v19  ;;  %v10315_v4 = vld [vmem:[%s20395_s6] sm:$0x1]  ;;  %s10719_s6 = sshll.u32 %s16190_s5, 4  ;;  %s10720_s6 = int_to_ptr.vmem [resolvable:$true] %s10719_s6 }
 0xb7c   :  { %s16156_s21 = scalar_lea.vmem %s10720_s6, 8192  ;;  %p16161_p11 = scmp.lt.s32.totalorder %s10720_s6, %s10720_s6 }
 0xb7d   :  { %v10171_v17 = vadd.f32 %v10170_v23, %v10169_v1  ;;  %v10303_v15 = vrot.slane %v10302_v11, 2  ;;  %p16157_p10 = scmp.ne.s32.totalorder %s10720_s6, %s16156_s21  ;;  %p16162_p12 = scmp.lt.s32.totalorder %s16156_s21, %s16156_s21 }
 0xb7f   :  { %v10172_v13 = vrot.slane %v10171_v17, 1  ;;  %v10304_v55 = vadd.f32 %v10303_v15, %v10302_v11  ;;  %v21213_v11 = vld [vmem:[#allocation78_spill] sm:$0xff]  ;;  %p16163_p13 = por %p16162_p12, %p16161_p11 }
 0xb81   :  { %v10173_v38 = vadd.f32 %v10172_v13, %v10171_v17  ;;  %v10305_v50 = vrot.slane %v10304_v55, 1  ;;  %v21212_v13 = vld [vmem:[#allocation50_spill] sm:$0xff]  ;;  %v21214_v17 = vld [vmem:[#allocation77_spill] sm:$0xff]  ;;  %p16164_p0 = pnand %p16163_p13, %p16157_p10 }
 0xb83   :  { %v10306_v26 = vadd.f32 %v10305_v50, %v10304_v55  ;;  %v10307_v27 = vmul.f32 0.001953125, %v10173_v38  ;;  %v21215_v55 = vld [vmem:[#allocation80_spill] sm:$0xff]  ;;  %v21216_v50 = vld [vmem:[#allocation79_spill] sm:$0xff] }
 0xb85   :  { %v10308_v6 = vmul.f32 0.001953125, %v10306_v26  ;;  %v10309_v22 = vmul.f32 %v10307_v27, %v10307_v27 }
 0xb87   :  { %v10310_v14 = vsub.f32 %v10308_v6, %v10309_v22  ;;  %v21218_v6 = vld [vmem:[#allocation81_spill] sm:$0xff] }
 0xb89   :  { %v10312_v28 = vadd.f32 1e-05, %v10310_v14 }
 0xb8b   :  { %16085 = vrsqrt.f32 %v10312_v28 }
 0xb95   :  { %v16086_v63 = vpop.eup %16085 }
 0xb96   :  { %v10314_v41 = vmul.f32 %v16086_v63, %v10311_v7  ;;  %v21219_v63 = vld [vmem:[#allocation15_spill] sm:$0xff] }
 0xb98   :  { %v10316_v15 = vmul.f32 %v10314_v41, %v10307_v27  ;;  %v19611_v23 = vrot.slane %v10314_v41, %v21212_v13  ;;  %v21217_v27 = vld [vmem:[#allocation13_spill] sm:$0xff] }
 0xb9a   :  { %v10317_v40 = vsub.f32 %v10315_v4, %v10316_v15  ;;  %v10386_v26 = vmul.f32 %v19611_v23, %v10032_v35  ;;  %v19616_v14 = vmul.f32 %v19611_v23, %v19293_v52  ;;  %v19620_v28 = vmul.f32 %v19289_v8, %v19611_v23  ;;  %v21220_v4 = vld [vmem:[#allocation14_spill] sm:$0xff] }
 0xb9b   :  { %v19624_v22 = vmul.f32 %v19611_v23, %v19301_v43  ;;  %v19628_v38 = vmul.f32 %v19299_v56, %v19611_v23  ;;  %v19632_v44 = vmul.f32 %v19611_v23, %v19311_v48  ;;  %v19636_v52 = vmul.f32 %v19309_v20, %v19611_v23  ;;  %v10520_v48 = vld [vmem:[#allocation3 + $0x1f0] sm:$0xff] }
 0xb9c   :  { %v19639_v35 = vrot.slane %v10317_v40, %v21212_v13  ;;  %v19643_v8 = vmul.f32 %v19611_v23, %v19321_v62  ;;  %v19647_v43 = vmul.f32 %v19318_v9, %v19611_v23  ;;  %v19651_v56 = vmul.f32 %v19611_v23, %v19331_v59  ;;  %v21221_v13 = vld [vmem:[#allocation17_spill] sm:$0xff] }
 0xb9d   :  { %v19655_v20 = vmul.f32 %v19328_v16, %v19611_v23  ;;  %v19659_v21 = vmul.f32 %v19611_v23, %v19341_v36  ;;  %v19663_v62 = vmul.f32 %v19338_v54, %v19611_v23  ;;  %v19667_v9 = vmul.f32 %v19611_v23, %v19351_v25 }
 0xb9e   :  { %v10456_v59 = vadd.f32 %v19639_v35, %v10386_v26  ;;  %v19672_v31 = vmul.f32 %v19348_v47, %v19611_v23  ;;  %v19676_v16 = vmul.f32 %v19611_v23, %v19361_v39  ;;  %v19680_v36 = vmul.f32 %v19358_v60, %v19611_v23  ;;  %v21222_v26 = vld [vmem:[#allocation16_spill] sm:$0xff] }
 0xb9f   :  { %v19684_v54 = vmul.f32 %v19611_v23, %v19371_v2  ;;  %v19688_v25 = vmul.f32 %v19368_v10, %v19611_v23  ;;  %v19692_v47 = vmul.f32 %v19611_v23, %v19381_v42  ;;  %v19696_v39 = vmul.f32 %v19378_v46, %v19611_v23 }
 0xba0   :  { %v10584_v19 = vadd.f32 %v10520_v48, %v10456_v59  ;;  %v19700_v60 = vmul.f32 %v19611_v23, %v19391_v24  ;;  %v19704_v2 = vmul.f32 %v19388_v57, %v19611_v23  ;;  %v19708_v10 = vmul.f32 %v19611_v23, %v19401_v3  ;;  %v21223_v59 = vld [vmem:[#allocation19_spill] sm:$0xff] }
 0xba1   :  { %v19712_v42 = vmul.f32 %v19398_v37, %v19611_v23  ;;  %v19716_v46 = vmul.f32 %v19611_v23, %v19411_v32  ;;  %v19720_v24 = vmul.f32 %v19408_v5, %v19611_v23  ;;  %v19724_v57 = vmul.f32 %v19611_v23, %v19421_v18 }
 0xba2   :  { %v10648_v1 = vmax.f32 %v10584_v19, 0.0  ;;  %v19728_v3 = vmul.f32 %v19418_v29, %v19611_v23  ;;  %v19732_v37 = vmul.f32 %v19611_v23, %v19431_v58  ;;  %v19736_v32 = vmul.f32 %v19428_v0, %v19611_v23 }
 0xba3   :  { %v19740_v5 = vmul.f32 %v19611_v23, %v19441_v53  ;;  %v19744_v18 = vmul.f32 %v19438_v34, %v19611_v23  ;;  %v19748_v29 = vmul.f32 %v19611_v23, %v19451_v51  ;;  %v19752_v58 = vmul.f32 %v19448_v30, %v19611_v23 }
 0xba4   :  { %10712 = vst [vmem:[#allocation9 + $0x1f0] sm:$0xff] %v10648_v1  ;;  %v19756_v0 = vmul.f32 %v19611_v23, %v19461_v12  ;;  %v19760_v53 = vmul.f32 %v19458_v49, %v19611_v23  ;;  %v19764_v34 = vmul.f32 %v19611_v23, %v19471_v33  ;;  %v19768_v51 = vmul.f32 %v19468_v45, %v19611_v23  ;;  %v21224_v1 = vld [vmem:[#allocation18_spill] sm:$0xff] }
 0xba5   :  { %v19772_v30 = vmul.f32 %v19611_v23, %v21213_v11  ;;  %v19776_v12 = vmul.f32 %v21214_v17, %v19611_v23  ;;  %v19780_v49 = vmul.f32 %v19611_v23, %v21215_v55  ;;  %v19784_v33 = vmul.f32 %v21216_v50, %v19611_v23  ;;  %v21225_v17 = vld [vmem:[#allocation21_spill] sm:$0xff]  ;;  %v21227_v50 = vld [vmem:[#allocation20_spill] sm:$0xff] }
 0xba6   :  { %v19788_v45 = vmul.f32 %v19611_v23, %v21217_v27  ;;  %v19792_v7 = vmul.f32 %v21218_v6, %v19611_v23  ;;  %v19796_v41 = vmul.f32 %v19611_v23, %v21219_v63  ;;  %v19800_v15 = vmul.f32 %v21220_v4, %v19611_v23  ;;  %v21229_v6 = vld [vmem:[#allocation82_spill] sm:$0xff] }
 0xba7   :  { %v19804_v40 = vmul.f32 %v19611_v23, %v21221_v13  ;;  %v19808_v48 = vmul.f32 %v21222_v26, %v19611_v23  ;;  %v19812_v19 = vmul.f32 %v19611_v23, %v21223_v59  ;;  %v19816_v11 = vmul.f32 %v21224_v1, %v19611_v23  ;;  %v21231_v4 = vld [vmem:[#allocation22_spill] sm:$0xff]  ;;  %v21233_v26 = vld [vmem:[#allocation84_spill] sm:$0xff]  ;;  %v21235_v1 = vld [vmem:[#allocation83_spill] sm:$0xff] }
 0xba8   :  { %v19820_v55 = vmul.f32 %v19611_v23, %v21225_v17  ;;  %v19824_v27 = vmul.f32 %v21227_v50, %v19611_v23  ;;  %v19828_v63 = vmul.f32 %v19611_v23, %v21229_v6  ;;  %v19832_v13 = vmul.f32 %v21231_v4, %v19611_v23 }
 0xba9   :  { %v19836_v59 = vmul.f32 %v19611_v23, %v21233_v26  ;;  %v19840_v17 = vmul.f32 %v21235_v1, %v19611_v23 }
 0xbaa   :  { %21226 = vst [vmem:[#allocation30_spill] sm:$0xff] %v19820_v55  ;;  %21228 = vst [vmem:[#allocation29_spill] sm:$0xff] %v19824_v27  ;;  %v21237_v55 = vld [vmem:[#allocation24_spill] sm:$0xff]  ;;  %v21238_v27 = vld [vmem:[#allocation23_spill] sm:$0xff] }
 0xbab   :  { %21230 = vst [vmem:[#allocation32_spill] sm:$0xff] %v19828_v63  ;;  %21232 = vst [vmem:[#allocation31_spill] sm:$0xff] %v19832_v13  ;;  %v19844_v50 = vmul.f32 %v19611_v23, %v21237_v55  ;;  %v19848_v6 = vmul.f32 %v21238_v27, %v19611_v23  ;;  %v21239_v63 = vld [vmem:[#allocation26_spill] sm:$0xff]  ;;  %v21240_v13 = vld [vmem:[#allocation25_spill] sm:$0xff]  ;;  %v19868_v27 = vmul.f32 %v19598_v61, %v19611_v23 }
 0xbac   :  { %21234 = vst [vmem:[#allocation34_spill] sm:$0xff] %v19836_v59  ;;  %21236 = vst [vmem:[#allocation33_spill] sm:$0xff] %v19840_v17  ;;  %v19852_v4 = vmul.f32 %v19611_v23, %v21239_v63  ;;  %v19856_v26 = vmul.f32 %v21240_v13, %v19611_v23  ;;  %v21241_v59 = vld [vmem:[#allocation27_spill] sm:$0xff]  ;;  %v21242_v17 = vld [vmem:[#allocation28_spill] sm:$0xff]  ;;  %v19872_v63 = vadd.f32 %v19639_v35, %v19616_v14 }
 0xbad   :  { %v19860_v1 = vmul.f32 %v19611_v23, %v21241_v59  ;;  %v19864_v55 = vmul.f32 %v21242_v17, %v19611_v23  ;;  %v19876_v13 = vadd.f32 %v19639_v35, %v19620_v28  ;;  %v19880_v59 = vadd.f32 %v19639_v35, %v19624_v22 }
 0xbae   :  { %v19884_v17 = vadd.f32 %v19639_v35, %v19628_v38  ;;  %v19888_v61 = vadd.f32 %v19639_v35, %v19632_v44  ;;  %v19892_v23 = vadd.f32 %v19639_v35, %v19636_v52  ;;  %v19896_v14 = vadd.f32 %v19639_v35, %v19643_v8 }
 0xbaf   :  { %v19900_v28 = vadd.f32 %v19639_v35, %v19647_v43  ;;  %v19904_v22 = vadd.f32 %v19639_v35, %v19651_v56  ;;  %v19908_v38 = vadd.f32 %v19639_v35, %v19655_v20  ;;  %v19912_v44 = vadd.f32 %v19639_v35, %v19659_v21 }
 0xbb0   :  { %v19916_v52 = vadd.f32 %v19639_v35, %v19663_v62  ;;  %v19920_v8 = vadd.f32 %v19639_v35, %v19667_v9  ;;  %v19924_v43 = vadd.f32 %v19639_v35, %v19672_v31  ;;  %v19928_v56 = vadd.f32 %v19639_v35, %v19676_v16 }
 0xbb1   :  { %v19932_v20 = vadd.f32 %v19639_v35, %v19680_v36  ;;  %v19936_v21 = vadd.f32 %v19639_v35, %v19684_v54  ;;  %v19940_v62 = vadd.f32 %v19639_v35, %v19688_v25  ;;  %v19944_v9 = vadd.f32 %v19639_v35, %v19692_v47 }
 0xbb2   :  { %v19948_v31 = vadd.f32 %v19639_v35, %v19696_v39  ;;  %v19952_v16 = vadd.f32 %v19639_v35, %v19700_v60  ;;  %v19956_v36 = vadd.f32 %v19639_v35, %v19704_v2  ;;  %v19960_v54 = vadd.f32 %v19639_v35, %v19708_v10 }
 0xbb3   :  { %v19964_v25 = vadd.f32 %v19639_v35, %v19712_v42  ;;  %v19968_v47 = vadd.f32 %v19639_v35, %v19716_v46  ;;  %v19972_v39 = vadd.f32 %v19639_v35, %v19720_v24  ;;  %v19976_v60 = vadd.f32 %v19639_v35, %v19724_v57 }
 0xbb4   :  { %v19980_v2 = vadd.f32 %v19639_v35, %v19728_v3  ;;  %v19984_v10 = vadd.f32 %v19639_v35, %v19732_v37  ;;  %v19988_v42 = vadd.f32 %v19639_v35, %v19736_v32  ;;  %v19992_v46 = vadd.f32 %v19639_v35, %v19740_v5 }
 0xbb5   :  { %v19996_v24 = vadd.f32 %v19639_v35, %v19744_v18  ;;  %v20000_v57 = vadd.f32 %v19639_v35, %v19748_v29  ;;  %v20004_v3 = vadd.f32 %v19639_v35, %v19752_v58  ;;  %v20008_v37 = vadd.f32 %v19639_v35, %v19756_v0 }
 0xbb6   :  { %21243 = vst [vmem:[#allocation36_spill] sm:$0xff] %v19992_v46  ;;  %v20012_v32 = vadd.f32 %v19639_v35, %v19760_v53  ;;  %v20016_v5 = vadd.f32 %v19639_v35, %v19764_v34  ;;  %v20020_v18 = vadd.f32 %v19639_v35, %v19768_v51  ;;  %v20024_v29 = vadd.f32 %v19639_v35, %v19772_v30  ;;  %v10459_v51 = vld [vmem:[#allocation3 + $0x8] sm:$0xff]  ;;  %v10461_v30 = vld [vmem:[#allocation3 + $0x18] sm:$0xff] }
 0xbb7   :  { %21244 = vst [vmem:[#allocation35_spill] sm:$0xff] %v19996_v24  ;;  %21245 = vst [vmem:[#allocation38_spill] sm:$0xff] %v20000_v57  ;;  %v20028_v58 = vadd.f32 %v19639_v35, %v19776_v12  ;;  %v20032_v0 = vadd.f32 %v19639_v35, %v19780_v49  ;;  %v20036_v53 = vadd.f32 %v19639_v35, %v19784_v33  ;;  %v10472_v57 = vld [vmem:[#allocation3 + $0x70] sm:$0xff]  ;;  %v21273_v24 = vld [vmem:[#allocation33_spill] sm:$0xff] }
 0xbb8   :  { %21246 = vst [vmem:[#allocation37_spill] sm:$0xff] %v20004_v3  ;;  %21247 = vst [vmem:[#allocation40_spill] sm:$0xff] %v20008_v37  ;;  %v20040_v34 = vadd.f32 %v19639_v35, %v19788_v45  ;;  %v20044_v12 = vadd.f32 %v19639_v35, %v19792_v7  ;;  %v20048_v49 = vadd.f32 %v19639_v35, %v19796_v41  ;;  %v10470_v37 = vld [vmem:[#allocation3 + $0x60] sm:$0xff]  ;;  %v10473_v3 = vld [vmem:[#allocation3 + $0x78] sm:$0xff] }
 0xbb9   :  { %21248 = vst [vmem:[#allocation39_spill] sm:$0xff] %v20012_v32  ;;  %21249 = vst [vmem:[#allocation42_spill] sm:$0xff] %v20016_v5  ;;  %v20052_v33 = vadd.f32 %v19639_v35, %v19800_v15  ;;  %v20056_v45 = vadd.f32 %v19639_v35, %v19804_v40  ;;  %v20060_v7 = vadd.f32 %v19639_v35, %v19808_v48  ;;  %v10468_v5 = vld [vmem:[#allocation3 + $0x50] sm:$0xff]  ;;  %v21265_v32 = vld [vmem:[#allocation29_spill] sm:$0xff] }
 0xbba   :  { %21250 = vst [vmem:[#allocation41_spill] sm:$0xff] %v20020_v18  ;;  %21251 = vst [vmem:[#allocation44_spill] sm:$0xff] %v20024_v29  ;;  %v10458_v18 = vld [vmem:[#allocation3] sm:$0xff]  ;;  %v10460_v29 = vld [vmem:[#allocation3 + $0x10] sm:$0xff]  ;;  %v20064_v41 = vadd.f32 %v19639_v35, %v19812_v19  ;;  %v20068_v15 = vadd.f32 %v19639_v35, %v19816_v11  ;;  %v20076_v48 = vadd.f32 %v19639_v35, %v21265_v32 }
 0xbbb   :  { %21252 = vst [vmem:[#allocation43_spill] sm:$0xff] %v20028_v58  ;;  %21253 = vst [vmem:[#allocation46_spill] sm:$0xff] %v20032_v0  ;;  %v10465_v0 = vld [vmem:[#allocation3 + $0x38] sm:$0xff]  ;;  %v10464_v58 = vld [vmem:[#allocation3 + $0x30] sm:$0xff]  ;;  %v20092_v32 = vadd.f32 %v19639_v35, %v21273_v24  ;;  %v20108_v24 = vadd.f32 %v19639_v35, %v19856_v26  ;;  %v20123_v46 = vadd.f32 %v10458_v18, %v19872_v63 }
 0xbbc   :  { %21254 = vst [vmem:[#allocation45_spill] sm:$0xff] %v20036_v53  ;;  %21255 = vst [vmem:[#allocation48_spill] sm:$0xff] %v20040_v34  ;;  %v10463_v34 = vld [vmem:[#allocation3 + $0x28] sm:$0xff]  ;;  %v10462_v53 = vld [vmem:[#allocation3 + $0x20] sm:$0xff]  ;;  %v20126_v26 = vadd.f32 %v10459_v51, %v19876_v13  ;;  %v20141_v63 = vadd.f32 %v10464_v58, %v19896_v14  ;;  %v20144_v13 = vadd.f32 %v10465_v0, %v19900_v28 }
 0xbbd   :  { %21256 = vst [vmem:[#allocation47_spill] sm:$0xff] %v20044_v12  ;;  %21257 = vst [vmem:[#allocation49_spill] sm:$0xff] %v20048_v49  ;;  %v10466_v49 = vld [vmem:[#allocation3 + $0x40] sm:$0xff]  ;;  %v10469_v12 = vld [vmem:[#allocation3 + $0x58] sm:$0xff] }
 0xbbe   :  { %21258 = vst [vmem:[#allocation51_spill] sm:$0xff] %v20052_v33  ;;  %21259 = vst [vmem:[#allocation52_spill] sm:$0xff] %v20056_v45  ;;  %v21263_v33 = vld [vmem:[#allocation30_spill] sm:$0xff]  ;;  %v10486_v18 = vld [vmem:[#allocation3 + $0xe0] sm:$0xff]  ;;  %v20147_v51 = vadd.f32 %v10466_v49, %v19904_v22  ;;  %v20165_v22 = vadd.f32 %v10472_v57, %v19928_v56 }
 0xbbf   :  { %21260 = vst [vmem:[#allocation53_spill] sm:$0xff] %v20060_v7  ;;  %21261 = vst [vmem:[#allocation54_spill] sm:$0xff] %v20064_v41  ;;  %v20072_v40 = vadd.f32 %v19639_v35, %v21263_v33  ;;  %v10467_v45 = vld [vmem:[#allocation3 + $0x48] sm:$0xff]  ;;  %v21267_v7 = vld [vmem:[#allocation32_spill] sm:$0xff] }
 0xbc0   :  { %21262 = vst [vmem:[#allocation55_spill] sm:$0xff] %v20068_v15  ;;  %21266 = vst [vmem:[#allocation58_spill] sm:$0xff] %v20076_v48  ;;  %v20080_v19 = vadd.f32 %v19639_v35, %v21267_v7  ;;  %v21269_v41 = vld [vmem:[#allocation31_spill] sm:$0xff]  ;;  %v21271_v15 = vld [vmem:[#allocation34_spill] sm:$0xff]  ;;  %v20096_v7 = vadd.f32 %v19639_v35, %v19844_v50  ;;  %v20112_v50 = vadd.f32 %v19639_v35, %v19860_v1 }
 0xbc1   :  { %21264 = vst [vmem:[#allocation56_spill] sm:$0xff] %v20072_v40  ;;  %v20084_v11 = vadd.f32 %v19639_v35, %v21269_v41  ;;  %v20088_v33 = vadd.f32 %v19639_v35, %v21271_v15  ;;  %v10471_v40 = vld [vmem:[#allocation3 + $0x68] sm:$0xff]  ;;  %21274 = vst [vmem:[#allocation63_spill] sm:$0xff] %v20092_v32  ;;  %v20100_v41 = vadd.f32 %v19639_v35, %v19848_v6  ;;  %v10476_v48 = vld [vmem:[#allocation3 + $0x90] sm:$0xff] }
 0xbc2   :  { %21268 = vst [vmem:[#allocation59_spill] sm:$0xff] %v20080_v19  ;;  %21275 = vst [vmem:[#allocation64_spill] sm:$0xff] %v20096_v7  ;;  %v20104_v15 = vadd.f32 %v19639_v35, %v19852_v4  ;;  %v10477_v19 = vld [vmem:[#allocation3 + $0x98] sm:$0xff]  ;;  %v20116_v6 = vadd.f32 %v19639_v35, %v19864_v55  ;;  %v20120_v4 = vadd.f32 %v19639_v35, %v19868_v27  ;;  %v10480_v32 = vld [vmem:[#allocation3 + $0xb0] sm:$0xff] }
 0xbc3   :  { %21270 = vst [vmem:[#allocation61_spill] sm:$0xff] %v20084_v11  ;;  %21272 = vst [vmem:[#allocation62_spill] sm:$0xff] %v20088_v33  ;;  %v10475_v33 = vld [vmem:[#allocation3 + $0x88] sm:$0xff]  ;;  %v10474_v11 = vld [vmem:[#allocation3 + $0x80] sm:$0xff]  ;;  %v20129_v1 = vadd.f32 %v10460_v29, %v19880_v59  ;;  %v20132_v55 = vadd.f32 %v10461_v30, %v19884_v17  ;;  %v20150_v30 = vadd.f32 %v10467_v45, %v19908_v38 }
 0xbc4   :  { %21276 = vst [vmem:[#allocation65_spill] sm:$0xff] %v20100_v41  ;;  %21277 = vst [vmem:[#allocation66_spill] sm:$0xff] %v20104_v15  ;;  %v10479_v15 = vld [vmem:[#allocation3 + $0xa8] sm:$0xff]  ;;  %v10478_v41 = vld [vmem:[#allocation3 + $0xa0] sm:$0xff]  ;;  %v20168_v38 = vadd.f32 %v10473_v3, %v19932_v20  ;;  %v20174_v49 = vadd.f32 %v10475_v33, %v19940_v62 }
 0xbc5   :  { %21278 = vst [vmem:[#allocation67_spill] sm:$0xff] %v20108_v24  ;;  %21279 = vst [vmem:[#allocation57_spill] sm:$0xff] %v20112_v50  ;;  %v10481_v7 = vld [vmem:[#allocation3 + $0xb8] sm:$0xff]  ;;  %v10482_v50 = vld [vmem:[#allocation3 + $0xc0] sm:$0xff]  ;;  %v20138_v24 = vadd.f32 %v10463_v34, %v19892_v23  ;;  %v20156_v23 = vadd.f32 %v10469_v12, %v19916_v52  ;;  %v20162_v34 = vadd.f32 %v10471_v40, %v19924_v43 }
 0xbc6   :  { %21280 = vst [vmem:[#allocation60_spill] sm:$0xff] %v20116_v6  ;;  %21281 = vst [vmem:[#allocation68_spill] sm:$0xff] %v20120_v4  ;;  %v10483_v6 = vld [vmem:[#allocation3 + $0xc8] sm:$0xff]  ;;  %v10485_v35 = vld [vmem:[#allocation3 + $0xd8] sm:$0xff]  ;;  %v20135_v4 = vadd.f32 %v10462_v53, %v19888_v61  ;;  %v20153_v61 = vadd.f32 %v10468_v5, %v19912_v44  ;;  %v20159_v53 = vadd.f32 %v10470_v37, %v19920_v8 }
 0xbc7   :  { %v10484_v27 = vld [vmem:[#allocation3 + $0xd0] sm:$0xff]  ;;  %v10487_v59 = vld [vmem:[#allocation3 + $0xe8] sm:$0xff]  ;;  %v10489_v17 = vld [vmem:[#allocation3 + $0xf8] sm:$0xff]  ;;  %v20171_v12 = vadd.f32 %v10474_v11, %v19936_v21  ;;  %v20177_v8 = vadd.f32 %v10476_v48, %v19944_v9  ;;  %v20180_v43 = vadd.f32 %v10477_v19, %v19948_v31  ;;  %v20183_v20 = vadd.f32 %v10478_v41, %v19952_v16 }
 0xbc8   :  { %v10488_v29 = vld [vmem:[#allocation3 + $0xf0] sm:$0xff]  ;;  %v10491_v14 = vld [vmem:[#allocation3 + $0x108] sm:$0xff]  ;;  %v10490_v58 = vld [vmem:[#allocation3 + $0x100] sm:$0xff]  ;;  %v20186_v3 = vadd.f32 %v10479_v15, %v19956_v36  ;;  %v20189_v21 = vadd.f32 %v10480_v32, %v19960_v54  ;;  %v20192_v62 = vadd.f32 %v10481_v7, %v19964_v25  ;;  %v20195_v31 = vadd.f32 %v10482_v50, %v19968_v47 }
 0xbc9   :  { %v10493_v28 = vld [vmem:[#allocation3 + $0x118] sm:$0xff]  ;;  %v10492_v0 = vld [vmem:[#allocation3 + $0x110] sm:$0xff]  ;;  %v10495_v44 = vld [vmem:[#allocation3 + $0x128] sm:$0xff]  ;;  %v20198_v48 = vadd.f32 %v10483_v6, %v19972_v39  ;;  %v20201_v16 = vadd.f32 %v10484_v27, %v19976_v60  ;;  %v20204_v36 = vadd.f32 %v10485_v35, %v19980_v2  ;;  %v20207_v25 = vadd.f32 %v10486_v18, %v19984_v10 }
 0xbca   :  { %v10494_v5 = vld [vmem:[#allocation3 + $0x120] sm:$0xff]  ;;  %v10497_v52 = vld [vmem:[#allocation3 + $0x138] sm:$0xff]  ;;  %v10496_v56 = vld [vmem:[#allocation3 + $0x130] sm:$0xff]  ;;  %v20210_v33 = vadd.f32 %v10487_v59, %v19988_v42 }
 0xbcb   :  { %v10499_v57 = vld [vmem:[#allocation3 + $0x148] sm:$0xff]  ;;  %v10498_v37 = vld [vmem:[#allocation3 + $0x140] sm:$0xff]  ;;  %v10501_v9 = vld [vmem:[#allocation3 + $0x158] sm:$0xff] }
 0xbcc   :  { %v10500_v45 = vld [vmem:[#allocation3 + $0x150] sm:$0xff]  ;;  %v10503_v40 = vld [vmem:[#allocation3 + $0x168] sm:$0xff]  ;;  %v10502_v54 = vld [vmem:[#allocation3 + $0x160] sm:$0xff] }
 0xbcd   :  { %v10505_v19 = vld [vmem:[#allocation3 + $0x178] sm:$0xff]  ;;  %v10504_v11 = vld [vmem:[#allocation3 + $0x170] sm:$0xff]  ;;  %v10507_v60 = vld [vmem:[#allocation3 + $0x188] sm:$0xff] }
 0xbce   :  { %v21282_v47 = vld [vmem:[#allocation36_spill] sm:$0xff]  ;;  %v21284_v39 = vld [vmem:[#allocation35_spill] sm:$0xff]  ;;  %v10506_v41 = vld [vmem:[#allocation3 + $0x180] sm:$0xff] }
 0xbcf   :  { %v20213_v32 = vadd.f32 %v10488_v29, %v21282_v47  ;;  %v20216_v7 = vadd.f32 %v10489_v17, %v21284_v39  ;;  %v10509_v15 = vld [vmem:[#allocation3 + $0x198] sm:$0xff]  ;;  %v21286_v2 = vld [vmem:[#allocation38_spill] sm:$0xff]  ;;  %v21287_v6 = vld [vmem:[#allocation37_spill] sm:$0xff] }
 0xbd0   :  { %v20219_v50 = vadd.f32 %v10490_v58, %v21286_v2  ;;  %v20222_v35 = vadd.f32 %v10491_v14, %v21287_v6  ;;  %v21289_v10 = vld [vmem:[#allocation40_spill] sm:$0xff]  ;;  %v21291_v42 = vld [vmem:[#allocation39_spill] sm:$0xff]  ;;  %v10511_v29 = vld [vmem:[#allocation3 + $0x1a8] sm:$0xff] }
 0xbd1   :  { %21283 = vst [vmem:[#allocation69_spill] sm:$0xff] %v20213_v32  ;;  %21285 = vst [vmem:[#allocation70_spill] sm:$0xff] %v20216_v7  ;;  %v20225_v27 = vadd.f32 %v10492_v0, %v21289_v10  ;;  %v20228_v59 = vadd.f32 %v10493_v28, %v21291_v42  ;;  %v10508_v18 = vld [vmem:[#allocation3 + $0x190] sm:$0xff]  ;;  %v10510_v47 = vld [vmem:[#allocation3 + $0x1a0] sm:$0xff] }
 0xbd2   :  { %21288 = vst [vmem:[#allocation71_spill] sm:$0xff] %v20222_v35  ;;  %v21293_v17 = vld [vmem:[#allocation42_spill] sm:$0xff]  ;;  %v21294_v7 = vld [vmem:[#allocation41_spill] sm:$0xff]  ;;  %v21296_v58 = vld [vmem:[#allocation44_spill] sm:$0xff] }
 0xbd3   :  { %21290 = vst [vmem:[#allocation72_spill] sm:$0xff] %v20225_v27  ;;  %21292 = vst [vmem:[#allocation73_spill] sm:$0xff] %v20228_v59  ;;  %v20231_v39 = vadd.f32 %v10494_v5, %v21293_v17  ;;  %v20234_v32 = vadd.f32 %v10495_v44, %v21294_v7  ;;  %v20237_v2 = vadd.f32 %v10496_v56, %v21296_v58  ;;  %v21298_v14 = vld [vmem:[#allocation43_spill] sm:$0xff]  ;;  %v10513_v0 = vld [vmem:[#allocation3 + $0x1b8] sm:$0xff] }
 0xbd4   :  { %v20240_v6 = vadd.f32 %v10497_v52, %v21298_v14  ;;  %v10512_v10 = vld [vmem:[#allocation3 + $0x1b0] sm:$0xff]  ;;  %v10515_v27 = vld [vmem:[#allocation3 + $0x1c8] sm:$0xff]  ;;  %v21301_v59 = vld [vmem:[#allocation45_spill] sm:$0xff] }
 0xbd5   :  { %21295 = vst [vmem:[#allocation74_spill] sm:$0xff] %v20234_v32  ;;  %21297 = vst [vmem:[#allocation75_spill] sm:$0xff] %v20237_v2  ;;  %v21300_v28 = vld [vmem:[#allocation46_spill] sm:$0xff]  ;;  %v20246_v35 = vadd.f32 %v10499_v57, %v21301_v59  ;;  %v21303_v5 = vld [vmem:[#allocation48_spill] sm:$0xff] }
 0xbd6   :  { %21299 = vst [vmem:[#allocation76_spill] sm:$0xff] %v20240_v6  ;;  %v20243_v42 = vadd.f32 %v10498_v37, %v21300_v28  ;;  %v20249_v17 = vadd.f32 %v10500_v45, %v21303_v5  ;;  %v21305_v44 = vld [vmem:[#allocation47_spill] sm:$0xff]  ;;  %v10514_v56 = vld [vmem:[#allocation3 + $0x1c0] sm:$0xff]  ;;  %v10517_v58 = vld [vmem:[#allocation3 + $0x1d8] sm:$0xff] }
 0xbd7   :  { %21302 = vst [vmem:[#allocation85_spill] sm:$0xff] %v20246_v35  ;;  %v20252_v7 = vadd.f32 %v10501_v9, %v21305_v44  ;;  %v10516_v2 = vld [vmem:[#allocation3 + $0x1d0] sm:$0xff]  ;;  %v21307_v52 = vld [vmem:[#allocation49_spill] sm:$0xff]  ;;  %v21309_v37 = vld [vmem:[#allocation52_spill] sm:$0xff] }
 0xbd8   :  { %21304 = vst [vmem:[#allocation86_spill] sm:$0xff] %v20249_v17  ;;  %v20255_v14 = vadd.f32 %v10502_v54, %v21307_v52  ;;  %v21308_v6 = vld [vmem:[#allocation51_spill] sm:$0xff]  ;;  %v20261_v28 = vadd.f32 %v10504_v11, %v21309_v37  ;;  %v21311_v57 = vld [vmem:[#allocation53_spill] sm:$0xff]  ;;  %v10519_v45 = vld [vmem:[#allocation3 + $0x1e8] sm:$0xff] }
 0xbd9   :  { %21306 = vst [vmem:[#allocation87_spill] sm:$0xff] %v20252_v7  ;;  %v20258_v32 = vadd.f32 %v10503_v40, %v21308_v6  ;;  %v20264_v59 = vadd.f32 %v10505_v19, %v21311_v57  ;;  %v10518_v5 = vld [vmem:[#allocation3 + $0x1e0] sm:$0xff]  ;;  %v10521_v17 = vld [vmem:[#allocation3 + $0x1f8] sm:$0xff]  ;;  %v21313_v9 = vld [vmem:[#allocation54_spill] sm:$0xff] }
 0xbda   :  { %21310 = vst [vmem:[#allocation88_spill] sm:$0xff] %v20261_v28  ;;  %v20267_v44 = vadd.f32 %v10506_v41, %v21313_v9  ;;  %v21314_v7 = vld [vmem:[#allocation55_spill] sm:$0xff]  ;;  %v21315_v54 = vld [vmem:[#allocation56_spill] sm:$0xff]  ;;  %v21316_v40 = vld [vmem:[#allocation58_spill] sm:$0xff] }
 0xbdb   :  { %21312 = vst [vmem:[#allocation89_spill] sm:$0xff] %v20264_v59  ;;  %v20270_v35 = vadd.f32 %v10507_v60, %v21314_v7  ;;  %v20273_v52 = vadd.f32 %v10508_v18, %v21315_v54  ;;  %v20276_v6 = vadd.f32 %v10509_v15, %v21316_v40  ;;  %v21317_v11 = vld [vmem:[#allocation59_spill] sm:$0xff]  ;;  %v21318_v19 = vld [vmem:[#allocation61_spill] sm:$0xff]  ;;  %v21319_v59 = vld [vmem:[#allocation62_spill] sm:$0xff] }
 0xbdc   :  { %v20279_v37 = vadd.f32 %v10510_v47, %v21317_v11  ;;  %v20282_v57 = vadd.f32 %v10511_v29, %v21318_v19  ;;  %v20285_v28 = vadd.f32 %v10512_v10, %v21319_v59  ;;  %v21320_v41 = vld [vmem:[#allocation63_spill] sm:$0xff]  ;;  %v21321_v60 = vld [vmem:[#allocation64_spill] sm:$0xff]  ;;  %v21322_v18 = vld [vmem:[#allocation65_spill] sm:$0xff] }
 0xbdd   :  { %v20288_v9 = vadd.f32 %v10513_v0, %v21320_v41  ;;  %v20291_v7 = vadd.f32 %v10514_v56, %v21321_v60  ;;  %v20294_v54 = vadd.f32 %v10515_v27, %v21322_v18  ;;  %v21323_v15 = vld [vmem:[#allocation66_spill] sm:$0xff]  ;;  %v21324_v47 = vld [vmem:[#allocation67_spill] sm:$0xff]  ;;  %v21325_v29 = vld [vmem:[#allocation57_spill] sm:$0xff]  ;;  %v10586_v56 = vmax.f32 %v20123_v46, 0.0 }
 0xbde   :  { %v20297_v40 = vadd.f32 %v10516_v2, %v21323_v15  ;;  %v20300_v11 = vadd.f32 %v10517_v58, %v21324_v47  ;;  %v20303_v19 = vadd.f32 %v10518_v5, %v21325_v29  ;;  %v21326_v10 = vld [vmem:[#allocation60_spill] sm:$0xff]  ;;  %v10587_v27 = vmax.f32 %v20126_v26, 0.0  ;;  %v21332_v47 = vld [vmem:[#allocation73_spill] sm:$0xff] }
 0xbdf   :  { %v20306_v59 = vadd.f32 %v10519_v45, %v21326_v10  ;;  %v21327_v0 = vld [vmem:[#allocation68_spill] sm:$0xff]  ;;  %v10588_v60 = vmax.f32 %v20129_v1, 0.0  ;;  %v10589_v2 = vmax.f32 %v20132_v55, 0.0  ;;  %v10590_v58 = vmax.f32 %v20135_v4, 0.0  ;;  %10650 = vst [vmem:[#allocation9] sm:$0xff] %v10586_v56  ;;  %v21334_v56 = vld [vmem:[#allocation75_spill] sm:$0xff] }
 0xbe0   :  { %v20309_v41 = vadd.f32 %v10521_v17, %v21327_v0  ;;  %v10591_v18 = vmax.f32 %v20138_v24, 0.0  ;;  %v10592_v5 = vmax.f32 %v20141_v63, 0.0  ;;  %v10593_v45 = vmax.f32 %v20144_v13, 0.0  ;;  %10651 = vst [vmem:[#allocation9 + $0x8] sm:$0xff] %v10587_v27  ;;  %v21335_v27 = vld [vmem:[#allocation76_spill] sm:$0xff] }
 0xbe1   :  { %v10594_v15 = vmax.f32 %v20147_v51, 0.0  ;;  %v10595_v17 = vmax.f32 %v20150_v30, 0.0  ;;  %v10596_v46 = vmax.f32 %v20153_v61, 0.0  ;;  %v10597_v26 = vmax.f32 %v20156_v23, 0.0  ;;  %10652 = vst [vmem:[#allocation9 + $0x10] sm:$0xff] %v10588_v60  ;;  %10653 = vst [vmem:[#allocation9 + $0x18] sm:$0xff] %v10589_v2 }
 0xbe2   :  { %v10598_v1 = vmax.f32 %v20159_v53, 0.0  ;;  %10654 = vst [vmem:[#allocation9 + $0x20] sm:$0xff] %v10590_v58  ;;  %v10599_v24 = vmax.f32 %v20162_v34, 0.0  ;;  %v10600_v4 = vmax.f32 %v20165_v22, 0.0  ;;  %v10601_v55 = vmax.f32 %v20168_v38, 0.0  ;;  %10655 = vst [vmem:[#allocation9 + $0x28] sm:$0xff] %v10591_v18 }
 0xbe3   :  { %v10602_v63 = vmax.f32 %v20171_v12, 0.0  ;;  %10656 = vst [vmem:[#allocation9 + $0x30] sm:$0xff] %v10592_v5  ;;  %10657 = vst [vmem:[#allocation9 + $0x38] sm:$0xff] %v10593_v45  ;;  %v10603_v13 = vmax.f32 %v20174_v49, 0.0  ;;  %v10604_v51 = vmax.f32 %v20177_v8, 0.0  ;;  %v10605_v30 = vmax.f32 %v20180_v43, 0.0 }
 0xbe4   :  { %10658 = vst [vmem:[#allocation9 + $0x40] sm:$0xff] %v10594_v15  ;;  %v10606_v61 = vmax.f32 %v20183_v20, 0.0  ;;  %10659 = vst [vmem:[#allocation9 + $0x48] sm:$0xff] %v10595_v17  ;;  %v10607_v23 = vmax.f32 %v20186_v3, 0.0  ;;  %v10608_v53 = vmax.f32 %v20189_v21, 0.0  ;;  %v10609_v34 = vmax.f32 %v20192_v62, 0.0 }
 0xbe5   :  { %10660 = vst [vmem:[#allocation9 + $0x50] sm:$0xff] %v10596_v46  ;;  %10661 = vst [vmem:[#allocation9 + $0x58] sm:$0xff] %v10597_v26  ;;  %v10610_v22 = vmax.f32 %v20195_v31, 0.0  ;;  %v10611_v38 = vmax.f32 %v20198_v48, 0.0  ;;  %v10612_v12 = vmax.f32 %v20201_v16, 0.0  ;;  %v10613_v49 = vmax.f32 %v20204_v36, 0.0 }
 0xbe6   :  { %10662 = vst [vmem:[#allocation9 + $0x60] sm:$0xff] %v10598_v1  ;;  %10663 = vst [vmem:[#allocation9 + $0x68] sm:$0xff] %v10599_v24  ;;  %v10614_v8 = vmax.f32 %v20207_v25, 0.0  ;;  %v10615_v43 = vmax.f32 %v20210_v33, 0.0  ;;  %v21328_v20 = vld [vmem:[#allocation69_spill] sm:$0xff]  ;;  %v21329_v21 = vld [vmem:[#allocation70_spill] sm:$0xff] }
 0xbe7   :  { %10664 = vst [vmem:[#allocation9 + $0x70] sm:$0xff] %v10600_v4  ;;  %10665 = vst [vmem:[#allocation9 + $0x78] sm:$0xff] %v10601_v55  ;;  %v10616_v3 = vmax.f32 %v21328_v20, 0.0  ;;  %v10617_v62 = vmax.f32 %v21329_v21, 0.0  ;;  %v10618_v31 = vmax.f32 %v20219_v50, 0.0  ;;  %v21330_v48 = vld [vmem:[#allocation71_spill] sm:$0xff] }
 0xbe8   :  { %10666 = vst [vmem:[#allocation9 + $0x80] sm:$0xff] %v10602_v63  ;;  %10667 = vst [vmem:[#allocation9 + $0x88] sm:$0xff] %v10603_v13  ;;  %v10619_v16 = vmax.f32 %v21330_v48, 0.0  ;;  %v21331_v36 = vld [vmem:[#allocation72_spill] sm:$0xff]  ;;  %v10621_v29 = vmax.f32 %v21332_v47, 0.0  ;;  %v10622_v10 = vmax.f32 %v20231_v39, 0.0 }
 0xbe9   :  { %10668 = vst [vmem:[#allocation9 + $0x90] sm:$0xff] %v10604_v51  ;;  %10669 = vst [vmem:[#allocation9 + $0x98] sm:$0xff] %v10605_v30  ;;  %v10620_v25 = vmax.f32 %v21331_v36, 0.0  ;;  %v21333_v33 = vld [vmem:[#allocation74_spill] sm:$0xff]  ;;  %v10624_v50 = vmax.f32 %v21334_v56, 0.0  ;;  %v10625_v60 = vmax.f32 %v21335_v27, 0.0 }
 0xbea   :  { %10670 = vst [vmem:[#allocation9 + $0xa0] sm:$0xff] %v10606_v61  ;;  %10671 = vst [vmem:[#allocation9 + $0xa8] sm:$0xff] %v10607_v23  ;;  %v10623_v0 = vmax.f32 %v21333_v33, 0.0  ;;  %v10626_v2 = vmax.f32 %v20243_v42, 0.0  ;;  %v21336_v58 = vld [vmem:[#allocation85_spill] sm:$0xff]  ;;  %v21337_v5 = vld [vmem:[#allocation86_spill] sm:$0xff] }
 0xbeb   :  { %10672 = vst [vmem:[#allocation9 + $0xb0] sm:$0xff] %v10608_v53  ;;  %10673 = vst [vmem:[#allocation9 + $0xb8] sm:$0xff] %v10609_v34  ;;  %v10627_v18 = vmax.f32 %v21336_v58, 0.0  ;;  %v10628_v39 = vmax.f32 %v21337_v5, 0.0  ;;  %v21338_v45 = vld [vmem:[#allocation87_spill] sm:$0xff]  ;;  %v10630_v17 = vmax.f32 %v20255_v14, 0.0 }
 0xbec   :  { %10674 = vst [vmem:[#allocation9 + $0xc0] sm:$0xff] %v10610_v22  ;;  %10675 = vst [vmem:[#allocation9 + $0xc8] sm:$0xff] %v10611_v38  ;;  %v10629_v15 = vmax.f32 %v21338_v45, 0.0  ;;  %v10631_v46 = vmax.f32 %v20258_v32, 0.0  ;;  %v21339_v26 = vld [vmem:[#allocation88_spill] sm:$0xff]  ;;  %v21340_v1 = vld [vmem:[#allocation89_spill] sm:$0xff] }
 0xbed   :  { %10676 = vst [vmem:[#allocation9 + $0xd0] sm:$0xff] %v10612_v12  ;;  %10677 = vst [vmem:[#allocation9 + $0xd8] sm:$0xff] %v10613_v49  ;;  %v10632_v42 = vmax.f32 %v21339_v26, 0.0  ;;  %v10633_v24 = vmax.f32 %v21340_v1, 0.0  ;;  %v10634_v4 = vmax.f32 %v20267_v44, 0.0  ;;  %v10635_v55 = vmax.f32 %v20270_v35, 0.0 }
 0xbee   :  { %10678 = vst [vmem:[#allocation9 + $0xe0] sm:$0xff] %v10614_v8  ;;  %10679 = vst [vmem:[#allocation9 + $0xe8] sm:$0xff] %v10615_v43  ;;  %v10636_v14 = vmax.f32 %v20273_v52, 0.0  ;;  %v10637_v63 = vmax.f32 %v20276_v6, 0.0  ;;  %v10638_v13 = vmax.f32 %v20279_v37, 0.0  ;;  %v10639_v32 = vmax.f32 %v20282_v57, 0.0 }
 0xbef   :  { %10680 = vst [vmem:[#allocation9 + $0xf0] sm:$0xff] %v10616_v3  ;;  %10681 = vst [vmem:[#allocation9 + $0xf8] sm:$0xff] %v10617_v62  ;;  %v10640_v44 = vmax.f32 %v20285_v28, 0.0  ;;  %v10641_v51 = vmax.f32 %v20288_v9, 0.0  ;;  %v10642_v35 = vmax.f32 %v20291_v7, 0.0  ;;  %v10643_v52 = vmax.f32 %v20294_v54, 0.0 }
 0xbf0   :  { %10682 = vst [vmem:[#allocation9 + $0x100] sm:$0xff] %v10618_v31  ;;  %10683 = vst [vmem:[#allocation9 + $0x108] sm:$0xff] %v10619_v16  ;;  %v10644_v6 = vmax.f32 %v20297_v40, 0.0  ;;  %v10645_v37 = vmax.f32 %v20300_v11, 0.0  ;;  %v10646_v30 = vmax.f32 %v20303_v19, 0.0  ;;  %v10647_v28 = vmax.f32 %v20306_v59, 0.0 }
 0xbf1   :  { %10684 = vst [vmem:[#allocation9 + $0x110] sm:$0xff] %v10620_v25  ;;  %10685 = vst [vmem:[#allocation9 + $0x118] sm:$0xff] %v10621_v29  ;;  %v10649_v57 = vmax.f32 %v20309_v41, 0.0 }
 0xbf2   :  { %10686 = vst [vmem:[#allocation9 + $0x120] sm:$0xff] %v10622_v10  ;;  %10687 = vst [vmem:[#allocation9 + $0x128] sm:$0xff] %v10623_v0 }
 0xbf3   :  { %10688 = vst [vmem:[#allocation9 + $0x130] sm:$0xff] %v10624_v50  ;;  %10689 = vst [vmem:[#allocation9 + $0x138] sm:$0xff] %v10625_v60 }
 0xbf4   :  { %10690 = vst [vmem:[#allocation9 + $0x140] sm:$0xff] %v10626_v2  ;;  %10691 = vst [vmem:[#allocation9 + $0x148] sm:$0xff] %v10627_v18 }
 0xbf5   :  { %10692 = vst [vmem:[#allocation9 + $0x150] sm:$0xff] %v10628_v39  ;;  %10693 = vst [vmem:[#allocation9 + $0x158] sm:$0xff] %v10629_v15 }
 0xbf6   :  { %10694 = vst [vmem:[#allocation9 + $0x160] sm:$0xff] %v10630_v17  ;;  %10695 = vst [vmem:[#allocation9 + $0x168] sm:$0xff] %v10631_v46 }
 0xbf7   :  { %10696 = vst [vmem:[#allocation9 + $0x170] sm:$0xff] %v10632_v42  ;;  %10697 = vst [vmem:[#allocation9 + $0x178] sm:$0xff] %v10633_v24 }
 0xbf8   :  { %10698 = vst [vmem:[#allocation9 + $0x180] sm:$0xff] %v10634_v4  ;;  %10699 = vst [vmem:[#allocation9 + $0x188] sm:$0xff] %v10635_v55 }
 0xbf9   :  { %10700 = vst [vmem:[#allocation9 + $0x190] sm:$0xff] %v10636_v14  ;;  %10701 = vst [vmem:[#allocation9 + $0x198] sm:$0xff] %v10637_v63 }
 0xbfa   :  { %10702 = vst [vmem:[#allocation9 + $0x1a0] sm:$0xff] %v10638_v13  ;;  %10703 = vst [vmem:[#allocation9 + $0x1a8] sm:$0xff] %v10639_v32 }
 0xbfb   :  { %10704 = vst [vmem:[#allocation9 + $0x1b0] sm:$0xff] %v10640_v44  ;;  %10705 = vst [vmem:[#allocation9 + $0x1b8] sm:$0xff] %v10641_v51 }
 0xbfc   :  { %10706 = vst [vmem:[#allocation9 + $0x1c0] sm:$0xff] %v10642_v35  ;;  %10707 = vst [vmem:[#allocation9 + $0x1c8] sm:$0xff] %v10643_v52 }
 0xbfd   :  { %10708 = vst [vmem:[#allocation9 + $0x1d0] sm:$0xff] %v10644_v6  ;;  %10709 = vst [vmem:[#allocation9 + $0x1d8] sm:$0xff] %v10645_v37 }
 0xbfe   :  { %10710 = vst [vmem:[#allocation9 + $0x1e0] sm:$0xff] %v10646_v30  ;;  %10711 = vst [vmem:[#allocation9 + $0x1e8] sm:$0xff] %v10647_v28 }
 0xbff   :  { %10713 = vst [vmem:[#allocation9 + $0x1f8] sm:$0xff] %v10649_v57 }
 0xc00   :  { %16167 = shalt.err (!%p16164_p0)
}
 0xc01   :  { %s16168_s24 = scalar_lea.hbm %s20396_s7, 8192 }
 0xc02   :  { %p16169_p1 = scmp.ne.s32.totalorder %s20396_s7, %s16168_s24  ;;  %p16172_p2 = scmp.lt.u32.totalorder %s16168_s24, %s20396_s7 }
 0xc04   :  { %p16174_p3 = pnand %p16172_p2, %p16169_p1 }
 0xc06   :  { %16177 = shalt.err (!%p16174_p3)
}
 0xc07   :  { %10725 = dma.vmem_to_hbm [thread:$0]  %s10720_s6, 8192, %s20396_s7, [#allocation5], %s16186_s13, %s16186_s13, %s16187_s14  }
 0xc08   :  { %16182 = dma.done.wait [#allocation5], 8192  }
 0xc09   :  { %16183 = vsyncadd [#allocation5], 4294959104 }
 0xc0a   :  { %10729 = vsyncpa [#allocation4], 1 }
 0xc0b   :  { %10730 = vsyncpa [#allocation7], 1 }
 0xc0c   :  { %10731 = vsyncpa [#allocation5], 1 }

</bundles_post_ra>
